<compile_context>
chip_gen: v5e
topology: v5e:2x2
jax: 0.10.0
libtpu: 0.0.40
codegen_flags: <defaults>
</compile_context>

<pallas_src>
import functools

import numpy as np
import jax
import jax.numpy as jnp
from jax.experimental import pallas as pl
from jax.experimental.pallas import tpu as pltpu

EPS = 1e-5


# ----------------------------------------------------------------------------
# Trace-time constants (numpy): upsample matrix, interior mask
# ----------------------------------------------------------------------------
def _bilinear_matrix(n_in, n_out):
    """(n_out, n_in) 1-D bilinear interpolation matrix, align_corners=True."""
    A = np.zeros((n_out, n_in), np.float64)
    if n_in == 1:
        A[:, 0] = 1.0
        return A.astype(np.float32)
    src = np.arange(n_out, dtype=np.float64) * (n_in - 1) / (n_out - 1)
    i0 = np.clip(np.floor(src).astype(np.int64), 0, n_in - 1)
    i1 = np.minimum(i0 + 1, n_in - 1)
    t = src - i0
    A[np.arange(n_out), i0] += 1.0 - t
    A[np.arange(n_out), i1] += t
    return A.astype(np.float32)


def _upsample_to_padded_matrix(H, W, Ho, Wo):
    """(H*W, (Ho+2)*(Wo+2)) matrix M such that x_flat @ M equals the bilinear
    x2 upsample of x scattered into the interior of a zero-padded plane (the
    1-pixel halo the 3x3 conv needs)."""
    # TODO(synk): for large resolutions (Ho,Wo >= ~128) this dense kron matrix
    # no longer fits VMEM (esp. v7x, 64 MiB); switch to a separable two-stage
    # upsample plus row-band tiling of the conv matmuls.
    Ah = _bilinear_matrix(H, Ho)                       # (Ho, H)
    Aw = _bilinear_matrix(W, Wo)                       # (Wo, W)
    U = np.kron(Ah, Aw)                                # (Ho*Wo, H*W)
    Hp, Wp = Ho + 2, Wo + 2
    M = np.zeros((H * W, Hp * Wp), np.float32)
    yy, xx = np.meshgrid(np.arange(Ho), np.arange(Wo), indexing="ij")
    q = ((yy + 1) * Wp + (xx + 1)).reshape(-1)         # interior flat positions
    M[:, q] = U.T
    return M


def _interior_mask(Ho, Wo):
    """(1, L) 0/1 mask over the computed flat range [Wp+1, Sp-Wp-1): 1 on real
    output columns, 0 on left/right halo columns (keeps conv1's output halo
    zero so conv2 sees correct zero padding)."""
    Wp = Wo + 2
    Sp = (Ho + 2) * Wp
    L = Sp - 2 * (Wp + 1)
    q = np.arange(L) + (Wp + 1)
    x = q % Wp
    return ((x >= 1) & (x <= Wo)).astype(np.float32)[None, :]


# ----------------------------------------------------------------------------
# Fused Up-block kernel: upsample + (implicit) concat + DoubleConv
# ----------------------------------------------------------------------------
def _up_block_kernel(x_ref, skip_ref, upad_ref, mask_ref,
                     w1s_ref, w1u_ref, b1_ref, w2_ref, b2_ref, o_ref,
                     up_ref, h1_ref, *, Wp):
    # Per grid step (= one batch element):
    #   x_ref    (1, C, H*W)   bf16  low-res input (NCHW-flat)
    #   skip_ref (1, C, Sp)    bf16  skip, already zero-padded to (Hp, Wp) flat
    #   upad_ref (H*W, Sp)     bf16  upsample -> padded-plane matrix
    #   mask_ref (1, L)        f32   interior mask for conv1's output strip
    #   w1s_ref  (M, 9*C)      bf16  conv1 weights (skip half), tap-major
    #   w1u_ref  (M, 9*C)      bf16  conv1 weights (upsample half), tap-major
    #   b1_ref   (M, 1)        f32   conv1 folded bias
    #   w2_ref   (Cout, 9*M)   bf16  conv2 weights, tap-major
    #   b2_ref   (Cout, 1)     f32   conv2 folded bias
    #   o_ref    (1, Cout, L)  f32   raw conv2 strip (halo cols stripped in XLA)
    #   up_ref   (C, Sp)       bf16  scratch: zero-padded upsampled plane
    #   h1_ref   (M, Sp)       bf16  scratch: zero-padded conv1 output plane
    C = skip_ref.shape[1]
    M = h1_ref.shape[0]
    Cout = o_ref.shape[1]
    Sp = up_ref.shape[1]
    L = mask_ref.shape[1]
    q0 = Wp + 1                                        # first computed flat position
    taps = [(dy - 1) * Wp + (dx - 1) for dy in range(3) for dx in range(3)]

    # ---- bilinear x2 upsample (align_corners=True): one MXU matmul landing
    #      directly in the zero-padded plane (halo columns of upad are zero) ---
    up_ref[...] = jnp.dot(x_ref[0], upad_ref[...],
                          preferred_element_type=jnp.float32).astype(jnp.bfloat16)

    skip_p = skip_ref[0]                               # (C, Sp), halo already zero

    # ---- conv1 (3x3, pad 1) + folded BN + ReLU: per-tap accumulation ---------
    acc1 = jnp.zeros((M, L), jnp.float32)
    for t, s in enumerate(taps):
        lo = q0 + s
        acc1 += jnp.dot(w1s_ref[:, t * C:(t + 1) * C], skip_p[:, lo:lo + L],
                        preferred_element_type=jnp.float32)
        acc1 += jnp.dot(w1u_ref[:, t * C:(t + 1) * C], up_ref[:, lo:lo + L],
                        preferred_element_type=jnp.float32)
    y1 = jnp.maximum(acc1 + b1_ref[...], 0.0) * mask_ref[...]

    # conv1 plane: tiny halo prefix/suffix zeroed, interior written in one store
    h1_ref[:, 0:q0] = jnp.zeros((M, q0), jnp.bfloat16)
    h1_ref[:, q0 + L:Sp] = jnp.zeros((M, Sp - q0 - L), jnp.bfloat16)
    h1_ref[:, q0:q0 + L] = y1.astype(jnp.bfloat16)

    # ---- conv2 (3x3, pad 1) + folded BN + ReLU: per-tap accumulation ---------
    acc2 = jnp.zeros((Cout, L), jnp.float32)
    for t, s in enumerate(taps):
        lo = q0 + s
        acc2 += jnp.dot(w2_ref[:, t * M:(t + 1) * M], h1_ref[:, lo:lo + L],
                        preferred_element_type=jnp.float32)
    # single lane-dense store of the raw strip
    o_ref[0] = jnp.maximum(acc2 + b2_ref[...], 0.0)


# ----------------------------------------------------------------------------
# Wrapper: parameter folding + pallas_call per Up block
# ----------------------------------------------------------------------------
def _fold_conv_bn(w_oihw, b, gamma, beta, mean, var):
    """Fold eval-mode BN into the conv: (Cout, 9*Cin) bf16 weights laid out
    tap-major (dy, dx, cin), (Cout, 1) f32 bias."""
    cout = w_oihw.shape[0]
    scale = gamma / jnp.sqrt(var + EPS)                        # (Cout,)
    w = jnp.transpose(w_oihw, (0, 2, 3, 1)).reshape(cout, -1)  # (Cout, 9*Cin)
    w = w * scale[:, None]
    bias = (b - mean) * scale + beta
    return w.astype(jnp.bfloat16), bias.astype(jnp.float32)[:, None]


def up_block(x_flat, skip_nchw, p, Ho, Wo):
    """One fused Up block: upsample x2 + concat + DoubleConv, all on-chip."""
    N, C, S = x_flat.shape
    H, W = Ho // 2, Wo // 2
    assert S == H * W and skip_nchw.shape == (N, C, Ho, Wo)
    M = p["conv1_w"].shape[0]
    Cout = p["conv2_w"].shape[0]
    Hp, Wp = Ho + 2, Wo + 2
    Sp = Hp * Wp
    L = Sp - 2 * (Wp + 1)                              # == Ho * Wp - 2

    upad = jnp.asarray(_upsample_to_padded_matrix(H, W, Ho, Wo), jnp.bfloat16)
    mask = jnp.asarray(_interior_mask(Ho, Wo), jnp.float32)

    w1, b1 = _fold_conv_bn(p["conv1_w"], p["conv1_b"], p["conv1_gamma"],
                           p["conv1_beta"], p["conv1_mean"], p["conv1_var"])
    # split conv1 weights into the skip half and the upsample half of cat([skip, up])
    w1 = w1.reshape(M, 9, 2 * C)
    w1s = w1[:, :, :C].reshape(M, 9 * C)
    w1u = w1[:, :, C:].reshape(M, 9 * C)
    w2, b2 = _fold_conv_bn(p["conv2_w"], p["conv2_b"], p["conv2_gamma"],
                           p["conv2_beta"], p["conv2_mean"], p["conv2_var"])

    # bf16 activations into the kernel; skip is pre-padded (cheap fused XLA pad)
    x_bf = x_flat.astype(jnp.bfloat16)
    skip_pad = jnp.pad(skip_nchw, ((0, 0), (0, 0), (1, 1), (1, 1)))
    skip_pad = skip_pad.reshape(N, C, Sp).astype(jnp.bfloat16)

    kernel = functools.partial(_up_block_kernel, Wp=Wp)
    raw = pl.pallas_call(
        kernel,
        out_shape=jax.ShapeDtypeStruct((N, Cout, L), jnp.float32),
        grid=(N,),
        in_specs=[
            pl.BlockSpec((1, C, S), lambda n: (n, 0, 0)),
            pl.BlockSpec((1, C, Sp), lambda n: (n, 0, 0)),
            pl.BlockSpec((S, Sp), lambda n: (0, 0)),
            pl.BlockSpec((1, L), lambda n: (0, 0)),
            pl.BlockSpec((M, 9 * C), lambda n: (0, 0)),
            pl.BlockSpec((M, 9 * C), lambda n: (0, 0)),
            pl.BlockSpec((M, 1), lambda n: (0, 0)),
            pl.BlockSpec((Cout, 9 * M), lambda n: (0, 0)),
            pl.BlockSpec((Cout, 1), lambda n: (0, 0)),
        ],
        out_specs=pl.BlockSpec((1, Cout, L), lambda n: (n, 0, 0)),
        scratch_shapes=[
            pltpu.VMEM((C, Sp), jnp.bfloat16),         # padded upsampled plane
            pltpu.VMEM((M, Sp), jnp.bfloat16),         # padded conv1 output plane
        ],
        compiler_params=pltpu.CompilerParams(
            dimension_semantics=("parallel",),
            vmem_limit_bytes=48 * 1024 * 1024),
    )(x_bf, skip_pad, upad, mask, w1s, w1u, b1, w2, b2)

    # strip halo columns with cheap XLA ops: raw index = i*Wp + j, j in [0, Wo)
    out = jnp.pad(raw, ((0, 0), (0, 0), (0, 2)))       # (N, Cout, Ho*Wp)
    out = out.reshape(N, Cout, Ho, Wp)[:, :, :, :Wo]   # (N, Cout, Ho, Wo)
    return out


def decoder_forward(x_nchw, skips_nchw, params):
    """Decoder.forward: returns (final, outs), NCHW, matching the PyTorch module."""
    N, C, H, W = x_nchw.shape
    x_flat = x_nchw.reshape(N, C, H * W)
    outs = []
    for skip, p in zip(skips_nchw, params):
        _, Cs, Ho, Wo = skip.shape
        out = up_block(x_flat, skip, p, Ho, Wo)        # (N, Cout, Ho, Wo) f32
        outs.append(out)
        x_flat = out.reshape(N, out.shape[1], Ho * Wo)
    # StochasticDepth(mode='batch') is identity at inference / dp_rate=0.
    # TODO(synk): fold the batch dim into the matmul lane axis (single grid
    # step) to amortize per-step overhead for very small channel counts.
    return outs[-1], outs


# ----------------------------------------------------------------------------
# Deterministic parameter init (synthetic, not a checkpoint load)
# ----------------------------------------------------------------------------
def init_decoder_params(key, dims):
    params = []
    for i in range(len(dims) - 1):
        cin, mid, cout = 2 * dims[i], dims[i], dims[i + 1]
        layer = {}
        for name, (ci, co) in (("conv1", (cin, mid)), ("conv2", (mid, cout))):
            key, kw, kb, kg, kbe, km, kv = jax.random.split(key, 7)
            layer[f"{name}_w"] = 0.1 * jax.random.normal(kw, (co, ci, 3, 3), jnp.float32)
            layer[f"{name}_b"] = 0.1 * jax.random.normal(kb, (co,), jnp.float32)
            layer[f"{name}_gamma"] = 1.0 + 0.1 * jax.random.normal(kg, (co,), jnp.float32)
            layer[f"{name}_beta"] = 0.1 * jax.random.normal(kbe, (co,), jnp.float32)
            layer[f"{name}_mean"] = 0.05 * jax.random.normal(km, (co,), jnp.float32)
            layer[f"{name}_var"] = 1.0 + 0.1 * jnp.abs(jax.random.normal(kv, (co,), jnp.float32))
        params.append(layer)
    return params


# ----------------------------------------------------------------------------
# Pure-JAX f32 reference (independent path: gather upsample + lax.conv)
# ----------------------------------------------------------------------------
def upsample_x2_bilinear_ac(x_nhwc):
    N, H, W, C = x_nhwc.shape
    Ho, Wo = 2 * H, 2 * W

    def coords(n_in, n_out):
        if n_in == 1:
            return jnp.zeros((n_out,), jnp.float32)
        return jnp.arange(n_out, dtype=jnp.float32) * (n_in - 1) / (n_out - 1)

    ys, xs = coords(H, Ho), coords(W, Wo)
    y0 = jnp.floor(ys).astype(jnp.int32)
    y1 = jnp.minimum(y0 + 1, H - 1)
    wy = (ys - y0.astype(jnp.float32))[None, :, None, None]
    x0 = jnp.floor(xs).astype(jnp.int32)
    x1 = jnp.minimum(x0 + 1, W - 1)
    wx = (xs - x0.astype(jnp.float32))[None, None, :, None]

    v = x_nhwc[:, y0, :, :] * (1.0 - wy) + x_nhwc[:, y1, :, :] * wy
    return v[:, :, x0, :] * (1.0 - wx) + v[:, :, x1, :] * wx


def _ref_conv_bn_relu(x_nhwc, w_oihw, b, gamma, beta, mean, var):
    w = jnp.transpose(w_oihw, (2, 3, 1, 0))            # HWIO
    y = jax.lax.conv_general_dilated(
        x_nhwc, w, (1, 1), "SAME",
        dimension_numbers=("NHWC", "HWIO", "NHWC"))
    y = y + b
    y = (y - mean) * (gamma / jnp.sqrt(var + EPS)) + beta
    return jnp.maximum(y, 0.0)


def _ref_decoder(x_nchw, skips_nchw, params):
    x = jnp.transpose(x_nchw, (0, 2, 3, 1))
    for i, p in enumerate(params):
        x1 = upsample_x2_bilinear_ac(x)
        skip = jnp.transpose(skips_nchw[i], (0, 2, 3, 1))
        x = jnp.concatenate([skip, x1], axis=-1)
        x = _ref_conv_bn_relu(x, p["conv1_w"], p["conv1_b"], p["conv1_gamma"],
                              p["conv1_beta"], p["conv1_mean"], p["conv1_var"])
        x = _ref_conv_bn_relu(x, p["conv2_w"], p["conv2_b"], p["conv2_gamma"],
                              p["conv2_beta"], p["conv2_mean"], p["conv2_var"])
    return jnp.transpose(x, (0, 3, 1, 2))


# ----------------------------------------------------------------------------
if __name__ == "__main__":
    dims = [8, 8, 4]                 # Decoder([8, 8, 4]) -> two Up blocks
    N, H, W = 2, 8, 8                # coarsest feature map: (2, 8, 8, 8) NCHW

    key = jax.random.PRNGKey(0)
    key, kx, ks0, ks1 = jax.random.split(key, 4)
    x = jax.random.normal(kx, (N, dims[0], H, W), jnp.float32)
    skips = [
        jax.random.normal(ks0, (N, dims[0], 2 * H, 2 * W), jnp.float32),
        jax.random.normal(ks1, (N, dims[1], 4 * H, 4 * W), jnp.float32),
    ]
    params = init_decoder_params(key, dims)

    fwd = jax.jit(decoder_forward)
    final, outs = fwd(x, skips, params)
    final = jax.block_until_ready(final)

    # sanity check against an independent plain-JAX f32 reference
    # (kernel uses bf16 MXU operands with f32 accumulation -> loose tolerance)
    ref_final = jax.block_until_ready(_ref_decoder(x, skips, params))
    np.testing.assert_allclose(np.asarray(final), np.asarray(ref_final),
                               rtol=5e-2, atol=5e-2)

    assert final.shape == (N, dims[-1], 4 * H, 4 * W)
    assert outs[0].shape == (N, dims[1], 2 * H, 2 * W)
    print("KERNEL_OK")
</pallas_src>

<mosaic_0001>
module attributes {stable_mosaic.version = 11 : i64} {
  func.func @_up_block_kernel(%arg0: i32, %arg1: memref<1x8x64xbf16, #tpu.memory_space<vmem>>, %arg2: memref<1x8x324xbf16, #tpu.memory_space<vmem>>, %arg3: memref<64x324xbf16, #tpu.memory_space<vmem>>, %arg4: memref<1x286xf32, #tpu.memory_space<vmem>>, %arg5: memref<8x72xbf16, #tpu.memory_space<vmem>>, %arg6: memref<8x72xbf16, #tpu.memory_space<vmem>>, %arg7: memref<8x1xf32, #tpu.memory_space<vmem>>, %arg8: memref<8x72xbf16, #tpu.memory_space<vmem>>, %arg9: memref<8x1xf32, #tpu.memory_space<vmem>>, %arg10: memref<1x8x286xf32, #tpu.memory_space<vmem>>, %arg11: memref<8x324xbf16, #tpu.memory_space<vmem>>, %arg12: memref<8x324xbf16, #tpu.memory_space<vmem>>) attributes {dimension_semantics = [#tpu.dimension_semantics<parallel>], iteration_bounds = array<i64: 2>, scalar_prefetch = 0 : i64, scratch_operands = 2 : i64, tpu.core_type = #tpu.core_type<tc>, window_params = [{transform_indices = @transform_0, window_bounds = array<i64: 1, 8, 64>}, {transform_indices = @transform_1, window_bounds = array<i64: 1, 8, 324>}, {pipeline_mode = #tpu.pipeline_mode<synchronous>, transform_indices = @transform_2, window_bounds = array<i64: 64, 324>}, {pipeline_mode = #tpu.pipeline_mode<synchronous>, transform_indices = @transform_3, window_bounds = array<i64: 1, 286>}, {pipeline_mode = #tpu.pipeline_mode<synchronous>, transform_indices = @transform_4, window_bounds = array<i64: 8, 72>}, {pipeline_mode = #tpu.pipeline_mode<synchronous>, transform_indices = @transform_5, window_bounds = array<i64: 8, 72>}, {pipeline_mode = #tpu.pipeline_mode<synchronous>, transform_indices = @transform_6, window_bounds = array<i64: 8, 1>}, {pipeline_mode = #tpu.pipeline_mode<synchronous>, transform_indices = @transform_7, window_bounds = array<i64: 8, 72>}, {pipeline_mode = #tpu.pipeline_mode<synchronous>, transform_indices = @transform_8, window_bounds = array<i64: 8, 1>}, {transform_indices = @transform_9, window_bounds = array<i64: 1, 8, 286>}]} {
    %c0 = arith.constant 0 : index
    %c0_0 = arith.constant 0 : index
    %c0_1 = arith.constant 0 : index
    %0 = vector.load %arg1[%c0, %c0_0, %c0_1] : memref<1x8x64xbf16, #tpu.memory_space<vmem>>, vector<1x8x64xbf16>
    %1 = vector.shape_cast %0 : vector<1x8x64xbf16> to vector<8x64xbf16>
    %c0_2 = arith.constant 0 : index
    %c0_3 = arith.constant 0 : index
    %2 = vector.load %arg3[%c0_2, %c0_3] : memref<64x324xbf16, #tpu.memory_space<vmem>>, vector<64x324xbf16>
    %cst = arith.constant dense<0.000000e+00> : vector<8x324xf32>
    %3 = tpu.matmul %1, %2, %cst {dimension_numbers = #tpu.dot_dimension_numbers<[1], [0], [0], [1], [0, 0, 1, 1], [], []>} : vector<8x64xbf16>, vector<64x324xbf16>, vector<8x324xf32> -> vector<8x324xf32>
    %4 = arith.truncf %3 : vector<8x324xf32> to vector<8x324xbf16>
    %c0_4 = arith.constant 0 : index
    %c0_5 = arith.constant 0 : index
    %5 = vector.load %arg11[%c0_4, %c0_5] : memref<8x324xbf16, #tpu.memory_space<vmem>>, vector<8x324xbf16>
    tpu.vector_store %arg11[%c0_4, %c0_5], %4 {strides = array<i32>} : memref<8x324xbf16, #tpu.memory_space<vmem>>, vector<8x324xbf16>,
    %c0_6 = arith.constant 0 : index
    %c0_7 = arith.constant 0 : index
    %c0_8 = arith.constant 0 : index
    %6 = vector.load %arg2[%c0_6, %c0_7, %c0_8] : memref<1x8x324xbf16, #tpu.memory_space<vmem>>, vector<1x8x324xbf16>
    %7 = vector.shape_cast %6 : vector<1x8x324xbf16> to vector<8x324xbf16>
    %cst_9 = arith.constant 0.000000e+00 : f32
    %8 = vector.broadcast %cst_9 : f32 to vector<8x286xf32>
    %c0_10 = arith.constant 0 : index
    %c0_11 = arith.constant 0 : index
    %9 = vector.load %arg5[%c0_10, %c0_11] : memref<8x72xbf16, #tpu.memory_space<vmem>>, vector<8x8xbf16>
    %10 = vector.extract_strided_slice %7 {offsets = [0, 0], sizes = [8, 286], strides = [1, 1]} : vector<8x324xbf16> to vector<8x286xbf16>
    %cst_12 = arith.constant dense<0.000000e+00> : vector<8x286xf32>
    %11 = tpu.matmul %9, %10, %cst_12 {dimension_numbers = #tpu.dot_dimension_numbers<[1], [0], [0], [1], [0, 0, 1, 1], [], []>} : vector<8x8xbf16>, vector<8x286xbf16>, vector<8x286xf32> -> vector<8x286xf32>
    %12 = arith.addf %8, %11 : vector<8x286xf32>
    %c0_13 = arith.constant 0 : index
    %c0_14 = arith.constant 0 : index
    %13 = vector.load %arg6[%c0_13, %c0_14] : memref<8x72xbf16, #tpu.memory_space<vmem>>, vector<8x8xbf16>
    %c0_15 = arith.constant 0 : index
    %c0_16 = arith.constant 0 : index
    %14 = vector.load %arg11[%c0_15, %c0_16] : memref<8x324xbf16, #tpu.memory_space<vmem>>, vector<8x286xbf16>
    %cst_17 = arith.constant dense<0.000000e+00> : vector<8x286xf32>
    %15 = tpu.matmul %13, %14, %cst_17 {dimension_numbers = #tpu.dot_dimension_numbers<[1], [0], [0], [1], [0, 0, 1, 1], [], []>} : vector<8x8xbf16>, vector<8x286xbf16>, vector<8x286xf32> -> vector<8x286xf32>
    %16 = arith.addf %12, %15 : vector<8x286xf32>
    %c0_18 = arith.constant 0 : index
    %c8 = arith.constant 8 : index
    %17 = vector.load %arg5[%c0_18, %c8] : memref<8x72xbf16, #tpu.memory_space<vmem>>, vector<8x8xbf16>
    %18 = vector.extract_strided_slice %7 {offsets = [0, 1], sizes = [8, 286], strides = [1, 1]} : vector<8x324xbf16> to vector<8x286xbf16>
    %cst_19 = arith.constant dense<0.000000e+00> : vector<8x286xf32>
    %19 = tpu.matmul %17, %18, %cst_19 {dimension_numbers = #tpu.dot_dimension_numbers<[1], [0], [0], [1], [0, 0, 1, 1], [], []>} : vector<8x8xbf16>, vector<8x286xbf16>, vector<8x286xf32> -> vector<8x286xf32>
    %20 = arith.addf %16, %19 : vector<8x286xf32>
    %c0_20 = arith.constant 0 : index
    %c8_21 = arith.constant 8 : index
    %21 = vector.load %arg6[%c0_20, %c8_21] : memref<8x72xbf16, #tpu.memory_space<vmem>>, vector<8x8xbf16>
    %c0_22 = arith.constant 0 : index
    %c1 = arith.constant 1 : index
    %22 = vector.load %arg11[%c0_22, %c1] : memref<8x324xbf16, #tpu.memory_space<vmem>>, vector<8x286xbf16>
    %cst_23 = arith.constant dense<0.000000e+00> : vector<8x286xf32>
    %23 = tpu.matmul %21, %22, %cst_23 {dimension_numbers = #tpu.dot_dimension_numbers<[1], [0], [0], [1], [0, 0, 1, 1], [], []>} : vector<8x8xbf16>, vector<8x286xbf16>, vector<8x286xf32> -> vector<8x286xf32>
    %24 = arith.addf %20, %23 : vector<8x286xf32>
    %c0_24 = arith.constant 0 : index
    %c16 = arith.constant 16 : index
    %25 = vector.load %arg5[%c0_24, %c16] : memref<8x72xbf16, #tpu.memory_space<vmem>>, vector<8x8xbf16>
    %26 = vector.extract_strided_slice %7 {offsets = [0, 2], sizes = [8, 286], strides = [1, 1]} : vector<8x324xbf16> to vector<8x286xbf16>
    %cst_25 = arith.constant dense<0.000000e+00> : vector<8x286xf32>
    %27 = tpu.matmul %25, %26, %cst_25 {dimension_numbers = #tpu.dot_dimension_numbers<[1], [0], [0], [1], [0, 0, 1, 1], [], []>} : vector<8x8xbf16>, vector<8x286xbf16>, vector<8x286xf32> -> vector<8x286xf32>
    %28 = arith.addf %24, %27 : vector<8x286xf32>
    %c0_26 = arith.constant 0 : index
    %c16_27 = arith.constant 16 : index
    %29 = vector.load %arg6[%c0_26, %c16_27] : memref<8x72xbf16, #tpu.memory_space<vmem>>, vector<8x8xbf16>
    %c0_28 = arith.constant 0 : index
    %c2 = arith.constant 2 : index
    %30 = vector.load %arg11[%c0_28, %c2] : memref<8x324xbf16, #tpu.memory_space<vmem>>, vector<8x286xbf16>
    %cst_29 = arith.constant dense<0.000000e+00> : vector<8x286xf32>
    %31 = tpu.matmul %29, %30, %cst_29 {dimension_numbers = #tpu.dot_dimension_numbers<[1], [0], [0], [1], [0, 0, 1, 1], [], []>} : vector<8x8xbf16>, vector<8x286xbf16>, vector<8x286xf32> -> vector<8x286xf32>
    %32 = arith.addf %28, %31 : vector<8x286xf32>
    %c0_30 = arith.constant 0 : index
    %c24 = arith.constant 24 : index
    %33 = vector.load %arg5[%c0_30, %c24] : memref<8x72xbf16, #tpu.memory_space<vmem>>, vector<8x8xbf16>
    %34 = vector.extract_strided_slice %7 {offsets = [0, 18], sizes = [8, 286], strides = [1, 1]} : vector<8x324xbf16> to vector<8x286xbf16>
    %cst_31 = arith.constant dense<0.000000e+00> : vector<8x286xf32>
    %35 = tpu.matmul %33, %34, %cst_31 {dimension_numbers = #tpu.dot_dimension_numbers<[1], [0], [0], [1], [0, 0, 1, 1], [], []>} : vector<8x8xbf16>, vector<8x286xbf16>, vector<8x286xf32> -> vector<8x286xf32>
    %36 = arith.addf %32, %35 : vector<8x286xf32>
    %c0_32 = arith.constant 0 : index
    %c24_33 = arith.constant 24 : index
    %37 = vector.load %arg6[%c0_32, %c24_33] : memref<8x72xbf16, #tpu.memory_space<vmem>>, vector<8x8xbf16>
    %c0_34 = arith.constant 0 : index
    %c18 = arith.constant 18 : index
    %38 = vector.load %arg11[%c0_34, %c18] : memref<8x324xbf16, #tpu.memory_space<vmem>>, vector<8x286xbf16>
    %cst_35 = arith.constant dense<0.000000e+00> : vector<8x286xf32>
    %39 = tpu.matmul %37, %38, %cst_35 {dimension_numbers = #tpu.dot_dimension_numbers<[1], [0], [0], [1], [0, 0, 1, 1], [], []>} : vector<8x8xbf16>, vector<8x286xbf16>, vector<8x286xf32> -> vector<8x286xf32>
    %40 = arith.addf %36, %39 : vector<8x286xf32>
    %c0_36 = arith.constant 0 : index
    %c32 = arith.constant 32 : index
    %41 = vector.load %arg5[%c0_36, %c32] : memref<8x72xbf16, #tpu.memory_space<vmem>>, vector<8x8xbf16>
    %42 = vector.extract_strided_slice %7 {offsets = [0, 19], sizes = [8, 286], strides = [1, 1]} : vector<8x324xbf16> to vector<8x286xbf16>
    %cst_37 = arith.constant dense<0.000000e+00> : vector<8x286xf32>
    %43 = tpu.matmul %41, %42, %cst_37 {dimension_numbers = #tpu.dot_dimension_numbers<[1], [0], [0], [1], [0, 0, 1, 1], [], []>} : vector<8x8xbf16>, vector<8x286xbf16>, vector<8x286xf32> -> vector<8x286xf32>
    %44 = arith.addf %40, %43 : vector<8x286xf32>
    %c0_38 = arith.constant 0 : index
    %c32_39 = arith.constant 32 : index
    %45 = vector.load %arg6[%c0_38, %c32_39] : memref<8x72xbf16, #tpu.memory_space<vmem>>, vector<8x8xbf16>
    %c0_40 = arith.constant 0 : index
    %c19 = arith.constant 19 : index
    %46 = vector.load %arg11[%c0_40, %c19] : memref<8x324xbf16, #tpu.memory_space<vmem>>, vector<8x286xbf16>
    %cst_41 = arith.constant dense<0.000000e+00> : vector<8x286xf32>
    %47 = tpu.matmul %45, %46, %cst_41 {dimension_numbers = #tpu.dot_dimension_numbers<[1], [0], [0], [1], [0, 0, 1, 1], [], []>} : vector<8x8xbf16>, vector<8x286xbf16>, vector<8x286xf32> -> vector<8x286xf32>
    %48 = arith.addf %44, %47 : vector<8x286xf32>
    %c0_42 = arith.constant 0 : index
    %c40 = arith.constant 40 : index
    %49 = vector.load %arg5[%c0_42, %c40] : memref<8x72xbf16, #tpu.memory_space<vmem>>, vector<8x8xbf16>
    %50 = vector.extract_strided_slice %7 {offsets = [0, 20], sizes = [8, 286], strides = [1, 1]} : vector<8x324xbf16> to vector<8x286xbf16>
    %cst_43 = arith.constant dense<0.000000e+00> : vector<8x286xf32>
    %51 = tpu.matmul %49, %50, %cst_43 {dimension_numbers = #tpu.dot_dimension_numbers<[1], [0], [0], [1], [0, 0, 1, 1], [], []>} : vector<8x8xbf16>, vector<8x286xbf16>, vector<8x286xf32> -> vector<8x286xf32>
    %52 = arith.addf %48, %51 : vector<8x286xf32>
    %c0_44 = arith.constant 0 : index
    %c40_45 = arith.constant 40 : index
    %53 = vector.load %arg6[%c0_44, %c40_45] : memref<8x72xbf16, #tpu.memory_space<vmem>>, vector<8x8xbf16>
    %c0_46 = arith.constant 0 : index
    %c20 = arith.constant 20 : index
    %54 = vector.load %arg11[%c0_46, %c20] : memref<8x324xbf16, #tpu.memory_space<vmem>>, vector<8x286xbf16>
    %cst_47 = arith.constant dense<0.000000e+00> : vector<8x286xf32>
    %55 = tpu.matmul %53, %54, %cst_47 {dimension_numbers = #tpu.dot_dimension_numbers<[1], [0], [0], [1], [0, 0, 1, 1], [], []>} : vector<8x8xbf16>, vector<8x286xbf16>, vector<8x286xf32> -> vector<8x286xf32>
    %56 = arith.addf %52, %55 : vector<8x286xf32>
    %c0_48 = arith.constant 0 : index
    %c48 = arith.constant 48 : index
    %57 = vector.load %arg5[%c0_48, %c48] : memref<8x72xbf16, #tpu.memory_space<vmem>>, vector<8x8xbf16>
    %58 = vector.extract_strided_slice %7 {offsets = [0, 36], sizes = [8, 286], strides = [1, 1]} : vector<8x324xbf16> to vector<8x286xbf16>
    %cst_49 = arith.constant dense<0.000000e+00> : vector<8x286xf32>
    %59 = tpu.matmul %57, %58, %cst_49 {dimension_numbers = #tpu.dot_dimension_numbers<[1], [0], [0], [1], [0, 0, 1, 1], [], []>} : vector<8x8xbf16>, vector<8x286xbf16>, vector<8x286xf32> -> vector<8x286xf32>
    %60 = arith.addf %56, %59 : vector<8x286xf32>
    %c0_50 = arith.constant 0 : index
    %c48_51 = arith.constant 48 : index
    %61 = vector.load %arg6[%c0_50, %c48_51] : memref<8x72xbf16, #tpu.memory_space<vmem>>, vector<8x8xbf16>
    %c0_52 = arith.constant 0 : index
    %c36 = arith.constant 36 : index
    %62 = vector.load %arg11[%c0_52, %c36] : memref<8x324xbf16, #tpu.memory_space<vmem>>, vector<8x286xbf16>
    %cst_53 = arith.constant dense<0.000000e+00> : vector<8x286xf32>
    %63 = tpu.matmul %61, %62, %cst_53 {dimension_numbers = #tpu.dot_dimension_numbers<[1], [0], [0], [1], [0, 0, 1, 1], [], []>} : vector<8x8xbf16>, vector<8x286xbf16>, vector<8x286xf32> -> vector<8x286xf32>
    %64 = arith.addf %60, %63 : vector<8x286xf32>
    %c0_54 = arith.constant 0 : index
    %c56 = arith.constant 56 : index
    %65 = vector.load %arg5[%c0_54, %c56] : memref<8x72xbf16, #tpu.memory_space<vmem>>, vector<8x8xbf16>
    %66 = vector.extract_strided_slice %7 {offsets = [0, 37], sizes = [8, 286], strides = [1, 1]} : vector<8x324xbf16> to vector<8x286xbf16>
    %cst_55 = arith.constant dense<0.000000e+00> : vector<8x286xf32>
    %67 = tpu.matmul %65, %66, %cst_55 {dimension_numbers = #tpu.dot_dimension_numbers<[1], [0], [0], [1], [0, 0, 1, 1], [], []>} : vector<8x8xbf16>, vector<8x286xbf16>, vector<8x286xf32> -> vector<8x286xf32>
    %68 = arith.addf %64, %67 : vector<8x286xf32>
    %c0_56 = arith.constant 0 : index
    %c56_57 = arith.constant 56 : index
    %69 = vector.load %arg6[%c0_56, %c56_57] : memref<8x72xbf16, #tpu.memory_space<vmem>>, vector<8x8xbf16>
    %c0_58 = arith.constant 0 : index
    %c37 = arith.constant 37 : index
    %70 = vector.load %arg11[%c0_58, %c37] : memref<8x324xbf16, #tpu.memory_space<vmem>>, vector<8x286xbf16>
    %cst_59 = arith.constant dense<0.000000e+00> : vector<8x286xf32>
    %71 = tpu.matmul %69, %70, %cst_59 {dimension_numbers = #tpu.dot_dimension_numbers<[1], [0], [0], [1], [0, 0, 1, 1], [], []>} : vector<8x8xbf16>, vector<8x286xbf16>, vector<8x286xf32> -> vector<8x286xf32>
    %72 = arith.addf %68, %71 : vector<8x286xf32>
    %c0_60 = arith.constant 0 : index
    %c64 = arith.constant 64 : index
    %73 = vector.load %arg5[%c0_60, %c64] : memref<8x72xbf16, #tpu.memory_space<vmem>>, vector<8x8xbf16>
    %74 = vector.extract_strided_slice %7 {offsets = [0, 38], sizes = [8, 286], strides = [1, 1]} : vector<8x324xbf16> to vector<8x286xbf16>
    %cst_61 = arith.constant dense<0.000000e+00> : vector<8x286xf32>
    %75 = tpu.matmul %73, %74, %cst_61 {dimension_numbers = #tpu.dot_dimension_numbers<[1], [0], [0], [1], [0, 0, 1, 1], [], []>} : vector<8x8xbf16>, vector<8x286xbf16>, vector<8x286xf32> -> vector<8x286xf32>
    %76 = arith.addf %72, %75 : vector<8x286xf32>
    %c0_62 = arith.constant 0 : index
    %c64_63 = arith.constant 64 : index
    %77 = vector.load %arg6[%c0_62, %c64_63] : memref<8x72xbf16, #tpu.memory_space<vmem>>, vector<8x8xbf16>
    %c0_64 = arith.constant 0 : index
    %c38 = arith.constant 38 : index
    %78 = vector.load %arg11[%c0_64, %c38] : memref<8x324xbf16, #tpu.memory_space<vmem>>, vector<8x286xbf16>
    %cst_65 = arith.constant dense<0.000000e+00> : vector<8x286xf32>
    %79 = tpu.matmul %77, %78, %cst_65 {dimension_numbers = #tpu.dot_dimension_numbers<[1], [0], [0], [1], [0, 0, 1, 1], [], []>} : vector<8x8xbf16>, vector<8x286xbf16>, vector<8x286xf32> -> vector<8x286xf32>
    %80 = arith.addf %76, %79 : vector<8x286xf32>
    %c0_66 = arith.constant 0 : index
    %c0_67 = arith.constant 0 : index
    %81 = vector.load %arg7[%c0_66, %c0_67] : memref<8x1xf32, #tpu.memory_space<vmem>>, vector<8x1xf32>
    %82 = vector.broadcast %81 : vector<8x1xf32> to vector<8x286xf32>
    %83 = arith.addf %80, %82 : vector<8x286xf32>
    %cst_68 = arith.constant 0.000000e+00 : f32
    %84 = vector.broadcast %cst_68 : f32 to vector<8x286xf32>
    %85 = arith.maximumf %83, %84 : vector<8x286xf32>
    %c0_69 = arith.constant 0 : index
    %c0_70 = arith.constant 0 : index
    %86 = vector.load %arg4[%c0_69, %c0_70] : memref<1x286xf32, #tpu.memory_space<vmem>>, vector<1x286xf32>
    %87 = vector.broadcast %86 : vector<1x286xf32> to vector<8x286xf32>
    %88 = arith.mulf %85, %87 : vector<8x286xf32>
    %cst_71 = arith.constant 0.000000e+00 : bf16
    %89 = vector.broadcast %cst_71 : bf16 to vector<8x19xbf16>
    %c0_72 = arith.constant 0 : index
    %c0_73 = arith.constant 0 : index
    %90 = vector.load %arg12[%c0_72, %c0_73] : memref<8x324xbf16, #tpu.memory_space<vmem>>, vector<8x19xbf16>
    tpu.vector_store %arg12[%c0_72, %c0_73], %89 {strides = array<i32>} : memref<8x324xbf16, #tpu.memory_space<vmem>>, vector<8x19xbf16>,
    %cst_74 = arith.constant 0.000000e+00 : bf16
    %91 = vector.broadcast %cst_74 : bf16 to vector<8x19xbf16>
    %c0_75 = arith.constant 0 : index
    %c305 = arith.constant 305 : index
    %92 = vector.load %arg12[%c0_75, %c305] : memref<8x324xbf16, #tpu.memory_space<vmem>>, vector<8x19xbf16>
    tpu.vector_store %arg12[%c0_75, %c305], %91 {strides = array<i32>} : memref<8x324xbf16, #tpu.memory_space<vmem>>, vector<8x19xbf16>,
    %93 = arith.truncf %88 : vector<8x286xf32> to vector<8x286xbf16>
    %c0_76 = arith.constant 0 : index
    %c19_77 = arith.constant 19 : index
    %94 = vector.load %arg12[%c0_76, %c19_77] : memref<8x324xbf16, #tpu.memory_space<vmem>>, vector<8x286xbf16>
    tpu.vector_store %arg12[%c0_76, %c19_77], %93 {strides = array<i32>} : memref<8x324xbf16, #tpu.memory_space<vmem>>, vector<8x286xbf16>,
    %cst_78 = arith.constant 0.000000e+00 : f32
    %95 = vector.broadcast %cst_78 : f32 to vector<8x286xf32>
    %c0_79 = arith.constant 0 : index
    %c0_80 = arith.constant 0 : index
    %96 = vector.load %arg8[%c0_79, %c0_80] : memref<8x72xbf16, #tpu.memory_space<vmem>>, vector<8x8xbf16>
    %c0_81 = arith.constant 0 : index
    %c0_82 = arith.constant 0 : index
    %97 = vector.load %arg12[%c0_81, %c0_82] : memref<8x324xbf16, #tpu.memory_space<vmem>>, vector<8x286xbf16>
    %cst_83 = arith.constant dense<0.000000e+00> : vector<8x286xf32>
    %98 = tpu.matmul %96, %97, %cst_83 {dimension_numbers = #tpu.dot_dimension_numbers<[1], [0], [0], [1], [0, 0, 1, 1], [], []>} : vector<8x8xbf16>, vector<8x286xbf16>, vector<8x286xf32> -> vector<8x286xf32>
    %99 = arith.addf %95, %98 : vector<8x286xf32>
    %c0_84 = arith.constant 0 : index
    %c8_85 = arith.constant 8 : index
    %100 = vector.load %arg8[%c0_84, %c8_85] : memref<8x72xbf16, #tpu.memory_space<vmem>>, vector<8x8xbf16>
    %c0_86 = arith.constant 0 : index
    %c1_87 = arith.constant 1 : index
    %101 = vector.load %arg12[%c0_86, %c1_87] : memref<8x324xbf16, #tpu.memory_space<vmem>>, vector<8x286xbf16>
    %cst_88 = arith.constant dense<0.000000e+00> : vector<8x286xf32>
    %102 = tpu.matmul %100, %101, %cst_88 {dimension_numbers = #tpu.dot_dimension_numbers<[1], [0], [0], [1], [0, 0, 1, 1], [], []>} : vector<8x8xbf16>, vector<8x286xbf16>, vector<8x286xf32> -> vector<8x286xf32>
    %103 = arith.addf %99, %102 : vector<8x286xf32>
    %c0_89 = arith.constant 0 : index
    %c16_90 = arith.constant 16 : index
    %104 = vector.load %arg8[%c0_89, %c16_90] : memref<8x72xbf16, #tpu.memory_space<vmem>>, vector<8x8xbf16>
    %c0_91 = arith.constant 0 : index
    %c2_92 = arith.constant 2 : index
    %105 = vector.load %arg12[%c0_91, %c2_92] : memref<8x324xbf16, #tpu.memory_space<vmem>>, vector<8x286xbf16>
    %cst_93 = arith.constant dense<0.000000e+00> : vector<8x286xf32>
    %106 = tpu.matmul %104, %105, %cst_93 {dimension_numbers = #tpu.dot_dimension_numbers<[1], [0], [0], [1], [0, 0, 1, 1], [], []>} : vector<8x8xbf16>, vector<8x286xbf16>, vector<8x286xf32> -> vector<8x286xf32>
    %107 = arith.addf %103, %106 : vector<8x286xf32>
    %c0_94 = arith.constant 0 : index
    %c24_95 = arith.constant 24 : index
    %108 = vector.load %arg8[%c0_94, %c24_95] : memref<8x72xbf16, #tpu.memory_space<vmem>>, vector<8x8xbf16>
    %c0_96 = arith.constant 0 : index
    %c18_97 = arith.constant 18 : index
    %109 = vector.load %arg12[%c0_96, %c18_97] : memref<8x324xbf16, #tpu.memory_space<vmem>>, vector<8x286xbf16>
    %cst_98 = arith.constant dense<0.000000e+00> : vector<8x286xf32>
    %110 = tpu.matmul %108, %109, %cst_98 {dimension_numbers = #tpu.dot_dimension_numbers<[1], [0], [0], [1], [0, 0, 1, 1], [], []>} : vector<8x8xbf16>, vector<8x286xbf16>, vector<8x286xf32> -> vector<8x286xf32>
    %111 = arith.addf %107, %110 : vector<8x286xf32>
    %c0_99 = arith.constant 0 : index
    %c32_100 = arith.constant 32 : index
    %112 = vector.load %arg8[%c0_99, %c32_100] : memref<8x72xbf16, #tpu.memory_space<vmem>>, vector<8x8xbf16>
    %c0_101 = arith.constant 0 : index
    %c19_102 = arith.constant 19 : index
    %113 = vector.load %arg12[%c0_101, %c19_102] : memref<8x324xbf16, #tpu.memory_space<vmem>>, vector<8x286xbf16>
    %cst_103 = arith.constant dense<0.000000e+00> : vector<8x286xf32>
    %114 = tpu.matmul %112, %113, %cst_103 {dimension_numbers = #tpu.dot_dimension_numbers<[1], [0], [0], [1], [0, 0, 1, 1], [], []>} : vector<8x8xbf16>, vector<8x286xbf16>, vector<8x286xf32> -> vector<8x286xf32>
    %115 = arith.addf %111, %114 : vector<8x286xf32>
    %c0_104 = arith.constant 0 : index
    %c40_105 = arith.constant 40 : index
    %116 = vector.load %arg8[%c0_104, %c40_105] : memref<8x72xbf16, #tpu.memory_space<vmem>>, vector<8x8xbf16>
    %c0_106 = arith.constant 0 : index
    %c20_107 = arith.constant 20 : index
    %117 = vector.load %arg12[%c0_106, %c20_107] : memref<8x324xbf16, #tpu.memory_space<vmem>>, vector<8x286xbf16>
    %cst_108 = arith.constant dense<0.000000e+00> : vector<8x286xf32>
    %118 = tpu.matmul %116, %117, %cst_108 {dimension_numbers = #tpu.dot_dimension_numbers<[1], [0], [0], [1], [0, 0, 1, 1], [], []>} : vector<8x8xbf16>, vector<8x286xbf16>, vector<8x286xf32> -> vector<8x286xf32>
    %119 = arith.addf %115, %118 : vector<8x286xf32>
    %c0_109 = arith.constant 0 : index
    %c48_110 = arith.constant 48 : index
    %120 = vector.load %arg8[%c0_109, %c48_110] : memref<8x72xbf16, #tpu.memory_space<vmem>>, vector<8x8xbf16>
    %c0_111 = arith.constant 0 : index
    %c36_112 = arith.constant 36 : index
    %121 = vector.load %arg12[%c0_111, %c36_112] : memref<8x324xbf16, #tpu.memory_space<vmem>>, vector<8x286xbf16>
    %cst_113 = arith.constant dense<0.000000e+00> : vector<8x286xf32>
    %122 = tpu.matmul %120, %121, %cst_113 {dimension_numbers = #tpu.dot_dimension_numbers<[1], [0], [0], [1], [0, 0, 1, 1], [], []>} : vector<8x8xbf16>, vector<8x286xbf16>, vector<8x286xf32> -> vector<8x286xf32>
    %123 = arith.addf %119, %122 : vector<8x286xf32>
    %c0_114 = arith.constant 0 : index
    %c56_115 = arith.constant 56 : index
    %124 = vector.load %arg8[%c0_114, %c56_115] : memref<8x72xbf16, #tpu.memory_space<vmem>>, vector<8x8xbf16>
    %c0_116 = arith.constant 0 : index
    %c37_117 = arith.constant 37 : index
    %125 = vector.load %arg12[%c0_116, %c37_117] : memref<8x324xbf16, #tpu.memory_space<vmem>>, vector<8x286xbf16>
    %cst_118 = arith.constant dense<0.000000e+00> : vector<8x286xf32>
    %126 = tpu.matmul %124, %125, %cst_118 {dimension_numbers = #tpu.dot_dimension_numbers<[1], [0], [0], [1], [0, 0, 1, 1], [], []>} : vector<8x8xbf16>, vector<8x286xbf16>, vector<8x286xf32> -> vector<8x286xf32>
    %127 = arith.addf %123, %126 : vector<8x286xf32>
    %c0_119 = arith.constant 0 : index
    %c64_120 = arith.constant 64 : index
    %128 = vector.load %arg8[%c0_119, %c64_120] : memref<8x72xbf16, #tpu.memory_space<vmem>>, vector<8x8xbf16>
    %c0_121 = arith.constant 0 : index
    %c38_122 = arith.constant 38 : index
    %129 = vector.load %arg12[%c0_121, %c38_122] : memref<8x324xbf16, #tpu.memory_space<vmem>>, vector<8x286xbf16>
    %cst_123 = arith.constant dense<0.000000e+00> : vector<8x286xf32>
    %130 = tpu.matmul %128, %129, %cst_123 {dimension_numbers = #tpu.dot_dimension_numbers<[1], [0], [0], [1], [0, 0, 1, 1], [], []>} : vector<8x8xbf16>, vector<8x286xbf16>, vector<8x286xf32> -> vector<8x286xf32>
    %131 = arith.addf %127, %130 : vector<8x286xf32>
    %c0_124 = arith.constant 0 : index
    %c0_125 = arith.constant 0 : index
    %132 = vector.load %arg9[%c0_124, %c0_125] : memref<8x1xf32, #tpu.memory_space<vmem>>, vector<8x1xf32>
    %133 = vector.broadcast %132 : vector<8x1xf32> to vector<8x286xf32>
    %134 = arith.addf %131, %133 : vector<8x286xf32>
    %cst_126 = arith.constant 0.000000e+00 : f32
    %135 = vector.broadcast %cst_126 : f32 to vector<8x286xf32>
    %136 = arith.maximumf %134, %135 : vector<8x286xf32>
    %c0_127 = arith.constant 0 : index
    %c0_128 = arith.constant 0 : index
    %c0_129 = arith.constant 0 : index
    %137 = vector.load %arg10[%c0_127, %c0_128, %c0_129] : memref<1x8x286xf32, #tpu.memory_space<vmem>>, vector<1x8x286xf32>
    %138 = vector.shape_cast %137 : vector<1x8x286xf32> to vector<8x286xf32>
    %139 = vector.shape_cast %136 : vector<8x286xf32> to vector<1x8x286xf32>
    tpu.vector_store %arg10[%c0_127, %c0_128, %c0_129], %139 {strides = array<i32>} : memref<1x8x286xf32, #tpu.memory_space<vmem>>, vector<1x8x286xf32>,
    return
  }
  func.func @transform_0(%arg0: i32) -> (i32, i32, i32) {
    %c0_i32 = arith.constant 0 : i32
    %c0_i32_0 = arith.constant 0 : i32
    %c0_i32_1 = arith.constant 0 : i32
    return %arg0, %c0_i32, %c0_i32_0 : i32, i32, i32
  }
  func.func @transform_1(%arg0: i32) -> (i32, i32, i32) {
    %c0_i32 = arith.constant 0 : i32
    %c0_i32_0 = arith.constant 0 : i32
    %c0_i32_1 = arith.constant 0 : i32
    return %arg0, %c0_i32, %c0_i32_0 : i32, i32, i32
  }
  func.func @transform_2(%arg0: i32) -> (i32, i32) {
    %c0_i32 = arith.constant 0 : i32
    %c0_i32_0 = arith.constant 0 : i32
    %c0_i32_1 = arith.constant 0 : i32
    return %c0_i32, %c0_i32_0 : i32, i32
  }
  func.func @transform_3(%arg0: i32) -> (i32, i32) {
    %c0_i32 = arith.constant 0 : i32
    %c0_i32_0 = arith.constant 0 : i32
    %c0_i32_1 = arith.constant 0 : i32
    return %c0_i32, %c0_i32_0 : i32, i32
  }
  func.func @transform_4(%arg0: i32) -> (i32, i32) {
    %c0_i32 = arith.constant 0 : i32
    %c0_i32_0 = arith.constant 0 : i32
    %c0_i32_1 = arith.constant 0 : i32
    return %c0_i32, %c0_i32_0 : i32, i32
  }
  func.func @transform_5(%arg0: i32) -> (i32, i32) {
    %c0_i32 = arith.constant 0 : i32
    %c0_i32_0 = arith.constant 0 : i32
    %c0_i32_1 = arith.constant 0 : i32
    return %c0_i32, %c0_i32_0 : i32, i32
  }
  func.func @transform_6(%arg0: i32) -> (i32, i32) {
    %c0_i32 = arith.constant 0 : i32
    %c0_i32_0 = arith.constant 0 : i32
    %c0_i32_1 = arith.constant 0 : i32
    return %c0_i32, %c0_i32_0 : i32, i32
  }
  func.func @transform_7(%arg0: i32) -> (i32, i32) {
    %c0_i32 = arith.constant 0 : i32
    %c0_i32_0 = arith.constant 0 : i32
    %c0_i32_1 = arith.constant 0 : i32
    return %c0_i32, %c0_i32_0 : i32, i32
  }
  func.func @transform_8(%arg0: i32) -> (i32, i32) {
    %c0_i32 = arith.constant 0 : i32
    %c0_i32_0 = arith.constant 0 : i32
    %c0_i32_1 = arith.constant 0 : i32
    return %c0_i32, %c0_i32_0 : i32, i32
  }
  func.func @transform_9(%arg0: i32) -> (i32, i32, i32) {
    %c0_i32 = arith.constant 0 : i32
    %c0_i32_0 = arith.constant 0 : i32
    %c0_i32_1 = arith.constant 0 : i32
    return %arg0, %c0_i32, %c0_i32_0 : i32, i32, i32
  }
}

module attributes {stable_mosaic.version = 11 : i64} {
  func.func @_up_block_kernel(%arg0: i32, %arg1: memref<1x8x256xbf16, #tpu.memory_space<vmem>>, %arg2: memref<1x8x1156xbf16, #tpu.memory_space<vmem>>, %arg3: memref<256x1156xbf16, #tpu.memory_space<vmem>>, %arg4: memref<1x1086xf32, #tpu.memory_space<vmem>>, %arg5: memref<8x72xbf16, #tpu.memory_space<vmem>>, %arg6: memref<8x72xbf16, #tpu.memory_space<vmem>>, %arg7: memref<8x1xf32, #tpu.memory_space<vmem>>, %arg8: memref<4x72xbf16, #tpu.memory_space<vmem>>, %arg9: memref<4x1xf32, #tpu.memory_space<vmem>>, %arg10: memref<1x4x1086xf32, #tpu.memory_space<vmem>>, %arg11: memref<8x1156xbf16, #tpu.memory_space<vmem>>, %arg12: memref<8x1156xbf16, #tpu.memory_space<vmem>>) attributes {dimension_semantics = [#tpu.dimension_semantics<parallel>], iteration_bounds = array<i64: 2>, scalar_prefetch = 0 : i64, scratch_operands = 2 : i64, tpu.core_type = #tpu.core_type<tc>, window_params = [{transform_indices = @transform_0, window_bounds = array<i64: 1, 8, 256>}, {transform_indices = @transform_1, window_bounds = array<i64: 1, 8, 1156>}, {pipeline_mode = #tpu.pipeline_mode<synchronous>, transform_indices = @transform_2, window_bounds = array<i64: 256, 1156>}, {pipeline_mode = #tpu.pipeline_mode<synchronous>, transform_indices = @transform_3, window_bounds = array<i64: 1, 1086>}, {pipeline_mode = #tpu.pipeline_mode<synchronous>, transform_indices = @transform_4, window_bounds = array<i64: 8, 72>}, {pipeline_mode = #tpu.pipeline_mode<synchronous>, transform_indices = @transform_5, window_bounds = array<i64: 8, 72>}, {pipeline_mode = #tpu.pipeline_mode<synchronous>, transform_indices = @transform_6, window_bounds = array<i64: 8, 1>}, {pipeline_mode = #tpu.pipeline_mode<synchronous>, transform_indices = @transform_7, window_bounds = array<i64: 4, 72>}, {pipeline_mode = #tpu.pipeline_mode<synchronous>, transform_indices = @transform_8, window_bounds = array<i64: 4, 1>}, {transform_indices = @transform_9, window_bounds = array<i64: 1, 4, 1086>}]} {
    %c0 = arith.constant 0 : index
    %c0_0 = arith.constant 0 : index
    %c0_1 = arith.constant 0 : index
    %0 = vector.load %arg1[%c0, %c0_0, %c0_1] : memref<1x8x256xbf16, #tpu.memory_space<vmem>>, vector<1x8x256xbf16>
    %1 = vector.shape_cast %0 : vector<1x8x256xbf16> to vector<8x256xbf16>
    %c0_2 = arith.constant 0 : index
    %c0_3 = arith.constant 0 : index
    %2 = vector.load %arg3[%c0_2, %c0_3] : memref<256x1156xbf16, #tpu.memory_space<vmem>>, vector<256x1156xbf16>
    %cst = arith.constant dense<0.000000e+00> : vector<8x1156xf32>
    %3 = tpu.matmul %1, %2, %cst {dimension_numbers = #tpu.dot_dimension_numbers<[1], [0], [0], [1], [0, 0, 1, 1], [], []>} : vector<8x256xbf16>, vector<256x1156xbf16>, vector<8x1156xf32> -> vector<8x1156xf32>
    %4 = arith.truncf %3 : vector<8x1156xf32> to vector<8x1156xbf16>
    %c0_4 = arith.constant 0 : index
    %c0_5 = arith.constant 0 : index
    %5 = vector.load %arg11[%c0_4, %c0_5] : memref<8x1156xbf16, #tpu.memory_space<vmem>>, vector<8x1156xbf16>
    tpu.vector_store %arg11[%c0_4, %c0_5], %4 {strides = array<i32>} : memref<8x1156xbf16, #tpu.memory_space<vmem>>, vector<8x1156xbf16>,
    %c0_6 = arith.constant 0 : index
    %c0_7 = arith.constant 0 : index
    %c0_8 = arith.constant 0 : index
    %6 = vector.load %arg2[%c0_6, %c0_7, %c0_8] : memref<1x8x1156xbf16, #tpu.memory_space<vmem>>, vector<1x8x1156xbf16>
    %7 = vector.shape_cast %6 : vector<1x8x1156xbf16> to vector<8x1156xbf16>
    %cst_9 = arith.constant 0.000000e+00 : f32
    %8 = vector.broadcast %cst_9 : f32 to vector<8x1086xf32>
    %c0_10 = arith.constant 0 : index
    %c0_11 = arith.constant 0 : index
    %9 = vector.load %arg5[%c0_10, %c0_11] : memref<8x72xbf16, #tpu.memory_space<vmem>>, vector<8x8xbf16>
    %10 = vector.extract_strided_slice %7 {offsets = [0, 0], sizes = [8, 1086], strides = [1, 1]} : vector<8x1156xbf16> to vector<8x1086xbf16>
    %cst_12 = arith.constant dense<0.000000e+00> : vector<8x1086xf32>
    %11 = tpu.matmul %9, %10, %cst_12 {dimension_numbers = #tpu.dot_dimension_numbers<[1], [0], [0], [1], [0, 0, 1, 1], [], []>} : vector<8x8xbf16>, vector<8x1086xbf16>, vector<8x1086xf32> -> vector<8x1086xf32>
    %12 = arith.addf %8, %11 : vector<8x1086xf32>
    %c0_13 = arith.constant 0 : index
    %c0_14 = arith.constant 0 : index
    %13 = vector.load %arg6[%c0_13, %c0_14] : memref<8x72xbf16, #tpu.memory_space<vmem>>, vector<8x8xbf16>
    %c0_15 = arith.constant 0 : index
    %c0_16 = arith.constant 0 : index
    %14 = vector.load %arg11[%c0_15, %c0_16] : memref<8x1156xbf16, #tpu.memory_space<vmem>>, vector<8x1086xbf16>
    %cst_17 = arith.constant dense<0.000000e+00> : vector<8x1086xf32>
    %15 = tpu.matmul %13, %14, %cst_17 {dimension_numbers = #tpu.dot_dimension_numbers<[1], [0], [0], [1], [0, 0, 1, 1], [], []>} : vector<8x8xbf16>, vector<8x1086xbf16>, vector<8x1086xf32> -> vector<8x1086xf32>
    %16 = arith.addf %12, %15 : vector<8x1086xf32>
    %c0_18 = arith.constant 0 : index
    %c8 = arith.constant 8 : index
    %17 = vector.load %arg5[%c0_18, %c8] : memref<8x72xbf16, #tpu.memory_space<vmem>>, vector<8x8xbf16>
    %18 = vector.extract_strided_slice %7 {offsets = [0, 1], sizes = [8, 1086], strides = [1, 1]} : vector<8x1156xbf16> to vector<8x1086xbf16>
    %cst_19 = arith.constant dense<0.000000e+00> : vector<8x1086xf32>
    %19 = tpu.matmul %17, %18, %cst_19 {dimension_numbers = #tpu.dot_dimension_numbers<[1], [0], [0], [1], [0, 0, 1, 1], [], []>} : vector<8x8xbf16>, vector<8x1086xbf16>, vector<8x1086xf32> -> vector<8x1086xf32>
    %20 = arith.addf %16, %19 : vector<8x1086xf32>
    %c0_20 = arith.constant 0 : index
    %c8_21 = arith.constant 8 : index
    %21 = vector.load %arg6[%c0_20, %c8_21] : memref<8x72xbf16, #tpu.memory_space<vmem>>, vector<8x8xbf16>
    %c0_22 = arith.constant 0 : index
    %c1 = arith.constant 1 : index
    %22 = vector.load %arg11[%c0_22, %c1] : memref<8x1156xbf16, #tpu.memory_space<vmem>>, vector<8x1086xbf16>
    %cst_23 = arith.constant dense<0.000000e+00> : vector<8x1086xf32>
    %23 = tpu.matmul %21, %22, %cst_23 {dimension_numbers = #tpu.dot_dimension_numbers<[1], [0], [0], [1], [0, 0, 1, 1], [], []>} : vector<8x8xbf16>, vector<8x1086xbf16>, vector<8x1086xf32> -> vector<8x1086xf32>
    %24 = arith.addf %20, %23 : vector<8x1086xf32>
    %c0_24 = arith.constant 0 : index
    %c16 = arith.constant 16 : index
    %25 = vector.load %arg5[%c0_24, %c16] : memref<8x72xbf16, #tpu.memory_space<vmem>>, vector<8x8xbf16>
    %26 = vector.extract_strided_slice %7 {offsets = [0, 2], sizes = [8, 1086], strides = [1, 1]} : vector<8x1156xbf16> to vector<8x1086xbf16>
    %cst_25 = arith.constant dense<0.000000e+00> : vector<8x1086xf32>
    %27 = tpu.matmul %25, %26, %cst_25 {dimension_numbers = #tpu.dot_dimension_numbers<[1], [0], [0], [1], [0, 0, 1, 1], [], []>} : vector<8x8xbf16>, vector<8x1086xbf16>, vector<8x1086xf32> -> vector<8x1086xf32>
    %28 = arith.addf %24, %27 : vector<8x1086xf32>
    %c0_26 = arith.constant 0 : index
    %c16_27 = arith.constant 16 : index
    %29 = vector.load %arg6[%c0_26, %c16_27] : memref<8x72xbf16, #tpu.memory_space<vmem>>, vector<8x8xbf16>
    %c0_28 = arith.constant 0 : index
    %c2 = arith.constant 2 : index
    %30 = vector.load %arg11[%c0_28, %c2] : memref<8x1156xbf16, #tpu.memory_space<vmem>>, vector<8x1086xbf16>
    %cst_29 = arith.constant dense<0.000000e+00> : vector<8x1086xf32>
    %31 = tpu.matmul %29, %30, %cst_29 {dimension_numbers = #tpu.dot_dimension_numbers<[1], [0], [0], [1], [0, 0, 1, 1], [], []>} : vector<8x8xbf16>, vector<8x1086xbf16>, vector<8x1086xf32> -> vector<8x1086xf32>
    %32 = arith.addf %28, %31 : vector<8x1086xf32>
    %c0_30 = arith.constant 0 : index
    %c24 = arith.constant 24 : index
    %33 = vector.load %arg5[%c0_30, %c24] : memref<8x72xbf16, #tpu.memory_space<vmem>>, vector<8x8xbf16>
    %34 = vector.extract_strided_slice %7 {offsets = [0, 34], sizes = [8, 1086], strides = [1, 1]} : vector<8x1156xbf16> to vector<8x1086xbf16>
    %cst_31 = arith.constant dense<0.000000e+00> : vector<8x1086xf32>
    %35 = tpu.matmul %33, %34, %cst_31 {dimension_numbers = #tpu.dot_dimension_numbers<[1], [0], [0], [1], [0, 0, 1, 1], [], []>} : vector<8x8xbf16>, vector<8x1086xbf16>, vector<8x1086xf32> -> vector<8x1086xf32>
    %36 = arith.addf %32, %35 : vector<8x1086xf32>
    %c0_32 = arith.constant 0 : index
    %c24_33 = arith.constant 24 : index
    %37 = vector.load %arg6[%c0_32, %c24_33] : memref<8x72xbf16, #tpu.memory_space<vmem>>, vector<8x8xbf16>
    %c0_34 = arith.constant 0 : index
    %c34 = arith.constant 34 : index
    %38 = vector.load %arg11[%c0_34, %c34] : memref<8x1156xbf16, #tpu.memory_space<vmem>>, vector<8x1086xbf16>
    %cst_35 = arith.constant dense<0.000000e+00> : vector<8x1086xf32>
    %39 = tpu.matmul %37, %38, %cst_35 {dimension_numbers = #tpu.dot_dimension_numbers<[1], [0], [0], [1], [0, 0, 1, 1], [], []>} : vector<8x8xbf16>, vector<8x1086xbf16>, vector<8x1086xf32> -> vector<8x1086xf32>
    %40 = arith.addf %36, %39 : vector<8x1086xf32>
    %c0_36 = arith.constant 0 : index
    %c32 = arith.constant 32 : index
    %41 = vector.load %arg5[%c0_36, %c32] : memref<8x72xbf16, #tpu.memory_space<vmem>>, vector<8x8xbf16>
    %42 = vector.extract_strided_slice %7 {offsets = [0, 35], sizes = [8, 1086], strides = [1, 1]} : vector<8x1156xbf16> to vector<8x1086xbf16>
    %cst_37 = arith.constant dense<0.000000e+00> : vector<8x1086xf32>
    %43 = tpu.matmul %41, %42, %cst_37 {dimension_numbers = #tpu.dot_dimension_numbers<[1], [0], [0], [1], [0, 0, 1, 1], [], []>} : vector<8x8xbf16>, vector<8x1086xbf16>, vector<8x1086xf32> -> vector<8x1086xf32>
    %44 = arith.addf %40, %43 : vector<8x1086xf32>
    %c0_38 = arith.constant 0 : index
    %c32_39 = arith.constant 32 : index
    %45 = vector.load %arg6[%c0_38, %c32_39] : memref<8x72xbf16, #tpu.memory_space<vmem>>, vector<8x8xbf16>
    %c0_40 = arith.constant 0 : index
    %c35 = arith.constant 35 : index
    %46 = vector.load %arg11[%c0_40, %c35] : memref<8x1156xbf16, #tpu.memory_space<vmem>>, vector<8x1086xbf16>
    %cst_41 = arith.constant dense<0.000000e+00> : vector<8x1086xf32>
    %47 = tpu.matmul %45, %46, %cst_41 {dimension_numbers = #tpu.dot_dimension_numbers<[1], [0], [0], [1], [0, 0, 1, 1], [], []>} : vector<8x8xbf16>, vector<8x1086xbf16>, vector<8x1086xf32> -> vector<8x1086xf32>
    %48 = arith.addf %44, %47 : vector<8x1086xf32>
    %c0_42 = arith.constant 0 : index
    %c40 = arith.constant 40 : index
    %49 = vector.load %arg5[%c0_42, %c40] : memref<8x72xbf16, #tpu.memory_space<vmem>>, vector<8x8xbf16>
    %50 = vector.extract_strided_slice %7 {offsets = [0, 36], sizes = [8, 1086], strides = [1, 1]} : vector<8x1156xbf16> to vector<8x1086xbf16>
    %cst_43 = arith.constant dense<0.000000e+00> : vector<8x1086xf32>
    %51 = tpu.matmul %49, %50, %cst_43 {dimension_numbers = #tpu.dot_dimension_numbers<[1], [0], [0], [1], [0, 0, 1, 1], [], []>} : vector<8x8xbf16>, vector<8x1086xbf16>, vector<8x1086xf32> -> vector<8x1086xf32>
    %52 = arith.addf %48, %51 : vector<8x1086xf32>
    %c0_44 = arith.constant 0 : index
    %c40_45 = arith.constant 40 : index
    %53 = vector.load %arg6[%c0_44, %c40_45] : memref<8x72xbf16, #tpu.memory_space<vmem>>, vector<8x8xbf16>
    %c0_46 = arith.constant 0 : index
    %c36 = arith.constant 36 : index
    %54 = vector.load %arg11[%c0_46, %c36] : memref<8x1156xbf16, #tpu.memory_space<vmem>>, vector<8x1086xbf16>
    %cst_47 = arith.constant dense<0.000000e+00> : vector<8x1086xf32>
    %55 = tpu.matmul %53, %54, %cst_47 {dimension_numbers = #tpu.dot_dimension_numbers<[1], [0], [0], [1], [0, 0, 1, 1], [], []>} : vector<8x8xbf16>, vector<8x1086xbf16>, vector<8x1086xf32> -> vector<8x1086xf32>
    %56 = arith.addf %52, %55 : vector<8x1086xf32>
    %c0_48 = arith.constant 0 : index
    %c48 = arith.constant 48 : index
    %57 = vector.load %arg5[%c0_48, %c48] : memref<8x72xbf16, #tpu.memory_space<vmem>>, vector<8x8xbf16>
    %58 = vector.extract_strided_slice %7 {offsets = [0, 68], sizes = [8, 1086], strides = [1, 1]} : vector<8x1156xbf16> to vector<8x1086xbf16>
    %cst_49 = arith.constant dense<0.000000e+00> : vector<8x1086xf32>
    %59 = tpu.matmul %57, %58, %cst_49 {dimension_numbers = #tpu.dot_dimension_numbers<[1], [0], [0], [1], [0, 0, 1, 1], [], []>} : vector<8x8xbf16>, vector<8x1086xbf16>, vector<8x1086xf32> -> vector<8x1086xf32>
    %60 = arith.addf %56, %59 : vector<8x1086xf32>
    %c0_50 = arith.constant 0 : index
    %c48_51 = arith.constant 48 : index
    %61 = vector.load %arg6[%c0_50, %c48_51] : memref<8x72xbf16, #tpu.memory_space<vmem>>, vector<8x8xbf16>
    %c0_52 = arith.constant 0 : index
    %c68 = arith.constant 68 : index
    %62 = vector.load %arg11[%c0_52, %c68] : memref<8x1156xbf16, #tpu.memory_space<vmem>>, vector<8x1086xbf16>
    %cst_53 = arith.constant dense<0.000000e+00> : vector<8x1086xf32>
    %63 = tpu.matmul %61, %62, %cst_53 {dimension_numbers = #tpu.dot_dimension_numbers<[1], [0], [0], [1], [0, 0, 1, 1], [], []>} : vector<8x8xbf16>, vector<8x1086xbf16>, vector<8x1086xf32> -> vector<8x1086xf32>
    %64 = arith.addf %60, %63 : vector<8x1086xf32>
    %c0_54 = arith.constant 0 : index
    %c56 = arith.constant 56 : index
    %65 = vector.load %arg5[%c0_54, %c56] : memref<8x72xbf16, #tpu.memory_space<vmem>>, vector<8x8xbf16>
    %66 = vector.extract_strided_slice %7 {offsets = [0, 69], sizes = [8, 1086], strides = [1, 1]} : vector<8x1156xbf16> to vector<8x1086xbf16>
    %cst_55 = arith.constant dense<0.000000e+00> : vector<8x1086xf32>
    %67 = tpu.matmul %65, %66, %cst_55 {dimension_numbers = #tpu.dot_dimension_numbers<[1], [0], [0], [1], [0, 0, 1, 1], [], []>} : vector<8x8xbf16>, vector<8x1086xbf16>, vector<8x1086xf32> -> vector<8x1086xf32>
    %68 = arith.addf %64, %67 : vector<8x1086xf32>
    %c0_56 = arith.constant 0 : index
    %c56_57 = arith.constant 56 : index
    %69 = vector.load %arg6[%c0_56, %c56_57] : memref<8x72xbf16, #tpu.memory_space<vmem>>, vector<8x8xbf16>
    %c0_58 = arith.constant 0 : index
    %c69 = arith.constant 69 : index
    %70 = vector.load %arg11[%c0_58, %c69] : memref<8x1156xbf16, #tpu.memory_space<vmem>>, vector<8x1086xbf16>
    %cst_59 = arith.constant dense<0.000000e+00> : vector<8x1086xf32>
    %71 = tpu.matmul %69, %70, %cst_59 {dimension_numbers = #tpu.dot_dimension_numbers<[1], [0], [0], [1], [0, 0, 1, 1], [], []>} : vector<8x8xbf16>, vector<8x1086xbf16>, vector<8x1086xf32> -> vector<8x1086xf32>
    %72 = arith.addf %68, %71 : vector<8x1086xf32>
    %c0_60 = arith.constant 0 : index
    %c64 = arith.constant 64 : index
    %73 = vector.load %arg5[%c0_60, %c64] : memref<8x72xbf16, #tpu.memory_space<vmem>>, vector<8x8xbf16>
    %74 = vector.extract_strided_slice %7 {offsets = [0, 70], sizes = [8, 1086], strides = [1, 1]} : vector<8x1156xbf16> to vector<8x1086xbf16>
    %cst_61 = arith.constant dense<0.000000e+00> : vector<8x1086xf32>
    %75 = tpu.matmul %73, %74, %cst_61 {dimension_numbers = #tpu.dot_dimension_numbers<[1], [0], [0], [1], [0, 0, 1, 1], [], []>} : vector<8x8xbf16>, vector<8x1086xbf16>, vector<8x1086xf32> -> vector<8x1086xf32>
    %76 = arith.addf %72, %75 : vector<8x1086xf32>
    %c0_62 = arith.constant 0 : index
    %c64_63 = arith.constant 64 : index
    %77 = vector.load %arg6[%c0_62, %c64_63] : memref<8x72xbf16, #tpu.memory_space<vmem>>, vector<8x8xbf16>
    %c0_64 = arith.constant 0 : index
    %c70 = arith.constant 70 : index
    %78 = vector.load %arg11[%c0_64, %c70] : memref<8x1156xbf16, #tpu.memory_space<vmem>>, vector<8x1086xbf16>
    %cst_65 = arith.constant dense<0.000000e+00> : vector<8x1086xf32>
    %79 = tpu.matmul %77, %78, %cst_65 {dimension_numbers = #tpu.dot_dimension_numbers<[1], [0], [0], [1], [0, 0, 1, 1], [], []>} : vector<8x8xbf16>, vector<8x1086xbf16>, vector<8x1086xf32> -> vector<8x1086xf32>
    %80 = arith.addf %76, %79 : vector<8x1086xf32>
    %c0_66 = arith.constant 0 : index
    %c0_67 = arith.constant 0 : index
    %81 = vector.load %arg7[%c0_66, %c0_67] : memref<8x1xf32, #tpu.memory_space<vmem>>, vector<8x1xf32>
    %82 = vector.broadcast %81 : vector<8x1xf32> to vector<8x1086xf32>
    %83 = arith.addf %80, %82 : vector<8x1086xf32>
    %cst_68 = arith.constant 0.000000e+00 : f32
    %84 = vector.broadcast %cst_68 : f32 to vector<8x1086xf32>
    %85 = arith.maximumf %83, %84 : vector<8x1086xf32>
    %c0_69 = arith.constant 0 : index
    %c0_70 = arith.constant 0 : index
    %86 = vector.load %arg4[%c0_69, %c0_70] : memref<1x1086xf32, #tpu.memory_space<vmem>>, vector<1x1086xf32>
    %87 = vector.broadcast %86 : vector<1x1086xf32> to vector<8x1086xf32>
    %88 = arith.mulf %85, %87 : vector<8x1086xf32>
    %cst_71 = arith.constant 0.000000e+00 : bf16
    %89 = vector.broadcast %cst_71 : bf16 to vector<8x35xbf16>
    %c0_72 = arith.constant 0 : index
    %c0_73 = arith.constant 0 : index
    %90 = vector.load %arg12[%c0_72, %c0_73] : memref<8x1156xbf16, #tpu.memory_space<vmem>>, vector<8x35xbf16>
    tpu.vector_store %arg12[%c0_72, %c0_73], %89 {strides = array<i32>} : memref<8x1156xbf16, #tpu.memory_space<vmem>>, vector<8x35xbf16>,
    %cst_74 = arith.constant 0.000000e+00 : bf16
    %91 = vector.broadcast %cst_74 : bf16 to vector<8x35xbf16>
    %c0_75 = arith.constant 0 : index
    %c1121 = arith.constant 1121 : index
    %92 = vector.load %arg12[%c0_75, %c1121] : memref<8x1156xbf16, #tpu.memory_space<vmem>>, vector<8x35xbf16>
    tpu.vector_store %arg12[%c0_75, %c1121], %91 {strides = array<i32>} : memref<8x1156xbf16, #tpu.memory_space<vmem>>, vector<8x35xbf16>,
    %93 = arith.truncf %88 : vector<8x1086xf32> to vector<8x1086xbf16>
    %c0_76 = arith.constant 0 : index
    %c35_77 = arith.constant 35 : index
    %94 = vector.load %arg12[%c0_76, %c35_77] : memref<8x1156xbf16, #tpu.memory_space<vmem>>, vector<8x1086xbf16>
    tpu.vector_store %arg12[%c0_76, %c35_77], %93 {strides = array<i32>} : memref<8x1156xbf16, #tpu.memory_space<vmem>>, vector<8x1086xbf16>,
    %cst_78 = arith.constant 0.000000e+00 : f32
    %95 = vector.broadcast %cst_78 : f32 to vector<4x1086xf32>
    %c0_79 = arith.constant 0 : index
    %c0_80 = arith.constant 0 : index
    %96 = vector.load %arg8[%c0_79, %c0_80] : memref<4x72xbf16, #tpu.memory_space<vmem>>, vector<4x8xbf16>
    %c0_81 = arith.constant 0 : index
    %c0_82 = arith.constant 0 : index
    %97 = vector.load %arg12[%c0_81, %c0_82] : memref<8x1156xbf16, #tpu.memory_space<vmem>>, vector<8x1086xbf16>
    %cst_83 = arith.constant dense<0.000000e+00> : vector<4x1086xf32>
    %98 = tpu.matmul %96, %97, %cst_83 {dimension_numbers = #tpu.dot_dimension_numbers<[1], [0], [0], [1], [0, 0, 1, 1], [], []>} : vector<4x8xbf16>, vector<8x1086xbf16>, vector<4x1086xf32> -> vector<4x1086xf32>
    %99 = arith.addf %95, %98 : vector<4x1086xf32>
    %c0_84 = arith.constant 0 : index
    %c8_85 = arith.constant 8 : index
    %100 = vector.load %arg8[%c0_84, %c8_85] : memref<4x72xbf16, #tpu.memory_space<vmem>>, vector<4x8xbf16>
    %c0_86 = arith.constant 0 : index
    %c1_87 = arith.constant 1 : index
    %101 = vector.load %arg12[%c0_86, %c1_87] : memref<8x1156xbf16, #tpu.memory_space<vmem>>, vector<8x1086xbf16>
    %cst_88 = arith.constant dense<0.000000e+00> : vector<4x1086xf32>
    %102 = tpu.matmul %100, %101, %cst_88 {dimension_numbers = #tpu.dot_dimension_numbers<[1], [0], [0], [1], [0, 0, 1, 1], [], []>} : vector<4x8xbf16>, vector<8x1086xbf16>, vector<4x1086xf32> -> vector<4x1086xf32>
    %103 = arith.addf %99, %102 : vector<4x1086xf32>
    %c0_89 = arith.constant 0 : index
    %c16_90 = arith.constant 16 : index
    %104 = vector.load %arg8[%c0_89, %c16_90] : memref<4x72xbf16, #tpu.memory_space<vmem>>, vector<4x8xbf16>
    %c0_91 = arith.constant 0 : index
    %c2_92 = arith.constant 2 : index
    %105 = vector.load %arg12[%c0_91, %c2_92] : memref<8x1156xbf16, #tpu.memory_space<vmem>>, vector<8x1086xbf16>
    %cst_93 = arith.constant dense<0.000000e+00> : vector<4x1086xf32>
    %106 = tpu.matmul %104, %105, %cst_93 {dimension_numbers = #tpu.dot_dimension_numbers<[1], [0], [0], [1], [0, 0, 1, 1], [], []>} : vector<4x8xbf16>, vector<8x1086xbf16>, vector<4x1086xf32> -> vector<4x1086xf32>
    %107 = arith.addf %103, %106 : vector<4x1086xf32>
    %c0_94 = arith.constant 0 : index
    %c24_95 = arith.constant 24 : index
    %108 = vector.load %arg8[%c0_94, %c24_95] : memref<4x72xbf16, #tpu.memory_space<vmem>>, vector<4x8xbf16>
    %c0_96 = arith.constant 0 : index
    %c34_97 = arith.constant 34 : index
    %109 = vector.load %arg12[%c0_96, %c34_97] : memref<8x1156xbf16, #tpu.memory_space<vmem>>, vector<8x1086xbf16>
    %cst_98 = arith.constant dense<0.000000e+00> : vector<4x1086xf32>
    %110 = tpu.matmul %108, %109, %cst_98 {dimension_numbers = #tpu.dot_dimension_numbers<[1], [0], [0], [1], [0, 0, 1, 1], [], []>} : vector<4x8xbf16>, vector<8x1086xbf16>, vector<4x1086xf32> -> vector<4x1086xf32>
    %111 = arith.addf %107, %110 : vector<4x1086xf32>
    %c0_99 = arith.constant 0 : index
    %c32_100 = arith.constant 32 : index
    %112 = vector.load %arg8[%c0_99, %c32_100] : memref<4x72xbf16, #tpu.memory_space<vmem>>, vector<4x8xbf16>
    %c0_101 = arith.constant 0 : index
    %c35_102 = arith.constant 35 : index
    %113 = vector.load %arg12[%c0_101, %c35_102] : memref<8x1156xbf16, #tpu.memory_space<vmem>>, vector<8x1086xbf16>
    %cst_103 = arith.constant dense<0.000000e+00> : vector<4x1086xf32>
    %114 = tpu.matmul %112, %113, %cst_103 {dimension_numbers = #tpu.dot_dimension_numbers<[1], [0], [0], [1], [0, 0, 1, 1], [], []>} : vector<4x8xbf16>, vector<8x1086xbf16>, vector<4x1086xf32> -> vector<4x1086xf32>
    %115 = arith.addf %111, %114 : vector<4x1086xf32>
    %c0_104 = arith.constant 0 : index
    %c40_105 = arith.constant 40 : index
    %116 = vector.load %arg8[%c0_104, %c40_105] : memref<4x72xbf16, #tpu.memory_space<vmem>>, vector<4x8xbf16>
    %c0_106 = arith.constant 0 : index
    %c36_107 = arith.constant 36 : index
    %117 = vector.load %arg12[%c0_106, %c36_107] : memref<8x1156xbf16, #tpu.memory_space<vmem>>, vector<8x1086xbf16>
    %cst_108 = arith.constant dense<0.000000e+00> : vector<4x1086xf32>
    %118 = tpu.matmul %116, %117, %cst_108 {dimension_numbers = #tpu.dot_dimension_numbers<[1], [0], [0], [1], [0, 0, 1, 1], [], []>} : vector<4x8xbf16>, vector<8x1086xbf16>, vector<4x1086xf32> -> vector<4x1086xf32>
    %119 = arith.addf %115, %118 : vector<4x1086xf32>
    %c0_109 = arith.constant 0 : index
    %c48_110 = arith.constant 48 : index
    %120 = vector.load %arg8[%c0_109, %c48_110] : memref<4x72xbf16, #tpu.memory_space<vmem>>, vector<4x8xbf16>
    %c0_111 = arith.constant 0 : index
    %c68_112 = arith.constant 68 : index
    %121 = vector.load %arg12[%c0_111, %c68_112] : memref<8x1156xbf16, #tpu.memory_space<vmem>>, vector<8x1086xbf16>
    %cst_113 = arith.constant dense<0.000000e+00> : vector<4x1086xf32>
    %122 = tpu.matmul %120, %121, %cst_113 {dimension_numbers = #tpu.dot_dimension_numbers<[1], [0], [0], [1], [0, 0, 1, 1], [], []>} : vector<4x8xbf16>, vector<8x1086xbf16>, vector<4x1086xf32> -> vector<4x1086xf32>
    %123 = arith.addf %119, %122 : vector<4x1086xf32>
    %c0_114 = arith.constant 0 : index
    %c56_115 = arith.constant 56 : index
    %124 = vector.load %arg8[%c0_114, %c56_115] : memref<4x72xbf16, #tpu.memory_space<vmem>>, vector<4x8xbf16>
    %c0_116 = arith.constant 0 : index
    %c69_117 = arith.constant 69 : index
    %125 = vector.load %arg12[%c0_116, %c69_117] : memref<8x1156xbf16, #tpu.memory_space<vmem>>, vector<8x1086xbf16>
    %cst_118 = arith.constant dense<0.000000e+00> : vector<4x1086xf32>
    %126 = tpu.matmul %124, %125, %cst_118 {dimension_numbers = #tpu.dot_dimension_numbers<[1], [0], [0], [1], [0, 0, 1, 1], [], []>} : vector<4x8xbf16>, vector<8x1086xbf16>, vector<4x1086xf32> -> vector<4x1086xf32>
    %127 = arith.addf %123, %126 : vector<4x1086xf32>
    %c0_119 = arith.constant 0 : index
    %c64_120 = arith.constant 64 : index
    %128 = vector.load %arg8[%c0_119, %c64_120] : memref<4x72xbf16, #tpu.memory_space<vmem>>, vector<4x8xbf16>
    %c0_121 = arith.constant 0 : index
    %c70_122 = arith.constant 70 : index
    %129 = vector.load %arg12[%c0_121, %c70_122] : memref<8x1156xbf16, #tpu.memory_space<vmem>>, vector<8x1086xbf16>
    %cst_123 = arith.constant dense<0.000000e+00> : vector<4x1086xf32>
    %130 = tpu.matmul %128, %129, %cst_123 {dimension_numbers = #tpu.dot_dimension_numbers<[1], [0], [0], [1], [0, 0, 1, 1], [], []>} : vector<4x8xbf16>, vector<8x1086xbf16>, vector<4x1086xf32> -> vector<4x1086xf32>
    %131 = arith.addf %127, %130 : vector<4x1086xf32>
    %c0_124 = arith.constant 0 : index
    %c0_125 = arith.constant 0 : index
    %132 = vector.load %arg9[%c0_124, %c0_125] : memref<4x1xf32, #tpu.memory_space<vmem>>, vector<4x1xf32>
    %133 = vector.broadcast %132 : vector<4x1xf32> to vector<4x1086xf32>
    %134 = arith.addf %131, %133 : vector<4x1086xf32>
    %cst_126 = arith.constant 0.000000e+00 : f32
    %135 = vector.broadcast %cst_126 : f32 to vector<4x1086xf32>
    %136 = arith.maximumf %134, %135 : vector<4x1086xf32>
    %c0_127 = arith.constant 0 : index
    %c0_128 = arith.constant 0 : index
    %c0_129 = arith.constant 0 : index
    %137 = vector.load %arg10[%c0_127, %c0_128, %c0_129] : memref<1x4x1086xf32, #tpu.memory_space<vmem>>, vector<1x4x1086xf32>
    %138 = vector.shape_cast %137 : vector<1x4x1086xf32> to vector<4x1086xf32>
    %139 = vector.shape_cast %136 : vector<4x1086xf32> to vector<1x4x1086xf32>
    tpu.vector_store %arg10[%c0_127, %c0_128, %c0_129], %139 {strides = array<i32>} : memref<1x4x1086xf32, #tpu.memory_space<vmem>>, vector<1x4x1086xf32>,
    return
  }
  func.func @transform_0(%arg0: i32) -> (i32, i32, i32) {
    %c0_i32 = arith.constant 0 : i32
    %c0_i32_0 = arith.constant 0 : i32
    %c0_i32_1 = arith.constant 0 : i32
    return %arg0, %c0_i32, %c0_i32_0 : i32, i32, i32
  }
  func.func @transform_1(%arg0: i32) -> (i32, i32, i32) {
    %c0_i32 = arith.constant 0 : i32
    %c0_i32_0 = arith.constant 0 : i32
    %c0_i32_1 = arith.constant 0 : i32
    return %arg0, %c0_i32, %c0_i32_0 : i32, i32, i32
  }
  func.func @transform_2(%arg0: i32) -> (i32, i32) {
    %c0_i32 = arith.constant 0 : i32
    %c0_i32_0 = arith.constant 0 : i32
    %c0_i32_1 = arith.constant 0 : i32
    return %c0_i32, %c0_i32_0 : i32, i32
  }
  func.func @transform_3(%arg0: i32) -> (i32, i32) {
    %c0_i32 = arith.constant 0 : i32
    %c0_i32_0 = arith.constant 0 : i32
    %c0_i32_1 = arith.constant 0 : i32
    return %c0_i32, %c0_i32_0 : i32, i32
  }
  func.func @transform_4(%arg0: i32) -> (i32, i32) {
    %c0_i32 = arith.constant 0 : i32
    %c0_i32_0 = arith.constant 0 : i32
    %c0_i32_1 = arith.constant 0 : i32
    return %c0_i32, %c0_i32_0 : i32, i32
  }
  func.func @transform_5(%arg0: i32) -> (i32, i32) {
    %c0_i32 = arith.constant 0 : i32
    %c0_i32_0 = arith.constant 0 : i32
    %c0_i32_1 = arith.constant 0 : i32
    return %c0_i32, %c0_i32_0 : i32, i32
  }
  func.func @transform_6(%arg0: i32) -> (i32, i32) {
    %c0_i32 = arith.constant 0 : i32
    %c0_i32_0 = arith.constant 0 : i32
    %c0_i32_1 = arith.constant 0 : i32
    return %c0_i32, %c0_i32_0 : i32, i32
  }
  func.func @transform_7(%arg0: i32) -> (i32, i32) {
    %c0_i32 = arith.constant 0 : i32
    %c0_i32_0 = arith.constant 0 : i32
    %c0_i32_1 = arith.constant 0 : i32
    return %c0_i32, %c0_i32_0 : i32, i32
  }
  func.func @transform_8(%arg0: i32) -> (i32, i32) {
    %c0_i32 = arith.constant 0 : i32
    %c0_i32_0 = arith.constant 0 : i32
    %c0_i32_1 = arith.constant 0 : i32
    return %c0_i32, %c0_i32_0 : i32, i32
  }
  func.func @transform_9(%arg0: i32) -> (i32, i32, i32) {
    %c0_i32 = arith.constant 0 : i32
    %c0_i32_0 = arith.constant 0 : i32
    %c0_i32_1 = arith.constant 0 : i32
    return %arg0, %c0_i32, %c0_i32_0 : i32, i32, i32
  }
}

</mosaic_0001>

<bundles_post_ra>
// kernel: decoder_forward.2
= control target key start
LH: loop header
LB: loop body
LE: loop exit
PB: predicated region body
PF: predicated region fallthrough
CT: control target
= control target key end

     0   :  { %s2608_s30 = smov 0   ;;  %s3203_s0 = inlined_call_operand.vmem [shape: bf16[2,8,64], index: 0, kind: input, shape index: {}]   ;;  %s3204_s1 = inlined_call_operand.vmem [shape: bf16[2,8,324], index: 1, kind: input, shape index: {}]   ;;  %s3205_s2 = inlined_call_operand.vmem [shape: bf16[64,324], index: 2, kind: input, shape index: {}]   ;;  %s3206_s3 = inlined_call_operand.vmem [shape: f32[1,286], index: 3, kind: input, shape index: {}]   ;;  %s3207_s4 = inlined_call_operand.vmem [shape: bf16[8,72], index: 4, kind: input, shape index: {}]   ;;  %s3208_s5 = inlined_call_operand.vmem [shape: bf16[8,72], index: 5, kind: input, shape index: {}]   ;;  %s3209_s6 = inlined_call_operand.vmem [shape: f32[8,1], index: 6, kind: input, shape index: {}]   ;;  %s3210_s7 = inlined_call_operand.vmem [shape: bf16[8,72], index: 7, kind: input, shape index: {}]   ;;  %s3211_s8 = inlined_call_operand.vmem [shape: f32[8,1], index: 8, kind: input, shape index: {}]   ;;  %s3212_s9 = inlined_call_operand.vmem [shape: f32[2,8,286], index: 9, kind: output, shape index: {}]  }
   0x1 LB: > { %s2348_s10 = sadd.s32 4294967295, %s2538_s30   ;;  %p2352_p0 = scmp.ge.s32.totalorder %s2538_s30, 1  ;;  %s2538_s30 = sphi %s2608_s30, %s19_s30  }
   0x2   : > { %p296_p1 = scmp.lt.s32.totalorder %s2538_s30, 3 }
   0x4   : > { %p297_p2 = pnand %p2352_p0, %p296_p1 }
   0x5   : > { %p336_p3 = scmp.lt.s32.totalorder (!%p297_p2), %s2348_s10, 1  ;;  %s2540_s29 = smov (!%p297_p2), 127  }
   0x6   : > { %300 = sbr.rel (%p297_p2) target bundleno = 1091 (0x443), region = 56  ;;  %s2541_s11 = smov (!%p297_p2), 126  }
   0x7   : > { %s2542_s16 = smov (!%p297_p2), 120   ;;  %s2543_s17 = smov (!%p297_p2), 112  }
   0x8   : > { %s2544_s18 = smov (!%p297_p2), 110   ;;  %s2545_s19 = smov (!%p297_p2), 109  }
   0x9   : > { %s2546_s20 = smov (!%p297_p2), 104   ;;  %s2549_s23 = smov (!%p297_p2), 88  }
   0xa   : > { %s2550_s24 = smov (!%p297_p2), 92   ;;  %s2552_s26 = smov (!%p297_p2), 91  }
   0xb   : > { %v2394_v0 = vld [vmem:[%s3205_s2 + $0x48] sm:$0xf]  ;;  %v2500_v1 = vld [vmem:[%s3205_s2 + $0x50] sm:$0xf0]  ;;  %v2499_v2 = vld [vmem:[%s3205_s2 + $0x4c] sm:$0xf] }
   0xc   : > { %v2395_v3 = vor.u32 %v2500_v1, %v2394_v0  ;;  %v2396_v4 = vld [vmem:[%s3205_s2 + $0x54] sm:$0xf0]  ;;  %v2402_v5 = vld [vmem:[%s3205_s2 + $0x50] sm:$0xf]  ;;  %v2501_v6 = vld [vmem:[%s3205_s2 + $0x58] sm:$0xf0] }
   0xd   : > { %v2399_v7 = vor.u32 %v2499_v2, %v2396_v4  ;;  %v2403_v8 = vor.u32 %v2501_v6, %v2402_v5  ;;  %v2382_v9 = vld [vmem:[%s3205_s2 + $0x30] sm:$0xf]  ;;  %v2497_v10 = vld [vmem:[%s3205_s2 + $0x38] sm:$0xf0]  ;;  %v2496_v11 = vld [vmem:[%s3205_s2 + $0x34] sm:$0xf] }
   0xe   : > { %440 = vmatpush.bf16.msra.mxu0 %v2395_v3  ;;  %v2383_v12 = vor.u32 %v2497_v10, %v2382_v9  ;;  %v2384_v13 = vld [vmem:[%s3205_s2 + $0x3c] sm:$0xf0]  ;;  %v2390_v14 = vld [vmem:[%s3205_s2 + $0x38] sm:$0xf]  ;;  %v2498_v15 = vld [vmem:[%s3205_s2 + $0x40] sm:$0xf0] }
   0xf   : > { %453 = vmatpush.bf16.msra.mxu1 %v2399_v7  ;;  %466 = vmatpush.bf16.msra.mxu2 %v2403_v8  ;;  %v2387_v16 = vor.u32 %v2496_v11, %v2384_v13  ;;  %v2391_v17 = vor.u32 %v2498_v15, %v2390_v14  ;;  %v2370_v18 = vld [vmem:[%s3205_s2 + $0x18] sm:$0xf]  ;;  %v2494_v19 = vld [vmem:[%s3205_s2 + $0x20] sm:$0xf0]  ;;  %v2493_v20 = vld [vmem:[%s3205_s2 + $0x1c] sm:$0xf] }
  0x10   : > { %v2372_v21 = vld [vmem:[%s3205_s2 + $0x24] sm:$0xf0]  ;;  %v2378_v22 = vld [vmem:[%s3205_s2 + $0x20] sm:$0xf]  ;;  %v2495_v23 = vld [vmem:[%s3205_s2 + $0x28] sm:$0xf0]  ;;  %v2371_v24 = vor.u32 %v2494_v19, %v2370_v18 }
  0x11   : > { %v2358_v25 = vld [vmem:[%s3205_s2] sm:$0xf]  ;;  %v2375_v26 = vor.u32 %v2493_v20, %v2372_v21  ;;  %v2379_v27 = vor.u32 %v2495_v23, %v2378_v22  ;;  %v2491_v28 = vld [vmem:[%s3205_s2 + $0x8] sm:$0xf0]  ;;  %v2490_v29 = vld [vmem:[%s3205_s2 + $0x4] sm:$0xf] }
  0x12   : > { %441 = vmatpush.bf16.msra.mxu0 %v2383_v12  ;;  %v2360_v30 = vld [vmem:[%s3205_s2 + $0xc] sm:$0xf0]  ;;  %v2366_v31 = vld [vmem:[%s3205_s2 + $0x8] sm:$0xf]  ;;  %v2492_v32 = vld [vmem:[%s3205_s2 + $0x10] sm:$0xf0]  ;;  %v2359_v33 = vor.u32 %v2491_v28, %v2358_v25 }
  0x13   : > { %454 = vmatpush.bf16.msra.mxu1 %v2387_v16  ;;  %467 = vmatpush.bf16.msra.mxu2 %v2391_v17  ;;  %s3214_s10 = smov (!%p336_p3, %s2348_s10), 1  ;;  %v2363_v34 = vor.u32 %v2490_v29, %v2360_v30  ;;  %v2367_v35 = vor.u32 %v2492_v32, %v2366_v31  ;;  %vm432_vm0 = vcmask 523264   ;;  %v2719_v50 = vld [vmem:[%s3207_s4] sm:$0xf]  ;;  %vm498_vm1 = vcmask 1043456   ;;  %s2553_s27 = smov 72  }
  0x14   : > { %s2353_s21 = sshll.u32 %s3214_s10, 2  ;;  %s2502_s22 = smul.u32 12, %s3214_s10  ;;  %v483_v51 = vld [vmem:[%s3208_s5] sm:$0xf]  ;;  %vm478_vm2 = vcmask 551936   ;;  %v607_v55 = vunpack.c.l.b16 %v2719_v50  ;;  %vm494_vm3 = vcmask 64512  }
  0x15   : > { %s339_s25 = scalar_lea.vmem %s3203_s0, %s2353_s21  ;;  %v675_v60 = vunpack.c.l.b16 %v483_v51  ;;  %s2547_s21 = smov 96   ;;  %vm617_vm4 = vcmask 1039360   ;;  %vm749_vm5 = vcmask 1031168   ;;  %vm878_vm6 = vcmask 900096  }
  0x16   : > { %442 = vmatpush.bf16.msra.mxu0 %v2371_v24  ;;  %s344_s28 = scalar_lea.vmem %s3204_s1, %s2502_s22  ;;  %v351_v36 = vld [vmem:[%s339_s25] sm:$0xf]  ;;  %v2737_v62 = vpack.c.b16 %v607_v55, %v607_v55  ;;  %s2548_s22 = smov 108   ;;  %vm1007_vm7 = vcmask 891904   ;;  %vm1136_vm8 = vcmask 883712   ;;  %vm1265_vm9 = vcmask 752640  }
  0x17   : > { %455 = vmatpush.bf16.msra.mxu1 %v2375_v26  ;;  %468 = vmatpush.bf16.msra.mxu2 %v2379_v27  ;;  %v480_v37 = vld [vmem:[%s344_s28] sm:$0xff]  ;;  %v481_v38 = vld [vmem:[%s344_s28 + $0x8] sm:$0xf]  ;;  %v2739_v63 = vpack.c.b16 %v675_v60, %v675_v60  ;;  %s2551_s25 = smov 80   ;;  %s2554_s28 = smov 90   ;;  %vm1394_vm10 = vcmask 744448  }
  0x18   : > { %v549_v39 = vunpack.c.l.b16 %v480_v37  ;;  %v551_v40 = vunpack.c.l.b16 %v481_v38  ;;  %v550_v43 = vunpack.c.h.b16 %v480_v37  ;;  %s2555_s12 = smov 64   ;;  %vm1523_vm11 = vcmask 736256   ;;  %s2557_s14 = smov 19  }
  0x19   : > { %vm1667_vm12 = vcmask 150528   ;;  %vm1669_vm13 = vcmask 552328   ;;  %vm1685_vm14 = vcmask 1043608   ;;  %vm1686_vm15 = vcmask 1047556  }
  0x1a   : > { %443 = vmatpush.bf16.msra.mxu0 %v2359_v33  ;;  %v2702_v41 = vpack.c.b16 %v549_v39, %v549_v39  ;;  %v2704_v42 = vpack.c.b16 %v551_v40, %v551_v40  ;;  %v2710_v44 = vpack.c.b16 %v550_v43, %v550_v43 }
  0x1b   : > { %456 = vmatpush.bf16.msra.mxu1 %v2363_v34  ;;  %469 = vmatpush.bf16.msra.mxu2 %v2367_v35 }
  0x1c   : > { %611 = vrot.lane.b32.xlu2 %v2702_v41, %s2540_s29  ;;  %615 = vrot.lane.b32.xlu0 %v2704_v42, %s2540_s29  ;;  %v559_v5 = vsel %vm498_vm1, %v2702_v41, 0  ;;  %v562_v9 = vsel %vm498_vm1, %v2710_v44, 0  ;;  %v565_v11 = vsel %vm498_vm1, %v2704_v42, 0 }
  0x1d   : > { %2404 = vmatmul.msk.bf16.vlgmr.msra.gmra.mxu0 %vm432_vm0, %v351_v36 }
  0x1e   : > { %2405 = vmatmul.msk.bf16.vlgmr.msra.gmra.mxu1 %vm432_vm0, %v351_v36  ;;  %2406 = vmatmul.msk.bf16.vlgmr.msra.gmra.mxu2 %vm432_vm0, %v351_v36  ;;  %vm1680_vm0 = vcmask 154624  }
  0x1f   : > { %574 = vmatpush.bf16.msrb.mxu1 %v559_v5  ;;  %587 = vmatpush.bf16.msrb.mxu2 %v562_v9 }
  0x24   : > { %613 = vrot.lane.b32.xlu2 %v2710_v44, %s2540_s29 }
  0x2c   : > { %745 = vrot.lane.b32.xlu2 %v2710_v44, %s2541_s11 }
  0x2e   : > { %2410 = vmatmul.msk.bf16.vlgmr.msrb.gmra.mxu1 %vm494_vm3, %v2719_v50  ;;  %2411 = vmatmul.msk.bf16.vlgmr.msrb.gmra.mxu2 %vm494_vm3, %v2719_v50 }
  0x76   : > { %v612_v6 = vpop.permute.xlu2 %611 }
  0x7e   : > { %v614_v7 = vpop.permute.xlu2 %613 }
  0x7f   : > { %v618_v8 = vsel %vm617_vm4, %v612_v6, %v614_v7 }
  0x80   : > { %v624_v10 = vsel %vm498_vm1, %v618_v8, 0 }
  0x86   : > { %v746_v16 = vpop.permute.xlu2 %745 }
  0x8e   : > { %v616_v12 = vpop.permute.xlu0 %615 }
  0x8f   : > { %v619_v13 = vsel %vm617_vm4, %v614_v7, %v616_v12  ;;  %v630_v14 = vsel %vm498_vm1, %v616_v12, 0 }
  0x90   : > { %v627_v15 = vsel %vm498_vm1, %v619_v13, 0  ;;  %665 = vmatpush.bf16.msra.mxu2 %v630_v14 }
  0x91   : > { %652 = vmatpush.bf16.msra.mxu1 %v627_v15 }
  0x9a   : > { %v445_v45 = vpop.f32.mrf.mxu0 }
  0x9b   : > { %v458_v46 = vpop.f32.mrf.mxu1 }
  0x9c   : > { %v475_v47 = vpack.c.bf16 %v458_v46, %v445_v45 }
  0x9e   : > { %v488_v48 = vunpack.c.l.b16 %v475_v47  ;;  %v489_v49 = vunpack.c.h.b16 %v475_v47 }
  0xa0   : > { %v2724_v52 = vpack.c.b16 %v488_v48, %v488_v48  ;;  %v2726_v53 = vpack.c.b16 %v489_v49, %v489_v49 }
  0xa1   : > { %v471_v54 = vpop.f32.mrf.mxu2 }
  0xa2   : > { %v476_v56 = vpack.c.bf16 %v471_v54, %v471_v54  ;;  %v447_v57 = vpop.f32.mrf.mxu0  ;;  %681 = vrot.lane.b32.xlu1 %v2726_v53, %s2540_s29  ;;  %679 = vrot.lane.b32.xlu0 %v2724_v52, %s2540_s29  ;;  %v500_v58 = vsel %vm498_vm1, %v2724_v52, 0  ;;  %v503_v59 = vsel %vm498_vm1, %v2726_v53, 0 }
  0xa3   : > { %v460_v61 = vpop.f32.mrf.mxu1  ;;  %515 = vmatpush.bf16.msra.mxu3 %v500_v58 }
  0xa4   : > { %479 = vst.msk [vmem:[#allocation2 + $0x8] sm:$0xf] %vm478_vm2, %v476_v56  ;;  %vm1687_vm2 = vmor %vm1686_vm15, %vm1685_vm14 }
  0xa6   : > { %2407 = vmatmul.msk.bf16.vlgmr.msra.gmra.mxu3 %vm494_vm3, %v483_v51 }
  0xa7   : > { %528 = vmatpush.bf16.msrb.mxu3 %v503_v59 }
  0xa9   : > { %v473_v0 = vpop.f32.mrf.mxu2 }
  0xaa   : > { %609 = vrot.lane.b32.xlu1 %v2737_v62, %s2542_s16  ;;  %677 = vrot.lane.b32.xlu0 %v2739_v63, %s2542_s16 }
  0xab   : > { %v485_v1 = vld [vmem:[#allocation2 + $0x8] sm:$0xf]  ;;  %600 = vmatpush.bf16.msra.mxu3 %v565_v11 }
  0xac   : > { %v490_v2 = vunpack.c.l.b16 %v485_v1 }
  0xae   : > { %v2745_v3 = vpack.c.b16 %v490_v2, %v490_v2 }
  0xb0   : > { %683 = vrot.lane.b32.xlu2 %v2745_v3, %s2540_s29  ;;  %v506_v4 = vsel %vm498_vm1, %v2745_v3, 0 }
  0xb1   : > { %541 = vmatpush.bf16.msrb.mxu0 %v506_v4  ;;  %v576_v4 = vpop.f32.mrf.mxu1 }
  0xb2   : > { %743 = vrot.lane.b32.xlu1 %v2702_v41, %s2541_s11  ;;  %747 = vrot.lane.b32.xlu0 %v2704_v42, %s2541_s11 }
  0xb4   : > { %2409 = vmatmul.msk.bf16.vlgmr.msrb.gmra.mxu0 %vm494_vm3, %v483_v51 }
  0xb5   : > { %639 = vmatpush.bf16.msra.mxu0 %v624_v10 }
  0xb6   : > { %2408 = vmatmul.msk.bf16.vlgmr.msrb.gmra.mxu3 %vm494_vm3, %v483_v51 }
  0xb8   : > { %806 = vrot.lane.b32.xlu2 %v2739_v63, %s2543_s17 }
  0xba   : > { %741 = vrot.lane.b32.xlu1 %v2737_v62, %s2543_s17  ;;  %810 = vrot.lane.b32.xlu0 %v2726_v53, %s2541_s11 }
  0xc0   : > { %937 = vrot.lane.b32.xlu2 %v2724_v52, %s2544_s18 }
  0xc2   : > { %812 = vrot.lane.b32.xlu1 %v2745_v3, %s2541_s11  ;;  %808 = vrot.lane.b32.xlu0 %v2724_v52, %s2541_s11 }
  0xc6   : > { %2412 = vmatmul.msk.bf16.vlgmr.msra.gmra.mxu3 %vm494_vm3, %v2719_v50 }
  0xc8   : > { %872 = vrot.lane.b32.xlu2 %v2702_v41, %s2544_s18 }
  0xca   : > { %876 = vrot.lane.b32.xlu1 %v2704_v42, %s2544_s18  ;;  %939 = vrot.lane.b32.xlu0 %v2726_v53, %s2544_s18 }
  0xd0   : > { %1001 = vrot.lane.b32.xlu2 %v2702_v41, %s2545_s19 }
  0xd2   : > { %870 = vrot.lane.b32.xlu1 %v2737_v62, %s2546_s20  ;;  %874 = vrot.lane.b32.xlu0 %v2710_v44, %s2544_s18 }
  0xd8   : > { %999 = vrot.lane.b32.xlu2 %v2737_v62, %s2547_s21 }
  0xda   : > { %935 = vrot.lane.b32.xlu1 %v2739_v63, %s2546_s20  ;;  %1003 = vrot.lane.b32.xlu0 %v2710_v44, %s2545_s19 }
  0xe0   : > { %1070 = vrot.lane.b32.xlu2 %v2745_v3, %s2545_s19 }
  0xe2   : > { %1005 = vrot.lane.b32.xlu1 %v2704_v42, %s2545_s19  ;;  %941 = vrot.lane.b32.xlu0 %v2745_v3, %s2544_s18 }
  0xe8   : > { %1134 = vrot.lane.b32.xlu2 %v2704_v42, %s2548_s22 }
  0xea   : > { %1068 = vrot.lane.b32.xlu1 %v2726_v53, %s2545_s19  ;;  %1064 = vrot.lane.b32.xlu0 %v2739_v63, %s2547_s21 }
  0xf0   : > { %1128 = vrot.lane.b32.xlu2 %v2737_v62, %s2549_s23 }
  0xf2   : > { %1066 = vrot.lane.b32.xlu1 %v2724_v52, %s2545_s19  ;;  %1195 = vrot.lane.b32.xlu0 %v2724_v52, %s2548_s22 }
  0xf8   : > { %1193 = vrot.lane.b32.xlu2 %v2739_v63, %s2549_s23 }
  0xfa   : > { %1197 = vrot.lane.b32.xlu1 %v2726_v53, %s2548_s22  ;;  %1130 = vrot.lane.b32.xlu0 %v2702_v41, %s2548_s22 }
 0x100   : > { %1263 = vrot.lane.b32.xlu2 %v2704_v42, %s2550_s24 }
 0x102   : > { %1132 = vrot.lane.b32.xlu1 %v2710_v44, %s2548_s22  ;;  %1259 = vrot.lane.b32.xlu0 %v2702_v41, %s2550_s24 }
 0x108   : > { %1326 = vrot.lane.b32.xlu2 %v2726_v53, %s2550_s24 }
 0x10a   : > { %v684_v17 = vpop.permute.xlu2 %683  ;;  %1261 = vrot.lane.b32.xlu1 %v2710_v44, %s2550_s24  ;;  %1257 = vrot.lane.b32.xlu0 %v2737_v62, %s2551_s25 }
 0x10b   : > { %v697_v18 = vsel %vm498_vm1, %v684_v17, 0 }
 0x10c   : > { %732 = vmatpush.bf16.msrb.mxu1 %v697_v18 }
 0x110   : > { %1324 = vrot.lane.b32.xlu2 %v2724_v52, %s2550_s24 }
 0x112   : > { %v2844_v19 = vpop.permute.xlu2 %806  ;;  %1199 = vrot.lane.b32.xlu1 %v2745_v3, %s2548_s22  ;;  %1328 = vrot.lane.b32.xlu0 %v2745_v3, %s2550_s24 }
 0x114   : > { %v682_v20 = vpop.permute.xlu1 %681  ;;  %v680_v21 = vpop.permute.xlu0 %679 }
 0x115   : > { %v686_v22 = vsel %vm617_vm4, %v682_v20, %v684_v17  ;;  %v685_v23 = vsel %vm617_vm4, %v680_v21, %v682_v20  ;;  %v578_v17 = vpop.f32.mrf.mxu1 }
 0x116   : > { %v694_v24 = vsel %vm498_vm1, %v686_v22, 0  ;;  %v691_v25 = vsel %vm498_vm1, %v685_v23, 0 }
 0x117   : > { %706 = vmatpush.bf16.msrb.mxu3 %v691_v25  ;;  %719 = vmatpush.bf16.msrb.mxu0 %v694_v24  ;;  %v589_v25 = vpop.f32.mrf.mxu2 }
 0x118   : > { %1455 = vrot.lane.b32.xlu2 %v2726_v53, %s2552_s26 }
 0x11a   : > { %v938_v26 = vpop.permute.xlu2 %937  ;;  %1322 = vrot.lane.b32.xlu1 %v2739_v63, %s2551_s25  ;;  %1392 = vrot.lane.b32.xlu0 %v2704_v42, %s2552_s26 }
 0x11c   : > { %v610_v27 = vpop.permute.xlu1 %609  ;;  %v678_v28 = vpop.permute.xlu0 %677 }
 0x11d   : > { %2413 = vmatmul.msk.bf16.vlgmr.msra.gmra.mxu0 %vm494_vm3, %v610_v27  ;;  %2414 = vmatmul.msk.bf16.vlgmr.msra.gmra.mxu1 %vm494_vm3, %v610_v27 }
 0x11e   : > { %2415 = vmatmul.msk.bf16.vlgmr.msra.gmra.mxu2 %vm494_vm3, %v610_v27  ;;  %2416 = vmatmul.msk.bf16.vlgmr.msrb.gmra.mxu3 %vm494_vm3, %v678_v28 }
 0x120   : > { %1390 = vrot.lane.b32.xlu2 %v2710_v44, %s2552_s26 }
 0x122   : > { %v2866_v29 = vpop.permute.xlu2 %872  ;;  %1453 = vrot.lane.b32.xlu1 %v2724_v52, %s2552_s26  ;;  %1386 = vrot.lane.b32.xlu0 %v2737_v62, %s2553_s27 }
 0x124   : > { %v744_v30 = vpop.permute.xlu1 %743  ;;  %v748_v31 = vpop.permute.xlu0 %747 }
 0x125   : > { %v750_v32 = vsel %vm749_vm5, %v744_v30, %v746_v16  ;;  %v751_v33 = vsel %vm749_vm5, %v746_v16, %v748_v31  ;;  %v762_v34 = vsel %vm498_vm1, %v748_v31, 0 }
 0x126   : > { %v756_v35 = vsel %vm498_vm1, %v750_v32, 0  ;;  %v759_v36 = vsel %vm498_vm1, %v751_v33, 0  ;;  %797 = vmatpush.bf16.msra.mxu0 %v762_v34  ;;  %v591_v34 = vpop.f32.mrf.mxu2 }
 0x127   : > { %771 = vmatpush.bf16.msrb.mxu2 %v756_v35  ;;  %784 = vmatpush.bf16.msra.mxu3 %v759_v36 }
 0x128   : > { %1519 = vrot.lane.b32.xlu2 %v2710_v44, %s2554_s28 }
 0x12a   : > { %v1002_v37 = vpop.permute.xlu2 %1001  ;;  %1388 = vrot.lane.b32.xlu1 %v2702_v41, %s2552_s26  ;;  %1451 = vrot.lane.b32.xlu0 %v2739_v63, %s2553_s27 }
 0x12c   : > { %v742_v38 = vpop.permute.xlu1 %741  ;;  %v811_v39 = vpop.permute.xlu0 %810 }
 0x12d   : > { %2417 = vmatmul.msk.bf16.vlgmr.msrb.gmra.mxu0 %vm494_vm3, %v678_v28  ;;  %2418 = vmatmul.msk.bf16.vlgmr.msrb.gmra.mxu1 %vm494_vm3, %v678_v28 }
 0x12e   : > { %2419 = vmatmul.msk.bf16.vlgmr.msrb.gmra.mxu2 %vm494_vm3, %v742_v38  ;;  %2420 = vmatmul.msk.bf16.vlgmr.msra.gmra.mxu3 %vm494_vm3, %v742_v38 }
 0x130   : > { %1457 = vrot.lane.b32.xlu2 %v2745_v3, %s2552_s26 }
 0x131   : > { %v543_v32 = vpop.f32.mrf.mxu0 }
 0x132   : > { %v2889_v40 = vpop.permute.xlu2 %999  ;;  %1517 = vrot.lane.b32.xlu1 %v2702_v41, %s2554_s28  ;;  %1521 = vrot.lane.b32.xlu0 %v2704_v42, %s2554_s28 }
 0x134   : > { %v813_v43 = vpop.permute.xlu1 %812  ;;  %v809_v44 = vpop.permute.xlu0 %808 }
 0x135   : > { %v815_v45 = vsel %vm749_vm5, %v811_v39, %v813_v43  ;;  %v826_v46 = vsel %vm498_vm1, %v813_v43, 0  ;;  %v814_v47 = vsel %vm749_vm5, %v809_v44, %v811_v39 }
 0x136   : > { %v823_v48 = vsel %vm498_vm1, %v815_v45, 0  ;;  %v820_v49 = vsel %vm498_vm1, %v814_v47, 0  ;;  %861 = vmatpush.bf16.msrb.mxu3 %v826_v46 }
 0x137   : > { %835 = vmatpush.bf16.msra.mxu1 %v820_v49  ;;  %848 = vmatpush.bf16.msra.mxu2 %v823_v48 }
 0x138   : > { %1580 = vrot.lane.b32.xlu2 %v2739_v63, %s2555_s12 }
 0x139   : > { %v545_v43 = vpop.f32.mrf.mxu0 }
 0x13a   : > { %v2902_v41 = vpop.permute.xlu2 %1070  ;;  %1515 = vrot.lane.b32.xlu1 %v2737_v62, %s2555_s12  ;;  %1584 = vrot.lane.b32.xlu0 %v2726_v53, %s2554_s28  ;;  %v517_v62 = vpop.f32.mrf.mxu3 }
 0x13b   : > { %v2937_v5 = vadd.f32 %v576_v4, %v517_v62  ;;  %v1084_v15 = vsel %vm498_vm1, %v2902_v41, 0 }
 0x13c   : > { %v877_v42 = vpop.permute.xlu1 %876  ;;  %v940_v50 = vpop.permute.xlu0 %939 }
 0x13d   : > { %v891_v51 = vsel %vm498_vm1, %v877_v42, 0  ;;  %v943_v54 = vsel %vm878_vm6, %v938_v26, %v940_v50  ;;  %2421 = vmatmul.msk.bf16.vlgmr.msra.gmra.mxu0 %vm494_vm3, %v742_v38  ;;  %2422 = vmatmul.msk.bf16.vlgmr.msra.gmra.mxu1 %vm494_vm3, %v2844_v19 }
 0x13e   : > { %v949_v55 = vsel %vm498_vm1, %v943_v54, 0  ;;  %2423 = vmatmul.msk.bf16.vlgmr.msra.gmra.mxu2 %vm494_vm3, %v2844_v19  ;;  %2424 = vmatmul.msk.bf16.vlgmr.msrb.gmra.mxu3 %vm494_vm3, %v2844_v19 }
 0x13f   : > { %926 = vmatpush.bf16.msrb.mxu2 %v891_v51  ;;  %964 = vmatpush.bf16.msra.mxu3 %v949_v55 }
 0x142   : > { %v2918_v53 = vpop.permute.xlu2 %1134  ;;  %1586 = vrot.lane.b32.xlu1 %v2745_v3, %s2554_s28  ;;  %1582 = vrot.lane.b32.xlu0 %v2724_v52, %s2554_s28  ;;  %v519_v3 = vpop.f32.mrf.mxu3 }
 0x143   : > { %v1149_v20 = vsel %vm498_vm1, %v2918_v53, 0 }
 0x144   : > { %v871_v56 = vpop.permute.xlu1 %870  ;;  %v875_v57 = vpop.permute.xlu0 %874 }
 0x145   : > { %v879_v58 = vsel %vm878_vm6, %v2866_v29, %v875_v57  ;;  %v880_v59 = vsel %vm878_vm6, %v875_v57, %v877_v42 }
 0x146   : > { %v885_v60 = vsel %vm498_vm1, %v879_v58, 0  ;;  %v888_v61 = vsel %vm498_vm1, %v880_v59, 0 }
 0x147   : > { %913 = vmatpush.bf16.msrb.mxu1 %v888_v61  ;;  %900 = vmatpush.bf16.msrb.mxu0 %v885_v60 }
 0x14a   : > { %v2929_v63 = vpop.permute.xlu2 %1128  ;;  %v530_v16 = vpop.f32.mrf.mxu3 }
 0x14b   : > { %v2960_v26 = vadd.f32 %v589_v25, %v530_v16 }
 0x14c   : > { %v936_v0 = vpop.permute.xlu1 %935  ;;  %v1004_v1 = vpop.permute.xlu0 %1003 }
 0x14d   : > { %v1008_v52 = vsel %vm1007_vm7, %v1002_v37, %v1004_v1  ;;  %2425 = vmatmul.msk.bf16.vlgmr.msrb.gmra.mxu0 %vm494_vm3, %v871_v56  ;;  %2426 = vmatmul.msk.bf16.vlgmr.msrb.gmra.mxu1 %vm494_vm3, %v871_v56 }
 0x14e   : > { %v1014_v2 = vsel %vm498_vm1, %v1008_v52, 0  ;;  %2427 = vmatmul.msk.bf16.vlgmr.msrb.gmra.mxu2 %vm494_vm3, %v871_v56  ;;  %2428 = vmatmul.msk.bf16.vlgmr.msra.gmra.mxu3 %vm494_vm3, %v936_v0 }
 0x14f   : > { %1029 = vmatpush.bf16.msra.mxu2 %v1014_v2 }
 0x152   : > { %v2939_v6 = vpop.permute.xlu2 %1193  ;;  %v532_v24 = vpop.f32.mrf.mxu3 }
 0x154   : > { %v1006_v7 = vpop.permute.xlu1 %1005  ;;  %v942_v8 = vpop.permute.xlu0 %941 }
 0x155   : > { %v1009_v9 = vsel %vm1007_vm7, %v1004_v1, %v1006_v7  ;;  %v1020_v10 = vsel %vm498_vm1, %v1006_v7, 0  ;;  %v944_v11 = vsel %vm878_vm6, %v940_v50, %v942_v8  ;;  %v955_v12 = vsel %vm498_vm1, %v942_v8, 0 }
 0x156   : > { %v1017_v13 = vsel %vm498_vm1, %v1009_v9, 0  ;;  %v952_v14 = vsel %vm498_vm1, %v944_v11, 0  ;;  %990 = vmatpush.bf16.msra.mxu1 %v955_v12 }
 0x157   : > { %977 = vmatpush.bf16.msra.mxu0 %v952_v14  ;;  %1042 = vmatpush.bf16.msrb.mxu3 %v1017_v13 }
 0x15a   : > { %v1264_v21 = vpop.permute.xlu2 %1263  ;;  %v602_v33 = vpop.f32.mrf.mxu3 }
 0x15b   : > { %1119 = vmatpush.bf16.msra.mxu3 %v1084_v15  ;;  %1055 = vmatpush.bf16.msrb.mxu0 %v1020_v10  ;;  %v2964_v37 = vadd.f32 %v602_v33, %v543_v32  ;;  %v1278_v58 = vsel %vm498_vm1, %v1264_v21, 0 }
 0x15c   : > { %v1069_v18 = vpop.permute.xlu1 %1068  ;;  %v1065_v19 = vpop.permute.xlu0 %1064 }
 0x15d   : > { %v1073_v22 = vsel %vm1007_vm7, %v1069_v18, %v2902_v41  ;;  %2429 = vmatmul.msk.bf16.vlgmr.msra.gmra.mxu0 %vm494_vm3, %v936_v0  ;;  %2430 = vmatmul.msk.bf16.vlgmr.msra.gmra.mxu1 %vm494_vm3, %v936_v0 }
 0x15e   : > { %v1081_v23 = vsel %vm498_vm1, %v1073_v22, 0  ;;  %2431 = vmatmul.msk.bf16.vlgmr.msra.gmra.mxu2 %vm494_vm3, %v2889_v40  ;;  %2432 = vmatmul.msk.bf16.vlgmr.msrb.gmra.mxu3 %vm494_vm3, %v2889_v40 }
 0x15f   : > { %1106 = vmatpush.bf16.msrb.mxu2 %v1081_v23 }
 0x162   : > { %v1327_v31 = vpop.permute.xlu2 %1326  ;;  %v604_v45 = vpop.f32.mrf.mxu3 }
 0x163   : > { %1184 = vmatpush.bf16.msra.mxu2 %v1149_v20 }
 0x164   : > { %v1067_v27 = vpop.permute.xlu1 %1066  ;;  %v1196_v28 = vpop.permute.xlu0 %1195 }
 0x165   : > { %v1072_v29 = vsel %vm1007_vm7, %v1067_v27, %v1069_v18 }
 0x166   : > { %v1078_v30 = vsel %vm498_vm1, %v1072_v29, 0 }
 0x167   : > { %1093 = vmatpush.bf16.msrb.mxu1 %v1078_v30 }
 0x16a   : > { %v1325_v44 = vpop.permute.xlu2 %1324 }
 0x16b   : > { %v1330_v57 = vsel %vm1265_vm9, %v1325_v44, %v1327_v31 }
 0x16c   : > { %v1198_v35 = vpop.permute.xlu1 %1197  ;;  %v1131_v36 = vpop.permute.xlu0 %1130  ;;  %v1336_v52 = vsel %vm498_vm1, %v1330_v57, 0 }
 0x16d   : > { %v1201_v38 = vsel %vm1136_vm8, %v1196_v28, %v1198_v35  ;;  %2433 = vmatmul.msk.bf16.vlgmr.msrb.gmra.mxu0 %vm494_vm3, %v2889_v40  ;;  %2434 = vmatmul.msk.bf16.vlgmr.msrb.gmra.mxu1 %vm494_vm3, %v1065_v19 }
 0x16e   : > { %v1207_v39 = vsel %vm498_vm1, %v1201_v38, 0  ;;  %2435 = vmatmul.msk.bf16.vlgmr.msrb.gmra.mxu2 %vm494_vm3, %v1065_v19  ;;  %2436 = vmatmul.msk.bf16.vlgmr.msra.gmra.mxu3 %vm494_vm3, %v1065_v19 }
 0x16f   : > { %1222 = vmatpush.bf16.msrb.mxu3 %v1207_v39 }
 0x172   : > { %v1456_v42 = vpop.permute.xlu2 %1455 }
 0x174   : > { %v1133_v46 = vpop.permute.xlu1 %1132  ;;  %v1260_v47 = vpop.permute.xlu0 %1259 }
 0x175   : > { %v1137_v48 = vsel %vm1136_vm8, %v1131_v36, %v1133_v46  ;;  %v1138_v49 = vsel %vm1136_vm8, %v1133_v46, %v2918_v53 }
 0x176   : > { %v1143_v40 = vsel %vm498_vm1, %v1137_v48, 0  ;;  %v1146_v41 = vsel %vm498_vm1, %v1138_v49, 0 }
 0x177   : > { %1171 = vmatpush.bf16.msra.mxu1 %v1146_v41  ;;  %1158 = vmatpush.bf16.msra.mxu0 %v1143_v40 }
 0x17a   : > { %v1391_v61 = vpop.permute.xlu2 %1390 }
 0x17c   : > { %v1262_v50 = vpop.permute.xlu1 %1261  ;;  %v1258_v51 = vpop.permute.xlu0 %1257 }
 0x17d   : > { %v1266_v54 = vsel %vm1265_vm9, %v1260_v47, %v1262_v50  ;;  %v1267_v55 = vsel %vm1265_vm9, %v1262_v50, %v1264_v21  ;;  %2437 = vmatmul.msk.bf16.vlgmr.msra.gmra.mxu0 %vm494_vm3, %v2929_v63  ;;  %2438 = vmatmul.msk.bf16.vlgmr.msra.gmra.mxu1 %vm494_vm3, %v2929_v63 }
 0x17e   : > { %v1272_v53 = vsel %vm498_vm1, %v1266_v54, 0  ;;  %v1275_v56 = vsel %vm498_vm1, %v1267_v55, 0  ;;  %2439 = vmatmul.msk.bf16.vlgmr.msra.gmra.mxu2 %vm494_vm3, %v2929_v63  ;;  %2440 = vmatmul.msk.bf16.vlgmr.msrb.gmra.mxu3 %vm494_vm3, %v2939_v6 }
 0x17f   : > { %1300 = vmatpush.bf16.msra.mxu3 %v1275_v56  ;;  %1287 = vmatpush.bf16.msrb.mxu2 %v1272_v53 }
 0x182   : > { %v1520_v11 = vpop.permute.xlu2 %1519 }
 0x184   : > { %v1200_v59 = vpop.permute.xlu1 %1199  ;;  %v1329_v60 = vpop.permute.xlu0 %1328 }
 0x185   : > { %v1202_v62 = vsel %vm1136_vm8, %v1198_v35, %v1200_v59  ;;  %v1213_v0 = vsel %vm498_vm1, %v1200_v59, 0  ;;  %v1331_v1 = vsel %vm1265_vm9, %v1327_v31, %v1329_v60  ;;  %v1342_v63 = vsel %vm498_vm1, %v1329_v60, 0 }
 0x186   : > { %v1210_v2 = vsel %vm498_vm1, %v1202_v62, 0  ;;  %v1339_v3 = vsel %vm498_vm1, %v1331_v1, 0  ;;  %1248 = vmatpush.bf16.msrb.mxu1 %v1213_v0  ;;  %1377 = vmatpush.bf16.msrb.mxu3 %v1342_v63  ;;  %v1644_v0 = vld [vmem:[%s3209_s6] sm:$0xff] }
 0x187   : > { %1235 = vmatpush.bf16.msrb.mxu0 %v1210_v2  ;;  %1364 = vmatpush.bf16.msra.mxu2 %v1339_v3 }
 0x18a   : > { %1351 = vmatpush.bf16.msra.mxu1 %v1336_v52  ;;  %v1458_v16 = vpop.permute.xlu2 %1457  ;;  %v2556_v52 = vmov 0  }
 0x18b   : > { %1313 = vmatpush.bf16.msra.mxu0 %v1278_v58  ;;  %v1460_v20 = vsel %vm1394_vm10, %v1456_v42, %v1458_v16  ;;  %v1471_v24 = vsel %vm498_vm1, %v1458_v16, 0  ;;  %2530 = vset.pattern.permute.xlu1 %v2556_v52  ;;  %1668 = vst.msk [vmem:[#allocation3] sm:$0xf] %vm1667_vm12, %v2556_v52  ;;  %vm1689_vm12 = vcmask 396288  }
 0x18c   : > { %v1323_v4 = vpop.permute.xlu1 %1322  ;;  %v1393_v7 = vpop.permute.xlu0 %1392  ;;  %2531 = vset.pattern.permute.xlu0 %v2556_v52  ;;  %1647 = vperm.xlu1 %2530, %v1644_v0   ;;  %1670 = vst.msk [vmem:[#allocation3 + $0x8] sm:$0xf] %vm1669_vm13, %v2556_v52 }
 0x18d   : > { %v1396_v8 = vsel %vm1394_vm10, %v1391_v61, %v1393_v7  ;;  %v1407_v9 = vsel %vm498_vm1, %v1393_v7, 0  ;;  %2441 = vmatmul.msk.bf16.vlgmr.msrb.gmra.mxu0 %vm494_vm3, %v2939_v6  ;;  %2442 = vmatmul.msk.bf16.vlgmr.msrb.gmra.mxu1 %vm494_vm3, %v2939_v6 }
 0x18e   : > { %v1404_v10 = vsel %vm498_vm1, %v1396_v8, 0  ;;  %2443 = vmatmul.msk.bf16.vlgmr.msrb.gmra.mxu2 %vm494_vm3, %v1258_v51  ;;  %2444 = vmatmul.msk.bf16.vlgmr.msra.gmra.mxu3 %vm494_vm3, %v1258_v51 }
 0x18f   : > { %1429 = vmatpush.bf16.msrb.mxu1 %v1404_v10  ;;  %1442 = vmatpush.bf16.msrb.mxu2 %v1407_v9 }
 0x194   : > { %v1454_v12 = vpop.permute.xlu1 %1453  ;;  %v1387_v13 = vpop.permute.xlu0 %1386 }
 0x195   : > { %v1459_v14 = vsel %vm1394_vm10, %v1454_v12, %v1456_v42  ;;  %v1581_v12 = vpop.permute.xlu2 %1580 }
 0x196   : > { %v1465_v15 = vsel %vm498_vm1, %v1459_v14, 0 }
 0x197   : > { %1480 = vmatpush.bf16.msra.mxu3 %v1465_v15 }
 0x19a   : > { %v641_v17 = vpop.f32.mrf.mxu0  ;;  %v654_v18 = vpop.f32.mrf.mxu1 }
 0x19b   : > { %v671_v6 = vadd.f32 %v641_v17, %v2937_v5  ;;  %v672_v19 = vadd.f32 %v654_v18, %v2960_v26  ;;  %v1468_v5 = vsel %vm498_vm1, %v1460_v20, 0 }
 0x19c   : > { %v1389_v21 = vpop.permute.xlu1 %1388  ;;  %v3013_v22 = vpop.permute.xlu0 %1451 }
 0x19d   : > { %v1395_v23 = vsel %vm1394_vm10, %v1389_v21, %v1391_v61  ;;  %2445 = vmatmul.msk.bf16.vlgmr.msra.gmra.mxu0 %vm494_vm3, %v1258_v51  ;;  %2446 = vmatmul.msk.bf16.vlgmr.msra.gmra.mxu1 %vm494_vm3, %v1323_v4 }
 0x19e   : > { %v1401_v25 = vsel %vm498_vm1, %v1395_v23, 0  ;;  %2447 = vmatmul.msk.bf16.vlgmr.msra.gmra.mxu2 %vm494_vm3, %v1323_v4  ;;  %2448 = vmatmul.msk.bf16.vlgmr.msrb.gmra.mxu3 %vm494_vm3, %v1323_v4 }
 0x19f   : > { %1506 = vmatpush.bf16.msra.mxu1 %v1471_v24  ;;  %1416 = vmatpush.bf16.msrb.mxu0 %v1401_v25 }
 0x1a1   : > { %v667_v26 = vpop.f32.mrf.mxu2  ;;  %v708_v27 = vpop.f32.mrf.mxu3 }
 0x1a2   : > { %v673_v28 = vadd.f32 %v667_v26, %v2964_v37  ;;  %v738_v29 = vadd.f32 %v708_v27, %v671_v6  ;;  %v643_v30 = vpop.f32.mrf.mxu0  ;;  %v656_v31 = vpop.f32.mrf.mxu1 }
 0x1a3   : > { %1493 = vmatpush.bf16.msra.mxu0 %v1468_v5 }
 0x1a4   : > { %v1518_v32 = vpop.permute.xlu1 %1517  ;;  %v1522_v33 = vpop.permute.xlu0 %1521 }
 0x1a5   : > { %v1524_v34 = vsel %vm1523_vm11, %v1518_v32, %v1520_v11  ;;  %v1525_v35 = vsel %vm1523_vm11, %v1520_v11, %v1522_v33  ;;  %v1536_v47 = vsel %vm498_vm1, %v1522_v33, 0 }
 0x1a6   : > { %v1530_v36 = vsel %vm498_vm1, %v1524_v34, 0  ;;  %v1533_v38 = vsel %vm498_vm1, %v1525_v35, 0 }
 0x1a7   : > { %1558 = vmatpush.bf16.msrb.mxu3 %v1533_v38  ;;  %1545 = vmatpush.bf16.msra.mxu2 %v1530_v36 }
 0x1a9   : > { %v669_v39 = vpop.f32.mrf.mxu2  ;;  %v710_v43 = vpop.f32.mrf.mxu3 }
 0x1aa   : > { %v721_v44 = vpop.f32.mrf.mxu0  ;;  %v734_v37 = vpop.f32.mrf.mxu1 }
 0x1ab   : > { %v739_v45 = vadd.f32 %v721_v44, %v672_v19  ;;  %v740_v46 = vadd.f32 %v734_v37, %v673_v28 }
 0x1ac   : > { %v1516_v48 = vpop.permute.xlu1 %1515  ;;  %v1585_v49 = vpop.permute.xlu0 %1584 }
 0x1ad   : > { %2449 = vmatmul.msk.bf16.vlgmr.msrb.gmra.mxu0 %vm494_vm3, %v1387_v13  ;;  %2450 = vmatmul.msk.bf16.vlgmr.msrb.gmra.mxu1 %vm494_vm3, %v1387_v13 }
 0x1ae   : > { %2451 = vmatmul.msk.bf16.vlgmr.msrb.gmra.mxu2 %vm494_vm3, %v1387_v13  ;;  %2452 = vmatmul.msk.bf16.vlgmr.msra.gmra.mxu3 %vm494_vm3, %v3013_v22 }
 0x1af   : > { %1571 = vmatpush.bf16.msrb.mxu0 %v1536_v47 }
 0x1b1   : > { %v773_v40 = vpop.f32.mrf.mxu2  ;;  %v786_v41 = vpop.f32.mrf.mxu3 }
 0x1b2   : > { %v803_v42 = vadd.f32 %v773_v40, %v738_v29  ;;  %v804_v50 = vadd.f32 %v786_v41, %v739_v45  ;;  %v723_v51 = vpop.f32.mrf.mxu0  ;;  %v736_v54 = vpop.f32.mrf.mxu1 }
 0x1b4   : > { %v1587_v55 = vpop.permute.xlu1 %1586  ;;  %v1583_v53 = vpop.permute.xlu0 %1582 }
 0x1b5   : > { %v1589_v56 = vsel %vm1523_vm11, %v1585_v49, %v1587_v55  ;;  %v1600_v57 = vsel %vm498_vm1, %v1587_v55, 0  ;;  %v1588_v58 = vsel %vm1523_vm11, %v1583_v53, %v1585_v49 }
 0x1b6   : > { %v1597_v59 = vsel %vm498_vm1, %v1589_v56, 0  ;;  %v1594_v60 = vsel %vm498_vm1, %v1588_v58, 0  ;;  %1635 = vmatpush.bf16.msra.mxu3 %v1600_v57 }
 0x1b7   : > { %1609 = vmatpush.bf16.msrb.mxu1 %v1594_v60  ;;  %1622 = vmatpush.bf16.msrb.mxu2 %v1597_v59 }
 0x1b9   : > { %v775_v61 = vpop.f32.mrf.mxu2  ;;  %v788_v62 = vpop.f32.mrf.mxu3 }
 0x1ba   : > { %v799_v1 = vpop.f32.mrf.mxu0  ;;  %v837_v63 = vpop.f32.mrf.mxu1 }
 0x1bb   : > { %v805_v2 = vadd.f32 %v799_v1, %v740_v46  ;;  %v867_v3 = vadd.f32 %v837_v63, %v803_v42 }
 0x1bd   : > { %2453 = vmatmul.msk.bf16.vlgmr.msra.gmra.mxu0 %vm494_vm3, %v3013_v22  ;;  %2454 = vmatmul.msk.bf16.vlgmr.msra.gmra.mxu1 %vm494_vm3, %v3013_v22 }
 0x1be   : > { %2455 = vmatmul.msk.bf16.vlgmr.msra.gmra.mxu2 %vm494_vm3, %v1516_v48  ;;  %2456 = vmatmul.msk.bf16.vlgmr.msrb.gmra.mxu3 %vm494_vm3, %v1516_v48 }
 0x1c1   : > { %v850_v4 = vpop.f32.mrf.mxu2  ;;  %v863_v7 = vpop.f32.mrf.mxu3 }
 0x1c2   : > { %v868_v8 = vadd.f32 %v850_v4, %v804_v50  ;;  %v869_v9 = vadd.f32 %v863_v7, %v805_v2  ;;  %v801_v10 = vpop.f32.mrf.mxu0  ;;  %v839_v11 = vpop.f32.mrf.mxu1 }
 0x1c9   : > { %v852_v13 = vpop.f32.mrf.mxu2  ;;  %v865_v14 = vpop.f32.mrf.mxu3 }
 0x1ca   : > { %v902_v15 = vpop.f32.mrf.mxu0  ;;  %v915_v16 = vpop.f32.mrf.mxu1 }
 0x1cb   : > { %v932_v17 = vadd.f32 %v902_v15, %v867_v3  ;;  %v933_v18 = vadd.f32 %v915_v16, %v868_v8 }
 0x1cd   : > { %2457 = vmatmul.msk.bf16.vlgmr.msrb.gmra.mxu0 %vm494_vm3, %v1516_v48  ;;  %2458 = vmatmul.msk.bf16.vlgmr.msrb.gmra.mxu1 %vm494_vm3, %v1581_v12 }
 0x1ce   : > { %2459 = vmatmul.msk.bf16.vlgmr.msrb.gmra.mxu2 %vm494_vm3, %v1581_v12  ;;  %2460 = vmatmul.msk.bf16.vlgmr.msra.gmra.mxu3 %vm494_vm3, %v1581_v12 }
 0x1d1   : > { %v928_v6 = vpop.f32.mrf.mxu2  ;;  %v966_v19 = vpop.f32.mrf.mxu3 }
 0x1d2   : > { %v934_v20 = vadd.f32 %v928_v6, %v869_v9  ;;  %v996_v21 = vadd.f32 %v966_v19, %v932_v17  ;;  %v904_v22 = vpop.f32.mrf.mxu0  ;;  %v917_v23 = vpop.f32.mrf.mxu1 }
 0x1d9   : > { %v930_v24 = vpop.f32.mrf.mxu2  ;;  %v968_v25 = vpop.f32.mrf.mxu3 }
 0x1da   : > { %v979_v5 = vpop.f32.mrf.mxu0  ;;  %v992_v26 = vpop.f32.mrf.mxu1 }
 0x1db   : > { %v997_v27 = vadd.f32 %v979_v5, %v933_v18  ;;  %v998_v28 = vadd.f32 %v992_v26, %v934_v20 }
 0x1e1   : > { %v1031_v29 = vpop.f32.mrf.mxu2  ;;  %v1044_v30 = vpop.f32.mrf.mxu3 }
 0x1e2   : > { %v1061_v31 = vadd.f32 %v1031_v29, %v996_v21  ;;  %v1062_v32 = vadd.f32 %v1044_v30, %v997_v27  ;;  %v981_v33 = vpop.f32.mrf.mxu0  ;;  %v994_v34 = vpop.f32.mrf.mxu1 }
 0x1e9   : > { %v1033_v35 = vpop.f32.mrf.mxu2  ;;  %v1046_v36 = vpop.f32.mrf.mxu3 }
 0x1ea   : > { %v1057_v38 = vpop.f32.mrf.mxu0  ;;  %v1095_v39 = vpop.f32.mrf.mxu1 }
 0x1eb   : > { %v1063_v43 = vadd.f32 %v1057_v38, %v998_v28  ;;  %v1125_v44 = vadd.f32 %v1095_v39, %v1061_v31 }
 0x1f1   : > { %v1108_v37 = vpop.f32.mrf.mxu2  ;;  %v1121_v45 = vpop.f32.mrf.mxu3 }
 0x1f2   : > { %v1126_v46 = vadd.f32 %v1108_v37, %v1062_v32  ;;  %v1127_v47 = vadd.f32 %v1121_v45, %v1063_v43  ;;  %v1059_v48 = vpop.f32.mrf.mxu0  ;;  %v1097_v49 = vpop.f32.mrf.mxu1 }
 0x1f9   : > { %v1110_v40 = vpop.f32.mrf.mxu2  ;;  %v1123_v41 = vpop.f32.mrf.mxu3 }
 0x1fa   : > { %v1160_v42 = vpop.f32.mrf.mxu0  ;;  %v1173_v50 = vpop.f32.mrf.mxu1 }
 0x1fb   : > { %v1190_v51 = vadd.f32 %v1160_v42, %v1125_v44  ;;  %v1191_v54 = vadd.f32 %v1173_v50, %v1126_v46 }
 0x1fe   : > { %v1648_v49 = vpop.permute.xlu1 %1647 }
 0x201   : > { %v1186_v55 = vpop.f32.mrf.mxu2  ;;  %v1224_v53 = vpop.f32.mrf.mxu3 }
 0x202   : > { %v1192_v56 = vadd.f32 %v1186_v55, %v1127_v47  ;;  %v1254_v57 = vadd.f32 %v1224_v53, %v1190_v51  ;;  %v1162_v58 = vpop.f32.mrf.mxu0  ;;  %v1175_v59 = vpop.f32.mrf.mxu1 }
 0x209   : > { %v1188_v60 = vpop.f32.mrf.mxu2  ;;  %v1226_v61 = vpop.f32.mrf.mxu3 }
 0x20a   : > { %v1237_v62 = vpop.f32.mrf.mxu0  ;;  %v1250_v0 = vpop.f32.mrf.mxu1 }
 0x20b   : > { %v1255_v30 = vadd.f32 %v1237_v62, %v1191_v54  ;;  %v1256_v31 = vadd.f32 %v1250_v0, %v1192_v56  ;;  %v1656_v54 = vld [vmem:[%s3206_s3] sm:$0x7] }
 0x20c   : > { %v1659_v60 = vperm.slane %v1656_v54, 1  ;;  %v1658_v61 = vperm.slane %v1656_v54, 0 }
 0x211   : > { %v1289_v1 = vpop.f32.mrf.mxu2  ;;  %v1302_v63 = vpop.f32.mrf.mxu3 }
 0x212   : > { %v1239_v2 = vpop.f32.mrf.mxu0  ;;  %v1252_v3 = vpop.f32.mrf.mxu1  ;;  %v1319_v26 = vadd.f32 %v1289_v1, %v1254_v57  ;;  %v1320_v33 = vadd.f32 %v1302_v63, %v1255_v30  ;;  %v1660_v63 = vperm.slane %v1656_v54, 2 }
 0x219   : > { %v1291_v4 = vpop.f32.mrf.mxu2  ;;  %v1304_v7 = vpop.f32.mrf.mxu3 }
 0x21a   : > { %v1315_v8 = vpop.f32.mrf.mxu0  ;;  %v1353_v9 = vpop.f32.mrf.mxu1 }
 0x21b   : > { %v1383_v29 = vadd.f32 %v1353_v9, %v1319_v26  ;;  %v1321_v34 = vadd.f32 %v1315_v8, %v1256_v31 }
 0x221   : > { %v1366_v10 = vpop.f32.mrf.mxu2  ;;  %v1379_v11 = vpop.f32.mrf.mxu3 }
 0x222   : > { %v1317_v12 = vpop.f32.mrf.mxu0  ;;  %v1355_v13 = vpop.f32.mrf.mxu1  ;;  %v1384_v39 = vadd.f32 %v1366_v10, %v1320_v33  ;;  %v1385_v43 = vadd.f32 %v1379_v11, %v1321_v34 }
 0x223   : > { %v3061_v13 = vld [vmem:[%s3210_s7] sm:$0xf] }
 0x229   : > { %v1368_v14 = vpop.f32.mrf.mxu2  ;;  %v1381_v15 = vpop.f32.mrf.mxu3 }
 0x22a   : > { %v1418_v16 = vpop.f32.mrf.mxu0  ;;  %v1431_v17 = vpop.f32.mrf.mxu1  ;;  %v1695_v14 = vunpack.c.l.b16 %v3061_v13 }
 0x22b   : > { %v1448_v32 = vadd.f32 %v1418_v16, %v1383_v29  ;;  %v1449_v46 = vadd.f32 %v1431_v17, %v1384_v39 }
 0x22c   : > { %v1696_v15 = vpack.c.b16 %v1695_v14, %v1695_v14 }
 0x231   : > { %v1444_v18 = vpop.f32.mrf.mxu2  ;;  %v1482_v6 = vpop.f32.mrf.mxu3 }
 0x232   : > { %v1420_v19 = vpop.f32.mrf.mxu0  ;;  %v1433_v20 = vpop.f32.mrf.mxu1  ;;  %v1512_v35 = vadd.f32 %v1482_v6, %v1448_v32  ;;  %v1450_v47 = vadd.f32 %v1444_v18, %v1385_v43 }
 0x239   : > { %v1446_v21 = vpop.f32.mrf.mxu2  ;;  %v1484_v22 = vpop.f32.mrf.mxu3 }
 0x23a   : > { %v1495_v23 = vpop.f32.mrf.mxu0  ;;  %v1508_v24 = vpop.f32.mrf.mxu1 }
 0x23b   : > { %v1513_v40 = vadd.f32 %v1495_v23, %v1449_v46  ;;  %v1514_v41 = vadd.f32 %v1508_v24, %v1450_v47 }
 0x241   : > { %v1547_v25 = vpop.f32.mrf.mxu2  ;;  %v1560_v5 = vpop.f32.mrf.mxu3 }
 0x242   : > { %v1497_v27 = vpop.f32.mrf.mxu0  ;;  %v1510_v28 = vpop.f32.mrf.mxu1  ;;  %v1577_v44 = vadd.f32 %v1547_v25, %v1512_v35  ;;  %v1578_v42 = vadd.f32 %v1560_v5, %v1513_v40 }
 0x249   : > { %v1549_v36 = vpop.f32.mrf.mxu2  ;;  %v1562_v38 = vpop.f32.mrf.mxu3 }
 0x24a   : > { %v1573_v37 = vpop.f32.mrf.mxu0  ;;  %v1611_v45 = vpop.f32.mrf.mxu1 }
 0x24b   : > { %v1641_v48 = vadd.f32 %v1611_v45, %v1577_v44  ;;  %v1579_v50 = vadd.f32 %v1573_v37, %v1514_v41 }
 0x24d   : > { %v1650_v51 = vadd.f32 %v1648_v49, %v1641_v48 }
 0x24f   : > { %v1653_v62 = vmax.f32 %v1650_v51, 0.0 }
 0x251   : > { %v1624_v55 = vpop.f32.mrf.mxu2  ;;  %v1637_v53 = vpop.f32.mrf.mxu3  ;;  %v1664_v7 = vmul.f32 %v1658_v61, %v1653_v62 }
 0x252   : > { %v1642_v56 = vadd.f32 %v1624_v55, %v1578_v42  ;;  %v1643_v57 = vadd.f32 %v1637_v53, %v1579_v50  ;;  %v1575_v58 = vpop.f32.mrf.mxu0  ;;  %v1613_v59 = vpop.f32.mrf.mxu1 }
 0x254   : > { %v1651_v0 = vadd.f32 %v1648_v49, %v1642_v56  ;;  %v1652_v1 = vadd.f32 %v1648_v49, %v1643_v57 }
 0x256   : > { %v1654_v2 = vmax.f32 %v1651_v0, 0.0  ;;  %v1655_v3 = vmax.f32 %v1652_v1, 0.0 }
 0x258   : > { %v1665_v4 = vmul.f32 %v1659_v60, %v1654_v2  ;;  %v1666_v8 = vmul.f32 %v1660_v63, %v1655_v3 }
 0x259   : > { %v1626_v9 = vpop.f32.mrf.mxu2  ;;  %v1639_v10 = vpop.f32.mrf.mxu3 }
 0x25a   : > { %v1671_v11 = vpack.c.bf16 %v1665_v4, %v1664_v7  ;;  %v1672_v12 = vpack.c.bf16 %v1666_v8, %v1666_v8 }
 0x25c   : > { %1675 = vrot.lane.b32.xlu2 %v1671_v11, %s2557_s14  ;;  %1677 = vrot.lane.b32.xlu0 %v1672_v12, %s2557_s14 }
 0x264   : > { %1697 = vrot.lane.b32.xlu2 %v1696_v15, %s2542_s16  ;;  %s2503_s16 = smul.u32 24, %s3214_s10 }
 0x2b6   : > { %v1676_v16 = vpop.permute.xlu2 %1675 }
 0x2b7   : > { %v1679_v17 = vrot.slane %v1676_v16, 4 }
 0x2b9   : > { %v1681_v18 = vsel %vm1680_vm0, %v1679_v17, %v1676_v16 }
 0x2ba   : > { %1688 = vst.msk [vmem:[#allocation3] sm:$0xff] %vm1687_vm2, %v1681_v18 }
 0x2be   : > { %v1698_v27 = vpop.permute.xlu2 %1697 }
 0x2c1   : > { %v1692_v6 = vld [vmem:[#allocation3] sm:$0xff] }
 0x2c2   : > { %v1701_v19 = vunpack.c.l.b16 %v1692_v6  ;;  %v1702_v52 = vunpack.c.h.b16 %v1692_v6 }
 0x2c4   : > { %v1704_v20 = vpack.c.b16 %v1701_v19, %v1701_v19  ;;  %v3072_v22 = vpack.c.b16 %v1702_v52, %v1702_v52 }
 0x2c6   : > { %1819 = vrot.lane.b32.xlu2 %v1704_v20, %s2541_s11  ;;  %1707 = vrot.lane.b32.xlu0 %v1704_v20, %s2540_s29  ;;  %v1770_v21 = vsel %vm498_vm1, %v1704_v20, 0  ;;  %v1773_v42 = vsel %vm498_vm1, %v3072_v22, 0 }
 0x2c7   : > { %1785 = vmatpush.bf16.msrb.mxu3 %v1770_v21 }
 0x2ca   : > { %2464 = vmatmul.msk.bf16.vlgmr.msrb.gmra.mxu3 %vm494_vm3, %v3061_v13 }
 0x2ce   : > { %1821 = vrot.lane.b32.xlu0 %v3072_v22, %s2541_s11  ;;  %v1678_v23 = vpop.permute.xlu0 %1677 }
 0x2cf   : > { %v1682_v24 = vsel %vm1680_vm0, %v1679_v17, %v1678_v23 }
 0x2d0   : > { %1690 = vst.msk [vmem:[#allocation3 + $0x8] sm:$0xf] %vm1689_vm12, %v1682_v24 }
 0x2d6   : > { %1885 = vrot.lane.b32.xlu0 %v3072_v22, %s2544_s18 }
 0x2d7   : > { %v1693_v25 = vld [vmem:[#allocation3 + $0x8] sm:$0xf] }
 0x2d8   : > { %v1703_v5 = vunpack.c.l.b16 %v1693_v25 }
 0x2da   : > { %v1706_v26 = vpack.c.b16 %v1703_v5, %v1703_v5 }
 0x2dc   : > { %1823 = vrot.lane.b32.xlu2 %v1706_v26, %s2541_s11  ;;  %1711 = vrot.lane.b32.xlu1 %v1706_v26, %s2540_s29  ;;  %v1776_v50 = vsel %vm498_vm1, %v1706_v26, 0 }
 0x2de   : > { %1883 = vrot.lane.b32.xlu0 %v1704_v20, %s2544_s18 }
 0x2e4   : > { %1881 = vrot.lane.b32.xlu2 %v1696_v15, %s2546_s20  ;;  %1709 = vrot.lane.b32.xlu1 %v3072_v22, %s2540_s29 }
 0x2e6   : > { %1947 = vrot.lane.b32.xlu0 %v1704_v20, %s2545_s19 }
 0x2ec   : > { %1945 = vrot.lane.b32.xlu2 %v1696_v15, %s2547_s21  ;;  %1817 = vrot.lane.b32.xlu1 %v1696_v15, %s2543_s17 }
 0x2ee   : > { %2013 = vrot.lane.b32.xlu0 %v3072_v22, %s2548_s22 }
 0x2f4   : > { %2011 = vrot.lane.b32.xlu2 %v1704_v20, %s2548_s22  ;;  %1887 = vrot.lane.b32.xlu1 %v1706_v26, %s2544_s18 }
 0x2f6   : > { %2009 = vrot.lane.b32.xlu0 %v1696_v15, %s2549_s23 }
 0x2fc   : > { %2077 = vrot.lane.b32.xlu2 %v3072_v22, %s2550_s24  ;;  %1951 = vrot.lane.b32.xlu1 %v1706_v26, %s2545_s19 }
 0x2fe   : > { %2079 = vrot.lane.b32.xlu0 %v1706_v26, %s2550_s24 }
 0x304   : > { %2015 = vrot.lane.b32.xlu2 %v1706_v26, %s2548_s22  ;;  %1949 = vrot.lane.b32.xlu1 %v3072_v22, %s2545_s19  ;;  %s349_s19 = scalar_lea.vmem %s3212_s9, %s2503_s16 }
 0x306   : > { %2137 = vrot.lane.b32.xlu0 %v1696_v15, %s2553_s27 }
 0x30c   : > { %2143 = vrot.lane.b32.xlu2 %v1706_v26, %s2552_s26  ;;  %2075 = vrot.lane.b32.xlu1 %v1704_v20, %s2550_s24 }
 0x30e   : > { %2201 = vrot.lane.b32.xlu0 %v1696_v15, %s2555_s12 }
 0x314   : > { %2207 = vrot.lane.b32.xlu2 %v1706_v26, %s2554_s28  ;;  %2073 = vrot.lane.b32.xlu1 %v1696_v15, %s2551_s25 }
 0x31c   : > { %2205 = vrot.lane.b32.xlu2 %v3072_v22, %s2554_s28  ;;  %2141 = vrot.lane.b32.xlu1 %v3072_v22, %s2552_s26 }
 0x320   : > { %v1820_v28 = vpop.permute.xlu2 %1819 }
 0x324   : > { %2139 = vrot.lane.b32.xlu1 %v1704_v20, %s2552_s26 }
 0x32c   : > { %2203 = vrot.lane.b32.xlu1 %v1704_v20, %s2554_s28 }
 0x336   : > { %v1824_v30 = vpop.permute.xlu2 %1823 }
 0x337   : > { %v1837_v51 = vsel %vm498_vm1, %v1824_v30, 0 }
 0x338   : > { %v1708_v29 = vpop.permute.xlu0 %1707 }
 0x33e   : > { %v3114_v35 = vpop.permute.xlu2 %1881 }
 0x340   : > { %v1822_v31 = vpop.permute.xlu0 %1821 }
 0x341   : > { %v1826_v32 = vsel %vm749_vm5, %v1822_v31, %v1824_v30  ;;  %v1825_v36 = vsel %vm749_vm5, %v1820_v28, %v1822_v31 }
 0x342   : > { %v1834_v33 = vsel %vm498_vm1, %v1826_v32, 0  ;;  %v1831_v43 = vsel %vm498_vm1, %v1825_v36, 0 }
 0x343   : > { %1859 = vmatpush.bf16.msra.mxu3 %v1834_v33  ;;  %v2265_v33 = vld [vmem:[%s3211_s8] sm:$0xff] }
 0x344   : > { %2268 = vperm.xlu0 %2531, %v2265_v33  }
 0x346   : > { %v3120_v37 = vpop.permute.xlu2 %1945 }
 0x348   : > { %v1886_v34 = vpop.permute.xlu0 %1885 }
 0x34e   : > { %v1712_v38 = vpop.permute.xlu1 %1711  ;;  %v2012_v55 = vpop.permute.xlu2 %2011 }
 0x34f   : > { %v1725_v39 = vsel %vm498_vm1, %v1712_v38, 0 }
 0x350   : > { %1760 = vmatpush.bf16.msra.mxu2 %v1725_v39  ;;  %v1884_v44 = vpop.permute.xlu0 %1883 }
 0x351   : > { %v1889_v41 = vsel %vm878_vm6, %v1884_v44, %v1886_v34 }
 0x352   : > { %v1895_v54 = vsel %vm498_vm1, %v1889_v41, 0 }
 0x353   : > { %2463 = vmatmul.msk.bf16.vlgmr.msra.gmra.mxu2 %vm494_vm3, %v1698_v27 }
 0x354   : > { %1846 = vmatpush.bf16.msrb.mxu2 %v1831_v43 }
 0x356   : > { %v1710_v45 = vpop.permute.xlu1 %1709  ;;  %v2078_v61 = vpop.permute.xlu2 %2077 }
 0x357   : > { %v1713_v46 = vsel %vm617_vm4, %v1708_v29, %v1710_v45  ;;  %v1714_v47 = vsel %vm617_vm4, %v1710_v45, %v1712_v38 }
 0x358   : > { %v1719_v48 = vsel %vm498_vm1, %v1713_v46, 0  ;;  %v1722_v49 = vsel %vm498_vm1, %v1714_v47, 0  ;;  %v1948_v40 = vpop.permute.xlu0 %1947 }
 0x359   : > { %1734 = vmatpush.bf16.msra.mxu0 %v1719_v48  ;;  %1747 = vmatpush.bf16.msra.mxu1 %v1722_v49 }
 0x35c   : > { %2461 = vmatmul.msk.bf16.vlgmr.msra.gmra.mxu0 %vm494_vm3, %v1698_v27  ;;  %2462 = vmatmul.msk.bf16.vlgmr.msra.gmra.mxu1 %vm494_vm3, %v1698_v27 }
 0x35d   : > { %1798 = vmatpush.bf16.msrb.mxu0 %v1773_v42  ;;  %1811 = vmatpush.bf16.msrb.mxu1 %v1776_v50 }
 0x35e   : > { %v1818_v53 = vpop.permute.xlu1 %1817  ;;  %v2016_v7 = vpop.permute.xlu2 %2015 }
 0x35f   : > { %2468 = vmatmul.msk.bf16.vlgmr.msra.gmra.mxu3 %vm494_vm3, %v1818_v53  ;;  %v2029_v15 = vsel %vm498_vm1, %v2016_v7, 0 }
 0x360   : > { %v2014_v56 = vpop.permute.xlu0 %2013 }
 0x361   : > { %1872 = vmatpush.bf16.msra.mxu0 %v1837_v51  ;;  %1910 = vmatpush.bf16.msra.mxu1 %v1895_v54  ;;  %v2017_v57 = vsel %vm1136_vm8, %v2012_v55, %v2014_v56  ;;  %v2018_v14 = vsel %vm1136_vm8, %v2014_v56, %v2016_v7 }
 0x362   : > { %v2023_v62 = vsel %vm498_vm1, %v2017_v57, 0  ;;  %v2026_v16 = vsel %vm498_vm1, %v2018_v14, 0 }
 0x363   : > { %2467 = vmatmul.msk.bf16.vlgmr.msrb.gmra.mxu2 %vm494_vm3, %v1818_v53 }
 0x366   : > { %v1888_v58 = vpop.permute.xlu1 %1887  ;;  %v2144_v17 = vpop.permute.xlu2 %2143 }
 0x367   : > { %v1890_v59 = vsel %vm878_vm6, %v1886_v34, %v1888_v58  ;;  %v1901_v60 = vsel %vm498_vm1, %v1888_v58, 0  ;;  %v2157_v6 = vsel %vm498_vm1, %v2144_v17, 0  ;;  %v1787_v34 = vpop.f32.mrf.mxu3 }
 0x368   : > { %v1898_v0 = vsel %vm498_vm1, %v1890_v59, 0  ;;  %1936 = vmatpush.bf16.msrb.mxu3 %v1901_v60  ;;  %v2010_v1 = vpop.permute.xlu0 %2009 }
 0x369   : > { %1923 = vmatpush.bf16.msra.mxu2 %v1898_v0 }
 0x36c   : > { %2038 = vmatpush.bf16.msra.mxu3 %v2023_v62  ;;  %2465 = vmatmul.msk.bf16.vlgmr.msrb.gmra.mxu0 %vm494_vm3, %v3061_v13 }
 0x36d   : > { %2466 = vmatmul.msk.bf16.vlgmr.msrb.gmra.mxu1 %vm494_vm3, %v3061_v13 }
 0x36e   : > { %v1952_v63 = vpop.permute.xlu1 %1951  ;;  %v2208_v52 = vpop.permute.xlu2 %2207 }
 0x36f   : > { %v1965_v2 = vsel %vm498_vm1, %v1952_v63, 0  ;;  %2472 = vmatmul.msk.bf16.vlgmr.msrb.gmra.mxu3 %vm494_vm3, %v3114_v35  ;;  %v2221_v5 = vsel %vm498_vm1, %v2208_v52, 0  ;;  %v1789_v39 = vpop.f32.mrf.mxu3 }
 0x370   : > { %2000 = vmatpush.bf16.msrb.mxu2 %v1965_v2  ;;  %v2080_v3 = vpop.permute.xlu0 %2079 }
 0x371   : > { %v2082_v4 = vsel %vm1265_vm9, %v2078_v61, %v2080_v3  ;;  %v2093_v22 = vsel %vm498_vm1, %v2080_v3, 0 }
 0x372   : > { %v2090_v8 = vsel %vm498_vm1, %v2082_v4, 0 }
 0x373   : > { %2471 = vmatmul.msk.bf16.vlgmr.msra.gmra.mxu2 %vm494_vm3, %v3114_v35  ;;  %2115 = vmatpush.bf16.msrb.mxu3 %v2090_v8 }
 0x376   : > { %v1950_v9 = vpop.permute.xlu1 %1949  ;;  %v2206_v26 = vpop.permute.xlu2 %2205 }
 0x377   : > { %v1953_v10 = vsel %vm1007_vm7, %v1948_v40, %v1950_v9  ;;  %v1954_v11 = vsel %vm1007_vm7, %v1950_v9, %v1952_v63  ;;  %v2210_v30 = vsel %vm1523_vm11, %v2206_v26, %v2208_v52 }
 0x378   : > { %v1959_v12 = vsel %vm498_vm1, %v1953_v10, 0  ;;  %v1962_v13 = vsel %vm498_vm1, %v1954_v11, 0  ;;  %v2218_v31 = vsel %vm498_vm1, %v2210_v30, 0  ;;  %v2138_v32 = vpop.permute.xlu0 %2137 }
 0x379   : > { %1974 = vmatpush.bf16.msrb.mxu0 %v1959_v12  ;;  %1987 = vmatpush.bf16.msrb.mxu1 %v1962_v13 }
 0x37c   : > { %2469 = vmatmul.msk.bf16.vlgmr.msra.gmra.mxu0 %vm494_vm3, %v1818_v53 }
 0x37d   : > { %2470 = vmatmul.msk.bf16.vlgmr.msra.gmra.mxu1 %vm494_vm3, %v3114_v35  ;;  %2051 = vmatpush.bf16.msra.mxu0 %v2026_v16 }
 0x37e   : > { %2064 = vmatpush.bf16.msra.mxu1 %v2029_v15  ;;  %v2076_v18 = vpop.permute.xlu1 %2075 }
 0x37f   : > { %v2081_v19 = vsel %vm1265_vm9, %v2076_v18, %v2078_v61  ;;  %2476 = vmatmul.msk.bf16.vlgmr.msra.gmra.mxu3 %vm494_vm3, %v2010_v1 }
 0x380   : > { %v2087_v20 = vsel %vm498_vm1, %v2081_v19, 0  ;;  %2192 = vmatpush.bf16.msra.mxu3 %v2157_v6  ;;  %v2202_v43 = vpop.permute.xlu0 %2201 }
 0x381   : > { %2102 = vmatpush.bf16.msra.mxu2 %v2087_v20 }
 0x383   : > { %2475 = vmatmul.msk.bf16.vlgmr.msrb.gmra.mxu2 %vm494_vm3, %v3120_v37 }
 0x386   : > { %v2074_v21 = vpop.permute.xlu1 %2073 }
 0x38c   : > { %2473 = vmatmul.msk.bf16.vlgmr.msrb.gmra.mxu0 %vm494_vm3, %v3120_v37 }
 0x38d   : > { %2474 = vmatmul.msk.bf16.vlgmr.msrb.gmra.mxu1 %vm494_vm3, %v3120_v37  ;;  %2128 = vmatpush.bf16.msrb.mxu0 %v2093_v22 }
 0x38e   : > { %v2142_v23 = vpop.permute.xlu1 %2141 }
 0x38f   : > { %v2146_v24 = vsel %vm1394_vm10, %v2142_v23, %v2144_v17  ;;  %2480 = vmatmul.msk.bf16.vlgmr.msrb.gmra.mxu3 %vm494_vm3, %v2074_v21 }
 0x390   : > { %v2154_v25 = vsel %vm498_vm1, %v2146_v24, 0 }
 0x391   : > { %2179 = vmatpush.bf16.msrb.mxu2 %v2154_v25 }
 0x393   : > { %2479 = vmatmul.msk.bf16.vlgmr.msra.gmra.mxu2 %vm494_vm3, %v2074_v21 }
 0x395   : > { %2256 = vmatpush.bf16.msra.mxu2 %v2221_v5 }
 0x396   : > { %v2140_v27 = vpop.permute.xlu1 %2139 }
 0x397   : > { %v2145_v28 = vsel %vm1394_vm10, %v2140_v27, %v2142_v23 }
 0x398   : > { %v2151_v29 = vsel %vm498_vm1, %v2145_v28, 0 }
 0x399   : > { %2166 = vmatpush.bf16.msrb.mxu1 %v2151_v29 }
 0x39c   : > { %2477 = vmatmul.msk.bf16.vlgmr.msra.gmra.mxu0 %vm494_vm3, %v2010_v1 }
 0x39d   : > { %2478 = vmatmul.msk.bf16.vlgmr.msra.gmra.mxu1 %vm494_vm3, %v2010_v1 }
 0x39e   : > { %2243 = vmatpush.bf16.msra.mxu1 %v2218_v31  ;;  %v2204_v35 = vpop.permute.xlu1 %2203 }
 0x39f   : > { %v2209_v36 = vsel %vm1523_vm11, %v2204_v35, %v2206_v26  ;;  %2484 = vmatmul.msk.bf16.vlgmr.msra.gmra.mxu3 %vm494_vm3, %v2138_v32 }
 0x3a0   : > { %v2215_v38 = vsel %vm498_vm1, %v2209_v36, 0  ;;  %vm2279_vm1 = vcmask 244736  }
 0x3a1   : > { %2230 = vmatpush.bf16.msra.mxu0 %v2215_v38 }
 0x3a3   : > { %2483 = vmatmul.msk.bf16.vlgmr.msrb.gmra.mxu2 %vm494_vm3, %v2138_v32 }
 0x3ac   : > { %2481 = vmatmul.msk.bf16.vlgmr.msrb.gmra.mxu0 %vm494_vm3, %v2074_v21 }
 0x3ad   : > { %2482 = vmatmul.msk.bf16.vlgmr.msrb.gmra.mxu1 %vm494_vm3, %v2138_v32 }
 0x3b3   : > { %2487 = vmatmul.msk.bf16.vlgmr.msra.gmra.mxu2 %vm494_vm3, %v2202_v43 }
 0x3bc   : > { %2485 = vmatmul.msk.bf16.vlgmr.msra.gmra.mxu0 %vm494_vm3, %v2202_v43 }
 0x3bd   : > { %2486 = vmatmul.msk.bf16.vlgmr.msra.gmra.mxu1 %vm494_vm3, %v2202_v43 }
 0x3d6   : > { %v1762_v44 = vpop.f32.mrf.mxu2 }
 0x3d9   : > { %v1736_v37 = vpop.f32.mrf.mxu0  ;;  %v1749_v45 = vpop.f32.mrf.mxu1 }
 0x3da   : > { %v1788_v46 = vadd.f32 %v1787_v34, %v1736_v37 }
 0x3de   : > { %v1764_v47 = vpop.f32.mrf.mxu2 }
 0x3e1   : > { %v1738_v48 = vpop.f32.mrf.mxu0  ;;  %v1751_v49 = vpop.f32.mrf.mxu1 }
 0x3e2   : > { %v1861_v40 = vpop.f32.mrf.mxu3 }
 0x3e6   : > { %v1848_v41 = vpop.f32.mrf.mxu2 }
 0x3e7   : > { %v1878_v42 = vadd.f32 %v1848_v41, %v1788_v46 }
 0x3e9   : > { %v1800_v50 = vpop.f32.mrf.mxu0 }
 0x3ea   : > { %v1813_v51 = vpop.f32.mrf.mxu1  ;;  %v1801_v54 = vadd.f32 %v1800_v50, %v1749_v45  ;;  %v1863_v55 = vpop.f32.mrf.mxu3 }
 0x3eb   : > { %v1814_v21 = vadd.f32 %v1813_v51, %v1762_v44  ;;  %v2269_v45 = vpop.permute.xlu0 %2268 }
 0x3ec   : > { %v1879_v53 = vadd.f32 %v1861_v40, %v1801_v54 }
 0x3ee   : > { %v1850_v56 = vpop.f32.mrf.mxu2 }
 0x3f1   : > { %v1802_v57 = vpop.f32.mrf.mxu0 }
 0x3f2   : > { %v1815_v58 = vpop.f32.mrf.mxu1  ;;  %v1938_v59 = vpop.f32.mrf.mxu3 }
 0x3f6   : > { %v1925_v60 = vpop.f32.mrf.mxu2 }
 0x3f7   : > { %v1943_v27 = vadd.f32 %v1925_v60, %v1879_v53 }
 0x3f9   : > { %v1874_v61 = vpop.f32.mrf.mxu0 }
 0x3fa   : > { %v1912_v62 = vpop.f32.mrf.mxu1  ;;  %v1940_v0 = vpop.f32.mrf.mxu3  ;;  %v1880_v22 = vadd.f32 %v1874_v61, %v1814_v21 }
 0x3fb   : > { %v1942_v28 = vadd.f32 %v1912_v62, %v1878_v42 }
 0x3fc   : > { %v1944_v5 = vadd.f32 %v1938_v59, %v1880_v22 }
 0x3fe   : > { %v1927_v1 = vpop.f32.mrf.mxu2 }
 0x401   : > { %v1876_v63 = vpop.f32.mrf.mxu0 }
 0x402   : > { %v1914_v2 = vpop.f32.mrf.mxu1  ;;  %v2040_v3 = vpop.f32.mrf.mxu3 }
 0x406   : > { %v2002_v4 = vpop.f32.mrf.mxu2 }
 0x407   : > { %v2008_v26 = vadd.f32 %v2002_v4, %v1944_v5 }
 0x409   : > { %v1976_v7 = vpop.f32.mrf.mxu0 }
 0x40a   : > { %v1989_v8 = vpop.f32.mrf.mxu1  ;;  %v2042_v9 = vpop.f32.mrf.mxu3  ;;  %v2006_v31 = vadd.f32 %v1976_v7, %v1942_v28 }
 0x40b   : > { %v2007_v32 = vadd.f32 %v1989_v8, %v1943_v27 }
 0x40c   : > { %v2070_v38 = vadd.f32 %v2040_v3, %v2006_v31 }
 0x40e   : > { %v2004_v10 = vpop.f32.mrf.mxu2 }
 0x411   : > { %v1978_v11 = vpop.f32.mrf.mxu0 }
 0x412   : > { %v1991_v12 = vpop.f32.mrf.mxu1  ;;  %v2117_v13 = vpop.f32.mrf.mxu3 }
 0x416   : > { %v2104_v14 = vpop.f32.mrf.mxu2 }
 0x417   : > { %v2134_v43 = vadd.f32 %v2104_v14, %v2070_v38 }
 0x419   : > { %v2053_v15 = vpop.f32.mrf.mxu0 }
 0x41a   : > { %v2066_v16 = vpop.f32.mrf.mxu1  ;;  %v2119_v17 = vpop.f32.mrf.mxu3  ;;  %v2071_v36 = vadd.f32 %v2053_v15, %v2007_v32 }
 0x41b   : > { %v2072_v30 = vadd.f32 %v2066_v16, %v2008_v26 }
 0x41c   : > { %v2135_v44 = vadd.f32 %v2117_v13, %v2071_v36 }
 0x41e   : > { %v2106_v18 = vpop.f32.mrf.mxu2 }
 0x421   : > { %v2055_v6 = vpop.f32.mrf.mxu0 }
 0x422   : > { %v2068_v19 = vpop.f32.mrf.mxu1  ;;  %v2194_v20 = vpop.f32.mrf.mxu3 }
 0x426   : > { %v2181_v52 = vpop.f32.mrf.mxu2 }
 0x427   : > { %v2199_v47 = vadd.f32 %v2181_v52, %v2135_v44 }
 0x429   : > { %v2130_v23 = vpop.f32.mrf.mxu0 }
 0x42a   : > { %v2168_v24 = vpop.f32.mrf.mxu1  ;;  %v2196_v25 = vpop.f32.mrf.mxu3  ;;  %v2136_v33 = vadd.f32 %v2130_v23, %v2072_v30 }
 0x42b   : > { %v2198_v48 = vadd.f32 %v2168_v24, %v2134_v43 }
 0x42c   : > { %v2200_v39 = vadd.f32 %v2194_v20, %v2136_v33 }
 0x42e   : > { %v2183_v29 = vpop.f32.mrf.mxu2 }
 0x431   : > { %v2132_v34 = vpop.f32.mrf.mxu0 }
 0x432   : > { %v2170_v35 = vpop.f32.mrf.mxu1 }
 0x436   : > { %v2258_v37 = vpop.f32.mrf.mxu2 }
 0x437   : > { %v2264_v46 = vadd.f32 %v2258_v37, %v2200_v39 }
 0x439   : > { %v2273_v49 = vadd.f32 %v2269_v45, %v2264_v46  ;;  %v2232_v40 = vpop.f32.mrf.mxu0 }
 0x43a   : > { %v2245_v41 = vpop.f32.mrf.mxu1  ;;  %v2262_v42 = vadd.f32 %v2232_v40, %v2198_v48 }
 0x43b   : > { %v2263_v50 = vadd.f32 %v2245_v41, %v2199_v47  ;;  %v2276_v51 = vmax.f32 %v2273_v49, 0.0 }
 0x43c   : > { %v2271_v54 = vadd.f32 %v2269_v45, %v2262_v42 }
 0x43d   : > { %v2272_v55 = vadd.f32 %v2269_v45, %v2263_v50  ;;  %2280 = vst.msk [vmem:[%s349_s19 + $0x10] sm:$0xff] %vm2279_vm1, %v2276_v51 }
 0x43e   : > { %v2274_v53 = vmax.f32 %v2271_v54, 0.0  ;;  %v2260_v57 = vpop.f32.mrf.mxu2 }
 0x43f   : > { %v2275_v56 = vmax.f32 %v2272_v55, 0.0 }
 0x440   : > { %2277 = vst [vmem:[%s349_s19] sm:$0xff] %v2274_v53 }
 0x441   : > { %2278 = vst [vmem:[%s349_s19 + $0x8] sm:$0xff] %v2275_v56  ;;  %v2234_v58 = vpop.f32.mrf.mxu0 }
 0x442   : > { %v2247_v59 = vpop.f32.mrf.mxu1 }
 0x443 PF: > { %s19_s30 = sadd.s32 1, %s2538_s30  }
 0x444   : > { %p16_p4 = scmp.ge.s32.totalorder %s19_s30, 4  }
 0x446   :  { %18 = sbr.rel (!%p16_p4) target bundleno = 1 (0x1), region = 89 }

// kernel: decoder_forward.3
= control target key start
LH: loop header
LB: loop body
LE: loop exit
PB: predicated region body
PF: predicated region fallthrough
CT: control target
= control target key end

     0   :  { %s8232_s30 = smov 0   ;;  %s11454_s0 = inlined_call_operand.vmem [shape: bf16[2,8,256], index: 0, kind: input, shape index: {}]   ;;  %s11455_s1 = inlined_call_operand.vmem [shape: bf16[2,8,1156], index: 1, kind: input, shape index: {}]   ;;  %s11456_s2 = inlined_call_operand.vmem [shape: bf16[256,1156], index: 2, kind: input, shape index: {}]   ;;  %s11457_s3 = inlined_call_operand.vmem [shape: f32[1,1086], index: 3, kind: input, shape index: {}]   ;;  %s11458_s4 = inlined_call_operand.vmem [shape: bf16[8,72], index: 4, kind: input, shape index: {}]   ;;  %s11459_s5 = inlined_call_operand.vmem [shape: bf16[8,72], index: 5, kind: input, shape index: {}]   ;;  %s11460_s6 = inlined_call_operand.vmem [shape: f32[8,1], index: 6, kind: input, shape index: {}]   ;;  %s11461_s7 = inlined_call_operand.vmem [shape: bf16[4,72], index: 7, kind: input, shape index: {}]   ;;  %s11462_s8 = inlined_call_operand.vmem [shape: f32[4,1], index: 8, kind: input, shape index: {}]   ;;  %s11463_s9 = inlined_call_operand.vmem [shape: f32[2,4,1086], index: 9, kind: output, shape index: {}]  }
   0x1 LB: > { %s7069_s10 = sadd.s32 4294967295, %s8162_s30   ;;  %p7073_p0 = scmp.ge.s32.totalorder %s8162_s30, 1  ;;  %s8162_s30 = sphi %s8232_s30, %s19_s30  }
   0x2   : > { %p297_p1 = scmp.lt.s32.totalorder %s8162_s30, 3 }
   0x4   : > { %p298_p2 = pnand %p7073_p0, %p297_p1 }
   0x5   : > { %p338_p3 = scmp.lt.s32.totalorder (!%p298_p2), %s7069_s10, 1  ;;  %s8164_s23 = smov (!%p298_p2), 120  }
   0x6   : > { %301 = sbr.rel (%p298_p2) target bundleno = 1769 (0x6e9), region = 56  ;;  %s8165_s21 = smov (!%p298_p2), 127  }
   0x7   : > { %s8166_s12 = smov (!%p298_p2), 126   ;;  %s8167_s13 = smov (!%p298_p2), 112  }
   0x8   : > { %s8168_s14 = smov (!%p298_p2), 94   ;;  %s8169_s15 = smov (!%p298_p2), 104  }
   0x9   : > { %s8170_s16 = smov (!%p298_p2), 93   ;;  %s8171_s17 = smov (!%p298_p2), 96  }
   0xa   : > { %s8174_s19 = smov (!%p298_p2), 60   ;;  %s8175_s20 = smov (!%p298_p2), 80  }
   0xb   : > { %v7360_v0 = vld [vmem:[%s11456_s2 + $0x230] sm:$0xf]  ;;  %v8039_v1 = vld [vmem:[%s11456_s2 + $0x254] sm:$0xf0]  ;;  %v8034_v5 = vld [vmem:[%s11456_s2 + $0x234] sm:$0xf] }
   0xc   : > { %v7680_v2 = vld [vmem:[%s11456_s2 + $0x4b0] sm:$0xf]  ;;  %v7361_v3 = vor.u32 %v8039_v1, %v7360_v0  ;;  %v8119_v4 = vld [vmem:[%s11456_s2 + $0x4d4] sm:$0xf0]  ;;  %v7362_v6 = vld [vmem:[%s11456_s2 + $0x258] sm:$0xf0] }
   0xd   : > { %v7681_v7 = vor.u32 %v8119_v4, %v7680_v2  ;;  %v7365_v8 = vor.u32 %v8034_v5, %v7362_v6  ;;  %v8114_v9 = vld [vmem:[%s11456_s2 + $0x4b4] sm:$0xf]  ;;  %v7682_v10 = vld [vmem:[%s11456_s2 + $0x4d8] sm:$0xf0]  ;;  %v7320_v11 = vld [vmem:[%s11456_s2 + $0x1e0] sm:$0xf] }
   0xe   : > { %1322 = vmatpush.bf16.msra.mxu0 %v7361_v3  ;;  %v7685_v12 = vor.u32 %v8114_v9, %v7682_v10  ;;  %v8029_v13 = vld [vmem:[%s11456_s2 + $0x204] sm:$0xf0]  ;;  %v7640_v14 = vld [vmem:[%s11456_s2 + $0x460] sm:$0xf]  ;;  %v8024_v18 = vld [vmem:[%s11456_s2 + $0x1e4] sm:$0xf] }
   0xf   : > { %v8109_v15 = vld [vmem:[%s11456_s2 + $0x484] sm:$0xf0]  ;;  %1335 = vmatpush.bf16.msra.mxu1 %v7681_v7  ;;  %1348 = vmatpush.bf16.msra.mxu2 %v7365_v8  ;;  %v7321_v16 = vor.u32 %v8029_v13, %v7320_v11  ;;  %v7322_v19 = vld [vmem:[%s11456_s2 + $0x208] sm:$0xf0]  ;;  %v8104_v20 = vld [vmem:[%s11456_s2 + $0x464] sm:$0xf] }
  0x10   : > { %v7641_v17 = vor.u32 %v8109_v15, %v7640_v14  ;;  %1361 = vmatpush.bf16.msra.mxu3 %v7685_v12  ;;  %v7325_v21 = vor.u32 %v8024_v18, %v7322_v19  ;;  %v7642_v22 = vld [vmem:[%s11456_s2 + $0x488] sm:$0xf0]  ;;  %v7280_v23 = vld [vmem:[%s11456_s2 + $0x190] sm:$0xf]  ;;  %v8019_v24 = vld [vmem:[%s11456_s2 + $0x1b4] sm:$0xf0] }
  0x11   : > { %v7645_v25 = vor.u32 %v8104_v20, %v7642_v22  ;;  %v7600_v26 = vld [vmem:[%s11456_s2 + $0x410] sm:$0xf]  ;;  %v8099_v27 = vld [vmem:[%s11456_s2 + $0x434] sm:$0xf0]  ;;  %v8014_v28 = vld [vmem:[%s11456_s2 + $0x194] sm:$0xf]  ;;  %v7281_v29 = vor.u32 %v8019_v24, %v7280_v23 }
  0x12   : > { %1323 = vmatpush.bf16.msra.mxu0 %v7321_v16  ;;  %v7282_v30 = vld [vmem:[%s11456_s2 + $0x1b8] sm:$0xf0]  ;;  %v8094_v31 = vld [vmem:[%s11456_s2 + $0x414] sm:$0xf]  ;;  %v7601_v33 = vor.u32 %v8099_v27, %v7600_v26  ;;  %v7240_v35 = vld [vmem:[%s11456_s2 + $0x140] sm:$0xf] }
  0x13   : > { %v7602_v32 = vld [vmem:[%s11456_s2 + $0x438] sm:$0xf0]  ;;  %1336 = vmatpush.bf16.msra.mxu1 %v7641_v17  ;;  %1349 = vmatpush.bf16.msra.mxu2 %v7325_v21  ;;  %v7285_v34 = vor.u32 %v8014_v28, %v7282_v30  ;;  %v8009_v36 = vld [vmem:[%s11456_s2 + $0x164] sm:$0xf0]  ;;  %v7560_v37 = vld [vmem:[%s11456_s2 + $0x3c0] sm:$0xf] }
  0x14   : > { %1362 = vmatpush.bf16.msra.mxu3 %v7645_v25  ;;  %v7605_v38 = vor.u32 %v8094_v31, %v7602_v32  ;;  %v8089_v39 = vld [vmem:[%s11456_s2 + $0x3e4] sm:$0xf0]  ;;  %v8004_v40 = vld [vmem:[%s11456_s2 + $0x144] sm:$0xf]  ;;  %v7242_v41 = vld [vmem:[%s11456_s2 + $0x168] sm:$0xf0]  ;;  %v7241_v44 = vor.u32 %v8009_v36, %v7240_v35 }
  0x15   : > { %v8084_v42 = vld [vmem:[%s11456_s2 + $0x3c4] sm:$0xf]  ;;  %v7562_v43 = vld [vmem:[%s11456_s2 + $0x3e8] sm:$0xf0]  ;;  %v7561_v45 = vor.u32 %v8089_v39, %v7560_v37  ;;  %v7245_v46 = vor.u32 %v8004_v40, %v7242_v41  ;;  %v7200_v47 = vld [vmem:[%s11456_s2 + $0xf0] sm:$0xf] }
  0x16   : > { %1324 = vmatpush.bf16.msra.mxu0 %v7281_v29  ;;  %v7999_v48 = vld [vmem:[%s11456_s2 + $0x114] sm:$0xf0]  ;;  %v7520_v49 = vld [vmem:[%s11456_s2 + $0x370] sm:$0xf]  ;;  %v7565_v50 = vor.u32 %v8084_v42, %v7562_v43  ;;  %v7994_v52 = vld [vmem:[%s11456_s2 + $0xf4] sm:$0xf] }
  0x17   : > { %1337 = vmatpush.bf16.msra.mxu1 %v7601_v33  ;;  %1350 = vmatpush.bf16.msra.mxu2 %v7285_v34  ;;  %v8079_v51 = vld [vmem:[%s11456_s2 + $0x394] sm:$0xf0]  ;;  %v7202_v53 = vld [vmem:[%s11456_s2 + $0x118] sm:$0xf0]  ;;  %v8074_v54 = vld [vmem:[%s11456_s2 + $0x374] sm:$0xf]  ;;  %v7201_v56 = vor.u32 %v7999_v48, %v7200_v47 }
  0x18   : > { %1363 = vmatpush.bf16.msra.mxu3 %v7605_v38  ;;  %v7522_v55 = vld [vmem:[%s11456_s2 + $0x398] sm:$0xf0]  ;;  %v7521_v57 = vor.u32 %v8079_v51, %v7520_v49  ;;  %v7205_v58 = vor.u32 %v7994_v52, %v7202_v53  ;;  %v7160_v59 = vld [vmem:[%s11456_s2 + $0xa0] sm:$0xf]  ;;  %v7989_v60 = vld [vmem:[%s11456_s2 + $0xc4] sm:$0xf0] }
  0x19   : > { %v7480_v61 = vld [vmem:[%s11456_s2 + $0x320] sm:$0xf]  ;;  %v7525_v62 = vor.u32 %v8074_v54, %v7522_v55  ;;  %v8069_v63 = vld [vmem:[%s11456_s2 + $0x344] sm:$0xf0]  ;;  %v7984_v0 = vld [vmem:[%s11456_s2 + $0xa4] sm:$0xf]  ;;  %v7161_v4 = vor.u32 %v7989_v60, %v7160_v59 }
  0x1a   : > { %1325 = vmatpush.bf16.msra.mxu0 %v7241_v44  ;;  %v7162_v1 = vld [vmem:[%s11456_s2 + $0xc8] sm:$0xf0]  ;;  %v8064_v2 = vld [vmem:[%s11456_s2 + $0x324] sm:$0xf]  ;;  %v7481_v5 = vor.u32 %v8069_v63, %v7480_v61  ;;  %v7120_v7 = vld [vmem:[%s11456_s2 + $0x50] sm:$0xf] }
  0x1b   : > { %1338 = vmatpush.bf16.msra.mxu1 %v7561_v45  ;;  %1351 = vmatpush.bf16.msra.mxu2 %v7245_v46  ;;  %v7482_v3 = vld [vmem:[%s11456_s2 + $0x348] sm:$0xf0]  ;;  %v7165_v6 = vor.u32 %v7984_v0, %v7162_v1  ;;  %v7979_v8 = vld [vmem:[%s11456_s2 + $0x74] sm:$0xf0]  ;;  %v7440_v9 = vld [vmem:[%s11456_s2 + $0x2d0] sm:$0xf] }
  0x1c   : > { %1364 = vmatpush.bf16.msra.mxu3 %v7565_v50  ;;  %v7485_v10 = vor.u32 %v8064_v2, %v7482_v3  ;;  %v8059_v11 = vld [vmem:[%s11456_s2 + $0x2f4] sm:$0xf0]  ;;  %v7974_v12 = vld [vmem:[%s11456_s2 + $0x54] sm:$0xf]  ;;  %v7122_v13 = vld [vmem:[%s11456_s2 + $0x78] sm:$0xf0]  ;;  %v7121_v16 = vor.u32 %v7979_v8, %v7120_v7 }
  0x1d   : > { %v8054_v14 = vld [vmem:[%s11456_s2 + $0x2d4] sm:$0xf]  ;;  %v7442_v15 = vld [vmem:[%s11456_s2 + $0x2f8] sm:$0xf0]  ;;  %v7080_v17 = vld [vmem:[%s11456_s2] sm:$0xf]  ;;  %v7441_v20 = vor.u32 %v8059_v11, %v7440_v9  ;;  %v7125_v21 = vor.u32 %v7974_v12, %v7122_v13 }
  0x1e   : > { %1326 = vmatpush.bf16.msra.mxu0 %v7201_v56  ;;  %v7969_v18 = vld [vmem:[%s11456_s2 + $0x24] sm:$0xf0]  ;;  %v7400_v19 = vld [vmem:[%s11456_s2 + $0x280] sm:$0xf]  ;;  %v7964_v23 = vld [vmem:[%s11456_s2 + $0x4] sm:$0xf]  ;;  %v7445_v25 = vor.u32 %v8054_v14, %v7442_v15 }
  0x1f   : > { %1339 = vmatpush.bf16.msra.mxu1 %v7521_v57  ;;  %1352 = vmatpush.bf16.msra.mxu2 %v7205_v58  ;;  %v8049_v22 = vld [vmem:[%s11456_s2 + $0x2a4] sm:$0xf0]  ;;  %v7082_v24 = vld [vmem:[%s11456_s2 + $0x28] sm:$0xf0]  ;;  %v8044_v26 = vld [vmem:[%s11456_s2 + $0x284] sm:$0xf]  ;;  %v7081_v31 = vor.u32 %v7969_v18, %v7080_v17 }
  0x20   : > { %1365 = vmatpush.bf16.msra.mxu3 %v7525_v62  ;;  %v7402_v27 = vld [vmem:[%s11456_s2 + $0x2a8] sm:$0xf0]  ;;  %v7368_v28 = vld [vmem:[%s11456_s2 + $0x238] sm:$0xf]  ;;  %v8040_v29 = vld [vmem:[%s11456_s2 + $0x25c] sm:$0xf0]  ;;  %v7401_v35 = vor.u32 %v8049_v22, %v7400_v19  ;;  %v7085_v36 = vor.u32 %v7964_v23, %v7082_v24 }
  0x21   : > { %v7688_v30 = vld [vmem:[%s11456_s2 + $0x4b8] sm:$0xf]  ;;  %v8120_v32 = vld [vmem:[%s11456_s2 + $0x4dc] sm:$0xf0]  ;;  %v8035_v33 = vld [vmem:[%s11456_s2 + $0x23c] sm:$0xf]  ;;  %v7405_v39 = vor.u32 %v8044_v26, %v7402_v27  ;;  %v7369_v40 = vor.u32 %v8040_v29, %v7368_v28 }
  0x22   : > { %1327 = vmatpush.bf16.msra.mxu0 %v7161_v4  ;;  %v7370_v34 = vld [vmem:[%s11456_s2 + $0x260] sm:$0xf0]  ;;  %v8115_v37 = vld [vmem:[%s11456_s2 + $0x4bc] sm:$0xf]  ;;  %s11467_s10 = smov (!%p338_p3, %s7069_s10), 1  ;;  %v7689_v42 = vor.u32 %v8120_v32, %v7688_v30  ;;  %vm1591_vm0 = vcmask 1043456  }
  0x23   : > { %1340 = vmatpush.bf16.msra.mxu1 %v7481_v5  ;;  %1353 = vmatpush.bf16.msra.mxu2 %v7165_v6  ;;  %v7690_v38 = vld [vmem:[%s11456_s2 + $0x4e0] sm:$0xf0]  ;;  %v7328_v41 = vld [vmem:[%s11456_s2 + $0x1e8] sm:$0xf]  ;;  %v7373_v43 = vor.u32 %v8035_v33, %v7370_v34  ;;  %v8030_v44 = vld [vmem:[%s11456_s2 + $0x20c] sm:$0xf0] }
  0x24   : > { %1366 = vmatpush.bf16.msra.mxu3 %v7485_v10  ;;  %v7648_v45 = vld [vmem:[%s11456_s2 + $0x468] sm:$0xf]  ;;  %s7963_s28 = sshll.u32 %s11467_s10, 3  ;;  %v7693_v46 = vor.u32 %v8115_v37, %v7690_v38  ;;  %v8110_v47 = vld [vmem:[%s11456_s2 + $0x48c] sm:$0xf0]  ;;  %v7329_v53 = vor.u32 %v8030_v44, %v7328_v41  ;;  %s8124_s29 = smul.u32 40, %s11467_s10 }
  0x25   : > { %v8025_v48 = vld [vmem:[%s11456_s2 + $0x1ec] sm:$0xf]  ;;  %v7330_v49 = vld [vmem:[%s11456_s2 + $0x210] sm:$0xf0]  ;;  %s342_s18 = scalar_lea.vmem %s11454_s0, %s7963_s28  ;;  %v7649_v56 = vor.u32 %v8110_v47, %v7648_v45  ;;  %v7288_v58 = vld [vmem:[%s11456_s2 + $0x198] sm:$0xf] }
  0x26   : > { %1328 = vmatpush.bf16.msra.mxu0 %v7121_v16  ;;  %v8105_v50 = vld [vmem:[%s11456_s2 + $0x46c] sm:$0xf]  ;;  %v7650_v51 = vld [vmem:[%s11456_s2 + $0x490] sm:$0xf0]  ;;  %v354_v52 = vld [vmem:[%s342_s18] sm:$0xff]  ;;  %v7333_v57 = vor.u32 %v8025_v48, %v7330_v49  ;;  %s9122_s11 = scalar_lea.vmem %s11455_s1, %s8124_s29  ;;  %vm1630_vm1 = vcmask 64512  }
  0x27   : > { %1341 = vmatpush.bf16.msra.mxu1 %v7441_v20  ;;  %1354 = vmatpush.bf16.msra.mxu2 %v7125_v21  ;;  %v516_v54 = vunpack.c.l.b16 %v354_v52  ;;  %v517_v55 = vunpack.c.h.b16 %v354_v52  ;;  %v8020_v59 = vld [vmem:[%s11456_s2 + $0x1bc] sm:$0xf0]  ;;  %v7608_v60 = vld [vmem:[%s11456_s2 + $0x418] sm:$0xf]  ;;  %v7653_v61 = vor.u32 %v8105_v50, %v7650_v51  ;;  %v8015_v0 = vld [vmem:[%s11456_s2 + $0x19c] sm:$0xf] }
  0x28   : > { %1367 = vmatpush.bf16.msra.mxu3 %v7445_v25  ;;  %v8100_v63 = vld [vmem:[%s11456_s2 + $0x43c] sm:$0xf0]  ;;  %v7290_v1 = vld [vmem:[%s11456_s2 + $0x1c0] sm:$0xf0]  ;;  %v8095_v3 = vld [vmem:[%s11456_s2 + $0x41c] sm:$0xf]  ;;  %v7289_v5 = vor.u32 %v8020_v59, %v7288_v58 }
  0x29   : > { %v8499_v62 = vpack.c.b16 %v516_v54, %v516_v54  ;;  %v8510_v2 = vpack.c.b16 %v517_v55, %v517_v55  ;;  %v7610_v4 = vld [vmem:[%s11456_s2 + $0x440] sm:$0xf0]  ;;  %v7609_v6 = vor.u32 %v8100_v63, %v7608_v60  ;;  %v7293_v7 = vor.u32 %v8015_v0, %v7290_v1  ;;  %v7248_v8 = vld [vmem:[%s11456_s2 + $0x148] sm:$0xf]  ;;  %v8010_v9 = vld [vmem:[%s11456_s2 + $0x16c] sm:$0xf0] }
  0x2a   : > { %1329 = vmatpush.bf16.msra.mxu0 %v7081_v31  ;;  %v7568_v10 = vld [vmem:[%s11456_s2 + $0x3c8] sm:$0xf]  ;;  %v7613_v11 = vor.u32 %v8095_v3, %v7610_v4  ;;  %v8090_v12 = vld [vmem:[%s11456_s2 + $0x3ec] sm:$0xf0]  ;;  %v8005_v13 = vld [vmem:[%s11456_s2 + $0x14c] sm:$0xf]  ;;  %v7249_v17 = vor.u32 %v8010_v9, %v7248_v8 }
  0x2b   : > { %1342 = vmatpush.bf16.msra.mxu1 %v7401_v35  ;;  %1355 = vmatpush.bf16.msra.mxu2 %v7085_v36  ;;  %v7250_v14 = vld [vmem:[%s11456_s2 + $0x170] sm:$0xf0]  ;;  %v8085_v15 = vld [vmem:[%s11456_s2 + $0x3cc] sm:$0xf]  ;;  %v7569_v18 = vor.u32 %v8090_v12, %v7568_v10  ;;  %v7208_v20 = vld [vmem:[%s11456_s2 + $0xf8] sm:$0xf] }
  0x2c   : > { %1368 = vmatpush.bf16.msra.mxu3 %v7405_v39  ;;  %v7570_v16 = vld [vmem:[%s11456_s2 + $0x3f0] sm:$0xf0]  ;;  %v7253_v19 = vor.u32 %v8005_v13, %v7250_v14  ;;  %v8000_v21 = vld [vmem:[%s11456_s2 + $0x11c] sm:$0xf0]  ;;  %v7528_v22 = vld [vmem:[%s11456_s2 + $0x378] sm:$0xf] }
  0x2d   : > { %1330 = vmatmul.bf16.vlgmr.msra.gmra.mxu0 %v8499_v62  ;;  %v7573_v23 = vor.u32 %v8085_v15, %v7570_v16  ;;  %v8080_v24 = vld [vmem:[%s11456_s2 + $0x39c] sm:$0xf0]  ;;  %v7995_v25 = vld [vmem:[%s11456_s2 + $0xfc] sm:$0xf]  ;;  %v7210_v26 = vld [vmem:[%s11456_s2 + $0x120] sm:$0xf0]  ;;  %v7209_v29 = vor.u32 %v8000_v21, %v7208_v20 }
  0x2e   : > { %1374 = vmatpush.bf16.msrb.mxu0 %v7369_v40  ;;  %1356 = vmatmul.bf16.vlgmr.msra.gmra.mxu2 %v8499_v62  ;;  %v8075_v27 = vld [vmem:[%s11456_s2 + $0x37c] sm:$0xf]  ;;  %v7530_v28 = vld [vmem:[%s11456_s2 + $0x3a0] sm:$0xf0]  ;;  %v7529_v30 = vor.u32 %v8080_v24, %v7528_v22  ;;  %v7213_v31 = vor.u32 %v7995_v25, %v7210_v26  ;;  %v7168_v32 = vld [vmem:[%s11456_s2 + $0xa8] sm:$0xf] }
  0x2f   : > { %1387 = vmatpush.bf16.msrb.mxu1 %v7689_v42  ;;  %1400 = vmatpush.bf16.msrb.mxu2 %v7373_v43  ;;  %v7990_v33 = vld [vmem:[%s11456_s2 + $0xcc] sm:$0xf0]  ;;  %v7488_v34 = vld [vmem:[%s11456_s2 + $0x328] sm:$0xf]  ;;  %v7533_v35 = vor.u32 %v8075_v27, %v7530_v28  ;;  %v7985_v37 = vld [vmem:[%s11456_s2 + $0xac] sm:$0xf] }
  0x30   : > { %1413 = vmatpush.bf16.msrb.mxu3 %v7693_v46  ;;  %1343 = vmatmul.bf16.vlgmr.msra.gmra.mxu1 %v8510_v2  ;;  %v8070_v36 = vld [vmem:[%s11456_s2 + $0x34c] sm:$0xf0]  ;;  %v7170_v38 = vld [vmem:[%s11456_s2 + $0xd0] sm:$0xf0]  ;;  %v8065_v39 = vld [vmem:[%s11456_s2 + $0x32c] sm:$0xf]  ;;  %v7169_v41 = vor.u32 %v7990_v33, %v7168_v32 }
  0x31   : > { %1369 = vmatmul.bf16.vlgmr.msra.gmra.mxu3 %v8510_v2  ;;  %v7490_v40 = vld [vmem:[%s11456_s2 + $0x350] sm:$0xf0]  ;;  %v7489_v42 = vor.u32 %v8070_v36, %v7488_v34  ;;  %v7173_v43 = vor.u32 %v7985_v37, %v7170_v38  ;;  %v7128_v44 = vld [vmem:[%s11456_s2 + $0x58] sm:$0xf]  ;;  %v7980_v45 = vld [vmem:[%s11456_s2 + $0x7c] sm:$0xf0] }
  0x32   : > { %1375 = vmatpush.bf16.msrb.mxu0 %v7329_v53  ;;  %v7448_v46 = vld [vmem:[%s11456_s2 + $0x2d8] sm:$0xf]  ;;  %v7493_v47 = vor.u32 %v8065_v39, %v7490_v40  ;;  %v8060_v48 = vld [vmem:[%s11456_s2 + $0x2fc] sm:$0xf0]  ;;  %v7975_v49 = vld [vmem:[%s11456_s2 + $0x5c] sm:$0xf]  ;;  %v7129_v53 = vor.u32 %v7980_v45, %v7128_v44 }
  0x33   : > { %1388 = vmatpush.bf16.msrb.mxu1 %v7649_v56  ;;  %1401 = vmatpush.bf16.msrb.mxu2 %v7333_v57  ;;  %v7130_v50 = vld [vmem:[%s11456_s2 + $0x80] sm:$0xf0]  ;;  %v8055_v51 = vld [vmem:[%s11456_s2 + $0x2dc] sm:$0xf]  ;;  %v7088_v54 = vld [vmem:[%s11456_s2 + $0x8] sm:$0xf]  ;;  %v7449_v56 = vor.u32 %v8060_v48, %v7448_v46 }
  0x34   : > { %1414 = vmatpush.bf16.msrb.mxu3 %v7653_v61  ;;  %v7450_v52 = vld [vmem:[%s11456_s2 + $0x300] sm:$0xf0]  ;;  %v7970_v55 = vld [vmem:[%s11456_s2 + $0x2c] sm:$0xf0]  ;;  %v7133_v57 = vor.u32 %v7975_v49, %v7130_v50  ;;  %v7408_v58 = vld [vmem:[%s11456_s2 + $0x288] sm:$0xf] }
  0x35   : > { %v8050_v59 = vld [vmem:[%s11456_s2 + $0x2ac] sm:$0xf0]  ;;  %v7965_v60 = vld [vmem:[%s11456_s2 + $0xc] sm:$0xf]  ;;  %v7453_v61 = vor.u32 %v8055_v51, %v7450_v52  ;;  %v7090_v63 = vld [vmem:[%s11456_s2 + $0x30] sm:$0xf0] }
  0x36   : > { %1376 = vmatpush.bf16.msrb.mxu0 %v7289_v5  ;;  %v8045_v0 = vld [vmem:[%s11456_s2 + $0x28c] sm:$0xf]  ;;  %v7410_v1 = vld [vmem:[%s11456_s2 + $0x2b0] sm:$0xf0]  ;;  %v7376_v3 = vld [vmem:[%s11456_s2 + $0x240] sm:$0xf]  ;;  %v7409_v10 = vor.u32 %v8050_v59, %v7408_v58 }
  0x37   : > { %1389 = vmatpush.bf16.msrb.mxu1 %v7609_v6  ;;  %1402 = vmatpush.bf16.msrb.mxu2 %v7293_v7  ;;  %v8041_v4 = vld [vmem:[%s11456_s2 + $0x264] sm:$0xf0]  ;;  %v7696_v5 = vld [vmem:[%s11456_s2 + $0x4c0] sm:$0xf]  ;;  %v7089_v6 = vor.u32 %v7970_v55, %v7088_v54  ;;  %v8036_v8 = vld [vmem:[%s11456_s2 + $0x244] sm:$0xf]  ;;  %v7413_v14 = vor.u32 %v8045_v0, %v7410_v1 }
  0x38   : > { %1415 = vmatpush.bf16.msrb.mxu3 %v7613_v11  ;;  %v8121_v7 = vld [vmem:[%s11456_s2 + $0x4e4] sm:$0xf0]  ;;  %v7378_v9 = vld [vmem:[%s11456_s2 + $0x268] sm:$0xf0]  ;;  %v7093_v11 = vor.u32 %v7965_v60, %v7090_v63  ;;  %v8116_v12 = vld [vmem:[%s11456_s2 + $0x4c4] sm:$0xf]  ;;  %v7377_v15 = vor.u32 %v8041_v4, %v7376_v3 }
  0x39   : > { %v7698_v13 = vld [vmem:[%s11456_s2 + $0x4e8] sm:$0xf0]  ;;  %v7697_v16 = vor.u32 %v8121_v7, %v7696_v5  ;;  %v7656_v20 = vld [vmem:[%s11456_s2 + $0x470] sm:$0xf]  ;;  %v8111_v22 = vld [vmem:[%s11456_s2 + $0x494] sm:$0xf0] }
  0x3a   : > { %1377 = vmatpush.bf16.msrb.mxu0 %v7249_v17  ;;  %v7381_v17 = vor.u32 %v8036_v8, %v7378_v9  ;;  %v7701_v21 = vor.u32 %v8116_v12, %v7698_v13  ;;  %v7338_v24 = vld [vmem:[%s11456_s2 + $0x218] sm:$0xf0]  ;;  %v8106_v25 = vld [vmem:[%s11456_s2 + $0x474] sm:$0xf]  ;;  %v7657_v28 = vor.u32 %v8111_v22, %v7656_v20  ;;  %v7616_v32 = vld [vmem:[%s11456_s2 + $0x420] sm:$0xf] }
  0x3b   : > { %1390 = vmatpush.bf16.msrb.mxu1 %v7569_v18  ;;  %1403 = vmatpush.bf16.msrb.mxu2 %v7253_v19  ;;  %v7336_v18 = vld [vmem:[%s11456_s2 + $0x1f0] sm:$0xf]  ;;  %v8031_v19 = vld [vmem:[%s11456_s2 + $0x214] sm:$0xf0]  ;;  %v7658_v26 = vld [vmem:[%s11456_s2 + $0x498] sm:$0xf0] }
  0x3c   : > { %1416 = vmatpush.bf16.msrb.mxu3 %v7573_v23  ;;  %v8026_v23 = vld [vmem:[%s11456_s2 + $0x1f4] sm:$0xf]  ;;  %v7337_v27 = vor.u32 %v8031_v19, %v7336_v18  ;;  %v7661_v33 = vor.u32 %v8106_v25, %v7658_v26  ;;  %v8101_v34 = vld [vmem:[%s11456_s2 + $0x444] sm:$0xf0]  ;;  %v7298_v36 = vld [vmem:[%s11456_s2 + $0x1c8] sm:$0xf0] }
  0x3d   : > { %v8096_v37 = vld [vmem:[%s11456_s2 + $0x424] sm:$0xf]  ;;  %v7618_v38 = vld [vmem:[%s11456_s2 + $0x448] sm:$0xf0]  ;;  %v7617_v40 = vor.u32 %v8101_v34, %v7616_v32  ;;  %v7576_v44 = vld [vmem:[%s11456_s2 + $0x3d0] sm:$0xf] }
  0x3e   : > { %1378 = vmatpush.bf16.msrb.mxu0 %v7209_v29  ;;  %v7341_v29 = vor.u32 %v8026_v23, %v7338_v24  ;;  %v7621_v45 = vor.u32 %v8096_v37, %v7618_v38  ;;  %v8091_v46 = vld [vmem:[%s11456_s2 + $0x3f4] sm:$0xf0]  ;;  %v7258_v48 = vld [vmem:[%s11456_s2 + $0x178] sm:$0xf0]  ;;  %v8086_v49 = vld [vmem:[%s11456_s2 + $0x3d4] sm:$0xf] }
  0x3f   : > { %1391 = vmatpush.bf16.msrb.mxu1 %v7529_v30  ;;  %1404 = vmatpush.bf16.msrb.mxu2 %v7213_v31  ;;  %v7296_v30 = vld [vmem:[%s11456_s2 + $0x1a0] sm:$0xf]  ;;  %v8021_v31 = vld [vmem:[%s11456_s2 + $0x1c4] sm:$0xf0]  ;;  %v7578_v50 = vld [vmem:[%s11456_s2 + $0x3f8] sm:$0xf0]  ;;  %v7577_v52 = vor.u32 %v8091_v46, %v7576_v44 }
  0x40   : > { %1417 = vmatpush.bf16.msrb.mxu3 %v7533_v35  ;;  %v8016_v35 = vld [vmem:[%s11456_s2 + $0x1a4] sm:$0xf]  ;;  %v7297_v39 = vor.u32 %v8021_v31, %v7296_v30  ;;  %v7216_v54 = vld [vmem:[%s11456_s2 + $0x100] sm:$0xf]  ;;  %v8001_v55 = vld [vmem:[%s11456_s2 + $0x124] sm:$0xf0] }
  0x41   : > { %v8081_v58 = vld [vmem:[%s11456_s2 + $0x3a4] sm:$0xf0]  ;;  %v7996_v59 = vld [vmem:[%s11456_s2 + $0x104] sm:$0xf]  ;;  %v7218_v60 = vld [vmem:[%s11456_s2 + $0x128] sm:$0xf0]  ;;  %v7217_v0 = vor.u32 %v8001_v55, %v7216_v54 }
  0x42   : > { %1379 = vmatpush.bf16.msrb.mxu0 %v7169_v41  ;;  %v7301_v41 = vor.u32 %v8016_v35, %v7298_v36  ;;  %v7538_v63 = vld [vmem:[%s11456_s2 + $0x3a8] sm:$0xf0]  ;;  %v7221_v3 = vor.u32 %v7996_v59, %v7218_v60  ;;  %v7176_v4 = vld [vmem:[%s11456_s2 + $0xb0] sm:$0xf]  ;;  %v7991_v5 = vld [vmem:[%s11456_s2 + $0xd4] sm:$0xf0] }
  0x43   : > { %1392 = vmatpush.bf16.msrb.mxu1 %v7489_v42  ;;  %1405 = vmatpush.bf16.msrb.mxu2 %v7173_v43  ;;  %v7256_v42 = vld [vmem:[%s11456_s2 + $0x150] sm:$0xf]  ;;  %v8011_v43 = vld [vmem:[%s11456_s2 + $0x174] sm:$0xf0]  ;;  %v7986_v9 = vld [vmem:[%s11456_s2 + $0xb4] sm:$0xf]  ;;  %v7177_v13 = vor.u32 %v7991_v5, %v7176_v4 }
  0x44   : > { %1418 = vmatpush.bf16.msrb.mxu3 %v7493_v47  ;;  %v8006_v47 = vld [vmem:[%s11456_s2 + $0x154] sm:$0xf]  ;;  %v7257_v51 = vor.u32 %v8011_v43, %v7256_v42  ;;  %v8071_v8 = vld [vmem:[%s11456_s2 + $0x354] sm:$0xf0]  ;;  %v7498_v12 = vld [vmem:[%s11456_s2 + $0x358] sm:$0xf0] }
  0x45   : > { %v7456_v18 = vld [vmem:[%s11456_s2 + $0x2e0] sm:$0xf]  ;;  %v8061_v20 = vld [vmem:[%s11456_s2 + $0x304] sm:$0xf0]  ;;  %v7138_v22 = vld [vmem:[%s11456_s2 + $0x88] sm:$0xf0] }
  0x46   : > { %1380 = vmatpush.bf16.msrb.mxu0 %v7129_v53  ;;  %v7261_v53 = vor.u32 %v8006_v47, %v7258_v48  ;;  %v8056_v23 = vld [vmem:[%s11456_s2 + $0x2e4] sm:$0xf]  ;;  %v7458_v24 = vld [vmem:[%s11456_s2 + $0x308] sm:$0xf0]  ;;  %v7096_v26 = vld [vmem:[%s11456_s2 + $0x10] sm:$0xf] }
  0x47   : > { %1393 = vmatpush.bf16.msrb.mxu1 %v7449_v56  ;;  %1406 = vmatpush.bf16.msrb.mxu2 %v7133_v57  ;;  %v7536_v56 = vld [vmem:[%s11456_s2 + $0x380] sm:$0xf]  ;;  %v7581_v57 = vor.u32 %v8086_v49, %v7578_v50  ;;  %v7416_v30 = vld [vmem:[%s11456_s2 + $0x290] sm:$0xf]  ;;  %v8051_v31 = vld [vmem:[%s11456_s2 + $0x2b4] sm:$0xf0] }
  0x48   : > { %1419 = vmatpush.bf16.msrb.mxu3 %v7453_v61  ;;  %v8076_v61 = vld [vmem:[%s11456_s2 + $0x384] sm:$0xf]  ;;  %v7537_v1 = vor.u32 %v8081_v58, %v7536_v56  ;;  %v7966_v32 = vld [vmem:[%s11456_s2 + $0x14] sm:$0xf]  ;;  %v7098_v34 = vld [vmem:[%s11456_s2 + $0x38] sm:$0xf0]  ;;  %v7417_v44 = vor.u32 %v8051_v31, %v7416_v30 }
  0x49   : > { %v7541_v7 = vor.u32 %v8076_v61, %v7538_v63  ;;  %v8046_v35 = vld [vmem:[%s11456_s2 + $0x294] sm:$0xf]  ;;  %v7418_v36 = vld [vmem:[%s11456_s2 + $0x2b8] sm:$0xf0]  ;;  %v7384_v37 = vld [vmem:[%s11456_s2 + $0x248] sm:$0xf] }
  0x4a   : > { %1381 = vmatpush.bf16.msrb.mxu0 %v7089_v6  ;;  %v7496_v6 = vld [vmem:[%s11456_s2 + $0x330] sm:$0xf]  ;;  %v8037_v42 = vld [vmem:[%s11456_s2 + $0x24c] sm:$0xf]  ;;  %v7386_v43 = vld [vmem:[%s11456_s2 + $0x270] sm:$0xf0]  ;;  %v7421_v48 = vor.u32 %v8046_v35, %v7418_v36 }
  0x4b   : > { %1394 = vmatpush.bf16.msrb.mxu1 %v7409_v10  ;;  %1407 = vmatpush.bf16.msrb.mxu2 %v7093_v11  ;;  %v7178_v10 = vld [vmem:[%s11456_s2 + $0xd8] sm:$0xf0]  ;;  %v8066_v11 = vld [vmem:[%s11456_s2 + $0x334] sm:$0xf]  ;;  %v8042_v38 = vld [vmem:[%s11456_s2 + $0x26c] sm:$0xf0] }
  0x4c   : > { %1420 = vmatpush.bf16.msrb.mxu3 %v7413_v14  ;;  %v7497_v14 = vor.u32 %v8071_v8, %v7496_v6  ;;  %v7501_v19 = vor.u32 %v8066_v11, %v7498_v12  ;;  %v8117_v46 = vld [vmem:[%s11456_s2 + $0x4cc] sm:$0xf]  ;;  %v7706_v47 = vld [vmem:[%s11456_s2 + $0x4f0] sm:$0xf0]  ;;  %v7385_v49 = vor.u32 %v8042_v38, %v7384_v37  ;;  %v7664_v54 = vld [vmem:[%s11456_s2 + $0x478] sm:$0xf] }
  0x4d   : > { %1382 = vmatmul.bf16.vlgmr.msrb.gmra.mxu0 %v8499_v62  ;;  %v7709_v55 = vor.u32 %v8117_v46, %v7706_v47  ;;  %v8112_v56 = vld [vmem:[%s11456_s2 + $0x49c] sm:$0xf0]  ;;  %v7346_v58 = vld [vmem:[%s11456_s2 + $0x220] sm:$0xf0]  ;;  %v8107_v59 = vld [vmem:[%s11456_s2 + $0x47c] sm:$0xf] }
  0x4e   : > { %1426 = vmatpush.bf16.msra.mxu0 %v7377_v15  ;;  %1408 = vmatmul.bf16.vlgmr.msrb.gmra.mxu2 %v8499_v62  ;;  %v7181_v15 = vor.u32 %v7986_v9, %v7178_v10  ;;  %v7666_v60 = vld [vmem:[%s11456_s2 + $0x4a0] sm:$0xf0]  ;;  %v7665_v63 = vor.u32 %v8112_v56, %v7664_v54  ;;  %v7624_v4 = vld [vmem:[%s11456_s2 + $0x428] sm:$0xf]  ;;  %v8102_v6 = vld [vmem:[%s11456_s2 + $0x44c] sm:$0xf0] }
  0x4f   : > { %1439 = vmatpush.bf16.msra.mxu1 %v7697_v16  ;;  %1452 = vmatpush.bf16.msra.mxu2 %v7381_v17  ;;  %v7136_v16 = vld [vmem:[%s11456_s2 + $0x60] sm:$0xf]  ;;  %v7981_v17 = vld [vmem:[%s11456_s2 + $0x84] sm:$0xf0]  ;;  %v7669_v5 = vor.u32 %v8107_v59, %v7666_v60  ;;  %v7306_v8 = vld [vmem:[%s11456_s2 + $0x1d0] sm:$0xf0]  ;;  %v7625_v12 = vor.u32 %v8102_v6, %v7624_v4 }
  0x50   : > { %1465 = vmatpush.bf16.msra.mxu3 %v7701_v21  ;;  %1395 = vmatmul.bf16.vlgmr.msrb.gmra.mxu1 %v8510_v2  ;;  %v7976_v21 = vld [vmem:[%s11456_s2 + $0x64] sm:$0xf]  ;;  %v7137_v25 = vor.u32 %v7981_v17, %v7136_v16  ;;  %v8097_v9 = vld [vmem:[%s11456_s2 + $0x42c] sm:$0xf]  ;;  %v7626_v10 = vld [vmem:[%s11456_s2 + $0x450] sm:$0xf0] }
  0x51   : > { %1421 = vmatmul.bf16.vlgmr.msrb.gmra.mxu3 %v8510_v2  ;;  %v7584_v16 = vld [vmem:[%s11456_s2 + $0x3d8] sm:$0xf]  ;;  %v7629_v17 = vor.u32 %v8097_v9, %v7626_v10  ;;  %v8082_v30 = vld [vmem:[%s11456_s2 + $0x3ac] sm:$0xf0]  ;;  %v7997_v31 = vld [vmem:[%s11456_s2 + $0x10c] sm:$0xf] }
  0x52   : > { %1427 = vmatpush.bf16.msra.mxu0 %v7337_v27  ;;  %v7971_v27 = vld [vmem:[%s11456_s2 + $0x34] sm:$0xf0]  ;;  %v7506_v46 = vld [vmem:[%s11456_s2 + $0x360] sm:$0xf0]  ;;  %v8062_v54 = vld [vmem:[%s11456_s2 + $0x30c] sm:$0xf0] }
  0x53   : > { %1440 = vmatpush.bf16.msra.mxu1 %v7657_v28  ;;  %1453 = vmatpush.bf16.msra.mxu2 %v7341_v29  ;;  %v7457_v28 = vor.u32 %v8061_v20, %v7456_v18  ;;  %v7141_v29 = vor.u32 %v7976_v21, %v7138_v22  ;;  %v8092_v18 = vld [vmem:[%s11456_s2 + $0x3fc] sm:$0xf0]  ;;  %v7266_v20 = vld [vmem:[%s11456_s2 + $0x180] sm:$0xf0]  ;;  %v8087_v21 = vld [vmem:[%s11456_s2 + $0x3dc] sm:$0xf] }
  0x54   : > { %1466 = vmatpush.bf16.msra.mxu3 %v7661_v33  ;;  %v7461_v33 = vor.u32 %v8056_v23, %v7458_v24  ;;  %v7586_v22 = vld [vmem:[%s11456_s2 + $0x400] sm:$0xf0]  ;;  %v7585_v24 = vor.u32 %v8092_v18, %v7584_v16  ;;  %v7184_v38 = vld [vmem:[%s11456_s2 + $0xb8] sm:$0xf]  ;;  %v7146_v56 = vld [vmem:[%s11456_s2 + $0x90] sm:$0xf0] }
  0x55   : > { %v7104_v60 = vld [vmem:[%s11456_s2 + $0x18] sm:$0xf]  ;;  %v7967_v4 = vld [vmem:[%s11456_s2 + $0x1c] sm:$0xf]  ;;  %v7106_v6 = vld [vmem:[%s11456_s2 + $0x40] sm:$0xf0] }
  0x56   : > { %1428 = vmatpush.bf16.msra.mxu0 %v7297_v39  ;;  %v7704_v39 = vld [vmem:[%s11456_s2 + $0x4c8] sm:$0xf]  ;;  %v7392_v9 = vld [vmem:[%s11456_s2 + $0x250] sm:$0xf]  ;;  %v8043_v10 = vld [vmem:[%s11456_s2 + $0x274] sm:$0xf0] }
  0x57   : > { %1441 = vmatpush.bf16.msra.mxu1 %v7617_v40  ;;  %1454 = vmatpush.bf16.msra.mxu2 %v7301_v41  ;;  %v7097_v40 = vor.u32 %v7971_v27, %v7096_v26  ;;  %v8122_v41 = vld [vmem:[%s11456_s2 + $0x4ec] sm:$0xf0]  ;;  %v7224_v26 = vld [vmem:[%s11456_s2 + $0x108] sm:$0xf]  ;;  %v8118_v18 = vld [vmem:[%s11456_s2 + $0x4d4] sm:$0xf] }
  0x58   : > { %1467 = vmatpush.bf16.msra.mxu3 %v7621_v45  ;;  %v7101_v45 = vor.u32 %v7966_v32, %v7098_v34  ;;  %v7705_v50 = vor.u32 %v8122_v41, %v7704_v39  ;;  %v8002_v27 = vld [vmem:[%s11456_s2 + $0x12c] sm:$0xf0]  ;;  %v7226_v32 = vld [vmem:[%s11456_s2 + $0x130] sm:$0xf0]  ;;  %v7992_v39 = vld [vmem:[%s11456_s2 + $0xdc] sm:$0xf0] }
  0x59   : > { %v7546_v34 = vld [vmem:[%s11456_s2 + $0x3b0] sm:$0xf0]  ;;  %v7225_v35 = vor.u32 %v8002_v27, %v7224_v26  ;;  %v7229_v37 = vor.u32 %v7997_v31, %v7226_v32  ;;  %v7185_v47 = vor.u32 %v7992_v39, %v7184_v38  ;;  %v7672_v26 = vld [vmem:[%s11456_s2 + $0x480] sm:$0xf]  ;;  %v8108_v31 = vld [vmem:[%s11456_s2 + $0x484] sm:$0xf] }
  0x5a   : > { %1429 = vmatpush.bf16.msra.mxu0 %v7257_v51  ;;  %v7389_v51 = vor.u32 %v8037_v42, %v7386_v43  ;;  %v8072_v42 = vld [vmem:[%s11456_s2 + $0x35c] sm:$0xf0]  ;;  %v7987_v43 = vld [vmem:[%s11456_s2 + $0xbc] sm:$0xf]  ;;  %v7674_v32 = vld [vmem:[%s11456_s2 + $0x4a8] sm:$0xf0] }
  0x5b   : > { %1442 = vmatpush.bf16.msra.mxu1 %v7577_v52  ;;  %1455 = vmatpush.bf16.msra.mxu2 %v7261_v53  ;;  %v7344_v52 = vld [vmem:[%s11456_s2 + $0x1f8] sm:$0xf]  ;;  %v8032_v53 = vld [vmem:[%s11456_s2 + $0x21c] sm:$0xf0]  ;;  %v7312_v38 = vld [vmem:[%s11456_s2 + $0x1b0] sm:$0xf] }
  0x5c   : > { %1468 = vmatpush.bf16.msra.mxu3 %v7581_v57  ;;  %v8027_v57 = vld [vmem:[%s11456_s2 + $0x1fc] sm:$0xf]  ;;  %v7345_v61 = vor.u32 %v8032_v53, %v7344_v52  ;;  %v7464_v52 = vld [vmem:[%s11456_s2 + $0x2e8] sm:$0xf]  ;;  %v8023_v39 = vld [vmem:[%s11456_s2 + $0x1d4] sm:$0xf0] }
  0x5d   : > { %vm1971_vm2 = vcmask 1039360   ;;  %vm1592_vm3 = vcmask 31748   ;;  %vm2343_vm5 = vcmask 1031168   ;;  %s8172_s29 = smov 92   ;;  %s8173_s18 = smov 88   ;;  %vm2712_vm6 = vcmask 769024  }
  0x5e   : > { %1430 = vmatpush.bf16.msra.mxu0 %v7217_v0  ;;  %v7349_v0 = vor.u32 %v8027_v57, %v7346_v58  ;;  %v8057_v57 = vld [vmem:[%s11456_s2 + $0x2ec] sm:$0xf]  ;;  %v7466_v58 = vld [vmem:[%s11456_s2 + $0x310] sm:$0xf0]  ;;  %vm1593_vm4 = vmor %vm1592_vm3, %vm1591_vm0  ;;  %vm3081_vm7 = vcmask 760832   ;;  %s8177_s22 = smov 72  }
  0x5f   : > { %1443 = vmatpush.bf16.msra.mxu1 %v7537_v1  ;;  %1456 = vmatpush.bf16.msra.mxu2 %v7221_v3  ;;  %v7304_v1 = vld [vmem:[%s11456_s2 + $0x1a8] sm:$0xf]  ;;  %v8022_v3 = vld [vmem:[%s11456_s2 + $0x1cc] sm:$0xf0]  ;;  %s8178_s24 = smov 58   ;;  %vm3450_vm8 = vcmask 752640  }
  0x60   : > { %1469 = vmatpush.bf16.msra.mxu3 %v7541_v7  ;;  %v8017_v7 = vld [vmem:[%s11456_s2 + $0x1ac] sm:$0xf]  ;;  %v7305_v11 = vor.u32 %v8022_v3, %v7304_v1  ;;  %v7424_v1 = vld [vmem:[%s11456_s2 + $0x298] sm:$0xf]  ;;  %v8052_v3 = vld [vmem:[%s11456_s2 + $0x2bc] sm:$0xf0] }
  0x61   : > { %v7425_v16 = vor.u32 %v8052_v3, %v7424_v1  ;;  %v7232_v3 = vld [vmem:[%s11456_s2 + $0x110] sm:$0xf]  ;;  %s11464_s25 = smov 64   ;;  %vm3823_vm9 = vcmask 490496   ;;  %vm4228_vm10 = vcmask 482304   ;;  %vm4603_vm11 = vcmask 474112  }
  0x62   : > { %1431 = vmatpush.bf16.msra.mxu0 %v7177_v13  ;;  %v7309_v13 = vor.u32 %v8017_v7, %v7306_v8  ;;  %v8047_v7 = vld [vmem:[%s11456_s2 + $0x29c] sm:$0xf]  ;;  %v7426_v8 = vld [vmem:[%s11456_s2 + $0x2c0] sm:$0xf0]  ;;  %vm5013_vm12 = vcmask 1044232   ;;  %vm5011_vm14 = vcmask 281600  }
  0x63   : > { %1444 = vmatpush.bf16.msra.mxu1 %v7497_v14  ;;  %1457 = vmatpush.bf16.msra.mxu2 %v7181_v15  ;;  %v7264_v14 = vld [vmem:[%s11456_s2 + $0x158] sm:$0xf]  ;;  %v8012_v15 = vld [vmem:[%s11456_s2 + $0x17c] sm:$0xf0]  ;;  %vm5014_vm13 = vmor %vm1592_vm3, %vm5013_vm12  ;;  %s8181_s27 = smov 35   ;;  %vm5055_vm15 = vcmask 1043736  }
  0x64   : > { %1470 = vmatpush.bf16.msra.mxu3 %v7501_v19  ;;  %v8007_v19 = vld [vmem:[%s11456_s2 + $0x15c] sm:$0xf]  ;;  %v7265_v23 = vor.u32 %v8012_v15, %v7264_v14  ;;  %v8038_v14 = vld [vmem:[%s11456_s2 + $0x254] sm:$0xf]  ;;  %vm5056_vm3 = vcmask 1047556  }
  0x65   : > { %v7394_v15 = vld [vmem:[%s11456_s2 + $0x278] sm:$0xf0]  ;;  %vm5057_vm12 = vmor %vm5056_vm3, %vm5055_vm15 }
  0x66   : > { %1432 = vmatpush.bf16.msra.mxu0 %v7137_v25  ;;  %v7269_v25 = vor.u32 %v8007_v19, %v7266_v20  ;;  %v7714_v19 = vld [vmem:[%s11456_s2 + $0x4f8] sm:$0xf0]  ;;  %v7429_v20 = vor.u32 %v8047_v7, %v7426_v8  ;;  %v8083_v7 = vld [vmem:[%s11456_s2 + $0x3b4] sm:$0xf0]  ;;  %v7998_v8 = vld [vmem:[%s11456_s2 + $0x114] sm:$0xf] }
  0x67   : > { %1445 = vmatpush.bf16.msra.mxu1 %v7457_v28  ;;  %1458 = vmatpush.bf16.msra.mxu2 %v7141_v29  ;;  %v7544_v28 = vld [vmem:[%s11456_s2 + $0x388] sm:$0xf]  ;;  %v7589_v29 = vor.u32 %v8087_v21, %v7586_v22  ;;  %v7393_v21 = vor.u32 %v8043_v10, %v7392_v9  ;;  %v7717_v27 = vor.u32 %v8118_v18, %v7714_v19  ;;  %v7234_v9 = vld [vmem:[%s11456_s2 + $0x138] sm:$0xf0]  ;;  %v7512_v18 = vld [vmem:[%s11456_s2 + $0x340] sm:$0xf] }
  0x68   : > { %1471 = vmatpush.bf16.msra.mxu3 %v7461_v33  ;;  %v8077_v33 = vld [vmem:[%s11456_s2 + $0x38c] sm:$0xf]  ;;  %v7545_v36 = vor.u32 %v8082_v30, %v7544_v28  ;;  %v8113_v28 = vld [vmem:[%s11456_s2 + $0x4a4] sm:$0xf0] }
  0x69   : > { %v7549_v41 = vor.u32 %v8077_v33, %v7546_v34  ;;  %v7354_v30 = vld [vmem:[%s11456_s2 + $0x228] sm:$0xf0]  ;;  %v9085_v33 = vld [vmem:[%s11458_s4] sm:$0xf] }
  0x6a   : > { %1433 = vmatpush.bf16.msra.mxu0 %v7097_v40  ;;  %v7504_v40 = vld [vmem:[%s11456_s2 + $0x338] sm:$0xf] }
  0x6b   : > { %1446 = vmatpush.bf16.msra.mxu1 %v7417_v44  ;;  %1459 = vmatpush.bf16.msra.mxu2 %v7101_v45  ;;  %v7186_v44 = vld [vmem:[%s11456_s2 + $0xe0] sm:$0xf0]  ;;  %v8067_v45 = vld [vmem:[%s11456_s2 + $0x33c] sm:$0xf] }
  0x6c   : > { %1472 = vmatpush.bf16.msra.mxu3 %v7421_v48  ;;  %v7505_v48 = vor.u32 %v8072_v42, %v7504_v40  ;;  %v7509_v53 = vor.u32 %v8067_v45, %v7506_v46  ;;  %v7632_v40 = vld [vmem:[%s11456_s2 + $0x430] sm:$0xf]  ;;  %v8103_v42 = vld [vmem:[%s11456_s2 + $0x454] sm:$0xf0]  ;;  %v8098_v46 = vld [vmem:[%s11456_s2 + $0x434] sm:$0xf] }
  0x6d   : > { %1434 = vmatmul.bf16.vlgmr.msra.gmra.mxu0 %v8499_v62 }
  0x6e   : > { %1478 = vmatpush.bf16.msrb.mxu0 %v7385_v49  ;;  %1460 = vmatmul.bf16.vlgmr.msra.gmra.mxu2 %v8499_v62  ;;  %v7189_v49 = vor.u32 %v7987_v43, %v7186_v44  ;;  %v8018_v43 = vld [vmem:[%s11456_s2 + $0x1b4] sm:$0xf]  ;;  %v7314_v44 = vld [vmem:[%s11456_s2 + $0x1d8] sm:$0xf0] }
  0x6f   : > { %1491 = vmatpush.bf16.msrb.mxu1 %v7705_v50  ;;  %1504 = vmatpush.bf16.msrb.mxu2 %v7389_v51  ;;  %v7144_v50 = vld [vmem:[%s11456_s2 + $0x68] sm:$0xf]  ;;  %v7982_v51 = vld [vmem:[%s11456_s2 + $0x8c] sm:$0xf0] }
  0x70   : > { %1517 = vmatpush.bf16.msrb.mxu3 %v7709_v55  ;;  %1447 = vmatmul.bf16.vlgmr.msra.gmra.mxu1 %v8510_v2  ;;  %v7977_v55 = vld [vmem:[%s11456_s2 + $0x6c] sm:$0xf]  ;;  %v7145_v59 = vor.u32 %v7982_v51, %v7144_v50  ;;  %v7317_v50 = vor.u32 %v8018_v43, %v7314_v44  ;;  %v7272_v51 = vld [vmem:[%s11456_s2 + $0x160] sm:$0xf] }
  0x71   : > { %1473 = vmatmul.bf16.vlgmr.msra.gmra.mxu3 %v8510_v2  ;;  %v7112_v44 = vld [vmem:[%s11456_s2 + $0x20] sm:$0xf] }
  0x72   : > { %1479 = vmatpush.bf16.msrb.mxu0 %v7345_v61  ;;  %v7972_v61 = vld [vmem:[%s11456_s2 + $0x3c] sm:$0xf0] }
  0x73   : > { %1492 = vmatpush.bf16.msrb.mxu1 %v7665_v63  ;;  %1505 = vmatpush.bf16.msrb.mxu2 %v7349_v0  ;;  %v7465_v63 = vor.u32 %v8062_v54, %v7464_v52  ;;  %v7149_v0 = vor.u32 %v7977_v55, %v7146_v56  ;;  %v8013_v52 = vld [vmem:[%s11456_s2 + $0x184] sm:$0xf0]  ;;  %v8008_v56 = vld [vmem:[%s11456_s2 + $0x164] sm:$0xf] }
  0x74   : > { %1518 = vmatpush.bf16.msrb.mxu3 %v7669_v5  ;;  %v7469_v5 = vor.u32 %v8057_v57, %v7466_v58  ;;  %v8093_v55 = vld [vmem:[%s11456_s2 + $0x404] sm:$0xf0]  ;;  %v7274_v57 = vld [vmem:[%s11456_s2 + $0x188] sm:$0xf0]  ;;  %v8088_v58 = vld [vmem:[%s11456_s2 + $0x3e4] sm:$0xf] }
  0x75   : > { %v7277_v1 = vor.u32 %v8008_v56, %v7274_v57  ;;  %v8048_v57 = vld [vmem:[%s11456_s2 + $0x2a4] sm:$0xf] }
  0x76   : > { %1480 = vmatpush.bf16.msrb.mxu0 %v7305_v11  ;;  %v7712_v11 = vld [vmem:[%s11456_s2 + $0x4d0] sm:$0xf] }
  0x77   : > { %1493 = vmatpush.bf16.msrb.mxu1 %v7625_v12  ;;  %1506 = vmatpush.bf16.msrb.mxu2 %v7309_v13  ;;  %v7105_v12 = vor.u32 %v7972_v61, %v7104_v60  ;;  %v8123_v13 = vld [vmem:[%s11456_s2 + $0x4f4] sm:$0xf0]  ;;  %v9151_v60 = vld [vmem:[%s9122_s11 + $0x8] sm:$0xff]  ;;  %v7273_v61 = vor.u32 %v8013_v52, %v7272_v51  ;;  %v1597_v51 = vld [vmem:[%s9122_s11 + $0x10] sm:$0xff] }
  0x78   : > { %1519 = vmatpush.bf16.msrb.mxu3 %v7629_v17  ;;  %v7109_v17 = vor.u32 %v7967_v4, %v7106_v6  ;;  %v7713_v22 = vor.u32 %v8123_v13, %v7712_v11  ;;  %v8003_v4 = vld [vmem:[%s11456_s2 + $0x134] sm:$0xf0]  ;;  %v8078_v11 = vld [vmem:[%s11456_s2 + $0x394] sm:$0xf]  ;;  %v1787_v56 = vunpack.c.l.b16 %v1597_v51 }
  0x79   : > { %v7233_v13 = vor.u32 %v8003_v4, %v7232_v3  ;;  %v1788_v4 = vunpack.c.h.b16 %v1597_v51 }
  0x7a   : > { %1481 = vmatpush.bf16.msrb.mxu0 %v7265_v23  ;;  %v7397_v23 = vor.u32 %v8038_v14, %v7394_v15  ;;  %v7237_v15 = vor.u32 %v7998_v8, %v7234_v9  ;;  %v1599_v9 = vld [vmem:[%s9122_s11 + $0x20] sm:$0xff] }
  0x7b   : > { %1494 = vmatpush.bf16.msrb.mxu1 %v7585_v24  ;;  %1507 = vmatpush.bf16.msrb.mxu2 %v7269_v25  ;;  %v7352_v24 = vld [vmem:[%s11456_s2 + $0x200] sm:$0xf]  ;;  %v8033_v25 = vld [vmem:[%s11456_s2 + $0x224] sm:$0xf0] }
  0x7c   : > { %1520 = vmatpush.bf16.msrb.mxu3 %v7589_v29  ;;  %v8028_v29 = vld [vmem:[%s11456_s2 + $0x204] sm:$0xf]  ;;  %v7353_v34 = vor.u32 %v8033_v25, %v7352_v24  ;;  %v7514_v24 = vld [vmem:[%s11456_s2 + $0x368] sm:$0xf0]  ;;  %v9207_v25 = vld [vmem:[%s9122_s11 + $0x18] sm:$0xff] }
  0x7e   : > { %1482 = vmatpush.bf16.msrb.mxu0 %v7225_v35  ;;  %v1949_v35 = vunpack.c.l.b16 %v9085_v33 }
  0x7f   : > { %1495 = vmatpush.bf16.msrb.mxu1 %v7545_v36  ;;  %1508 = vmatpush.bf16.msrb.mxu2 %v7229_v37  ;;  %v7673_v36 = vor.u32 %v8113_v28, %v7672_v26  ;;  %v7357_v37 = vor.u32 %v8028_v29, %v7354_v30  ;;  %v1789_v28 = vunpack.c.l.b16 %v9207_v25 }
  0x80   : > { %1521 = vmatpush.bf16.msrb.mxu3 %v7549_v41  ;;  %v7677_v41 = vor.u32 %v8108_v31, %v7674_v32  ;;  %v9108_v45 = vpack.c.b16 %v1949_v35, %v1949_v35  ;;  %v7983_v31 = vld [vmem:[%s11456_s2 + $0x94] sm:$0xf0]  ;;  %v7472_v32 = vld [vmem:[%s11456_s2 + $0x2f0] sm:$0xf] }
  0x82   : > { %1483 = vmatpush.bf16.msrb.mxu0 %v7185_v47  ;;  %v7634_v47 = vld [vmem:[%s11456_s2 + $0x458] sm:$0xf0]  ;;  %1951 = vrot.lane.b32.xlu1 %v9108_v45, %s8164_s23 }
  0x83   : > { %1496 = vmatpush.bf16.msrb.mxu1 %v7505_v48  ;;  %1509 = vmatpush.bf16.msrb.mxu2 %v7189_v49  ;;  %v7313_v48 = vor.u32 %v8023_v39, %v7312_v38  ;;  %v7633_v49 = vor.u32 %v8103_v42, %v7632_v40  ;;  %v7637_v54 = vor.u32 %v8098_v46, %v7634_v47  ;;  %v7154_v38 = vld [vmem:[%s11456_s2 + $0x98] sm:$0xf0] }
  0x84   : > { %1522 = vmatpush.bf16.msrb.mxu3 %v7509_v53  ;;  %v7592_v53 = vld [vmem:[%s11456_s2 + $0x3e0] sm:$0xf]  ;;  %v9229_v39 = vpack.c.b16 %v1789_v28, %v1789_v28  ;;  %v7474_v42 = vld [vmem:[%s11456_s2 + $0x318] sm:$0xf0] }
  0x86   : > { %1484 = vmatpush.bf16.msrb.mxu0 %v7145_v59  ;;  %v7594_v59 = vld [vmem:[%s11456_s2 + $0x408] sm:$0xf0] }
  0x87   : > { %1497 = vmatpush.bf16.msrb.mxu1 %v7465_v63  ;;  %1510 = vmatpush.bf16.msrb.mxu2 %v7149_v0  ;;  %v1785_v63 = vunpack.c.l.b16 %v9151_v60  ;;  %v7593_v0 = vor.u32 %v8093_v55, %v7592_v53  ;;  %v7597_v6 = vor.u32 %v8088_v58, %v7594_v59  ;;  %v8053_v53 = vld [vmem:[%s11456_s2 + $0x2c4] sm:$0xf0]  ;;  %v7114_v55 = vld [vmem:[%s11456_s2 + $0x48] sm:$0xf0] }
  0x88   : > { %1523 = vmatpush.bf16.msrb.mxu3 %v7469_v5  ;;  %v7552_v5 = vld [vmem:[%s11456_s2 + $0x390] sm:$0xf]  ;;  %v7434_v58 = vld [vmem:[%s11456_s2 + $0x2c8] sm:$0xf0] }
  0x89   : > { %v9172_v10 = vpack.c.b16 %v1785_v63, %v1785_v63  ;;  %v7553_v14 = vor.u32 %v8083_v7, %v7552_v5  ;;  %v7437_v3 = vor.u32 %v8048_v57, %v7434_v58  ;;  %v1786_v7 = vunpack.c.h.b16 %v9151_v60 }
  0x8a   : > { %1485 = vmatpush.bf16.msrb.mxu0 %v7105_v12  ;;  %v7554_v12 = vld [vmem:[%s11456_s2 + $0x3b8] sm:$0xf0] }
  0x8b   : > { %1498 = vmatpush.bf16.msrb.mxu1 %v7425_v16  ;;  %1511 = vmatpush.bf16.msrb.mxu2 %v7109_v17  ;;  %v7192_v16 = vld [vmem:[%s11456_s2 + $0xc0] sm:$0xf]  ;;  %v7993_v17 = vld [vmem:[%s11456_s2 + $0xe4] sm:$0xf0]  ;;  %v7557_v19 = vor.u32 %v8078_v11, %v7554_v12  ;;  %v9285_v8 = vpack.c.b16 %v1786_v7, %v1786_v7  ;;  %v1791_v11 = vunpack.c.l.b16 %v1599_v9 }
  0x8c   : > { %1524 = vmatpush.bf16.msrb.mxu3 %v7429_v20  ;;  %v8073_v20 = vld [vmem:[%s11456_s2 + $0x364] sm:$0xf0]  ;;  %1957 = vrot.lane.b32.xlu1 %v9172_v10, %s8165_s21  ;;  %v7193_v26 = vor.u32 %v7993_v17, %v7192_v16 }
  0x8d   : > { %1486 = vmatmul.bf16.vlgmr.msrb.gmra.mxu0 %v8499_v62  ;;  %v7513_v29 = vor.u32 %v8073_v20, %v7512_v18 }
  0x8e   : > { %1530 = vmatpush.bf16.msra.mxu0 %v7393_v21  ;;  %1512 = vmatmul.bf16.vlgmr.msrb.gmra.mxu2 %v8499_v62  ;;  %v7988_v21 = vld [vmem:[%s11456_s2 + $0xc4] sm:$0xf] }
  0x8f   : > { %1543 = vmatpush.bf16.msra.mxu1 %v7713_v22  ;;  %1556 = vmatpush.bf16.msra.mxu2 %v7397_v23  ;;  %v7194_v22 = vld [vmem:[%s11456_s2 + $0xe8] sm:$0xf0]  ;;  %v8068_v23 = vld [vmem:[%s11456_s2 + $0x344] sm:$0xf] }
  0x90   : > { %1569 = vmatpush.bf16.msra.mxu3 %v7717_v27  ;;  %1499 = vmatmul.bf16.vlgmr.msrb.gmra.mxu1 %v8510_v2  ;;  %v7152_v27 = vld [vmem:[%s11456_s2 + $0x70] sm:$0xf]  ;;  %v7197_v30 = vor.u32 %v7988_v21, %v7194_v22  ;;  %v7517_v35 = vor.u32 %v8068_v23, %v7514_v24 }
  0x91   : > { %1525 = vmatmul.bf16.vlgmr.msrb.gmra.mxu3 %v8510_v2  ;;  %v7153_v43 = vor.u32 %v7983_v31, %v7152_v27 }
  0x92   : > { %1531 = vmatpush.bf16.msra.mxu0 %v7353_v34  ;;  %v1595_v34 = vld [vmem:[%s9122_s11] sm:$0xff] }
  0x93   : > { %1544 = vmatpush.bf16.msra.mxu1 %v7673_v36  ;;  %1557 = vmatpush.bf16.msra.mxu2 %v7357_v37  ;;  %v8063_v36 = vld [vmem:[%s11456_s2 + $0x314] sm:$0xf0]  ;;  %v7978_v37 = vld [vmem:[%s11456_s2 + $0x74] sm:$0xf]  ;;  %v1783_v40 = vunpack.c.l.b16 %v1595_v34 }
  0x94   : > { %1570 = vmatpush.bf16.msra.mxu3 %v7677_v41  ;;  %v8058_v41 = vld [vmem:[%s11456_s2 + $0x2f4] sm:$0xf]  ;;  %v7473_v47 = vor.u32 %v8063_v36, %v7472_v32  ;;  %1965 = vrot.lane.b32.xlu1 %v9229_v39, %s8165_s21 }
  0x95   : > { %v9240_v46 = vpack.c.b16 %v1783_v40, %v1783_v40  ;;  %v7477_v52 = vor.u32 %v8058_v41, %v7474_v42  ;;  %v9314_v40 = vld [vmem:[%s11459_s5] sm:$0xf] }
  0x96   : > { %1532 = vmatpush.bf16.msra.mxu0 %v7313_v48  ;;  %v7157_v48 = vor.u32 %v7978_v37, %v7154_v38 }
  0x97   : > { %1545 = vmatpush.bf16.msra.mxu1 %v7633_v49  ;;  %1558 = vmatpush.bf16.msra.mxu2 %v7317_v50  ;;  %v7973_v49 = vld [vmem:[%s11456_s2 + $0x44] sm:$0xf0]  ;;  %v7432_v50 = vld [vmem:[%s11456_s2 + $0x2a0] sm:$0xf] }
  0x98   : > { %1571 = vmatpush.bf16.msra.mxu3 %v7637_v54  ;;  %v7968_v54 = vld [vmem:[%s11456_s2 + $0x24] sm:$0xf]  ;;  %1953 = vrot.lane.b32.xlu0 %v9240_v46, %s8165_s21  ;;  %v7113_v59 = vor.u32 %v7973_v49, %v7112_v44  ;;  %v7433_v63 = vor.u32 %v8053_v53, %v7432_v50  ;;  %v2137_v53 = vunpack.c.l.b16 %v9314_v40 }
  0x9a   : > { %1533 = vmatpush.bf16.msra.mxu0 %v7273_v61  ;;  %v9268_v61 = vpack.c.b16 %v1787_v56, %v1787_v56 }
  0x9b   : > { %1546 = vmatpush.bf16.msra.mxu1 %v7593_v0  ;;  %1559 = vmatpush.bf16.msra.mxu2 %v7277_v1  ;;  %v7117_v0 = vor.u32 %v7968_v54, %v7114_v55  ;;  %v1784_v1 = vunpack.c.h.b16 %v1595_v34  ;;  %v9337_v54 = vpack.c.b16 %v2137_v53, %v2137_v53 }
  0x9c   : > { %1572 = vmatpush.bf16.msra.mxu3 %v7597_v6  ;;  %1961 = vrot.lane.b32.xlu2 %v9268_v61, %s8165_s21  ;;  %v9274_v6 = vpack.c.b16 %v1788_v4, %v1788_v4 }
  0x9d   : > { %v9272_v5 = vpack.c.b16 %v1784_v1, %v1784_v1 }
  0x9e   : > { %1534 = vmatpush.bf16.msra.mxu0 %v7233_v13 }
  0x9f   : > { %1547 = vmatpush.bf16.msra.mxu1 %v7553_v14  ;;  %1560 = vmatpush.bf16.msra.mxu2 %v7237_v15  ;;  %v9290_v14 = vpack.c.b16 %v1791_v11, %v1791_v11 }
  0xa0   : > { %1573 = vmatpush.bf16.msra.mxu3 %v7557_v19  ;;  %1955 = vrot.lane.b32.xlu0 %v9272_v5, %s8165_s21 }
  0xa2   : > { %1535 = vmatpush.bf16.msra.mxu0 %v7193_v26 }
  0xa3   : > { %1548 = vmatpush.bf16.msra.mxu1 %v7513_v29  ;;  %1561 = vmatpush.bf16.msra.mxu2 %v7197_v30 }
  0xa4   : > { %1574 = vmatpush.bf16.msra.mxu3 %v7517_v35  ;;  %1963 = vrot.lane.b32.xlu2 %v9274_v6, %s8165_s21 }
  0xa6   : > { %1536 = vmatpush.bf16.msra.mxu0 %v7153_v43 }
  0xa7   : > { %1549 = vmatpush.bf16.msra.mxu1 %v7473_v47  ;;  %1562 = vmatpush.bf16.msra.mxu2 %v7157_v48 }
  0xa8   : > { %1575 = vmatpush.bf16.msra.mxu3 %v7477_v52  ;;  %1959 = vrot.lane.b32.xlu0 %v9285_v8, %s8165_s21 }
  0xaa   : > { %1537 = vmatpush.bf16.msra.mxu0 %v7113_v59  ;;  %v1331_v12 = vpop.f32.mrf.mxu0 }
  0xab   : > { %1550 = vmatpush.bf16.msra.mxu1 %v7433_v63  ;;  %1563 = vmatpush.bf16.msra.mxu2 %v7117_v0 }
  0xac   : > { %1576 = vmatpush.bf16.msra.mxu3 %v7437_v3  ;;  %1969 = vrot.lane.b32.xlu2 %v9290_v14, %s8165_s21 }
  0xad   : > { %1538 = vmatmul.bf16.vlgmr.msra.gmra.mxu0 %v8499_v62  ;;  %v1344_v13 = vpop.f32.mrf.mxu1 }
  0xae   : > { %1551 = vmatmul.bf16.vlgmr.msra.gmra.mxu1 %v8510_v2  ;;  %1564 = vmatmul.bf16.vlgmr.msra.gmra.mxu2 %v8499_v62  ;;  %v1790_v62 = vunpack.c.h.b16 %v9207_v25  ;;  %v1345_v60 = vadd.f32 %v1344_v13, %v1331_v12  ;;  %v1805_v12 = vsel %vm1591_vm0, %v9240_v46, 0 }
  0xaf   : > { %1577 = vmatmul.bf16.vlgmr.msra.gmra.mxu3 %v8510_v2 }
  0xb0   : > { %v9295_v2 = vpack.c.b16 %v1790_v62, %v1790_v62 }
  0xb1   : > { %v1357_v15 = vpop.f32.mrf.mxu2 }
  0xb2   : > { %1967 = vrot.lane.b32.xlu0 %v9295_v2, %s8165_s21  ;;  %v1333_v18 = vpop.f32.mrf.mxu0 }
  0xb4   : > { %v1370_v16 = vpop.f32.mrf.mxu3 }
  0xb5   : > { %v1371_v17 = vadd.f32 %v1370_v16, %v1357_v15  ;;  %v1346_v19 = vpop.f32.mrf.mxu1 }
  0xb7   : > { %v1582_v20 = vpack.c.bf16 %v1371_v17, %v1345_v60 }
  0xb9   : > { %1587 = vst [vmem:[#allocation2] sm:$0xff] %v1582_v20  ;;  %v1612_v21 = vunpack.c.l.b16 %v1582_v20  ;;  %v1359_v22 = vpop.f32.mrf.mxu2  ;;  %v1613_v23 = vunpack.c.h.b16 %v1582_v20  ;;  %v1817_v20 = vsel %vm1591_vm0, %v9268_v61, 0 }
  0xbb   : > { %v9299_v24 = vpack.c.b16 %v1612_v21, %v1612_v21  ;;  %v9301_v25 = vpack.c.b16 %v1613_v23, %v1613_v23 }
  0xbc   : > { %v1372_v26 = vpop.f32.mrf.mxu3 }
  0xbd   : > { %2141 = vrot.lane.b32.xlu1 %v9299_v24, %s8165_s21  ;;  %2143 = vrot.lane.b32.xlu2 %v9301_v25, %s8165_s21  ;;  %v1635_v27 = vsel %vm1591_vm0, %v9299_v24, 0  ;;  %v1638_v28 = vsel %vm1591_vm0, %v9301_v25, 0 }
  0xbe   : > { %1668 = vmatpush.bf16.msrb.mxu0 %v1635_v27  ;;  %1681 = vmatpush.bf16.msrb.mxu1 %v1638_v28 }
  0xc1   : > { %7719 = vmatmul.msk.bf16.vlgmr.msrb.gmra.mxu1 %vm1630_vm1, %v9314_v40  ;;  %7718 = vmatmul.msk.bf16.vlgmr.msrb.gmra.mxu0 %vm1630_vm1, %v9314_v40 }
  0xc5   : > { %2139 = vrot.lane.b32.xlu2 %v9337_v54, %s8164_s23 }
  0xca   : > { %v1383_v29 = vpop.f32.mrf.mxu0 }
  0xcd   : > { %v1396_v30 = vpop.f32.mrf.mxu1 }
  0xce   : > { %v1397_v31 = vadd.f32 %v1396_v30, %v1383_v29 }
  0xd1   : > { %v1409_v32 = vpop.f32.mrf.mxu2 }
  0xd2   : > { %v1385_v36 = vpop.f32.mrf.mxu0 }
  0xd4   : > { %v1422_v34 = vpop.f32.mrf.mxu3 }
  0xd5   : > { %v1423_v35 = vadd.f32 %v1422_v34, %v1409_v32  ;;  %v1398_v38 = vpop.f32.mrf.mxu1  ;;  %v1808_v32 = vsel %vm1591_vm0, %v9272_v5, 0  ;;  %v1811_v34 = vsel %vm1591_vm0, %v9172_v10, 0 }
  0xd6   : > { %v1820_v38 = vsel %vm1591_vm0, %v9274_v6, 0 }
  0xd7   : > { %v1583_v37 = vpack.c.bf16 %v1423_v35, %v1397_v31 }
  0xd9   : > { %1588 = vst [vmem:[#allocation2 + $0x8] sm:$0xff] %v1583_v37  ;;  %v1615_v41 = vunpack.c.h.b16 %v1583_v37  ;;  %v1614_v42 = vunpack.c.l.b16 %v1583_v37  ;;  %v1411_v44 = vpop.f32.mrf.mxu2 }
  0xda   : > { %v1829_v44 = vsel %vm1591_vm0, %v9290_v14, 0 }
  0xdb   : > { %v9320_v43 = vpack.c.b16 %v1615_v41, %v1615_v41  ;;  %v9322_v47 = vpack.c.b16 %v1614_v42, %v1614_v42  ;;  %v1823_v41 = vsel %vm1591_vm0, %v9229_v39, 0 }
  0xdc   : > { %v1424_v48 = vpop.f32.mrf.mxu3 }
  0xdd   : > { %2147 = vrot.lane.b32.xlu0 %v9320_v43, %s8165_s21  ;;  %v1641_v49 = vsel %vm1591_vm0, %v9322_v47, 0  ;;  %v1644_v50 = vsel %vm1591_vm0, %v9320_v43, 0 }
  0xde   : > { %1694 = vmatpush.bf16.msrb.mxu2 %v1641_v49  ;;  %1707 = vmatpush.bf16.msrb.mxu3 %v1644_v50 }
  0xe1   : > { %7720 = vmatmul.msk.bf16.vlgmr.msrb.gmra.mxu2 %vm1630_vm1, %v9314_v40  ;;  %7721 = vmatmul.msk.bf16.vlgmr.msrb.gmra.mxu3 %vm1630_vm1, %v9314_v40 }
  0xe5   : > { %2145 = vrot.lane.b32.xlu0 %v9322_v47, %s8165_s21 }
  0xea   : > { %v1435_v51 = vpop.f32.mrf.mxu0 }
  0xed   : > { %v1448_v52 = vpop.f32.mrf.mxu1 }
  0xee   : > { %v1449_v55 = vadd.f32 %v1448_v52, %v1435_v51 }
  0xf1   : > { %v1461_v56 = vpop.f32.mrf.mxu2 }
  0xf2   : > { %v1437_v59 = vpop.f32.mrf.mxu0 }
  0xf4   : > { %v1474_v57 = vpop.f32.mrf.mxu3  ;;  %v9387_v42 = vpop.permute.xlu1 %1951 }
  0xf5   : > { %v1475_v58 = vadd.f32 %v1474_v57, %v1461_v56  ;;  %v1450_v0 = vpop.f32.mrf.mxu1 }
  0xf6   : > { %v1962_v49 = vpop.permute.xlu2 %1961 }
  0xf7   : > { %v1584_v63 = vpack.c.bf16 %v1475_v58, %v1449_v55 }
  0xf9   : > { %1589 = vst [vmem:[#allocation2 + $0x10] sm:$0xff] %v1584_v63  ;;  %v1616_v1 = vunpack.c.l.b16 %v1584_v63  ;;  %v1617_v3 = vunpack.c.h.b16 %v1584_v63  ;;  %v1463_v7 = vpop.f32.mrf.mxu2 }
  0xfb   : > { %v9341_v4 = vpack.c.b16 %v1616_v1, %v1616_v1  ;;  %v9343_v9 = vpack.c.b16 %v1617_v3, %v1617_v3 }
  0xfc   : > { %v1476_v11 = vpop.f32.mrf.mxu3 }
  0xfd   : > { %2149 = vrot.lane.b32.xlu1 %v9341_v4, %s8165_s21  ;;  %v1650_v13 = vsel %vm1591_vm0, %v9343_v9, 0  ;;  %v1647_v62 = vsel %vm1591_vm0, %v9341_v4, 0 }
  0xfe   : > { %1733 = vmatpush.bf16.msra.mxu1 %v1650_v13  ;;  %1720 = vmatpush.bf16.msra.mxu0 %v1647_v62  ;;  %v9397_v52 = vpop.permute.xlu1 %1957  ;;  %v1964_v62 = vpop.permute.xlu2 %1963 }
 0x101   : > { %7723 = vmatmul.msk.bf16.vlgmr.msra.gmra.mxu1 %vm1630_vm1, %v9314_v40  ;;  %7722 = vmatmul.msk.bf16.vlgmr.msra.gmra.mxu0 %vm1630_vm1, %v9314_v40 }
 0x102   : > { %1838 = vmatpush.bf16.msrb.mxu1 %v1805_v12 }
 0x105   : > { %2151 = vrot.lane.b32.xlu1 %v9343_v9, %s8165_s21 }
 0x106   : > { %1890 = vmatpush.bf16.msra.mxu1 %v1817_v20  ;;  %v1970_v20 = vpop.permute.xlu2 %1969 }
 0x10a   : > { %v1487_v15 = vpop.f32.mrf.mxu0  ;;  %v1954_v35 = vpop.permute.xlu0 %1953 }
 0x10d   : > { %v1500_v60 = vpop.f32.mrf.mxu1 }
 0x10e   : > { %v1501_v16 = vadd.f32 %v1500_v60, %v1487_v15 }
 0x111   : > { %v1513_v17 = vpop.f32.mrf.mxu2  ;;  %7727 = vmatmul.msk.bf16.vlgmr.msrb.gmra.mxu1 %vm1630_vm1, %v9085_v33 }
 0x112   : > { %v1489_v21 = vpop.f32.mrf.mxu0  ;;  %v1956_v48 = vpop.permute.xlu0 %1955  ;;  %1942 = vmatpush.bf16.msrb.mxu1 %v1829_v44 }
 0x113   : > { %v1972_v53 = vsel %vm1971_vm2, %v1954_v35, %v1956_v48  ;;  %v1973_v55 = vsel %vm1971_vm2, %v1956_v48, %v9397_v52  ;;  %v1826_v35 = vsel %vm1591_vm0, %v9295_v2, 0 }
 0x114   : > { %v1526_v18 = vpop.f32.mrf.mxu3  ;;  %v1987_v56 = vsel %vm1591_vm0, %v1973_v55, 0  ;;  %v1984_v57 = vsel %vm1591_vm0, %v1972_v53, 0 }
 0x115   : > { %v1527_v19 = vadd.f32 %v1526_v18, %v1513_v17  ;;  %v1502_v23 = vpop.f32.mrf.mxu1  ;;  %v1976_v17 = vsel %vm1971_vm2, %v1962_v49, %v1964_v62 }
 0x117   : > { %v1585_v22 = vpack.c.bf16 %v1527_v19, %v1501_v16  ;;  %v9425_v16 = vpop.permute.xlu1 %1965 }
 0x118   : > { %v1977_v18 = vsel %vm1971_vm2, %v1964_v62, %v9425_v16 }
 0x119   : > { %1590 = vst [vmem:[#allocation2 + $0x18] sm:$0xff] %v1585_v22  ;;  %v1619_v26 = vunpack.c.h.b16 %v1585_v22  ;;  %v1618_v27 = vunpack.c.l.b16 %v1585_v22  ;;  %v1515_v28 = vpop.f32.mrf.mxu2  ;;  %v1999_v23 = vsel %vm1591_vm0, %v1977_v18, 0 }
 0x11a   : > { %v9408_v58 = vpop.permute.xlu0 %1959 }
 0x11b   : > { %v9363_v29 = vpack.c.b16 %v1619_v26, %v1619_v26  ;;  %v9365_v30 = vpack.c.b16 %v1618_v27, %v1618_v27  ;;  %v1975_v0 = vsel %vm1971_vm2, %v9408_v58, %v1962_v49  ;;  %v1996_v26 = vsel %vm1591_vm0, %v1976_v17, 0 }
 0x11c   : > { %v1528_v31 = vpop.f32.mrf.mxu3  ;;  %v1993_v12 = vsel %vm1591_vm0, %v1975_v0, 0 }
 0x11d   : > { %2155 = vrot.lane.b32.xlu2 %v9363_v29, %s8165_s21  ;;  %2153 = vrot.lane.b32.xlu1 %v9365_v30, %s8165_s21  ;;  %v1653_v36 = vsel %vm1591_vm0, %v9365_v30, 0  ;;  %v1656_v37 = vsel %vm1591_vm0, %v9363_v29, 0 }
 0x11e   : > { %1746 = vmatpush.bf16.msra.mxu2 %v1653_v36  ;;  %1759 = vmatpush.bf16.msra.mxu3 %v1656_v37  ;;  %v2144_v36 = vpop.permute.xlu2 %2143 }
 0x121   : > { %7724 = vmatmul.msk.bf16.vlgmr.msra.gmra.mxu2 %vm1630_vm1, %v9314_v40  ;;  %7725 = vmatmul.msk.bf16.vlgmr.msra.gmra.mxu3 %vm1630_vm1, %v9314_v40 }
 0x122   : > { %1851 = vmatpush.bf16.msrb.mxu2 %v1808_v32  ;;  %1864 = vmatpush.bf16.msrb.mxu3 %v1811_v34  ;;  %v1814_v32 = vsel %vm1591_vm0, %v9285_v8, 0 }
 0x123   : > { %7731 = vmatmul.msk.bf16.vlgmr.msra.gmra.mxu1 %vm1630_vm1, %v9085_v33 }
 0x124   : > { %2056 = vmatpush.bf16.msra.mxu1 %v1993_v12  ;;  %v1968_v22 = vpop.permute.xlu0 %1967 }
 0x125   : > { %2329 = vrot.lane.b32.xlu2 %v9172_v10, %s8166_s12  ;;  %2325 = vrot.lane.b32.xlu1 %v9240_v46, %s8166_s12  ;;  %v1979_v27 = vsel %vm1971_vm2, %v1968_v22, %v1970_v20  ;;  %v1978_v53 = vsel %vm1971_vm2, %v9425_v16, %v1968_v22 }
 0x126   : > { %1903 = vmatpush.bf16.msra.mxu2 %v1820_v38  ;;  %1916 = vmatpush.bf16.msra.mxu3 %v1823_v41  ;;  %v2005_v34 = vsel %vm1591_vm0, %v1979_v27, 0  ;;  %v2008_v41 = vsel %vm1591_vm0, %v1970_v20, 0  ;;  %v9501_v55 = vpop.permute.xlu2 %2139 }
 0x12a   : > { %v1539_v50 = vpop.f32.mrf.mxu0 }
 0x12b   : > { %v1552_v51 = vpop.f32.mrf.mxu1 }
 0x12c   : > { %v1553_v59 = vadd.f32 %v1552_v51, %v1539_v50 }
 0x12d   : > { %2327 = vrot.lane.b32.xlu2 %v9272_v5, %s8166_s12  ;;  %2333 = vrot.lane.b32.xlu1 %v9268_v61, %s8166_s12 }
 0x12f   : > { %v2142_v37 = vpop.permute.xlu1 %2141 }
 0x130   : > { %v2159_v38 = vsel %vm1971_vm2, %v2142_v37, %v2144_v36 }
 0x131   : > { %v1565_v63 = vpop.f32.mrf.mxu2  ;;  %7728 = vmatmul.msk.bf16.vlgmr.msrb.gmra.mxu2 %vm1630_vm1, %v9085_v33  ;;  %7729 = vmatmul.msk.bf16.vlgmr.msrb.gmra.mxu3 %vm1630_vm1, %v9085_v33  ;;  %v2171_v44 = vsel %vm1591_vm0, %v2159_v38, 0 }
 0x132   : > { %v1578_v1 = vpop.f32.mrf.mxu3  ;;  %v1541_v3 = vpop.f32.mrf.mxu0  ;;  %2030 = vmatpush.bf16.msrb.mxu3 %v1987_v56  ;;  %2017 = vmatpush.bf16.msrb.mxu2 %v1984_v57  ;;  %v2002_v57 = vsel %vm1591_vm0, %v1978_v53, 0 }
 0x133   : > { %v1579_v7 = vadd.f32 %v1578_v1, %v1565_v63  ;;  %v1554_v11 = vpop.f32.mrf.mxu1  ;;  %7735 = vmatmul.msk.bf16.vlgmr.msrb.gmra.mxu1 %vm1630_vm1, %v9085_v33 }
 0x134   : > { %2108 = vmatpush.bf16.msrb.mxu1 %v2005_v34 }
 0x135   : > { %v1586_v13 = vpack.c.bf16 %v1579_v7, %v1553_v59  ;;  %2337 = vrot.lane.b32.xlu2 %v9229_v39, %s8166_s12  ;;  %2335 = vrot.lane.b32.xlu1 %v9274_v6, %s8166_s12 }
 0x137   : > { %1594 = vst.msk [vmem:[#allocation2 + $0x20] sm:$0xff] %vm1593_vm4, %v1586_v13  ;;  %vm5040_vm4 = vcmask 285696  }
 0x139   : > { %v1567_v15 = vpop.f32.mrf.mxu2 }
 0x13a   : > { %v1580_v60 = vpop.f32.mrf.mxu3 }
 0x13d   : > { %2341 = vrot.lane.b32.xlu2 %v9290_v14, %s8166_s12  ;;  %2514 = vrot.lane.b32.xlu1 %v9322_v47, %s8166_s12 }
 0x13e   : > { %v1606_v19 = vld [vmem:[#allocation2 + $0x20] sm:$0xf]  ;;  %v9507_v56 = vpop.f32.mrf.mxu1  ;;  %v1670_v17 = vpop.f32.mrf.mxu0 }
 0x13f   : > { %v1620_v21 = vunpack.c.l.b16 %v1606_v19 }
 0x141   : > { %v9437_v28 = vpack.c.b16 %v1620_v21, %v1620_v21  ;;  %7732 = vmatmul.msk.bf16.vlgmr.msra.gmra.mxu2 %vm1630_vm1, %v9085_v33  ;;  %7733 = vmatmul.msk.bf16.vlgmr.msra.gmra.mxu3 %vm1630_vm1, %v9085_v33 }
 0x142   : > { %2082 = vmatpush.bf16.msra.mxu3 %v1999_v23  ;;  %2069 = vmatpush.bf16.msra.mxu2 %v1996_v26 }
 0x143   : > { %2157 = vrot.lane.b32.xlu0 %v9437_v28, %s8165_s21  ;;  %v1659_v31 = vsel %vm1591_vm0, %v9437_v28, 0  ;;  %7739 = vmatmul.msk.bf16.vlgmr.msra.gmra.mxu1 %vm1630_vm1, %v9387_v42 }
 0x144   : > { %1772 = vmatpush.bf16.msrb.mxu0 %v1659_v31 }
 0x145   : > { %2508 = vrot.lane.b32.xlu2 %v9337_v54, %s8167_s13  ;;  %2516 = vrot.lane.b32.xlu1 %v9320_v43, %s8166_s12 }
 0x146   : > { %v1672_v19 = vpop.f32.mrf.mxu0 }
 0x147   : > { %7726 = vmatmul.msk.bf16.vlgmr.msrb.gmra.mxu0 %vm1630_vm1, %v9314_v40  ;;  %v1974_v40 = vsel %vm1971_vm2, %v9397_v52, %v9408_v58  ;;  %v1685_v58 = vpop.f32.mrf.mxu1 }
 0x148   : > { %1877 = vmatpush.bf16.msra.mxu0 %v1814_v32  ;;  %v1990_v49 = vsel %vm1591_vm0, %v1974_v40, 0 }
 0x14b   : > { %2331 = vrot.lane.b32.xlu0 %v9285_v8, %s8166_s12 }
 0x14c   : > { %1929 = vmatpush.bf16.msrb.mxu0 %v1826_v35 }
 0x14d   : > { %2520 = vrot.lane.b32.xlu2 %v9343_v9, %s8166_s12  ;;  %2518 = vrot.lane.b32.xlu1 %v9341_v4, %s8166_s12 }
 0x14f   : > { %v2148_v48 = vpop.permute.xlu0 %2147 }
 0x151   : > { %7736 = vmatmul.msk.bf16.vlgmr.msrb.gmra.mxu2 %vm1630_vm1, %v9387_v42  ;;  %7737 = vmatmul.msk.bf16.vlgmr.msrb.gmra.mxu3 %vm1630_vm1, %v9387_v42 }
 0x152   : > { %2204 = vmatpush.bf16.msrb.mxu3 %v2171_v44  ;;  %2121 = vmatpush.bf16.msrb.mxu2 %v2008_v41 }
 0x153   : > { %2323 = vrot.lane.b32.xlu0 %v9108_v45, %s8167_s13  ;;  %7743 = vmatmul.msk.bf16.vlgmr.msrb.gmra.mxu1 %vm1630_vm1, %v9387_v42 }
 0x155   : > { %2524 = vrot.lane.b32.xlu2 %v9363_v29, %s8166_s12  ;;  %2696 = vrot.lane.b32.xlu1 %v9272_v5, %s8168_s14 }
 0x157   : > { %7730 = vmatmul.msk.bf16.vlgmr.msra.gmra.mxu0 %vm1630_vm1, %v9085_v33  ;;  %v2146_v50 = vpop.permute.xlu0 %2145 }
 0x158   : > { %2043 = vmatpush.bf16.msra.mxu0 %v1990_v49  ;;  %v2161_v51 = vsel %vm1971_vm2, %v2146_v50, %v2148_v48  ;;  %v2160_v0 = vsel %vm1971_vm2, %v2144_v36, %v2146_v50 }
 0x159   : > { %v2177_v52 = vsel %vm1591_vm0, %v2161_v51, 0  ;;  %v2174_v7 = vsel %vm1591_vm0, %v2160_v0, 0 }
 0x15a   : > { %2230 = vmatpush.bf16.msra.mxu1 %v2177_v52 }
 0x15b   : > { %2339 = vrot.lane.b32.xlu0 %v9295_v2, %s8166_s12 }
 0x15d   : > { %2698 = vrot.lane.b32.xlu1 %v9172_v10, %s8168_s14  ;;  %2526 = vrot.lane.b32.xlu2 %v9437_v28, %s8166_s12 }
 0x161   : > { %7740 = vmatmul.msk.bf16.vlgmr.msra.gmra.mxu2 %vm1630_vm1, %v9387_v42  ;;  %7741 = vmatmul.msk.bf16.vlgmr.msra.gmra.mxu3 %vm1630_vm1, %v9387_v42 }
 0x163   : > { %2512 = vrot.lane.b32.xlu0 %v9301_v25, %s8166_s12  ;;  %7747 = vmatmul.msk.bf16.vlgmr.msra.gmra.mxu1 %vm1630_vm1, %v9501_v55 }
 0x164   : > { %v9535_v1 = vpop.f32.mrf.mxu2  ;;  %v9537_v3 = vpop.f32.mrf.mxu3 }
 0x165   : > { %2700 = vrot.lane.b32.xlu1 %v9285_v8, %s8168_s14  ;;  %2702 = vrot.lane.b32.xlu2 %v9268_v61, %s8168_s14 }
 0x167   : > { %7734 = vmatmul.msk.bf16.vlgmr.msrb.gmra.mxu0 %vm1630_vm1, %v9085_v33 }
 0x168   : > { %2095 = vmatpush.bf16.msrb.mxu0 %v2002_v57 }
 0x16b   : > { %2510 = vrot.lane.b32.xlu0 %v9299_v24, %s8166_s12 }
 0x16c   : > { %v1698_v62 = vpop.f32.mrf.mxu2  ;;  %v1711_v15 = vpop.f32.mrf.mxu3 }
 0x16d   : > { %2708 = vrot.lane.b32.xlu1 %v9295_v2, %s8168_s14  ;;  %2706 = vrot.lane.b32.xlu2 %v9229_v39, %s8168_s14 }
 0x16f   : > { %v2150_v59 = vpop.permute.xlu1 %2149 }
 0x170   : > { %v2162_v33 = vsel %vm1971_vm2, %v2148_v48, %v2150_v59 }
 0x171   : > { %7744 = vmatmul.msk.bf16.vlgmr.msrb.gmra.mxu2 %vm1630_vm1, %v9387_v42  ;;  %7745 = vmatmul.msk.bf16.vlgmr.msrb.gmra.mxu3 %vm1630_vm1, %v9501_v55  ;;  %v2180_v63 = vsel %vm1591_vm0, %v2162_v33, 0 }
 0x172   : > { %2243 = vmatpush.bf16.msra.mxu2 %v2180_v63 }
 0x173   : > { %2522 = vrot.lane.b32.xlu0 %v9365_v30, %s8166_s12 }
 0x175   : > { %2885 = vrot.lane.b32.xlu1 %v9320_v43, %s8168_s14  ;;  %2879 = vrot.lane.b32.xlu2 %v9299_v24, %s8168_s14 }
 0x177   : > { %7738 = vmatmul.msk.bf16.vlgmr.msra.gmra.mxu0 %vm1630_vm1, %v9387_v42  ;;  %v2152_v11 = vpop.permute.xlu1 %2151  ;;  %v9556_v16 = vpop.permute.xlu2 %2155 }
 0x178   : > { %2217 = vmatpush.bf16.msra.mxu0 %v2174_v7  ;;  %v2163_v12 = vsel %vm1971_vm2, %v2150_v59, %v2152_v11 }
 0x179   : > { %v2183_v13 = vsel %vm1591_vm0, %v2163_v12, 0 }
 0x17a   : > { %2256 = vmatpush.bf16.msra.mxu3 %v2183_v13 }
 0x17b   : > { %2694 = vrot.lane.b32.xlu0 %v9240_v46, %s8168_s14 }
 0x17d   : > { %2883 = vrot.lane.b32.xlu1 %v9322_v47, %s8168_s14  ;;  %2887 = vrot.lane.b32.xlu2 %v9341_v4, %s8168_s14 }
 0x17e   : > { %v9550_v60 = vpop.f32.mrf.mxu1  ;;  %v1722_v32 = vpop.f32.mrf.mxu0 }
 0x17f   : > { %v9568_v20 = vpop.permute.xlu2 %2329 }
 0x181   : > { %7748 = vmatmul.msk.bf16.vlgmr.msra.gmra.mxu2 %vm1630_vm1, %v9501_v55  ;;  %7749 = vmatmul.msk.bf16.vlgmr.msra.gmra.mxu3 %vm1630_vm1, %v9501_v55 }
 0x183   : > { %2692 = vrot.lane.b32.xlu0 %v9108_v45, %s8169_s15 }
 0x185   : > { %2895 = vrot.lane.b32.xlu1 %v9437_v28, %s8168_s14  ;;  %2889 = vrot.lane.b32.xlu2 %v9343_v9, %s8168_s14 }
 0x186   : > { %v1737_v18 = vpop.f32.mrf.mxu1  ;;  %v1724_v44 = vpop.f32.mrf.mxu0 }
 0x187   : > { %7742 = vmatmul.msk.bf16.vlgmr.msrb.gmra.mxu0 %vm1630_vm1, %v9387_v42  ;;  %v2328_v34 = vpop.permute.xlu2 %2327 }
 0x188   : > { %v2345_v41 = vsel %vm2343_vm5, %v2328_v34, %v9568_v20 }
 0x189   : > { %v2359_v40 = vsel %vm1591_vm0, %v2345_v41, 0 }
 0x18b   : > { %2704 = vrot.lane.b32.xlu0 %v9274_v6, %s8168_s14 }
 0x18d   : > { %3069 = vrot.lane.b32.xlu1 %v9285_v8, %s8170_s16  ;;  %2891 = vrot.lane.b32.xlu2 %v9365_v30, %s8168_s14 }
 0x18e   : > { %v1840_v23 = vpop.f32.mrf.mxu1 }
 0x18f   : > { %v2154_v21 = vpop.permute.xlu1 %2153  ;;  %v9579_v31 = vadd.f32 %v1840_v23, %v1670_v17  ;;  %v9618_v59 = vpop.permute.xlu2 %2337 }
 0x190   : > { %v2164_v22 = vsel %vm1971_vm2, %v2152_v11, %v2154_v21  ;;  %v2165_v42 = vsel %vm1971_vm2, %v2154_v21, %v9556_v16 }
 0x191   : > { %v2189_v26 = vsel %vm1591_vm0, %v2165_v42, 0  ;;  %v2186_v27 = vsel %vm1591_vm0, %v2164_v22, 0 }
 0x192   : > { %2282 = vmatpush.bf16.msrb.mxu1 %v2189_v26  ;;  %2269 = vmatpush.bf16.msrb.mxu0 %v2186_v27 }
 0x193   : > { %2710 = vrot.lane.b32.xlu0 %v9290_v14, %s8168_s14 }
 0x195   : > { %7751 = vmatmul.msk.bf16.vlgmr.msrb.gmra.mxu1 %vm1630_vm1, %v9501_v55  ;;  %3061 = vrot.lane.b32.xlu1 %v9108_v45, %s8171_s17 }
 0x196   : > { %3063 = vrot.lane.b32.xlu2 %v9240_v46, %s8170_s16  ;;  %v1842_v37 = vpop.f32.mrf.mxu1  ;;  %2402 = vmatpush.bf16.msra.mxu1 %v2359_v40 }
 0x197   : > { %7746 = vmatmul.msk.bf16.vlgmr.msra.gmra.mxu0 %vm1630_vm1, %v9501_v55  ;;  %v2326_v35 = vpop.permute.xlu1 %2325  ;;  %v2342_v21 = vpop.permute.xlu2 %2341 }
 0x198   : > { %v2344_v36 = vsel %vm2343_vm5, %v2326_v35, %v2328_v34  ;;  %v2380_v41 = vsel %vm1591_vm0, %v2342_v21, 0 }
 0x199   : > { %v2356_v38 = vsel %vm1591_vm0, %v2344_v36, 0 }
 0x19a   : > { %2389 = vmatpush.bf16.msra.mxu0 %v2356_v38 }
 0x19b   : > { %2881 = vrot.lane.b32.xlu0 %v9301_v25, %s8168_s14 }
 0x19d   : > { %3077 = vrot.lane.b32.xlu1 %v9295_v2, %s8170_s16 }
 0x19e   : > { %3071 = vrot.lane.b32.xlu2 %v9268_v61, %s8170_s16 }
 0x19f   : > { %v2334_v50 = vpop.permute.xlu1 %2333  ;;  %v9661_v36 = vpop.permute.xlu2 %2508 }
 0x1a0   : > { %v1892_v48 = vpop.f32.mrf.mxu1 }
 0x1a1   : > { %v9602_v49 = vadd.f32 %v1892_v48, %v1722_v32 }
 0x1a3   : > { %2877 = vrot.lane.b32.xlu0 %v9337_v54, %s8169_s15 }
 0x1a4   : > { %v9606_v51 = vpop.f32.mrf.mxu2  ;;  %v9608_v52 = vpop.f32.mrf.mxu3 }
 0x1a5   : > { %3250 = vrot.lane.b32.xlu1 %v9301_v25, %s8170_s16 }
 0x1a6   : > { %3073 = vrot.lane.b32.xlu2 %v9274_v6, %s8170_s16 }
 0x1a7   : > { %7750 = vmatmul.msk.bf16.vlgmr.msrb.gmra.mxu0 %vm1630_vm1, %v9501_v55  ;;  %v2336_v33 = vpop.permute.xlu1 %2335 }
 0x1a8   : > { %v1894_v53 = vpop.f32.mrf.mxu1  ;;  %v2348_v63 = vsel %vm2343_vm5, %v2334_v50, %v2336_v33  ;;  %v2349_v0 = vsel %vm2343_vm5, %v2336_v33, %v9618_v59 }
 0x1a9   : > { %v2368_v11 = vsel %vm1591_vm0, %v2348_v63, 0  ;;  %v2371_v12 = vsel %vm1591_vm0, %v2349_v0, 0 }
 0x1aa   : > { %2441 = vmatpush.bf16.msrb.mxu0 %v2368_v11  ;;  %2454 = vmatpush.bf16.msrb.mxu1 %v2371_v12 }
 0x1ab   : > { %2893 = vrot.lane.b32.xlu0 %v9363_v29, %s8168_s14 }
 0x1ac   : > { %v1750_v57 = vpop.f32.mrf.mxu2  ;;  %v1763_v58 = vpop.f32.mrf.mxu3 }
 0x1ad   : > { %3248 = vrot.lane.b32.xlu1 %v9299_v24, %s8170_s16  ;;  %v9686_v57 = vpop.permute.xlu2 %2520 }
 0x1ae   : > { %3252 = vrot.lane.b32.xlu2 %v9322_v47, %s8170_s16 }
 0x1af   : > { %v9644_v23 = vpop.permute.xlu1 %2514 }
 0x1b0   : > { %v1944_v7 = vpop.f32.mrf.mxu1 }
 0x1b3   : > { %3067 = vrot.lane.b32.xlu0 %v9172_v10, %s8170_s16 }
 0x1b4   : > { %v9631_v13 = vpop.f32.mrf.mxu2  ;;  %v1866_v62 = vpop.f32.mrf.mxu3 }
 0x1b5   : > { %v2158_v15 = vpop.permute.xlu0 %2157  ;;  %v9634_v17 = vadd.f32 %v1866_v62, %v9535_v1  ;;  %3260 = vrot.lane.b32.xlu1 %v9365_v30, %s8170_s16 }
 0x1b6   : > { %v2166_v18 = vsel %vm1971_vm2, %v9556_v16, %v2158_v15  ;;  %v2195_v19 = vsel %vm1591_vm0, %v2158_v15, 0  ;;  %3254 = vrot.lane.b32.xlu2 %v9320_v43, %s8170_s16 }
 0x1b7   : > { %2308 = vmatpush.bf16.msrb.mxu3 %v2195_v19  ;;  %v2192_v22 = vsel %vm1591_vm0, %v2166_v18, 0  ;;  %v2517_v37 = vpop.permute.xlu1 %2516 }
 0x1b8   : > { %2295 = vmatpush.bf16.msrb.mxu2 %v2192_v22  ;;  %v1946_v42 = vpop.f32.mrf.mxu1 }
 0x1ba   : > { %7753 = vmatmul.msk.bf16.vlgmr.msrb.gmra.mxu3 %vm1630_vm1, %v9501_v55 }
 0x1bb   : > { %3065 = vrot.lane.b32.xlu0 %v9272_v5, %s8170_s16  ;;  %7752 = vmatmul.msk.bf16.vlgmr.msrb.gmra.mxu2 %vm1630_vm1, %v9501_v55 }
 0x1bc   : > { %v1855_v1 = vpop.f32.mrf.mxu2  ;;  %v1868_v16 = vpop.f32.mrf.mxu3 }
 0x1bd   : > { %v2332_v26 = vpop.permute.xlu0 %2331  ;;  %3432 = vrot.lane.b32.xlu1 %v9240_v46, %s8172_s29 }
 0x1be   : > { %v2346_v27 = vsel %vm2343_vm5, %v9568_v20, %v2332_v26  ;;  %v2347_v32 = vsel %vm2343_vm5, %v2332_v26, %v2334_v50  ;;  %3256 = vrot.lane.b32.xlu2 %v9341_v4, %s8170_s16 }
 0x1bf   : > { %v2362_v34 = vsel %vm1591_vm0, %v2346_v27, 0  ;;  %v2365_v35 = vsel %vm1591_vm0, %v2347_v32, 0  ;;  %v2519_v12 = vpop.permute.xlu1 %2518  ;;  %v2525_v32 = vpop.permute.xlu2 %2524 }
 0x1c0   : > { %2415 = vmatpush.bf16.msra.mxu2 %v2362_v34  ;;  %2428 = vmatpush.bf16.msra.mxu3 %v2365_v35  ;;  %v2058_v55 = vpop.f32.mrf.mxu1  ;;  %v2531_v22 = vsel %vm2343_vm5, %v2517_v37, %v2519_v12 }
 0x1c3   : > { %3075 = vrot.lane.b32.xlu0 %v9229_v39, %s8170_s16 }
 0x1c4   : > { %v1774_v38 = vpop.f32.mrf.mxu0  ;;  %v1905_v20 = vpop.f32.mrf.mxu2 }
 0x1c5   : > { %v9666_v44 = vpop.permute.xlu0 %2323  ;;  %v9668_v40 = vadd.f32 %v1944_v7, %v1774_v38  ;;  %v9671_v48 = vadd.f32 %v1905_v20, %v9550_v60  ;;  %v1918_v50 = vpop.f32.mrf.mxu3  ;;  %3430 = vrot.lane.b32.xlu1 %v9108_v45, %s8173_s18  ;;  %v2532_v38 = vsel %vm2343_vm5, %v2519_v12, %v9686_v57 }
 0x1c6   : > { %7754 = vmatmul.msk.bf16.vlgmr.msra.gmra.mxu0 %vm1630_vm1, %v9666_v44  ;;  %7755 = vmatmul.msk.bf16.vlgmr.msra.gmra.mxu1 %vm1630_vm1, %v9666_v44  ;;  %v9680_v53 = vadd.f32 %v1918_v50, %v9606_v51  ;;  %v2530_v51 = vsel %vm2343_vm5, %v9644_v23, %v2517_v37 }
 0x1c7   : > { %3434 = vrot.lane.b32.xlu2 %v9272_v5, %s8172_s29  ;;  %2493 = vmatpush.bf16.msra.mxu0 %v2380_v41  ;;  %v2546_v18 = vsel %vm1591_vm0, %v2530_v51, 0  ;;  %v2697_v35 = vpop.permute.xlu1 %2696 }
 0x1c8   : > { %v2060_v60 = vpop.f32.mrf.mxu1 }
 0x1ca   : > { %7757 = vmatmul.msk.bf16.vlgmr.msra.gmra.mxu3 %vm1630_vm1, %v9666_v44 }
 0x1cb   : > { %3079 = vrot.lane.b32.xlu0 %v9290_v14, %s8170_s16  ;;  %7756 = vmatmul.msk.bf16.vlgmr.msra.gmra.mxu2 %vm1630_vm1, %v9666_v44 }
 0x1cc   : > { %v1776_v58 = vpop.f32.mrf.mxu0  ;;  %v1907_v33 = vpop.f32.mrf.mxu2 }
 0x1cd   : > { %v2340_v63 = vpop.permute.xlu0 %2339  ;;  %v1920_v0 = vpop.f32.mrf.mxu3  ;;  %3442 = vrot.lane.b32.xlu1 %v9274_v6, %s8172_s29  ;;  %v2552_v33 = vsel %vm1591_vm0, %v2532_v38, 0 }
 0x1ce   : > { %v2350_v7 = vsel %vm2343_vm5, %v9618_v59, %v2340_v63  ;;  %v2351_v11 = vsel %vm2343_vm5, %v2340_v63, %v2342_v21  ;;  %v1854_v59 = vadd.f32 %v9631_v13, %v9507_v56  ;;  %v2549_v56 = vsel %vm1591_vm0, %v2531_v22, 0  ;;  %v2527_v58 = vpop.permute.xlu2 %2526 }
 0x1cf   : > { %v2377_v62 = vsel %vm1591_vm0, %v2351_v11, 0  ;;  %3436 = vrot.lane.b32.xlu2 %v9172_v10, %s8172_s29  ;;  %v2374_v15 = vsel %vm1591_vm0, %v2350_v7, 0  ;;  %v2535_v63 = vsel %vm2343_vm5, %v2525_v32, %v2527_v58  ;;  %v2699_v0 = vpop.permute.xlu1 %2698 }
 0x1d0   : > { %2480 = vmatpush.bf16.msrb.mxu3 %v2377_v62  ;;  %2467 = vmatpush.bf16.msrb.mxu2 %v2374_v15  ;;  %v2110_v19 = vpop.f32.mrf.mxu1  ;;  %v2714_v11 = vsel %vm2712_vm6, %v2697_v35, %v2699_v0  ;;  %v2564_v15 = vsel %vm1591_vm0, %v2527_v58, 0 }
 0x1d3   : > { %3246 = vrot.lane.b32.xlu0 %v9337_v54, %s8171_s17 }
 0x1d4   : > { %2599 = vmatpush.bf16.msra.mxu3 %v2546_v18  ;;  %v1879_v21 = vpop.f32.mrf.mxu0  ;;  %v2019_v42 = vpop.f32.mrf.mxu2 }
 0x1d5   : > { %v1880_v1 = vadd.f32 %v1879_v21, %v9537_v3  ;;  %v2513_v16 = vpop.permute.xlu0 %2512  ;;  %v9711_v26 = vadd.f32 %v2019_v42, %v9579_v31  ;;  %v2032_v27 = vpop.f32.mrf.mxu3  ;;  %3448 = vrot.lane.b32.xlu1 %v9290_v14, %s8172_s29 }
 0x1d6   : > { %v2529_v34 = vsel %vm2343_vm5, %v2513_v16, %v9644_v23  ;;  %7758 = vmatmul.msk.bf16.vlgmr.msrb.gmra.mxu0 %vm1630_vm1, %v9666_v44  ;;  %7759 = vmatmul.msk.bf16.vlgmr.msrb.gmra.mxu1 %vm1630_vm1, %v9666_v44  ;;  %v9722_v3 = vadd.f32 %v2032_v27, %v1854_v59 }
 0x1d7   : > { %v9724_v31 = vadd.f32 %v2058_v55, %v1880_v1  ;;  %2612 = vmatpush.bf16.msrb.mxu0 %v2549_v56  ;;  %v2543_v13 = vsel %vm1591_vm0, %v2529_v34, 0  ;;  %3438 = vrot.lane.b32.xlu2 %v9285_v8, %s8172_s29 }
 0x1d8   : > { %2586 = vmatpush.bf16.msra.mxu2 %v2543_v13  ;;  %v2112_v23 = vpop.f32.mrf.mxu1  ;;  %v2701_v13 = vpop.permute.xlu1 %2700 }
 0x1d9   : > { %v2715_v23 = vsel %vm2712_vm6, %v2699_v0, %v2701_v13 }
 0x1da   : > { %7761 = vmatmul.msk.bf16.vlgmr.msrb.gmra.mxu3 %vm1630_vm1, %v9666_v44 }
 0x1db   : > { %3258 = vrot.lane.b32.xlu0 %v9343_v9, %s8170_s16  ;;  %7760 = vmatmul.msk.bf16.vlgmr.msrb.gmra.mxu2 %vm1630_vm1, %v9666_v44 }
 0x1dc   : > { %v1881_v55 = vpop.f32.mrf.mxu0  ;;  %v2021_v37 = vpop.f32.mrf.mxu2 }
 0x1dd   : > { %v2511_v20 = vpop.permute.xlu0 %2510  ;;  %v2034_v41 = vpop.f32.mrf.mxu3  ;;  %3619 = vrot.lane.b32.xlu1 %v9301_v25, %s8172_s29 }
 0x1de   : > { %v2528_v50 = vsel %vm2343_vm5, %v2511_v20, %v2513_v16 }
 0x1df   : > { %v2540_v60 = vsel %vm1591_vm0, %v2528_v50, 0  ;;  %3446 = vrot.lane.b32.xlu2 %v9295_v2, %s8172_s29 }
 0x1e0   : > { %2573 = vmatpush.bf16.msra.mxu1 %v2540_v60  ;;  %v9744_v51 = vpop.f32.mrf.mxu1 }
 0x1e3   : > { %3262 = vrot.lane.b32.xlu0 %v9363_v29, %s8170_s16 }
 0x1e4   : > { %2625 = vmatpush.bf16.msrb.mxu1 %v2552_v33  ;;  %v1931_v25 = vpop.f32.mrf.mxu0  ;;  %v2071_v7 = vpop.f32.mrf.mxu2 }
 0x1e5   : > { %v1932_v12 = vadd.f32 %v1931_v25, %v9608_v52  ;;  %v2523_v62 = vpop.permute.xlu0 %2522  ;;  %v9753_v18 = vadd.f32 %v2071_v7, %v9602_v49  ;;  %v2084_v22 = vpop.f32.mrf.mxu3  ;;  %3615 = vrot.lane.b32.xlu1 %v9337_v54, %s8173_s18  ;;  %v2561_v52 = vsel %vm1591_vm0, %v2535_v63, 0 }
 0x1e6   : > { %v2533_v59 = vsel %vm2343_vm5, %v9686_v57, %v2523_v62  ;;  %v2534_v21 = vsel %vm2343_vm5, %v2523_v62, %v2525_v32  ;;  %7762 = vmatmul.msk.bf16.vlgmr.msra.gmra.mxu0 %vm1630_vm1, %v9666_v44  ;;  %7763 = vmatmul.msk.bf16.vlgmr.msra.gmra.mxu1 %vm1630_vm1, %v9661_v36  ;;  %v9766_v49 = vadd.f32 %v2084_v22, %v9671_v48  ;;  %v2728_v44 = vsel %vm1591_vm0, %v2714_v11, 0  ;;  %v2703_v48 = vpop.permute.xlu2 %2702 }
 0x1e7   : > { %v9768_v42 = vadd.f32 %v2110_v19, %v1932_v12  ;;  %2664 = vmatpush.bf16.msra.mxu0 %v2561_v52  ;;  %v2555_v1 = vsel %vm1591_vm0, %v2533_v59, 0  ;;  %v2558_v57 = vsel %vm1591_vm0, %v2534_v21, 0  ;;  %3623 = vrot.lane.b32.xlu2 %v9320_v43, %s8172_s29  ;;  %v2716_v55 = vsel %vm2712_vm6, %v2701_v13, %v2703_v48 }
 0x1e8   : > { %2677 = vmatpush.bf16.msra.mxu1 %v2564_v15  ;;  %2638 = vmatpush.bf16.msrb.mxu2 %v2555_v1  ;;  %v2234_v16 = vpop.f32.mrf.mxu1 }
 0x1e9   : > { %2651 = vmatpush.bf16.msrb.mxu3 %v2558_v57 }
 0x1ea   : > { %7765 = vmatmul.msk.bf16.vlgmr.msra.gmra.mxu3 %vm1630_vm1, %v9661_v36 }
 0x1eb   : > { %3264 = vrot.lane.b32.xlu0 %v9437_v28, %s8170_s16  ;;  %7764 = vmatmul.msk.bf16.vlgmr.msra.gmra.mxu2 %vm1630_vm1, %v9661_v36 }
 0x1ec   : > { %v1933_v19 = vpop.f32.mrf.mxu0  ;;  %v2073_v27 = vpop.f32.mrf.mxu2 }
 0x1ed   : > { %2771 = vmatpush.bf16.msra.mxu3 %v2728_v44  ;;  %v2695_v32 = vpop.permute.xlu0 %2694  ;;  %v2086_v34 = vpop.f32.mrf.mxu3  ;;  %3631 = vrot.lane.b32.xlu1 %v9363_v29, %s8172_s29  ;;  %v2731_v29 = vsel %vm1591_vm0, %v2715_v23, 0  ;;  %v8155_v19 = vld [vmem:[%s9122_s11 + $0x20] sm:$0xff]  ;;  %s8176_s11 = smov 59  }
 0x1ee   : > { %v2713_v43 = vsel %vm2712_vm6, %v2695_v32, %v2697_v35  ;;  %v2734_v35 = vsel %vm1591_vm0, %v2716_v55, 0  ;;  %v3801_v27 = vunpack.c.h.b16 %v8155_v19 }
 0x1ef   : > { %v2725_v56 = vsel %vm1591_vm0, %v2713_v43, 0  ;;  %3621 = vrot.lane.b32.xlu2 %v9322_v47, %s8172_s29  ;;  %v2707_v47 = vpop.permute.xlu2 %2706 }
 0x1f0   : > { %2758 = vmatpush.bf16.msra.mxu2 %v2725_v56  ;;  %v9864_v13 = vpack.c.b16 %v3801_v27, %v3801_v27 }
 0x1f3   : > { %3440 = vrot.lane.b32.xlu0 %v9268_v61, %s8172_s29 }
 0x1f4   : > { %v2045_v37 = vpop.f32.mrf.mxu0  ;;  %v2123_v38 = vpop.f32.mrf.mxu2 }
 0x1f5   : > { %v2129_v20 = vadd.f32 %v2045_v37, %v9634_v17  ;;  %v9794_v41 = vpop.permute.xlu0 %2692  ;;  %v9797_v50 = vadd.f32 %v2123_v38, %v9668_v40  ;;  %v2206_v60 = vpop.f32.mrf.mxu3  ;;  %3807 = vrot.lane.b32.xlu1 %v9172_v10, %s8174_s19 }
 0x1f6   : > { %7766 = vmatmul.msk.bf16.vlgmr.msrb.gmra.mxu0 %vm1630_vm1, %v9661_v36  ;;  %7767 = vmatmul.msk.bf16.vlgmr.msrb.gmra.mxu1 %vm1630_vm1, %v9661_v36  ;;  %v9806_v58 = vadd.f32 %v2206_v60, %v9711_v26  ;;  %v2709_v40 = vpop.permute.xlu1 %2708  ;;  %v9873_v60 = vld [vmem:[#allocation2 + $0x8] sm:$0xff] }
 0x1f7   : > { %v9809_v17 = vadd.f32 %v9744_v51, %v2129_v20  ;;  %2784 = vmatpush.bf16.msrb.mxu0 %v2731_v29  ;;  %2797 = vmatpush.bf16.msrb.mxu1 %v2734_v35  ;;  %v2880_v11 = vpop.permute.xlu2 %2879  ;;  %v2719_v12 = vsel %vm2712_vm6, %v2707_v47, %v2709_v40 }
 0x1f8   : > { %3633 = vrot.lane.b32.xlu2 %v9437_v28, %s8172_s29  ;;  %v2743_v22 = vsel %vm1591_vm0, %v2719_v12, 0  ;;  %v3991_v12 = vld [vmem:[#allocation2 + $0x10] sm:$0xff] }
 0x1fa   : > { %7769 = vmatmul.msk.bf16.vlgmr.msrb.gmra.mxu3 %vm1630_vm1, %v9661_v36 }
 0x1fb   : > { %3444 = vrot.lane.b32.xlu0 %v9229_v39, %s8172_s29  ;;  %7768 = vmatmul.msk.bf16.vlgmr.msrb.gmra.mxu2 %vm1630_vm1, %v9661_v36 }
 0x1fc   : > { %v2047_v26 = vpop.f32.mrf.mxu0  ;;  %v2125_v33 = vpop.f32.mrf.mxu2 }
 0x1fd   : > { %v2705_v63 = vpop.permute.xlu0 %2704  ;;  %v2208_v51 = vpop.f32.mrf.mxu3  ;;  %3805 = vrot.lane.b32.xlu1 %v9272_v5, %s8174_s19 }
 0x1fe   : > { %v2717_v0 = vsel %vm2712_vm6, %v2703_v48, %v2705_v63  ;;  %v2718_v28 = vsel %vm2712_vm6, %v2705_v63, %v2707_v47  ;;  %v2886_v57 = vpop.permute.xlu1 %2885  ;;  %v4004_v63 = vunpack.c.h.b16 %v9873_v60 }
 0x1ff   : > { %v2740_v25 = vsel %vm1591_vm0, %v2718_v28, 0  ;;  %v2737_v7 = vsel %vm1591_vm0, %v2717_v0, 0  ;;  %v2888_v44 = vpop.permute.xlu2 %2887 }
 0x200   : > { %2823 = vmatpush.bf16.msrb.mxu3 %v2740_v25  ;;  %2810 = vmatpush.bf16.msrb.mxu2 %v2737_v7  ;;  %v2900_v51 = vsel %vm2712_vm6, %v2886_v57, %v2888_v44  ;;  %v9900_v25 = vpack.c.b16 %v4004_v63, %v4004_v63 }
 0x201   : > { %3809 = vrot.lane.b32.xlu2 %v9285_v8, %s8174_s19  ;;  %v2918_v7 = vsel %vm1591_vm0, %v2900_v51, 0 }
 0x203   : > { %3617 = vrot.lane.b32.xlu0 %v9299_v24, %s8172_s29 }
 0x204   : > { %v2097_v62 = vpop.f32.mrf.mxu0  ;;  %v2245_v15 = vpop.f32.mrf.mxu2 }
 0x205   : > { %v2133_v59 = vadd.f32 %v2097_v62, %v9680_v53  ;;  %v2711_v21 = vpop.permute.xlu0 %2710  ;;  %v9833_v52 = vadd.f32 %v2245_v15, %v9724_v31  ;;  %v2258_v1 = vpop.f32.mrf.mxu3  ;;  %3815 = vrot.lane.b32.xlu1 %v9229_v39, %s8174_s19 }
 0x206   : > { %v2720_v16 = vsel %vm2712_vm6, %v2709_v40, %v2711_v21  ;;  %7770 = vmatmul.msk.bf16.vlgmr.msra.gmra.mxu0 %vm1630_vm1, %v9661_v36  ;;  %7771 = vmatmul.msk.bf16.vlgmr.msra.gmra.mxu1 %vm1630_vm1, %v9661_v36  ;;  %v9843_v24 = vadd.f32 %v2258_v1, %v9753_v18  ;;  %v2749_v31 = vsel %vm1591_vm0, %v2711_v21, 0  ;;  %v2884_v56 = vpop.permute.xlu1 %2883 }
 0x207   : > { %v2746_v53 = vsel %vm1591_vm0, %v2720_v16, 0  ;;  %2836 = vmatpush.bf16.msra.mxu0 %v2743_v22  ;;  %v2899_v55 = vsel %vm2712_vm6, %v2884_v56, %v2886_v57  ;;  %v2890_v35 = vpop.permute.xlu2 %2889  ;;  %v4005_v22 = vunpack.c.l.b16 %v3991_v12  ;;  %v4006_v57 = vunpack.c.h.b16 %v3991_v12 }
 0x208   : > { %2849 = vmatpush.bf16.msra.mxu1 %v2746_v53  ;;  %v2915_v26 = vsel %vm1591_vm0, %v2899_v55, 0  ;;  %v2901_v33 = vsel %vm2712_vm6, %v2888_v44, %v2890_v35 }
 0x209   : > { %3799 = vrot.lane.b32.xlu2 %v9108_v45, %s8175_s20  ;;  %v2921_v0 = vsel %vm1591_vm0, %v2901_v33, 0  ;;  %v9913_v1 = vpack.c.b16 %v4005_v22, %v4005_v22 }
 0x20a   : > { %7773 = vmatmul.msk.bf16.vlgmr.msra.gmra.mxu3 %vm1630_vm1, %v9794_v41 }
 0x20b   : > { %3625 = vrot.lane.b32.xlu0 %v9341_v4, %s8172_s29  ;;  %7772 = vmatmul.msk.bf16.vlgmr.msra.gmra.mxu2 %vm1630_vm1, %v9794_v41  ;;  %v9860_v4 = vld [vmem:[#allocation2] sm:$0xff] }
 0x20c   : > { %v2099_v36 = vpop.f32.mrf.mxu0  ;;  %2862 = vmatpush.bf16.msra.mxu2 %v2749_v31  ;;  %v2247_v18 = vpop.f32.mrf.mxu2  ;;  %v4002_v29 = vunpack.c.h.b16 %v9860_v4 }
 0x20d   : > { %v2882_v48 = vpop.permute.xlu0 %2881  ;;  %3819 = vrot.lane.b32.xlu1 %v9290_v14, %s8174_s19  ;;  %v2260_v32 = vpop.f32.mrf.mxu3  ;;  %v9926_v18 = vpack.c.b16 %v4006_v57, %v4006_v57 }
 0x20e   : > { %v2897_v34 = vsel %vm2712_vm6, %v2880_v11, %v2882_v48  ;;  %v2898_v37 = vsel %vm2712_vm6, %v2882_v48, %v2884_v56  ;;  %v2896_v15 = vpop.permute.xlu1 %2895  ;;  %v9928_v48 = vld [vmem:[#allocation2 + $0x18] sm:$0xff] }
 0x20f   : > { %v2909_v43 = vsel %vm1591_vm0, %v2897_v34, 0  ;;  %v2933_v32 = vsel %vm1591_vm0, %v2896_v15, 0  ;;  %v4008_v34 = vunpack.c.h.b16 %v9928_v48 }
 0x210   : > { %2942 = vmatpush.bf16.msra.mxu3 %v2909_v43 }
 0x211   : > { %3817 = vrot.lane.b32.xlu2 %v9295_v2, %s8174_s19  ;;  %v9944_v55 = vpack.c.b16 %v4008_v34, %v4008_v34 }
 0x212   : > { %v2284_v23 = vpop.f32.mrf.mxu1 }
 0x213   : > { %3627 = vrot.lane.b32.xlu0 %v9343_v9, %s8172_s29  ;;  %v9870_v38 = vadd.f32 %v2284_v23, %v2133_v59  ;;  %v2912_v9 = vsel %vm1591_vm0, %v2898_v37, 0  ;;  %v2892_v59 = vpop.permute.xlu2 %2891  ;;  %v3993_v23 = vld [vmem:[#allocation2 + $0x20] sm:$0xff] }
 0x214   : > { %v2219_v20 = vpop.f32.mrf.mxu0  ;;  %v4010_v37 = vunpack.c.h.b16 %v3993_v23 }
 0x215   : > { %v9876_v47 = vadd.f32 %v2219_v20, %v9722_v3  ;;  %v9878_v40 = vpop.permute.xlu0 %2877  ;;  %3821 = vrot.lane.b32.xlu1 %v9864_v13, %s8174_s19  ;;  %v9889_v3 = vpack.c.b16 %v4002_v29, %v4002_v29 }
 0x216   : > { %7774 = vmatmul.msk.bf16.vlgmr.msrb.gmra.mxu0 %vm1630_vm1, %v9794_v41  ;;  %7775 = vmatmul.msk.bf16.vlgmr.msrb.gmra.mxu1 %vm1630_vm1, %v9794_v41 }
 0x217   : > { %2955 = vmatpush.bf16.msrb.mxu0 %v2912_v9  ;;  %2968 = vmatpush.bf16.msrb.mxu1 %v2915_v26  ;;  %v9954_v9 = vpack.c.b16 %v4010_v37, %v4010_v37  ;;  %v4009_v26 = vunpack.c.l.b16 %v3993_v23  ;;  %v4007_v23 = vunpack.c.l.b16 %v9928_v48 }
 0x219   : > { %4023 = vrot.lane.b32.xlu2 %v9889_v3, %s8174_s19 }
 0x21a   : > { %7777 = vmatmul.msk.bf16.vlgmr.msrb.gmra.mxu3 %vm1630_vm1, %v9794_v41  ;;  %v2286_v28 = vpop.f32.mrf.mxu1 }
 0x21b   : > { %2994 = vmatpush.bf16.msrb.mxu3 %v2921_v0  ;;  %3629 = vrot.lane.b32.xlu0 %v9365_v30, %s8172_s29  ;;  %v2902_v30 = vsel %vm2712_vm6, %v2890_v35, %v2892_v59  ;;  %v3064_v27 = vpop.permute.xlu2 %3063  ;;  %v4003_v28 = vunpack.c.l.b16 %v9873_v60 }
 0x21c   : > { %7776 = vmatmul.msk.bf16.vlgmr.msrb.gmra.mxu2 %vm1630_vm1, %v9794_v41  ;;  %v2221_v11 = vpop.f32.mrf.mxu0  ;;  %v2924_v44 = vsel %vm1591_vm0, %v2902_v30, 0  ;;  %v4001_v30 = vunpack.c.l.b16 %v9860_v4 }
 0x21d   : > { %2981 = vmatpush.bf16.msrb.mxu2 %v2918_v7  ;;  %v2894_v62 = vpop.permute.xlu0 %2893  ;;  %4027 = vrot.lane.b32.xlu1 %v9900_v25, %s8174_s19  ;;  %v9967_v11 = vpack.c.b16 %v4009_v26, %v4009_v26 }
 0x21e   : > { %v2903_v21 = vsel %vm2712_vm6, %v2892_v59, %v2894_v62  ;;  %v2904_v19 = vsel %vm2712_vm6, %v2894_v62, %v2896_v15  ;;  %v9970_v62 = vpack.c.b16 %v4003_v28, %v4003_v28 }
 0x21f   : > { %v2927_v36 = vsel %vm1591_vm0, %v2903_v21, 0  ;;  %v2930_v43 = vsel %vm1591_vm0, %v2904_v19, 0 }
 0x221   : > { %3994 = vrot.lane.b32.xlu2 %v9337_v54, %s8175_s20 }
 0x223   : > { %3803 = vrot.lane.b32.xlu0 %v9240_v46, %s8174_s19  ;;  %v3072_v33 = vpop.permute.xlu2 %3071 }
 0x224   : > { %v2271_v16 = vpop.f32.mrf.mxu0 }
 0x225   : > { %v9916_v53 = vadd.f32 %v2271_v16, %v9766_v49  ;;  %4029 = vrot.lane.b32.xlu1 %v9913_v1, %s8174_s19  ;;  %v3068_v31 = vpop.permute.xlu0 %3067  ;;  %v3070_v49 = vpop.permute.xlu1 %3069 }
 0x226   : > { %7778 = vmatmul.msk.bf16.vlgmr.msra.gmra.mxu0 %vm1630_vm1, %v9794_v41  ;;  %7779 = vmatmul.msk.bf16.vlgmr.msra.gmra.mxu1 %vm1630_vm1, %v9794_v41  ;;  %v3085_v0 = vsel %vm3081_vm7, %v3070_v49, %v3072_v33  ;;  %v3084_v7 = vsel %vm3081_vm7, %v3068_v31, %v3070_v49  ;;  %v9992_v49 = vpack.c.b16 %v4001_v30, %v4001_v30 }
 0x227   : > { %3007 = vmatpush.bf16.msra.mxu0 %v2924_v44  ;;  %3020 = vmatpush.bf16.msra.mxu1 %v2927_v36  ;;  %v3103_v12 = vsel %vm1591_vm0, %v3085_v0, 0  ;;  %v3100_v15 = vsel %vm1591_vm0, %v3084_v7, 0 }
 0x229   : > { %4031 = vrot.lane.b32.xlu2 %v9926_v18, %s8174_s19 }
 0x22a   : > { %7781 = vmatmul.msk.bf16.vlgmr.msra.gmra.mxu3 %vm1630_vm1, %v9878_v40 }
 0x22b   : > { %3046 = vmatpush.bf16.msra.mxu3 %v2933_v32  ;;  %3811 = vrot.lane.b32.xlu0 %v9268_v61, %s8174_s19 }
 0x22c   : > { %7780 = vmatmul.msk.bf16.vlgmr.msra.gmra.mxu2 %vm1630_vm1, %v9794_v41  ;;  %v2273_v56 = vpop.f32.mrf.mxu0 }
 0x22d   : > { %3033 = vmatpush.bf16.msra.mxu2 %v2930_v43  ;;  %4210 = vrot.lane.b32.xlu1 %v9272_v5, %s8176_s11  ;;  %v3066_v29 = vpop.permute.xlu0 %3065  ;;  %v9950_v41 = vpop.permute.xlu1 %3061 }
 0x22e   : > { %v3082_v35 = vsel %vm3081_vm7, %v3064_v27, %v3066_v29  ;;  %v3083_v20 = vsel %vm3081_vm7, %v3066_v29, %v3068_v31  ;;  %v3074_v31 = vpop.permute.xlu2 %3073 }
 0x22f   : > { %v3097_v63 = vsel %vm1591_vm0, %v3083_v20, 0  ;;  %v3094_v51 = vsel %vm1591_vm0, %v3082_v35, 0  ;;  %v3086_v44 = vsel %vm3081_vm7, %v3072_v33, %v3074_v31  ;;  %v10016_v35 = vpack.c.b16 %v4007_v23, %v4007_v23 }
 0x230   : > { %v3106_v34 = vsel %vm1591_vm0, %v3086_v44, 0 }
 0x231   : > { %4035 = vrot.lane.b32.xlu2 %v9944_v55, %s8174_s19 }
 0x233   : > { %3813 = vrot.lane.b32.xlu0 %v9274_v6, %s8174_s19 }
 0x235   : > { %4039 = vrot.lane.b32.xlu1 %v9954_v9, %s8174_s19  ;;  %v3076_v60 = vpop.permute.xlu0 %3075  ;;  %v3078_v22 = vpop.permute.xlu1 %3077 }
 0x236   : > { %7782 = vmatmul.msk.bf16.vlgmr.msrb.gmra.mxu0 %vm1630_vm1, %v9878_v40  ;;  %7783 = vmatmul.msk.bf16.vlgmr.msrb.gmra.mxu1 %vm1630_vm1, %v9878_v40  ;;  %v3087_v36 = vsel %vm3081_vm7, %v3074_v31, %v3076_v60  ;;  %v3253_v48 = vpop.permute.xlu2 %3252 }
 0x237   : > { %3140 = vmatpush.bf16.msrb.mxu1 %v3097_v63  ;;  %3127 = vmatpush.bf16.msrb.mxu0 %v3094_v51  ;;  %v3109_v32 = vsel %vm1591_vm0, %v3087_v36, 0 }
 0x239   : > { %4037 = vrot.lane.b32.xlu2 %v9967_v11, %s8174_s19 }
 0x23a   : > { %7785 = vmatmul.msk.bf16.vlgmr.msrb.gmra.mxu3 %vm1630_vm1, %v9878_v40 }
 0x23b   : > { %4025 = vrot.lane.b32.xlu0 %v9970_v62, %s8174_s19  ;;  %3166 = vmatpush.bf16.msrb.mxu3 %v3103_v12 }
 0x23c   : > { %7784 = vmatmul.msk.bf16.vlgmr.msrb.gmra.mxu2 %vm1630_vm1, %v9878_v40 }
 0x23d   : > { %v2310_v59 = vpop.f32.mrf.mxu3  ;;  %4218 = vrot.lane.b32.xlu1 %v9274_v6, %s8176_s11  ;;  %3153 = vmatpush.bf16.msrb.mxu2 %v3100_v15  ;;  %v3080_v19 = vpop.permute.xlu0 %3079 }
 0x23e   : > { %v9985_v21 = vadd.f32 %v2310_v59, %v9797_v50  ;;  %v2297_v57 = vpop.f32.mrf.mxu2  ;;  %v3089_v43 = vsel %vm3081_vm7, %v3078_v22, %v3080_v19  ;;  %v3251_v37 = vpop.permute.xlu1 %3250  ;;  %v3118_v59 = vsel %vm1591_vm0, %v3080_v19, 0 }
 0x23f   : > { %v9988_v16 = vadd.f32 %v2297_v57, %v9768_v42 }
 0x241   : > { %4212 = vrot.lane.b32.xlu2 %v9172_v10, %s8176_s11 }
 0x243   : > { %4021 = vrot.lane.b32.xlu0 %v9992_v49, %s8174_s19  ;;  %v2391_v4 = vpop.f32.mrf.mxu0  ;;  %v2404_v50 = vpop.f32.mrf.mxu1 }
 0x244   : > { %v9999_v27 = vadd.f32 %v2391_v4, %v9806_v58  ;;  %v10002_v42 = vadd.f32 %v2404_v50, %v9876_v47  ;;  %v3088_v58 = vsel %vm3081_vm7, %v3076_v60, %v3078_v22  ;;  %v3115_v47 = vsel %vm1591_vm0, %v3089_v43, 0  ;;  %v3255_v22 = vpop.permute.xlu2 %3254 }
 0x245   : > { %v2312_v56 = vpop.f32.mrf.mxu3  ;;  %4224 = vrot.lane.b32.xlu1 %v9290_v14, %s8176_s11  ;;  %v3112_v20 = vsel %vm1591_vm0, %v3088_v58, 0  ;;  %v10035_v12 = vpop.permute.xlu0 %3246 }
 0x246   : > { %v2299_v29 = vpop.f32.mrf.mxu2  ;;  %7786 = vmatmul.msk.bf16.vlgmr.msra.gmra.mxu0 %vm1630_vm1, %v9878_v40  ;;  %7787 = vmatmul.msk.bf16.vlgmr.msra.gmra.mxu1 %vm1630_vm1, %v9878_v40  ;;  %v3249_v7 = vpop.permute.xlu1 %3248 }
 0x247   : > { %3192 = vmatpush.bf16.msra.mxu1 %v3109_v32  ;;  %3179 = vmatpush.bf16.msra.mxu0 %v3106_v34 }
 0x249   : > { %4214 = vrot.lane.b32.xlu2 %v9285_v8, %s8176_s11 }
 0x24a   : > { %7789 = vmatmul.msk.bf16.vlgmr.msra.gmra.mxu3 %vm1630_vm1, %v9878_v40 }
 0x24b   : > { %4033 = vrot.lane.b32.xlu0 %v10016_v35, %s8174_s19  ;;  %v2393_v26 = vpop.f32.mrf.mxu0  ;;  %v2406_v33 = vpop.f32.mrf.mxu1  ;;  %3218 = vmatpush.bf16.msra.mxu3 %v3115_v47 }
 0x24c   : > { %7788 = vmatmul.msk.bf16.vlgmr.msra.gmra.mxu2 %vm1630_vm1, %v9878_v40  ;;  %v3266_v40 = vsel %vm3081_vm7, %v3249_v7, %v3251_v37  ;;  %v3257_v23 = vpop.permute.xlu2 %3256 }
 0x24d   : > { %v2430_v63 = vpop.f32.mrf.mxu3  ;;  %4396 = vrot.lane.b32.xlu1 %v9992_v49, %s8176_s11  ;;  %3205 = vmatpush.bf16.msra.mxu2 %v3112_v20  ;;  %v3278_v57 = vsel %vm1591_vm0, %v3266_v40, 0  ;;  %v3259_v44 = vpop.permute.xlu0 %3258  ;;  %v3269_v29 = vsel %vm3081_vm7, %v3255_v22, %v3257_v23 }
 0x24e   : > { %v10030_v51 = vadd.f32 %v2430_v63, %v9833_v52  ;;  %v2417_v0 = vpop.f32.mrf.mxu2  ;;  %v3270_v58 = vsel %vm3081_vm7, %v3257_v23, %v3259_v44  ;;  %v3287_v63 = vsel %vm1591_vm0, %v3269_v29, 0 }
 0x24f   : > { %v10033_v28 = vadd.f32 %v2417_v0, %v9809_v17  ;;  %v3290_v0 = vsel %vm1591_vm0, %v3270_v58, 0 }
 0x251   : > { %4226 = vrot.lane.b32.xlu2 %v9864_v13, %s8176_s11 }
 0x253   : > { %4208 = vrot.lane.b32.xlu0 %v9240_v46, %s8176_s11  ;;  %v2443_v60 = vpop.f32.mrf.mxu0  ;;  %v2456_v15 = vpop.f32.mrf.mxu1 }
 0x254   : > { %v10043_v52 = vadd.f32 %v2443_v60, %v9843_v24  ;;  %v10046_v17 = vadd.f32 %v2456_v15, %v9916_v53  ;;  %v3268_v24 = vsel %vm3081_vm7, %v3253_v48, %v3255_v22  ;;  %v3267_v53 = vsel %vm3081_vm7, %v3251_v37, %v3253_v48  ;;  %v3261_v37 = vpop.permute.xlu1 %3260  ;;  %v3435_v7 = vpop.permute.xlu2 %3434 }
 0x255   : > { %v2432_v30 = vpop.f32.mrf.mxu3  ;;  %4404 = vrot.lane.b32.xlu1 %v9913_v1, %s8176_s11  ;;  %v3284_v36 = vsel %vm1591_vm0, %v3268_v24, 0  ;;  %v3281_v19 = vsel %vm1591_vm0, %v3267_v53, 0 }
 0x256   : > { %v2419_v31 = vpop.f32.mrf.mxu2  ;;  %7790 = vmatmul.msk.bf16.vlgmr.msrb.gmra.mxu0 %vm1630_vm1, %v9950_v41  ;;  %7791 = vmatmul.msk.bf16.vlgmr.msrb.gmra.mxu1 %vm1630_vm1, %v9950_v41 }
 0x257   : > { %3311 = vmatpush.bf16.msrb.mxu1 %v3278_v57  ;;  %3231 = vmatpush.bf16.msrb.mxu0 %v3118_v59 }
 0x259   : > { %4398 = vrot.lane.b32.xlu2 %v9889_v3, %s8176_s11 }
 0x25a   : > { %7793 = vmatmul.msk.bf16.vlgmr.msrb.gmra.mxu3 %vm1630_vm1, %v9950_v41 }
 0x25b   : > { %3337 = vmatpush.bf16.msrb.mxu3 %v3284_v36  ;;  %4206 = vrot.lane.b32.xlu0 %v9108_v45, %s8177_s22  ;;  %v2445_v4 = vpop.f32.mrf.mxu0  ;;  %v2458_v50 = vpop.f32.mrf.mxu1 }
 0x25c   : > { %7792 = vmatmul.msk.bf16.vlgmr.msrb.gmra.mxu2 %vm1630_vm1, %v9950_v41  ;;  %v3433_v40 = vpop.permute.xlu1 %3432 }
 0x25d   : > { %3324 = vmatpush.bf16.msrb.mxu2 %v3281_v19  ;;  %v2482_v32 = vpop.f32.mrf.mxu3  ;;  %4406 = vrot.lane.b32.xlu1 %v9926_v18, %s8176_s11 }
 0x25e   : > { %v10071_v34 = vadd.f32 %v2482_v32, %v9988_v16  ;;  %v2469_v43 = vpop.f32.mrf.mxu2  ;;  %v3263_v16 = vpop.permute.xlu0 %3262 }
 0x25f   : > { %v10074_v56 = vadd.f32 %v2469_v43, %v9870_v38 }
 0x261   : > { %4394 = vrot.lane.b32.xlu2 %v9337_v54, %s8177_s22 }
 0x263   : > { %4216 = vrot.lane.b32.xlu0 %v9268_v61, %s8176_s11  ;;  %v2495_v47 = vpop.f32.mrf.mxu0  ;;  %v2575_v48 = vpop.f32.mrf.mxu1 }
 0x264   : > { %v10083_v20 = vadd.f32 %v2495_v47, %v9985_v21  ;;  %v10086_v38 = vadd.f32 %v2575_v48, %v9999_v27  ;;  %v3272_v21 = vsel %vm3081_vm7, %v3261_v37, %v3263_v16  ;;  %v3271_v27 = vsel %vm3081_vm7, %v3259_v44, %v3261_v37  ;;  %v10121_v50 = vpop.permute.xlu1 %3430 }
 0x265   : > { %v2484_v26 = vpop.f32.mrf.mxu3  ;;  %4408 = vrot.lane.b32.xlu1 %v10016_v35, %s8176_s11  ;;  %v3296_v60 = vsel %vm1591_vm0, %v3272_v21, 0  ;;  %v3293_v59 = vsel %vm1591_vm0, %v3271_v27, 0 }
 0x266   : > { %v2471_v33 = vpop.f32.mrf.mxu2  ;;  %7794 = vmatmul.msk.bf16.vlgmr.msra.gmra.mxu0 %vm1630_vm1, %v9950_v41  ;;  %7795 = vmatmul.msk.bf16.vlgmr.msra.gmra.mxu1 %vm1630_vm1, %v9950_v41  ;;  %v3265_v53 = vpop.permute.xlu0 %3264 }
 0x267   : > { %3350 = vmatpush.bf16.msra.mxu0 %v3287_v63  ;;  %3363 = vmatpush.bf16.msra.mxu1 %v3290_v0  ;;  %v3273_v44 = vsel %vm3081_vm7, %v3263_v16, %v3265_v53  ;;  %v3302_v23 = vsel %vm1591_vm0, %v3265_v53, 0 }
 0x269   : > { %4410 = vrot.lane.b32.xlu2 %v9944_v55, %s8176_s11 }
 0x26a   : > { %7797 = vmatmul.msk.bf16.vlgmr.msra.gmra.mxu3 %vm1630_vm1, %v9950_v41 }
 0x26b   : > { %3389 = vmatpush.bf16.msra.mxu3 %v3296_v60  ;;  %4220 = vrot.lane.b32.xlu0 %v9229_v39, %s8176_s11  ;;  %v2497_v15 = vpop.f32.mrf.mxu0  ;;  %v2577_v22 = vpop.f32.mrf.mxu1 }
 0x26c   : > { %7796 = vmatmul.msk.bf16.vlgmr.msra.gmra.mxu2 %vm1630_vm1, %v9950_v41 }
 0x26d   : > { %3376 = vmatpush.bf16.msra.mxu2 %v3293_v59  ;;  %v2601_v30 = vpop.f32.mrf.mxu3  ;;  %4589 = vrot.lane.b32.xlu1 %v9285_v8, %s8178_s24  ;;  %v3437_v8 = vpop.permute.xlu2 %3436 }
 0x26e   : > { %v10111_v57 = vadd.f32 %v2601_v30, %v10033_v28  ;;  %v2588_v31 = vpop.f32.mrf.mxu2  ;;  %v3452_v19 = vsel %vm3450_vm8, %v3435_v7, %v3437_v8  ;;  %v3441_v29 = vpop.permute.xlu0 %3440 }
 0x26f   : > { %v10114_v24 = vadd.f32 %v2588_v31, %v10002_v42  ;;  %v3466_v37 = vsel %vm1591_vm0, %v3452_v19, 0 }
 0x271   : > { %4414 = vrot.lane.b32.xlu2 %v9954_v9, %s8176_s11 }
 0x273   : > { %4222 = vrot.lane.b32.xlu0 %v9295_v2, %s8176_s11  ;;  %v2614_v36 = vpop.f32.mrf.mxu0  ;;  %v2627_v4 = vpop.f32.mrf.mxu1 }
 0x274   : > { %v10124_v28 = vadd.f32 %v2614_v36, %v10030_v51  ;;  %v10127_v42 = vadd.f32 %v2627_v4, %v10043_v52  ;;  %v3299_v51 = vsel %vm1591_vm0, %v3273_v44, 0  ;;  %v3451_v52 = vsel %vm3450_vm8, %v3433_v40, %v3435_v7 }
 0x275   : > { %v2603_v32 = vpop.f32.mrf.mxu3  ;;  %4581 = vrot.lane.b32.xlu1 %v9108_v45, %s11464_s25  ;;  %v3463_v45 = vsel %vm1591_vm0, %v3451_v52, 0  ;;  %v3439_v33 = vpop.permute.xlu2 %3438 }
 0x276   : > { %v2590_v43 = vpop.f32.mrf.mxu2  ;;  %7798 = vmatmul.msk.bf16.vlgmr.msrb.gmra.mxu0 %vm1630_vm1, %v9950_v41  ;;  %7799 = vmatmul.msk.bf16.vlgmr.msrb.gmra.mxu1 %vm1630_vm1, %v10035_v12  ;;  %v3453_v63 = vsel %vm3450_vm8, %v3437_v8, %v3439_v33  ;;  %v3454_v0 = vsel %vm3450_vm8, %v3439_v33, %v3441_v29  ;;  %v3445_v27 = vpop.permute.xlu0 %3444 }
 0x277   : > { %3402 = vmatpush.bf16.msrb.mxu0 %v3299_v51  ;;  %3415 = vmatpush.bf16.msrb.mxu1 %v3302_v23  ;;  %v3469_v7 = vsel %vm1591_vm0, %v3453_v63, 0  ;;  %v3472_v40 = vsel %vm1591_vm0, %v3454_v0, 0 }
 0x279   : > { %4583 = vrot.lane.b32.xlu2 %v9240_v46, %s8178_s24  ;;  %v3443_v46 = vpop.permute.xlu1 %3442 }
 0x27a   : > { %7801 = vmatmul.msk.bf16.vlgmr.msrb.gmra.mxu3 %vm1630_vm1, %v10035_v12  ;;  %v3456_v60 = vsel %vm3450_vm8, %v3443_v46, %v3445_v27 }
 0x27b   : > { %4402 = vrot.lane.b32.xlu0 %v9900_v25, %s8176_s11  ;;  %v2616_v41 = vpop.f32.mrf.mxu0  ;;  %v2629_v58 = vpop.f32.mrf.mxu1  ;;  %3509 = vmatpush.bf16.msrb.mxu3 %v3466_v37  ;;  %v3478_v22 = vsel %vm1591_vm0, %v3456_v60, 0 }
 0x27c   : > { %7800 = vmatmul.msk.bf16.vlgmr.msrb.gmra.mxu2 %vm1630_vm1, %v10035_v12 }
 0x27d   : > { %v2653_v47 = vpop.f32.mrf.mxu3  ;;  %4597 = vrot.lane.b32.xlu1 %v9295_v2, %s8178_s24  ;;  %3496 = vmatpush.bf16.msrb.mxu2 %v3463_v45  ;;  %v3447_v31 = vpop.permute.xlu2 %3446 }
 0x27e   : > { %v10152_v48 = vadd.f32 %v2653_v47, %v10074_v56  ;;  %v2640_v16 = vpop.f32.mrf.mxu2  ;;  %v3457_v19 = vsel %vm3450_vm8, %v3445_v27, %v3447_v31 }
 0x27f   : > { %v10155_v26 = vadd.f32 %v2640_v16, %v10046_v17  ;;  %v3481_v23 = vsel %vm1591_vm0, %v3457_v19, 0 }
 0x281   : > { %4591 = vrot.lane.b32.xlu2 %v9268_v61, %s8178_s24 }
 0x283   : > { %4400 = vrot.lane.b32.xlu0 %v9970_v62, %s8176_s11  ;;  %v2666_v2 = vpop.f32.mrf.mxu0  ;;  %v2679_v21 = vpop.f32.mrf.mxu1 }
 0x284   : > { %v10164_v56 = vadd.f32 %v2666_v2, %v10071_v34  ;;  %v10167_v17 = vadd.f32 %v2679_v21, %v10083_v20  ;;  %v3455_v34 = vsel %vm3450_vm8, %v3441_v29, %v3443_v46  ;;  %v3449_v20 = vpop.permute.xlu1 %3448 }
 0x285   : > { %v2655_v15 = vpop.f32.mrf.mxu3  ;;  %4773 = vrot.lane.b32.xlu1 %v9889_v3, %s8178_s24  ;;  %v3475_v3 = vsel %vm1591_vm0, %v3455_v34, 0  ;;  %v3458_v8 = vsel %vm3450_vm8, %v3447_v31, %v3449_v20 }
 0x286   : > { %v2642_v61 = vpop.f32.mrf.mxu2  ;;  %7802 = vmatmul.msk.bf16.vlgmr.msra.gmra.mxu0 %vm1630_vm1, %v10035_v12  ;;  %7803 = vmatmul.msk.bf16.vlgmr.msra.gmra.mxu1 %vm1630_vm1, %v10035_v12 }
 0x287   : > { %3522 = vmatpush.bf16.msra.mxu0 %v3469_v7  ;;  %3535 = vmatpush.bf16.msra.mxu1 %v3472_v40 }
 0x289   : > { %4593 = vrot.lane.b32.xlu2 %v9274_v6, %s8178_s24  ;;  %v3618_v6 = vpop.permute.xlu0 %3617 }
 0x28a   : > { %7805 = vmatmul.msk.bf16.vlgmr.msra.gmra.mxu3 %vm1630_vm1, %v10035_v12 }
 0x28b   : > { %4412 = vrot.lane.b32.xlu0 %v9967_v11, %s8176_s11  ;;  %v2668_v59 = vpop.f32.mrf.mxu0  ;;  %v2681_v30 = vpop.f32.mrf.mxu1  ;;  %3561 = vmatpush.bf16.msra.mxu3 %v3478_v22 }
 0x28c   : > { %7804 = vmatmul.msk.bf16.vlgmr.msra.gmra.mxu2 %vm1630_vm1, %v10035_v12  ;;  %v3620_v32 = vpop.permute.xlu1 %3619 }
 0x28d   : > { %v2773_v53 = vpop.f32.mrf.mxu3  ;;  %4769 = vrot.lane.b32.xlu1 %v9337_v54, %s11464_s25  ;;  %3548 = vmatpush.bf16.msra.mxu2 %v3475_v3 }
 0x28e   : > { %v10192_v44 = vadd.f32 %v2773_v53, %v10114_v24  ;;  %v2760_v36 = vpop.f32.mrf.mxu2 }
 0x28f   : > { %v10195_v4 = vadd.f32 %v2760_v36, %v10086_v38  ;;  %v3484_v38 = vsel %vm1591_vm0, %v3458_v8, 0 }
 0x291   : > { %4775 = vrot.lane.b32.xlu2 %v9970_v62, %s8178_s24  ;;  %v3624_v62 = vpop.permute.xlu2 %3623 }
 0x293   : > { %4587 = vrot.lane.b32.xlu0 %v9172_v10, %s8178_s24  ;;  %v2786_v54 = vpop.f32.mrf.mxu0  ;;  %v2799_v43 = vpop.f32.mrf.mxu1  ;;  %v3635_v10 = vsel %vm3450_vm8, %v3618_v6, %v3620_v32 }
 0x294   : > { %v10204_v24 = vadd.f32 %v2786_v54, %v10111_v57  ;;  %v10207_v51 = vadd.f32 %v2799_v43, %v10124_v28  ;;  %v3626_v57 = vpop.permute.xlu0 %3625  ;;  %v3647_v28 = vsel %vm1591_vm0, %v3635_v10, 0  ;;  %v10226_v29 = vpop.permute.xlu1 %3615 }
 0x295   : > { %v2775_v52 = vpop.f32.mrf.mxu3  ;;  %4781 = vrot.lane.b32.xlu1 %v9926_v18, %s8178_s24  ;;  %v3487_v18 = vsel %vm1591_vm0, %v3449_v20, 0 }
 0x296   : > { %v2762_v37 = vpop.f32.mrf.mxu2  ;;  %7806 = vmatmul.msk.bf16.vlgmr.msrb.gmra.mxu0 %vm1630_vm1, %v10035_v12  ;;  %7807 = vmatmul.msk.bf16.vlgmr.msrb.gmra.mxu1 %vm1630_vm1, %v10035_v12 }
 0x297   : > { %3587 = vmatpush.bf16.msrb.mxu1 %v3484_v38  ;;  %3574 = vmatpush.bf16.msrb.mxu0 %v3481_v23 }
 0x299   : > { %4771 = vrot.lane.b32.xlu2 %v9992_v49, %s8178_s24  ;;  %v3622_v47 = vpop.permute.xlu2 %3621 }
 0x29a   : > { %7809 = vmatmul.msk.bf16.vlgmr.msrb.gmra.mxu3 %vm1630_vm1, %v10121_v50  ;;  %v3637_v16 = vsel %vm3450_vm8, %v3622_v47, %v3624_v62  ;;  %v3636_v33 = vsel %vm3450_vm8, %v3620_v32, %v3622_v47 }
 0x29b   : > { %3680 = vmatpush.bf16.msrb.mxu3 %v3647_v28  ;;  %4585 = vrot.lane.b32.xlu0 %v9272_v5, %s8178_s24  ;;  %v2788_v12 = vpop.f32.mrf.mxu0  ;;  %v2801_v45 = vpop.f32.mrf.mxu1 }
 0x29c   : > { %7808 = vmatmul.msk.bf16.vlgmr.msrb.gmra.mxu2 %vm1630_vm1, %v10121_v50  ;;  %v3628_v5 = vpop.permute.xlu0 %3627  ;;  %v3632_v2 = vpop.permute.xlu1 %3631 }
 0x29d   : > { %v2825_v41 = vpop.f32.mrf.mxu3  ;;  %4785 = vrot.lane.b32.xlu1 %v9944_v55, %s8178_s24  ;;  %3600 = vmatpush.bf16.msrb.mxu2 %v3487_v18  ;;  %v3639_v21 = vsel %vm3450_vm8, %v3626_v57, %v3628_v5 }
 0x29e   : > { %v10233_v49 = vadd.f32 %v2825_v41, %v10155_v26  ;;  %v3659_v7 = vsel %vm1591_vm0, %v3639_v21, 0 }
 0x29f   : > { %v2812_v58 = vpop.f32.mrf.mxu2 }
 0x2a0   : > { %v10236_v46 = vadd.f32 %v2812_v58, %v10127_v42 }
 0x2a1   : > { %4783 = vrot.lane.b32.xlu2 %v10016_v35, %s8178_s24  ;;  %v3650_v35 = vsel %vm1591_vm0, %v3636_v33, 0 }
 0x2a3   : > { %4595 = vrot.lane.b32.xlu0 %v9229_v39, %s8178_s24  ;;  %v2838_v55 = vpop.f32.mrf.mxu0  ;;  %v2851_v63 = vpop.f32.mrf.mxu1  ;;  %v3653_v39 = vsel %vm1591_vm0, %v3637_v16, 0 }
 0x2a4   : > { %v10245_v26 = vadd.f32 %v2838_v55, %v10152_v48  ;;  %v10248_v0 = vadd.f32 %v2851_v63, %v10164_v56  ;;  %v3638_v48 = vsel %vm3450_vm8, %v3624_v62, %v3626_v57  ;;  %v3634_v56 = vpop.permute.xlu2 %3633  ;;  %v3630_v15 = vpop.permute.xlu0 %3629 }
 0x2a5   : > { %v2827_v42 = vpop.f32.mrf.mxu3  ;;  %v3656_v61 = vsel %vm1591_vm0, %v3638_v48, 0  ;;  %v3808_v22 = vpop.permute.xlu1 %3807  ;;  %v3641_v59 = vsel %vm3450_vm8, %v3630_v15, %v3632_v2  ;;  %v3671_v54 = vsel %vm1591_vm0, %v3634_v56, 0 }
 0x2a6   : > { %7810 = vmatmul.msk.bf16.vlgmr.msra.gmra.mxu0 %vm1630_vm1, %v10121_v50  ;;  %7811 = vmatmul.msk.bf16.vlgmr.msra.gmra.mxu1 %vm1630_vm1, %v10121_v50 }
 0x2a7   : > { %v2814_v27 = vpop.f32.mrf.mxu2  ;;  %3693 = vmatpush.bf16.msra.mxu0 %v3650_v35  ;;  %3706 = vmatpush.bf16.msra.mxu1 %v3653_v39 }
 0x2a9   : > { %4787 = vrot.lane.b32.xlu2 %v9967_v11, %s8178_s24 }
 0x2aa   : > { %7813 = vmatmul.msk.bf16.vlgmr.msra.gmra.mxu3 %vm1630_vm1, %v10121_v50 }
 0x2ab   : > { %3732 = vmatpush.bf16.msra.mxu3 %v3659_v7  ;;  %4599 = vrot.lane.b32.xlu0 %v9290_v14, %s8178_s24  ;;  %v2840_v40 = vpop.f32.mrf.mxu0  ;;  %v2853_v60 = vpop.f32.mrf.mxu1  ;;  %v3640_v14 = vsel %vm3450_vm8, %v3628_v5, %v3630_v15 }
 0x2ac   : > { %7812 = vmatmul.msk.bf16.vlgmr.msra.gmra.mxu2 %vm1630_vm1, %v10121_v50  ;;  %v3810_v53 = vpop.permute.xlu2 %3809  ;;  %v3804_v8 = vpop.permute.xlu0 %3803 }
 0x2ad   : > { %3719 = vmatpush.bf16.msra.mxu2 %v3656_v61  ;;  %v2944_v11 = vpop.f32.mrf.mxu3  ;;  %v3806_v32 = vpop.permute.xlu1 %3805 }
 0x2ae   : > { %v10269_v34 = vadd.f32 %v2944_v11, %v10195_v4  ;;  %v3824_v28 = vsel %vm3823_vm9, %v3804_v8, %v3806_v32 }
 0x2af   : > { %v2864_v20 = vpop.f32.mrf.mxu2  ;;  %v3837_v45 = vsel %vm1591_vm0, %v3824_v28, 0 }
 0x2b0   : > { %v10272_v3 = vadd.f32 %v2864_v20, %v10167_v17  ;;  %v3662_v17 = vsel %vm1591_vm0, %v3640_v14, 0 }
 0x2b3   : > { %4601 = vrot.lane.b32.xlu0 %v9864_v13, %s8178_s24  ;;  %v2957_v30 = vpop.f32.mrf.mxu0  ;;  %v2970_v31 = vpop.f32.mrf.mxu1  ;;  %v3665_v13 = vsel %vm1591_vm0, %v3641_v59, 0 }
 0x2b4   : > { %v10279_v6 = vadd.f32 %v2957_v30, %v10192_v44  ;;  %v10282_v36 = vadd.f32 %v2970_v31, %v10204_v24  ;;  %v3642_v44 = vsel %vm3450_vm8, %v3632_v2, %v3634_v56  ;;  %v10299_v52 = vpop.permute.xlu2 %3799  ;;  %v3812_v10 = vpop.permute.xlu0 %3811 }
 0x2b5   : > { %v2946_v4 = vpop.f32.mrf.mxu3  ;;  %v3668_v38 = vsel %vm1591_vm0, %v3642_v44, 0  ;;  %v3816_v12 = vpop.permute.xlu1 %3815  ;;  %v3827_v47 = vsel %vm3823_vm9, %v3810_v53, %v3812_v10 }
 0x2b6   : > { %7814 = vmatmul.msk.bf16.vlgmr.msrb.gmra.mxu0 %vm1630_vm1, %v10121_v50  ;;  %7815 = vmatmul.msk.bf16.vlgmr.msrb.gmra.mxu1 %vm1630_vm1, %v10121_v50  ;;  %v3846_v16 = vsel %vm1591_vm0, %v3827_v47, 0 }
 0x2b7   : > { %v2866_v19 = vpop.f32.mrf.mxu2  ;;  %3745 = vmatpush.bf16.msrb.mxu0 %v3662_v17  ;;  %3758 = vmatpush.bf16.msrb.mxu1 %v3665_v13 }
 0x2ba   : > { %7817 = vmatmul.msk.bf16.vlgmr.msrb.gmra.mxu3 %vm1630_vm1, %v10226_v29 }
 0x2bb   : > { %3784 = vmatpush.bf16.msrb.mxu3 %v3671_v54  ;;  %4777 = vrot.lane.b32.xlu0 %v9900_v25, %s8178_s24  ;;  %v2959_v43 = vpop.f32.mrf.mxu0  ;;  %v2972_v24 = vpop.f32.mrf.mxu1  ;;  %v3825_v25 = vsel %vm3823_vm9, %v3806_v32, %v3808_v22 }
 0x2bc   : > { %7816 = vmatmul.msk.bf16.vlgmr.msrb.gmra.mxu2 %vm1630_vm1, %v10121_v50  ;;  %v3814_v33 = vpop.permute.xlu0 %3813 }
 0x2bd   : > { %3771 = vmatpush.bf16.msrb.mxu2 %v3668_v38  ;;  %v2996_v23 = vpop.f32.mrf.mxu3  ;;  %v3820_v2 = vpop.permute.xlu1 %3819  ;;  %v3828_v27 = vsel %vm3823_vm9, %v3812_v10, %v3814_v33 }
 0x2be   : > { %v10302_v62 = vadd.f32 %v2996_v23, %v10236_v46  ;;  %v3849_v11 = vsel %vm1591_vm0, %v3828_v27, 0 }
 0x2bf   : > { %v2983_v37 = vpop.f32.mrf.mxu2 }
 0x2c0   : > { %v10305_v57 = vadd.f32 %v2983_v37, %v10207_v51  ;;  %v3840_v51 = vsel %vm1591_vm0, %v3825_v25, 0 }
 0x2c3   : > { %4779 = vrot.lane.b32.xlu0 %v9913_v1, %s8178_s24  ;;  %v3009_v50 = vpop.f32.mrf.mxu0  ;;  %v3022_v18 = vpop.f32.mrf.mxu1  ;;  %v3826_v1 = vsel %vm3823_vm9, %v3808_v22, %v3810_v53 }
 0x2c4   : > { %v10313_v41 = vadd.f32 %v3009_v50, %v10233_v49  ;;  %v10316_v58 = vadd.f32 %v3022_v18, %v10245_v26  ;;  %v3818_v49 = vpop.permute.xlu2 %3817  ;;  %v3843_v55 = vsel %vm1591_vm0, %v3826_v1, 0  ;;  %v4026_v40 = vpop.permute.xlu0 %4025 }
 0x2c5   : > { %v2998_v46 = vpop.f32.mrf.mxu3  ;;  %v3830_v22 = vsel %vm3823_vm9, %v3816_v12, %v3818_v49  ;;  %v3822_v14 = vpop.permute.xlu1 %3821 }
 0x2c6   : > { %7818 = vmatmul.msk.bf16.vlgmr.msra.gmra.mxu0 %vm1630_vm1, %v10226_v29  ;;  %7819 = vmatmul.msk.bf16.vlgmr.msra.gmra.mxu1 %vm1630_vm1, %v10226_v29  ;;  %v3855_v59 = vsel %vm1591_vm0, %v3830_v22, 0  ;;  %v3832_v19 = vsel %vm3823_vm9, %v3820_v2, %v3822_v14 }
 0x2c7   : > { %v2985_v5 = vpop.f32.mrf.mxu2  ;;  %3883 = vmatpush.bf16.msra.mxu1 %v3840_v51  ;;  %3870 = vmatpush.bf16.msra.mxu0 %v3837_v45  ;;  %v3861_v24 = vsel %vm1591_vm0, %v3832_v19, 0 }
 0x2ca   : > { %7821 = vmatmul.msk.bf16.vlgmr.msra.gmra.mxu3 %vm1630_vm1, %v10226_v29 }
 0x2cb   : > { %4789 = vrot.lane.b32.xlu0 %v9954_v9, %s8178_s24  ;;  %v3011_v63 = vpop.f32.mrf.mxu0  ;;  %v3024_v26 = vpop.f32.mrf.mxu1  ;;  %3909 = vmatpush.bf16.msra.mxu3 %v3846_v16  ;;  %v3829_v9 = vsel %vm3823_vm9, %v3814_v33, %v3816_v12 }
 0x2cc   : > { %7820 = vmatmul.msk.bf16.vlgmr.msra.gmra.mxu2 %vm1630_vm1, %v10226_v29  ;;  %v4024_v48 = vpop.permute.xlu2 %4023  ;;  %v3852_v61 = vsel %vm1591_vm0, %v3829_v9, 0  ;;  %v4022_v4 = vpop.permute.xlu0 %4021 }
 0x2cd   : > { %v3048_v42 = vpop.f32.mrf.mxu3  ;;  %3896 = vmatpush.bf16.msra.mxu2 %v3843_v55  ;;  %v4028_v44 = vpop.permute.xlu1 %4027  ;;  %v4041_v32 = vsel %vm3823_vm9, %v4022_v4, %v4024_v48  ;;  %v4042_v25 = vsel %vm3823_vm9, %v4024_v48, %v4026_v40 }
 0x2ce   : > { %v10334_v35 = vadd.f32 %v3048_v42, %v10272_v3  ;;  %v4043_v10 = vsel %vm3823_vm9, %v4026_v40, %v4028_v44  ;;  %v4057_v45 = vsel %vm1591_vm0, %v4042_v25, 0 }
 0x2cf   : > { %v3035_v39 = vpop.f32.mrf.mxu2  ;;  %v4060_v28 = vsel %vm1591_vm0, %v4043_v10, 0 }
 0x2d0   : > { %v10337_v21 = vadd.f32 %v3035_v39, %v10248_v0  ;;  %v3831_v0 = vsel %vm3823_vm9, %v3818_v49, %v3820_v2 }
 0x2d1   : > { %v3858_v3 = vsel %vm1591_vm0, %v3831_v0, 0 }
 0x2d3   : > { %v3129_v56 = vpop.f32.mrf.mxu0  ;;  %v3142_v7 = vpop.f32.mrf.mxu1 }
 0x2d4   : > { %v10342_v60 = vadd.f32 %v3129_v56, %v10269_v34  ;;  %v10345_v15 = vadd.f32 %v3142_v7, %v10279_v6  ;;  %v10359_v53 = vpop.permute.xlu2 %3994 }
 0x2d5   : > { %v3050_v20 = vpop.f32.mrf.mxu3  ;;  %v4030_v12 = vpop.permute.xlu1 %4029 }
 0x2d6   : > { %7822 = vmatmul.msk.bf16.vlgmr.msrb.gmra.mxu0 %vm1630_vm1, %v10226_v29  ;;  %7823 = vmatmul.msk.bf16.vlgmr.msrb.gmra.mxu1 %vm1630_vm1, %v10226_v29  ;;  %v4044_v49 = vsel %vm3823_vm9, %v4028_v44, %v4030_v12 }
 0x2d7   : > { %v3037_v34 = vpop.f32.mrf.mxu2  ;;  %3935 = vmatpush.bf16.msrb.mxu1 %v3852_v61  ;;  %3922 = vmatpush.bf16.msrb.mxu0 %v3849_v11  ;;  %v4063_v2 = vsel %vm1591_vm0, %v4044_v49, 0 }
 0x2da   : > { %7825 = vmatmul.msk.bf16.vlgmr.msrb.gmra.mxu3 %vm1630_vm1, %v10226_v29 }
 0x2db   : > { %v3131_v30 = vpop.f32.mrf.mxu0  ;;  %v3144_v31 = vpop.f32.mrf.mxu1  ;;  %3961 = vmatpush.bf16.msrb.mxu3 %v3858_v3 }
 0x2dc   : > { %7824 = vmatmul.msk.bf16.vlgmr.msrb.gmra.mxu2 %vm1630_vm1, %v10226_v29  ;;  %v4032_v37 = vpop.permute.xlu2 %4031 }
 0x2dd   : > { %v3168_v6 = vpop.f32.mrf.mxu3  ;;  %3948 = vmatpush.bf16.msrb.mxu2 %v3855_v59  ;;  %v4045_v16 = vsel %vm3823_vm9, %v4030_v12, %v4032_v37 }
 0x2de   : > { %v10364_v8 = vadd.f32 %v3168_v6, %v10305_v57  ;;  %v4066_v39 = vsel %vm1591_vm0, %v4045_v16, 0 }
 0x2df   : > { %v3155_v17 = vpop.f32.mrf.mxu2 }
 0x2e0   : > { %v10367_v13 = vadd.f32 %v3155_v17, %v10282_v36  ;;  %v4054_v36 = vsel %vm1591_vm0, %v4041_v32, 0 }
 0x2e3   : > { %v3181_v54 = vpop.f32.mrf.mxu0  ;;  %v3194_v43 = vpop.f32.mrf.mxu1 }
 0x2e4   : > { %v10373_v29 = vadd.f32 %v3181_v54, %v10302_v62  ;;  %v10376_v38 = vadd.f32 %v3194_v43, %v10313_v41  ;;  %v4034_v62 = vpop.permute.xlu0 %4033  ;;  %v4036_v46 = vpop.permute.xlu2 %4035 }
 0x2e5   : > { %v3170_v23 = vpop.f32.mrf.mxu3 }
 0x2e6   : > { %7826 = vmatmul.msk.bf16.vlgmr.msra.gmra.mxu0 %vm1630_vm1, %v10299_v52  ;;  %7827 = vmatmul.msk.bf16.vlgmr.msra.gmra.mxu1 %vm1630_vm1, %v10299_v52 }
 0x2e7   : > { %v3157_v57 = vpop.f32.mrf.mxu2  ;;  %4087 = vmatpush.bf16.msra.mxu1 %v4054_v36  ;;  %3974 = vmatpush.bf16.msra.mxu0 %v3861_v24 }
 0x2ea   : > { %7829 = vmatmul.msk.bf16.vlgmr.msra.gmra.mxu3 %vm1630_vm1, %v10299_v52 }
 0x2eb   : > { %4113 = vmatpush.bf16.msra.mxu3 %v4060_v28  ;;  %v3183_v50 = vpop.f32.mrf.mxu0  ;;  %v3196_v18 = vpop.f32.mrf.mxu1 }
 0x2ec   : > { %7828 = vmatmul.msk.bf16.vlgmr.msra.gmra.mxu2 %vm1630_vm1, %v10299_v52  ;;  %v4209_v5 = vpop.permute.xlu0 %4208  ;;  %v4038_v9 = vpop.permute.xlu2 %4037 }
 0x2ed   : > { %4100 = vmatpush.bf16.msra.mxu2 %v4057_v45  ;;  %v3220_v41 = vpop.f32.mrf.mxu3  ;;  %v4048_v34 = vsel %vm3823_vm9, %v4036_v46, %v4038_v9 }
 0x2ee   : > { %v10392_v51 = vadd.f32 %v3220_v41, %v10337_v21  ;;  %v4047_v21 = vsel %vm3823_vm9, %v4034_v62, %v4036_v46 }
 0x2ef   : > { %v3207_v47 = vpop.f32.mrf.mxu2  ;;  %v4072_v48 = vsel %vm1591_vm0, %v4047_v21, 0 }
 0x2f0   : > { %v10395_v1 = vadd.f32 %v3207_v47, %v10316_v58  ;;  %v4211_v58 = vpop.permute.xlu1 %4210 }
 0x2f3   : > { %v3233_v33 = vpop.f32.mrf.mxu0  ;;  %v3313_v55 = vpop.f32.mrf.mxu1 }
 0x2f4   : > { %v10400_v63 = vadd.f32 %v3233_v33, %v10334_v35  ;;  %v10403_v26 = vadd.f32 %v3313_v55, %v10342_v60  ;;  %v4046_v35 = vsel %vm3823_vm9, %v4032_v37, %v4034_v62  ;;  %v10417_v60 = vpop.permute.xlu0 %4206  ;;  %v4213_v30 = vpop.permute.xlu2 %4212 }
 0x2f5   : > { %v3222_v42 = vpop.f32.mrf.mxu3  ;;  %v4069_v40 = vsel %vm1591_vm0, %v4046_v35, 0  ;;  %v4230_v4 = vsel %vm4228_vm10, %v4211_v58, %v4213_v30 }
 0x2f6   : > { %7830 = vmatmul.msk.bf16.vlgmr.msrb.gmra.mxu0 %vm1630_vm1, %v10299_v52  ;;  %7831 = vmatmul.msk.bf16.vlgmr.msrb.gmra.mxu1 %vm1630_vm1, %v10299_v52  ;;  %v4245_v32 = vsel %vm1591_vm0, %v4230_v4, 0 }
 0x2f7   : > { %v3209_v27 = vpop.f32.mrf.mxu2  ;;  %4126 = vmatpush.bf16.msrb.mxu0 %v4063_v2  ;;  %4139 = vmatpush.bf16.msrb.mxu1 %v4066_v39 }
 0x2f8   : > { %v4040_v20 = vpop.permute.xlu1 %4039 }
 0x2f9   : > { %v4049_v3 = vsel %vm3823_vm9, %v4038_v9, %v4040_v20 }
 0x2fa   : > { %7833 = vmatmul.msk.bf16.vlgmr.msrb.gmra.mxu3 %vm1630_vm1, %v10299_v52 }
 0x2fb   : > { %4165 = vmatpush.bf16.msrb.mxu3 %v4072_v48  ;;  %v3235_v56 = vpop.f32.mrf.mxu0  ;;  %v3315_v7 = vpop.f32.mrf.mxu1 }
 0x2fc   : > { %7832 = vmatmul.msk.bf16.vlgmr.msrb.gmra.mxu2 %vm1630_vm1, %v10299_v52  ;;  %v4217_v19 = vpop.permute.xlu0 %4216  ;;  %v4215_v23 = vpop.permute.xlu2 %4214 }
 0x2fd   : > { %4152 = vmatpush.bf16.msrb.mxu2 %v4069_v40  ;;  %v3339_v61 = vpop.f32.mrf.mxu3  ;;  %v4231_v62 = vsel %vm4228_vm10, %v4213_v30, %v4215_v23  ;;  %v4232_v25 = vsel %vm4228_vm10, %v4215_v23, %v4217_v19 }
 0x2fe   : > { %v10422_v11 = vadd.f32 %v3339_v61, %v10367_v13  ;;  %v4078_v13 = vsel %vm1591_vm0, %v4049_v3, 0  ;;  %v4248_v18 = vsel %vm1591_vm0, %v4231_v62, 0  ;;  %v4251_v12 = vsel %vm1591_vm0, %v4232_v25, 0 }
 0x2ff   : > { %v3326_v0 = vpop.f32.mrf.mxu2 }
 0x300   : > { %v10425_v22 = vadd.f32 %v3326_v0, %v10345_v15  ;;  %v4075_v15 = vsel %vm1591_vm0, %v4048_v34, 0 }
 0x303   : > { %v3352_v14 = vpop.f32.mrf.mxu0  ;;  %v3365_v59 = vpop.f32.mrf.mxu1 }
 0x304   : > { %v10430_v31 = vadd.f32 %v3352_v14, %v10364_v8  ;;  %v10433_v6 = vadd.f32 %v3365_v59, %v10373_v29  ;;  %v4229_v8 = vsel %vm4228_vm10, %v4209_v5, %v4211_v58  ;;  %v4219_v29 = vpop.permute.xlu1 %4218  ;;  %v4221_v10 = vpop.permute.xlu0 %4220 }
 0x305   : > { %v3341_v17 = vpop.f32.mrf.mxu3  ;;  %v4242_v54 = vsel %vm1591_vm0, %v4229_v8, 0  ;;  %v4234_v47 = vsel %vm4228_vm10, %v4219_v29, %v4221_v10 }
 0x306   : > { %7834 = vmatmul.msk.bf16.vlgmr.msra.gmra.mxu0 %vm1630_vm1, %v10299_v52  ;;  %7835 = vmatmul.msk.bf16.vlgmr.msra.gmra.mxu1 %vm1630_vm1, %v10359_v53  ;;  %v4257_v49 = vsel %vm1591_vm0, %v4234_v47, 0 }
 0x307   : > { %v3328_v44 = vpop.f32.mrf.mxu2  ;;  %4178 = vmatpush.bf16.msra.mxu0 %v4075_v15  ;;  %4191 = vmatpush.bf16.msra.mxu1 %v4078_v13 }
 0x30a   : > { %7837 = vmatmul.msk.bf16.vlgmr.msra.gmra.mxu3 %vm1630_vm1, %v10359_v53 }
 0x30b   : > { %v3354_v43 = vpop.f32.mrf.mxu0  ;;  %v3367_v24 = vpop.f32.mrf.mxu1  ;;  %4288 = vmatpush.bf16.msra.mxu3 %v4245_v32 }
 0x30c   : > { %7836 = vmatmul.msk.bf16.vlgmr.msra.gmra.mxu2 %vm1630_vm1, %v10359_v53  ;;  %v4225_v46 = vpop.permute.xlu1 %4224  ;;  %v4223_v33 = vpop.permute.xlu0 %4222 }
 0x30d   : > { %v3391_v52 = vpop.f32.mrf.mxu3  ;;  %4275 = vmatpush.bf16.msra.mxu2 %v4242_v54  ;;  %v4235_v27 = vsel %vm4228_vm10, %v4221_v10, %v4223_v33  ;;  %v4236_v35 = vsel %vm4228_vm10, %v4223_v33, %v4225_v46 }
 0x30e   : > { %v10450_v37 = vadd.f32 %v3391_v52, %v10395_v1  ;;  %v4233_v1 = vsel %vm4228_vm10, %v4217_v19, %v4219_v29  ;;  %v4260_v7 = vsel %vm1591_vm0, %v4235_v27, 0  ;;  %v4263_v40 = vsel %vm1591_vm0, %v4236_v35, 0 }
 0x30f   : > { %v3378_v36 = vpop.f32.mrf.mxu2  ;;  %v4254_v16 = vsel %vm1591_vm0, %v4233_v1, 0 }
 0x310   : > { %v10453_v57 = vadd.f32 %v3378_v36, %v10376_v38 }
 0x313   : > { %v3404_v28 = vpop.f32.mrf.mxu0  ;;  %v3417_v50 = vpop.f32.mrf.mxu1 }
 0x314   : > { %v10460_v45 = vadd.f32 %v3404_v28, %v10392_v51  ;;  %v10463_v41 = vadd.f32 %v3417_v50, %v10400_v63  ;;  %v4227_v51 = vpop.permute.xlu2 %4226  ;;  %v4397_v58 = vpop.permute.xlu1 %4396 }
 0x315   : > { %v3393_v38 = vpop.f32.mrf.mxu3  ;;  %v4403_v61 = vpop.permute.xlu0 %4402 }
 0x316   : > { %7838 = vmatmul.msk.bf16.vlgmr.msrb.gmra.mxu0 %vm1630_vm1, %v10359_v53  ;;  %7839 = vmatmul.msk.bf16.vlgmr.msrb.gmra.mxu1 %vm1630_vm1, %v10359_v53 }
 0x317   : > { %v3380_v5 = vpop.f32.mrf.mxu2  ;;  %4301 = vmatpush.bf16.msrb.mxu0 %v4248_v18  ;;  %4314 = vmatpush.bf16.msrb.mxu1 %v4251_v12 }
 0x31a   : > { %7841 = vmatmul.msk.bf16.vlgmr.msrb.gmra.mxu3 %vm1630_vm1, %v10359_v53 }
 0x31b   : > { %v3406_v55 = vpop.f32.mrf.mxu0  ;;  %v3419_v63 = vpop.f32.mrf.mxu1  ;;  %4340 = vmatpush.bf16.msrb.mxu3 %v4257_v49 }
 0x31c   : > { %7840 = vmatmul.msk.bf16.vlgmr.msrb.gmra.mxu2 %vm1630_vm1, %v10359_v53  ;;  %v4399_v9 = vpop.permute.xlu2 %4398  ;;  %v4405_v59 = vpop.permute.xlu1 %4404 }
 0x31d   : > { %v3511_v42 = vpop.f32.mrf.mxu3  ;;  %4327 = vmatpush.bf16.msrb.mxu2 %v4254_v16  ;;  %v4416_v34 = vsel %vm4228_vm10, %v4397_v58, %v4399_v9  ;;  %v4401_v17 = vpop.permute.xlu0 %4400  ;;  %v4419_v62 = vsel %vm4228_vm10, %v4403_v61, %v4405_v59 }
 0x31e   : > { %v10478_v2 = vadd.f32 %v3511_v42, %v10425_v22  ;;  %v4237_v22 = vsel %vm4228_vm10, %v4225_v46, %v4227_v51  ;;  %v4429_v14 = vsel %vm1591_vm0, %v4416_v34, 0  ;;  %v4417_v8 = vsel %vm4228_vm10, %v4399_v9, %v4401_v17 }
 0x31f   : > { %v3498_v39 = vpop.f32.mrf.mxu2  ;;  %v4418_v44 = vsel %vm4228_vm10, %v4401_v17, %v4403_v61  ;;  %v4432_v36 = vsel %vm1591_vm0, %v4417_v8, 0  ;;  %v4438_v18 = vsel %vm1591_vm0, %v4419_v62, 0 }
 0x320   : > { %v10481_v21 = vadd.f32 %v3498_v39, %v10403_v26 }
 0x323   : > { %v3524_v48 = vpop.f32.mrf.mxu0  ;;  %v3537_v56 = vpop.f32.mrf.mxu1 }
 0x324   : > { %v10488_v0 = vadd.f32 %v3524_v48, %v10422_v11  ;;  %v10491_v20 = vadd.f32 %v3537_v56, %v10430_v31  ;;  %v4266_v11 = vsel %vm1591_vm0, %v4237_v22, 0  ;;  %v10503_v4 = vpop.permute.xlu2 %4394  ;;  %v4407_v43 = vpop.permute.xlu1 %4406 }
 0x325   : > { %v3513_v26 = vpop.f32.mrf.mxu3  ;;  %v4420_v10 = vsel %vm4228_vm10, %v4405_v59, %v4407_v43 }
 0x326   : > { %7842 = vmatmul.msk.bf16.vlgmr.msra.gmra.mxu0 %vm1630_vm1, %v10359_v53  ;;  %7843 = vmatmul.msk.bf16.vlgmr.msra.gmra.mxu1 %vm1630_vm1, %v10359_v53  ;;  %v4441_v25 = vsel %vm1591_vm0, %v4420_v10, 0 }
 0x327   : > { %v3500_v3 = vpop.f32.mrf.mxu2  ;;  %4366 = vmatpush.bf16.msra.mxu1 %v4263_v40  ;;  %4353 = vmatpush.bf16.msra.mxu0 %v4260_v7 }
 0x32a   : > { %7845 = vmatmul.msk.bf16.vlgmr.msra.gmra.mxu3 %vm1630_vm1, %v10417_v60 }
 0x32b   : > { %4462 = vmatpush.bf16.msra.mxu3 %v4429_v14  ;;  %v3526_v30 = vpop.f32.mrf.mxu0  ;;  %v3539_v31 = vpop.f32.mrf.mxu1 }
 0x32c   : > { %7844 = vmatmul.msk.bf16.vlgmr.msra.gmra.mxu2 %vm1630_vm1, %v10417_v60  ;;  %v4411_v23 = vpop.permute.xlu2 %4410 }
 0x32d   : > { %v3563_v53 = vpop.f32.mrf.mxu3  ;;  %4379 = vmatpush.bf16.msra.mxu2 %v4266_v11 }
 0x32e   : > { %v10508_v15 = vadd.f32 %v3563_v53, %v10453_v57 }
 0x32f   : > { %v3550_v13 = vpop.f32.mrf.mxu2 }
 0x330   : > { %v10511_v19 = vadd.f32 %v3550_v13, %v10433_v6  ;;  %v4435_v6 = vsel %vm1591_vm0, %v4418_v44, 0 }
 0x333   : > { %v3576_v32 = vpop.f32.mrf.mxu0  ;;  %v3589_v54 = vpop.f32.mrf.mxu1 }
 0x334   : > { %v10516_v24 = vadd.f32 %v3576_v32, %v10450_v37  ;;  %v10519_v29 = vadd.f32 %v3589_v54, %v10460_v45  ;;  %v4413_v37 = vpop.permute.xlu0 %4412  ;;  %v4409_v45 = vpop.permute.xlu1 %4408 }
 0x335   : > { %v3565_v52 = vpop.f32.mrf.mxu3  ;;  %v4415_v46 = vpop.permute.xlu2 %4414  ;;  %v4421_v51 = vsel %vm4228_vm10, %v4407_v43, %v4409_v45  ;;  %v4422_v49 = vsel %vm4228_vm10, %v4409_v45, %v4411_v23  ;;  %v4423_v27 = vsel %vm4228_vm10, %v4411_v23, %v4413_v37 }
 0x336   : > { %7846 = vmatmul.msk.bf16.vlgmr.msrb.gmra.mxu0 %vm1630_vm1, %v10417_v60  ;;  %7847 = vmatmul.msk.bf16.vlgmr.msrb.gmra.mxu1 %vm1630_vm1, %v10417_v60  ;;  %v4444_v39 = vsel %vm1591_vm0, %v4421_v51, 0  ;;  %v4447_v58 = vsel %vm1591_vm0, %v4422_v49, 0  ;;  %v4450_v7 = vsel %vm1591_vm0, %v4423_v27, 0 }
 0x337   : > { %v3552_v57 = vpop.f32.mrf.mxu2  ;;  %4475 = vmatpush.bf16.msrb.mxu0 %v4432_v36  ;;  %4488 = vmatpush.bf16.msrb.mxu1 %v4435_v6 }
 0x33a   : > { %7849 = vmatmul.msk.bf16.vlgmr.msrb.gmra.mxu3 %vm1630_vm1, %v10417_v60 }
 0x33b   : > { %4514 = vmatpush.bf16.msrb.mxu3 %v4441_v25  ;;  %v3578_v28 = vpop.f32.mrf.mxu0  ;;  %v3591_v50 = vpop.f32.mrf.mxu1 }
 0x33c   : > { %7848 = vmatmul.msk.bf16.vlgmr.msrb.gmra.mxu2 %vm1630_vm1, %v10417_v60  ;;  %v4588_v5 = vpop.permute.xlu0 %4587 }
 0x33d   : > { %4501 = vmatpush.bf16.msrb.mxu2 %v4438_v18  ;;  %v3682_v12 = vpop.f32.mrf.mxu3  ;;  %v4584_v35 = vpop.permute.xlu2 %4583 }
 0x33e   : > { %v10536_v47 = vadd.f32 %v3682_v12, %v10481_v21 }
 0x33f   : > { %v3602_v38 = vpop.f32.mrf.mxu2 }
 0x340   : > { %v10539_v1 = vadd.f32 %v3602_v38, %v10463_v41  ;;  %v4424_v41 = vsel %vm4228_vm10, %v4413_v37, %v4415_v46 }
 0x341   : > { %v4453_v9 = vsel %vm1591_vm0, %v4424_v41, 0 }
 0x343   : > { %v3695_v16 = vpop.f32.mrf.mxu0  ;;  %v3708_v33 = vpop.f32.mrf.mxu1 }
 0x344   : > { %v10544_v55 = vadd.f32 %v3695_v16, %v10478_v2  ;;  %v10547_v63 = vadd.f32 %v3708_v33, %v10488_v0  ;;  %v4590_v2 = vpop.permute.xlu1 %4589  ;;  %v4586_v40 = vpop.permute.xlu0 %4585 }
 0x345   : > { %v3684_v42 = vpop.f32.mrf.mxu3  ;;  %v4604_v34 = vsel %vm4603_vm11, %v4584_v35, %v4586_v40  ;;  %v4605_v3 = vsel %vm4603_vm11, %v4586_v40, %v4588_v5  ;;  %v4592_v30 = vpop.permute.xlu2 %4591  ;;  %v4606_v8 = vsel %vm4603_vm11, %v4588_v5, %v4590_v2 }
 0x346   : > { %7850 = vmatmul.msk.bf16.vlgmr.msra.gmra.mxu0 %vm1630_vm1, %v10417_v60  ;;  %7851 = vmatmul.msk.bf16.vlgmr.msra.gmra.mxu1 %vm1630_vm1, %v10417_v60  ;;  %v4620_v31 = vsel %vm1591_vm0, %v4605_v3, 0  ;;  %v4623_v32 = vsel %vm1591_vm0, %v4606_v8, 0  ;;  %v8180_v8 = vmov 0  }
 0x347   : > { %v3604_v21 = vpop.f32.mrf.mxu2  ;;  %4527 = vmatpush.bf16.msra.mxu0 %v4444_v39  ;;  %4540 = vmatpush.bf16.msra.mxu1 %v4447_v58  ;;  %5015 = vst.msk [vmem:[#allocation3 + $0x20] sm:$0xff] %vm5014_vm13, %v8180_v8  ;;  %vm5062_vm13 = vcmask 789504  }
 0x348   : > { %8152 = vset.pattern.permute.xlu1 %v8180_v8  ;;  %8153 = vset.pattern.permute.xlu0 %v8180_v8  ;;  %5012 = vst.msk [vmem:[#allocation3] sm:$0xf] %vm5011_vm14, %v8180_v8 }
 0x34a   : > { %7853 = vmatmul.msk.bf16.vlgmr.msra.gmra.mxu3 %vm1630_vm1, %v10503_v4 }
 0x34b   : > { %4566 = vmatpush.bf16.msra.mxu3 %v4453_v9  ;;  %v3697_v48 = vpop.f32.mrf.mxu0  ;;  %v3710_v56 = vpop.f32.mrf.mxu1 }
 0x34c   : > { %7852 = vmatmul.msk.bf16.vlgmr.msra.gmra.mxu2 %vm1630_vm1, %v10417_v60  ;;  %v10571_v11 = vpop.permute.xlu1 %4581  ;;  %v4617_v60 = vsel %vm1591_vm0, %v4604_v34, 0 }
 0x34d   : > { %4553 = vmatpush.bf16.msra.mxu2 %v4450_v7  ;;  %v3734_v61 = vpop.f32.mrf.mxu3  ;;  %v4594_v23 = vpop.permute.xlu2 %4593 }
 0x34e   : > { %v10564_v0 = vadd.f32 %v3734_v61, %v10511_v19  ;;  %v4596_v19 = vpop.permute.xlu0 %4595  ;;  %v4608_v37 = vsel %vm4603_vm11, %v4592_v30, %v4594_v23 }
 0x34f   : > { %v3721_v26 = vpop.f32.mrf.mxu2  ;;  %v4609_v62 = vsel %vm4603_vm11, %v4594_v23, %v4596_v19  ;;  %v4629_v50 = vsel %vm1591_vm0, %v4608_v37, 0 }
 0x350   : > { %v10567_v22 = vadd.f32 %v3721_v26, %v10491_v20  ;;  %v4607_v20 = vsel %vm4603_vm11, %v4590_v2, %v4592_v30  ;;  %v4632_v18 = vsel %vm1591_vm0, %v4609_v62, 0 }
 0x353   : > { %v3747_v14 = vpop.f32.mrf.mxu0  ;;  %v3760_v59 = vpop.f32.mrf.mxu1 }
 0x354   : > { %v10576_v53 = vadd.f32 %v3747_v14, %v10508_v15  ;;  %v10579_v17 = vadd.f32 %v3760_v59, %v10516_v24  ;;  %v4626_v15 = vsel %vm1591_vm0, %v4607_v20, 0  ;;  %v4598_v24 = vpop.permute.xlu1 %4597 }
 0x355   : > { %v3736_v13 = vpop.f32.mrf.mxu3 }
 0x356   : > { %7854 = vmatmul.msk.bf16.vlgmr.msrb.gmra.mxu0 %vm1630_vm1, %v10503_v4  ;;  %7855 = vmatmul.msk.bf16.vlgmr.msrb.gmra.mxu1 %vm1630_vm1, %v10503_v4  ;;  %v4600_v10 = vpop.permute.xlu0 %4599 }
 0x357   : > { %v3723_v44 = vpop.f32.mrf.mxu2  ;;  %4663 = vmatpush.bf16.msrb.mxu1 %v4620_v31  ;;  %4650 = vmatpush.bf16.msrb.mxu0 %v4617_v60  ;;  %v4611_v38 = vsel %vm4603_vm11, %v4598_v24, %v4600_v10 }
 0x358   : > { %v4638_v51 = vsel %vm1591_vm0, %v4611_v38, 0 }
 0x35a   : > { %7857 = vmatmul.msk.bf16.vlgmr.msrb.gmra.mxu3 %vm1630_vm1, %v10503_v4 }
 0x35b   : > { %v3749_v54 = vpop.f32.mrf.mxu0  ;;  %v3762_v43 = vpop.f32.mrf.mxu1  ;;  %4689 = vmatpush.bf16.msrb.mxu3 %v4626_v15 }
 0x35c   : > { %7856 = vmatmul.msk.bf16.vlgmr.msrb.gmra.mxu2 %vm1630_vm1, %v10503_v4  ;;  %v4774_v46 = vpop.permute.xlu1 %4773 }
 0x35d   : > { %v3786_v52 = vpop.f32.mrf.mxu3  ;;  %4676 = vmatpush.bf16.msrb.mxu2 %v4623_v32 }
 0x35e   : > { %v10594_v36 = vadd.f32 %v3786_v52, %v10539_v1  ;;  %v4610_v1 = vsel %vm4603_vm11, %v4596_v19, %v4598_v24  ;;  %v4602_v16 = vpop.permute.xlu0 %4601  ;;  %v4956_v19 = vld [vmem:[%s11460_s6] sm:$0xff] }
 0x35f   : > { %v3773_v6 = vpop.f32.mrf.mxu2  ;;  %v4635_v49 = vsel %vm1591_vm0, %v4610_v1, 0  ;;  %v4612_v2 = vsel %vm4603_vm11, %v4600_v10, %v4602_v16  ;;  %4959 = vperm.xlu1 %8152, %v4956_v19  }
 0x360   : > { %v10597_v57 = vadd.f32 %v3773_v6, %v10519_v29 }
 0x363   : > { %v3872_v25 = vpop.f32.mrf.mxu0  ;;  %v3885_v28 = vpop.f32.mrf.mxu1 }
 0x364   : > { %v10604_v12 = vadd.f32 %v3872_v25, %v10536_v47  ;;  %v10607_v45 = vadd.f32 %v3885_v28, %v10544_v55  ;;  %v4776_v47 = vpop.permute.xlu2 %4775  ;;  %v10624_v41 = vpop.permute.xlu1 %4769 }
 0x365   : > { %v3788_v29 = vpop.f32.mrf.mxu3 }
 0x366   : > { %7858 = vmatmul.msk.bf16.vlgmr.msra.gmra.mxu0 %vm1630_vm1, %v10503_v4  ;;  %7859 = vmatmul.msk.bf16.vlgmr.msra.gmra.mxu1 %vm1630_vm1, %v10503_v4  ;;  %v4778_v56 = vpop.permute.xlu0 %4777 }
 0x367   : > { %v3775_v5 = vpop.f32.mrf.mxu2  ;;  %4715 = vmatpush.bf16.msra.mxu1 %v4632_v18  ;;  %4702 = vmatpush.bf16.msra.mxu0 %v4629_v50  ;;  %v4793_v26 = vsel %vm4603_vm11, %v4776_v47, %v4778_v56 }
 0x368   : > { %v4810_v3 = vsel %vm1591_vm0, %v4793_v26, 0 }
 0x36a   : > { %7861 = vmatmul.msk.bf16.vlgmr.msra.gmra.mxu3 %vm1630_vm1, %v10503_v4 }
 0x36b   : > { %v3874_v33 = vpop.f32.mrf.mxu0  ;;  %v3887_v55 = vpop.f32.mrf.mxu1  ;;  %4741 = vmatpush.bf16.msra.mxu3 %v4638_v51 }
 0x36c   : > { %7860 = vmatmul.msk.bf16.vlgmr.msra.gmra.mxu2 %vm1630_vm1, %v10503_v4  ;;  %v4772_v27 = vpop.permute.xlu2 %4771  ;;  %v4641_v4 = vsel %vm1591_vm0, %v4612_v2, 0  ;;  %v4782_v34 = vpop.permute.xlu1 %4781 }
 0x36d   : > { %v3911_v42 = vpop.f32.mrf.mxu3  ;;  %4728 = vmatpush.bf16.msra.mxu2 %v4635_v49  ;;  %v4791_v35 = vsel %vm4603_vm11, %v4772_v27, %v4774_v46 }
 0x36e   : > { %v10622_v39 = vadd.f32 %v3911_v42, %v10567_v22  ;;  %v4780_v20 = vpop.permute.xlu0 %4779 }
 0x36f   : > { %v3898_v58 = vpop.f32.mrf.mxu2  ;;  %v4794_v44 = vsel %vm4603_vm11, %v4778_v56, %v4780_v20  ;;  %v4795_v15 = vsel %vm4603_vm11, %v4780_v20, %v4782_v34 }
 0x370   : > { %v10627_v21 = vadd.f32 %v3898_v58, %v10547_v63  ;;  %v4804_v63 = vsel %vm1591_vm0, %v4791_v35, 0  ;;  %v4813_v6 = vsel %vm1591_vm0, %v4794_v44, 0  ;;  %v4816_v10 = vsel %vm1591_vm0, %v4795_v15, 0 }
 0x373   : > { %v3924_v9 = vpop.f32.mrf.mxu0  ;;  %v3937_v48 = vpop.f32.mrf.mxu1 }
 0x374   : > { %v10633_v7 = vadd.f32 %v3924_v9, %v10564_v0  ;;  %v10636_v40 = vadd.f32 %v3937_v48, %v10576_v53  ;;  %v4792_v0 = vsel %vm4603_vm11, %v4774_v46, %v4776_v47  ;;  %v4786_v43 = vpop.permute.xlu1 %4785  ;;  %v4784_v23 = vpop.permute.xlu2 %4783 }
 0x375   : > { %v3913_v61 = vpop.f32.mrf.mxu3  ;;  %v4807_v30 = vsel %vm1591_vm0, %v4792_v0, 0 }
 0x376   : > { %7862 = vmatmul.msk.bf16.vlgmr.msrb.gmra.mxu0 %vm1630_vm1, %v10571_v11  ;;  %7863 = vmatmul.msk.bf16.vlgmr.msrb.gmra.mxu1 %vm1630_vm1, %v10571_v11  ;;  %v4790_v29 = vpop.permute.xlu0 %4789 }
 0x377   : > { %v3900_v22 = vpop.f32.mrf.mxu2  ;;  %4837 = vmatpush.bf16.msrb.mxu1 %v4804_v63  ;;  %4754 = vmatpush.bf16.msrb.mxu0 %v4641_v4 }
 0x37a   : > { %7865 = vmatmul.msk.bf16.vlgmr.msrb.gmra.mxu3 %vm1630_vm1, %v10571_v11 }
 0x37b   : > { %4863 = vmatpush.bf16.msrb.mxu3 %v4810_v3  ;;  %v3926_v14 = vpop.f32.mrf.mxu0  ;;  %v3939_v59 = vpop.f32.mrf.mxu1 }
 0x37c   : > { %7864 = vmatmul.msk.bf16.vlgmr.msrb.gmra.mxu2 %vm1630_vm1, %v10571_v11  ;;  %v4788_v1 = vpop.permute.xlu2 %4787 }
 0x37d   : > { %4850 = vmatpush.bf16.msrb.mxu2 %v4807_v30  ;;  %v3963_v60 = vpop.f32.mrf.mxu3  ;;  %v4798_v5 = vsel %vm4603_vm11, %v4786_v43, %v4788_v1  ;;  %v4799_v47 = vsel %vm4603_vm11, %v4788_v1, %v4790_v29 }
 0x37e   : > { %v10653_v31 = vadd.f32 %v3963_v60, %v10597_v57  ;;  %v4797_v57 = vsel %vm4603_vm11, %v4784_v23, %v4786_v43  ;;  %v4825_v42 = vsel %vm1591_vm0, %v4798_v5, 0  ;;  %v4828_v58 = vsel %vm1591_vm0, %v4799_v47, 0 }
 0x37f   : > { %v3950_v53 = vpop.f32.mrf.mxu2  ;;  %v4822_v62 = vsel %vm1591_vm0, %v4797_v57, 0 }
 0x380   : > { %v3986_v13 = vadd.f32 %v3950_v53, %v10579_v17 }
 0x383   : > { %v3976_v32 = vpop.f32.mrf.mxu0  ;;  %v4089_v54 = vpop.f32.mrf.mxu1 }
 0x384   : > { %v3988_v17 = vadd.f32 %v3976_v32, %v10594_v36  ;;  %v10666_v24 = vadd.f32 %v4089_v54, %v10604_v12  ;;  %v4796_v36 = vsel %vm4603_vm11, %v4782_v34, %v4784_v23 }
 0x385   : > { %v3965_v52 = vpop.f32.mrf.mxu3  ;;  %v4819_v50 = vsel %vm1591_vm0, %v4796_v36, 0 }
 0x386   : > { %7866 = vmatmul.msk.bf16.vlgmr.msra.gmra.mxu0 %vm1630_vm1, %v10571_v11  ;;  %7867 = vmatmul.msk.bf16.vlgmr.msra.gmra.mxu1 %vm1630_vm1, %v10571_v11 }
 0x387   : > { %v3952_v37 = vpop.f32.mrf.mxu2  ;;  %4876 = vmatpush.bf16.msra.mxu0 %v4813_v6  ;;  %4889 = vmatpush.bf16.msra.mxu1 %v4816_v10 }
 0x38a   : > { %7869 = vmatmul.msk.bf16.vlgmr.msra.gmra.mxu3 %vm1630_vm1, %v10571_v11 }
 0x38b   : > { %4915 = vmatpush.bf16.msra.mxu3 %v4822_v62  ;;  %v3978_v25 = vpop.f32.mrf.mxu0  ;;  %v4091_v28 = vpop.f32.mrf.mxu1 }
 0x38c   : > { %7868 = vmatmul.msk.bf16.vlgmr.msra.gmra.mxu2 %vm1630_vm1, %v10571_v11 }
 0x38d   : > { %4902 = vmatpush.bf16.msra.mxu2 %v4819_v50  ;;  %v4115_v18 = vpop.f32.mrf.mxu3 }
 0x38e   : > { %v4199_v12 = vadd.f32 %v4115_v18, %v10627_v21 }
 0x38f   : > { %v4102_v38 = vpop.f32.mrf.mxu2 }
 0x390   : > { %v4198_v46 = vadd.f32 %v4102_v38, %v10607_v45 }
 0x393   : > { %v4128_v51 = vpop.f32.mrf.mxu0  ;;  %v4141_v49 = vpop.f32.mrf.mxu1 }
 0x394   : > { %v4200_v16 = vadd.f32 %v4128_v51, %v10622_v39  ;;  %v4201_v33 = vadd.f32 %v4141_v49, %v10633_v7 }
 0x395   : > { %v4117_v55 = vpop.f32.mrf.mxu3 }
 0x396   : > { %7870 = vmatmul.msk.bf16.vlgmr.msrb.gmra.mxu0 %vm1630_vm1, %v10571_v11  ;;  %7871 = vmatmul.msk.bf16.vlgmr.msrb.gmra.mxu1 %vm1630_vm1, %v10624_v41 }
 0x397   : > { %v4104_v45 = vpop.f32.mrf.mxu2  ;;  %4928 = vmatpush.bf16.msrb.mxu0 %v4825_v42  ;;  %4941 = vmatpush.bf16.msrb.mxu1 %v4828_v58 }
 0x39a   : > { %7873 = vmatmul.msk.bf16.vlgmr.msrb.gmra.mxu3 %vm1630_vm1, %v10624_v41 }
 0x39b   : > { %v4130_v39 = vpop.f32.mrf.mxu0  ;;  %v4143_v21 = vpop.f32.mrf.mxu1 }
 0x39c   : > { %7872 = vmatmul.msk.bf16.vlgmr.msrb.gmra.mxu2 %vm1630_vm1, %v10624_v41 }
 0x39d   : > { %v4167_v2 = vpop.f32.mrf.mxu3 }
 0x39e   : > { %v4203_v27 = vadd.f32 %v4167_v2, %v3986_v13 }
 0x39f   : > { %v4154_v35 = vpop.f32.mrf.mxu2 }
 0x3a0   : > { %v4202_v9 = vadd.f32 %v4154_v35, %v10636_v40 }
 0x3a3   : > { %v4180_v11 = vpop.f32.mrf.mxu0  ;;  %v4193_v48 = vpop.f32.mrf.mxu1 }
 0x3a4   : > { %v4204_v4 = vadd.f32 %v4180_v11, %v10653_v31  ;;  %v4205_v56 = vadd.f32 %v4193_v48, %v3988_v17 }
 0x3a5   : > { %v4169_v7 = vpop.f32.mrf.mxu3 }
 0x3a6   : > { %7874 = vmatmul.msk.bf16.vlgmr.msra.gmra.mxu0 %vm1630_vm1, %v10624_v41  ;;  %7875 = vmatmul.msk.bf16.vlgmr.msra.gmra.mxu1 %vm1630_vm1, %v10624_v41 }
 0x3a7   : > { %v4156_v61 = vpop.f32.mrf.mxu2 }
 0x3aa   : > { %7877 = vmatmul.msk.bf16.vlgmr.msra.gmra.mxu3 %vm1630_vm1, %v10624_v41 }
 0x3ab   : > { %v4182_v63 = vpop.f32.mrf.mxu0  ;;  %v4195_v26 = vpop.f32.mrf.mxu1 }
 0x3ac   : > { %7876 = vmatmul.msk.bf16.vlgmr.msra.gmra.mxu2 %vm1630_vm1, %v10624_v41 }
 0x3ad   : > { %v4290_v40 = vpop.f32.mrf.mxu3 }
 0x3ae   : > { %v4386_v22 = vadd.f32 %v4290_v40, %v4198_v46 }
 0x3af   : > { %v4277_v0 = vpop.f32.mrf.mxu2 }
 0x3b0   : > { %v4385_v34 = vadd.f32 %v4277_v0, %v10666_v24 }
 0x3b3   : > { %v4303_v3 = vpop.f32.mrf.mxu0  ;;  %v4316_v14 = vpop.f32.mrf.mxu1 }
 0x3b4   : > { %v4387_v59 = vadd.f32 %v4303_v3, %v4199_v12  ;;  %v4388_v30 = vadd.f32 %v4316_v14, %v4200_v16 }
 0x3b5   : > { %v4292_v60 = vpop.f32.mrf.mxu3 }
 0x3b6   : > { %7878 = vmatmul.msk.bf16.vlgmr.msrb.gmra.mxu0 %vm1630_vm1, %v10624_v41  ;;  %7879 = vmatmul.msk.bf16.vlgmr.msrb.gmra.mxu1 %vm1630_vm1, %v10624_v41 }
 0x3b7   : > { %v4279_v31 = vpop.f32.mrf.mxu2 }
 0x3bb   : > { %v4305_v53 = vpop.f32.mrf.mxu0  ;;  %v4318_v20 = vpop.f32.mrf.mxu1 }
 0x3bd   : > { %v4342_v13 = vpop.f32.mrf.mxu3 }
 0x3be   : > { %v4390_v19 = vadd.f32 %v4342_v13, %v4202_v9 }
 0x3bf   : > { %v4329_v44 = vpop.f32.mrf.mxu2 }
 0x3c0   : > { %v4389_v15 = vadd.f32 %v4329_v44, %v4201_v33 }
 0x3c3   : > { %v4355_v32 = vpop.f32.mrf.mxu0  ;;  %v4368_v54 = vpop.f32.mrf.mxu1 }
 0x3c4   : > { %v4391_v43 = vadd.f32 %v4355_v32, %v4203_v27  ;;  %v4392_v17 = vadd.f32 %v4368_v54, %v4204_v4 }
 0x3c5   : > { %v4344_v24 = vpop.f32.mrf.mxu3 }
 0x3c7   : > { %v4331_v52 = vpop.f32.mrf.mxu2 }
 0x3cb   : > { %v4357_v23 = vpop.f32.mrf.mxu0  ;;  %v4370_v6 = vpop.f32.mrf.mxu1 }
 0x3cd   : > { %v4464_v10 = vpop.f32.mrf.mxu3 }
 0x3ce   : > { %v4572_v57 = vadd.f32 %v4464_v10, %v4385_v34 }
 0x3cf   : > { %v4381_v37 = vpop.f32.mrf.mxu2 }
 0x3d0   : > { %v4393_v36 = vadd.f32 %v4381_v37, %v4205_v56 }
 0x3d1   : > { %v10723_v20 = vpop.permute.xlu1 %4959 }
 0x3d3   : > { %v4477_v41 = vpop.f32.mrf.mxu0  ;;  %v4490_v62 = vpop.f32.mrf.mxu1 }
 0x3d4   : > { %v4573_v25 = vadd.f32 %v4477_v41, %v4386_v22  ;;  %v4574_v28 = vadd.f32 %v4490_v62, %v4387_v59 }
 0x3d5   : > { %v4466_v50 = vpop.f32.mrf.mxu3 }
 0x3d7   : > { %v4383_v18 = vpop.f32.mrf.mxu2 }
 0x3db   : > { %v4479_v12 = vpop.f32.mrf.mxu0  ;;  %v4492_v38 = vpop.f32.mrf.mxu1 }
 0x3dd   : > { %v4516_v29 = vpop.f32.mrf.mxu3 }
 0x3de   : > { %v10713_v46 = vadd.f32 %v4516_v29, %v4389_v15 }
 0x3df   : > { %v4503_v1 = vpop.f32.mrf.mxu2 }
 0x3e0   : > { %v4575_v5 = vadd.f32 %v4503_v1, %v4388_v30 }
 0x3e3   : > { %v4529_v47 = vpop.f32.mrf.mxu0  ;;  %v4542_v51 = vpop.f32.mrf.mxu1 }
 0x3e4   : > { %v10715_v49 = vadd.f32 %v4529_v47, %v4390_v19  ;;  %v10717_v16 = vadd.f32 %v4542_v51, %v4391_v43  ;;  %v10728_v43 = vld [vmem:[%s11457_s3] sm:$0xff] }
 0x3e5   : > { %v4518_v33 = vpop.f32.mrf.mxu3  ;;  %v4984_v6 = vperm.slane %v10728_v43, 0  ;;  %v4986_v50 = vperm.slane %v10728_v43, 2  ;;  %v4987_v18 = vperm.slane %v10728_v43, 3 }
 0x3e7   : > { %v4505_v55 = vpop.f32.mrf.mxu2 }
 0x3eb   : > { %v4531_v42 = vpop.f32.mrf.mxu0  ;;  %v4544_v58 = vpop.f32.mrf.mxu1 }
 0x3ed   : > { %v4568_v45 = vpop.f32.mrf.mxu3 }
 0x3ee   : > { %v10719_v39 = vadd.f32 %v4568_v45, %v4393_v36  ;;  %v4985_v36 = vperm.slane %v10728_v43, 1 }
 0x3ef   : > { %v4555_v21 = vpop.f32.mrf.mxu2 }
 0x3f0   : > { %v10721_v2 = vadd.f32 %v4555_v21, %v4392_v17 }
 0x3f3   : > { %v4652_v27 = vpop.f32.mrf.mxu0  ;;  %v4665_v35 = vpop.f32.mrf.mxu1 }
 0x3f4   : > { %v4760_v31 = vadd.f32 %v4652_v27, %v4572_v57  ;;  %v4761_v32 = vadd.f32 %v4665_v35, %v4573_v25 }
 0x3f5   : > { %v4570_v9 = vpop.f32.mrf.mxu3 }
 0x3f7   : > { %v4557_v11 = vpop.f32.mrf.mxu2 }
 0x3fb   : > { %v4654_v48 = vpop.f32.mrf.mxu0  ;;  %v4667_v4 = vpop.f32.mrf.mxu1 }
 0x3fd   : > { %v4691_v56 = vpop.f32.mrf.mxu3 }
 0x3fe   : > { %v4763_v23 = vadd.f32 %v4691_v56, %v4575_v5 }
 0x3ff   : > { %v4678_v7 = vpop.f32.mrf.mxu2 }
 0x400   : > { %v4762_v44 = vadd.f32 %v4678_v7, %v4574_v28 }
 0x403   : > { %v4704_v61 = vpop.f32.mrf.mxu0  ;;  %v4717_v63 = vpop.f32.mrf.mxu1 }
 0x404   : > { %v4764_v5 = vadd.f32 %v4704_v61, %v10713_v46  ;;  %v4765_v48 = vadd.f32 %v4717_v63, %v10715_v49 }
 0x405   : > { %v4693_v26 = vpop.f32.mrf.mxu3 }
 0x406   : > { %v4988_v26 = vperm.slane %v10728_v43, 4 }
 0x407   : > { %v4680_v40 = vpop.f32.mrf.mxu2 }
 0x40b   : > { %v4706_v22 = vpop.f32.mrf.mxu0  ;;  %v4719_v0 = vpop.f32.mrf.mxu1 }
 0x40c   : > { %v4989_v0 = vperm.slane %v10728_v43, 5 }
 0x40d   : > { %v4743_v34 = vpop.f32.mrf.mxu3 }
 0x40e   : > { %v4767_v7 = vadd.f32 %v4743_v34, %v10721_v2  ;;  %v4991_v2 = vperm.slane %v10728_v43, 7 }
 0x40f   : > { %v4730_v3 = vpop.f32.mrf.mxu2 }
 0x410   : > { %v4766_v27 = vadd.f32 %v4730_v3, %v10717_v16 }
 0x413   : > { %v4756_v14 = vpop.f32.mrf.mxu0  ;;  %v4839_v59 = vpop.f32.mrf.mxu1 }
 0x414   : > { %v4947_v53 = vadd.f32 %v4839_v59, %v4760_v31  ;;  %v4768_v40 = vadd.f32 %v4756_v14, %v10719_v39  ;;  %v4990_v31 = vperm.slane %v10728_v43, 6 }
 0x415   : > { %v4745_v30 = vpop.f32.mrf.mxu3 }
 0x416   : > { %v4962_v17 = vadd.f32 %v10723_v20, %v4947_v53 }
 0x417   : > { %v4732_v60 = vpop.f32.mrf.mxu2 }
 0x418   : > { %v4971_v37 = vmax.f32 %v4962_v17, 0.0 }
 0x41a   : > { %v5002_v38 = vmul.f32 %v4984_v6, %v4971_v37 }
 0x41b   : > { %v4758_v13 = vpop.f32.mrf.mxu0  ;;  %v4841_v19 = vpop.f32.mrf.mxu1 }
 0x41c   : > { %v8154_v19 = vld [vmem:[%s11457_s3 + $0x8] ss:$0 sm:$0xff] }
 0x41d   : > { %v4865_v15 = vpop.f32.mrf.mxu3 }
 0x41e   : > { %v4949_v54 = vadd.f32 %v4865_v15, %v4762_v44 }
 0x41f   : > { %v4852_v24 = vpop.f32.mrf.mxu2 }
 0x420   : > { %v4948_v52 = vadd.f32 %v4852_v24, %v4761_v32  ;;  %v4964_v10 = vadd.f32 %v10723_v20, %v4949_v54 }
 0x422   : > { %v4963_v57 = vadd.f32 %v10723_v20, %v4948_v52  ;;  %v4973_v12 = vmax.f32 %v4964_v10, 0.0 }
 0x423   : > { %v4878_v41 = vpop.f32.mrf.mxu0  ;;  %v4891_v62 = vpop.f32.mrf.mxu1 }
 0x424   : > { %v4972_v25 = vmax.f32 %v4963_v57, 0.0  ;;  %v4950_v28 = vadd.f32 %v4878_v41, %v4763_v23  ;;  %v4951_v55 = vadd.f32 %v4891_v62, %v4764_v5  ;;  %v5004_v42 = vmul.f32 %v4986_v50, %v4973_v12 }
 0x425   : > { %v4867_v8 = vpop.f32.mrf.mxu3 }
 0x426   : > { %v5003_v29 = vmul.f32 %v4985_v36, %v4972_v25  ;;  %v4965_v1 = vadd.f32 %v10723_v20, %v4950_v28  ;;  %v4966_v9 = vadd.f32 %v10723_v20, %v4951_v55  ;;  %v5418_v8 = vld [vmem:[%s11461_s7] sm:$0x3] }
 0x427   : > { %v4854_v47 = vpop.f32.mrf.mxu2 }
 0x428   : > { %v5016_v51 = vpack.c.bf16 %v5003_v29, %v5002_v38  ;;  %v4974_v33 = vmax.f32 %v4965_v1, 0.0  ;;  %v4975_v61 = vmax.f32 %v4966_v9, 0.0 }
 0x42a   : > { %v5005_v58 = vmul.f32 %v4987_v18, %v4974_v33  ;;  %5026 = vrot.lane.b32.xlu2 %v5016_v51, %s8181_s27  ;;  %v5006_v60 = vmul.f32 %v4988_v26, %v4975_v61 }
 0x42b   : > { %v4880_v45 = vpop.f32.mrf.mxu0  ;;  %v4893_v21 = vpop.f32.mrf.mxu1 }
 0x42c   : > { %v5017_v35 = vpack.c.bf16 %v5005_v58, %v5004_v42 }
 0x42d   : > { %v4917_v11 = vpop.f32.mrf.mxu3 }
 0x42e   : > { %v4953_v46 = vadd.f32 %v4917_v11, %v4766_v27  ;;  %5028 = vrot.lane.b32.xlu0 %v5017_v35, %s8181_s27 }
 0x42f   : > { %v4904_v4 = vpop.f32.mrf.mxu2 }
 0x430   : > { %v4952_v56 = vadd.f32 %v4904_v4, %v4765_v48  ;;  %v4968_v16 = vadd.f32 %v10723_v20, %v4953_v46 }
 0x432   : > { %v4967_v22 = vadd.f32 %v10723_v20, %v4952_v56  ;;  %v4977_v53 = vmax.f32 %v4968_v16, 0.0 }
 0x433   : > { %v4930_v3 = vpop.f32.mrf.mxu0  ;;  %v4943_v49 = vpop.f32.mrf.mxu1 }
 0x434   : > { %v4976_v63 = vmax.f32 %v4967_v22, 0.0  ;;  %v4954_v59 = vadd.f32 %v4930_v3, %v4767_v7  ;;  %v4955_v30 = vadd.f32 %v4943_v49, %v4768_v40  ;;  %v5008_v17 = vmul.f32 %v4990_v31, %v4977_v53  ;;  %v6069_v53 = vld [vmem:[%s11461_s7] sm:$0x3] }
 0x435   : > { %v4919_v34 = vpop.f32.mrf.mxu3 }
 0x436   : > { %v5007_v13 = vmul.f32 %v4989_v0, %v4976_v63  ;;  %v4969_v39 = vadd.f32 %v10723_v20, %v4954_v59  ;;  %v4970_v14 = vadd.f32 %v10723_v20, %v4955_v30  ;;  %v10764_v20 = vld [vmem:[%s11461_s7] sm:$0x3] }
 0x437   : > { %v4906_v44 = vpop.f32.mrf.mxu2  ;;  %5071 = vst [vmem:[#allocation1] ss:$4 sm:$0xff] %v10764_v20  ;;  %v5635_v63 = vld [vmem:[%s11461_s7] sm:$0x3] }
 0x438   : > { %v5018_v15 = vpack.c.bf16 %v5007_v13, %v5006_v60  ;;  %v4978_v32 = vmax.f32 %v4969_v39, 0.0  ;;  %v4979_v54 = vmax.f32 %v4970_v14, 0.0  ;;  %v5852_v59 = vld [vmem:[%s11461_s7] sm:$0x3] }
 0x439   : > { %v6286_v44 = vld [vmem:[%s11461_s7] sm:$0x3] }
 0x43a   : > { %v5009_v24 = vmul.f32 %v4991_v2, %v4978_v32  ;;  %v5010_v52 = vmul.f32 %v8154_v19, %v4979_v54  ;;  %5030 = vrot.lane.b32.xlu1 %v5018_v15, %s8181_s27 }
 0x43b   : > { %v4932_v43 = vpop.f32.mrf.mxu0  ;;  %v4945_v23 = vpop.f32.mrf.mxu1 }
 0x43c   : > { %v5019_v6 = vpack.c.bf16 %v5009_v24, %v5008_v17  ;;  %v5020_v10 = vpack.c.bf16 %v5010_v52, %v5010_v52 }
 0x43e   : > { %5032 = vrot.lane.b32.xlu2 %v5019_v6, %s8181_s27  ;;  %5034 = vrot.lane.b32.xlu0 %v5020_v10, %s8181_s27  ;;  %v5072_v37 = vld.sshfl [vmem:[#allocation1] sm:$0xff pattern:$0x73625140] }
 0x43f   : > { %5425 = vst [vmem:[#allocation1] ss:$4 sm:$0xff] %v5418_v8  ;;  %v6508_v10 = vld [vmem:[%s11461_s7] sm:$0x3] }
 0x446   : > { %5074 = vrot.lane.b32.xlu0 %v5072_v37, %s8164_s23  ;;  %v5426_v49 = vld.sshfl [vmem:[#allocation1] sm:$0xff pattern:$0x73625140] }
 0x447   : > { %5642 = vst [vmem:[#allocation1] ss:$4 sm:$0xff] %v5635_v63 }
 0x44e   : > { %v5643_v30 = vld.sshfl [vmem:[#allocation1] sm:$0xff pattern:$0x73625140] }
 0x44f   : > { %5859 = vst [vmem:[#allocation1] ss:$4 sm:$0xff] %v5852_v59 }
 0x456   : > { %v5860_v34 = vld.sshfl [vmem:[#allocation1] sm:$0xff pattern:$0x73625140] }
 0x457   : > { %6076 = vst [vmem:[#allocation1] ss:$4 sm:$0xff] %v6069_v53 }
 0x45e   : > { %v6077_v19 = vld.sshfl [vmem:[#allocation1] sm:$0xff pattern:$0x73625140] }
 0x45f   : > { %6293 = vst [vmem:[#allocation1] ss:$4 sm:$0xff] %v6286_v44 }
 0x466   : > { %v10891_v6 = vld.sshfl [vmem:[#allocation1] sm:$0xff pattern:$0x73625140] }
 0x467   : > { %6515 = vst [vmem:[#allocation1] ss:$4 sm:$0xff] %v6508_v10 }
 0x484   : > { %v5027_v57 = vpop.permute.xlu2 %5026 }
 0x485   : > { %v5036_v36 = vrot.slane %v5027_v57, 4 }
 0x487   : > { %v5041_v41 = vsel %vm5040_vm4, %v5036_v36, %v5027_v57 }
 0x488   : > { %5058 = vst.msk [vmem:[#allocation3] sm:$0xff] %vm5057_vm12, %v5041_v41 }
 0x48f   : > { %v5065_v62 = vld [vmem:[#allocation3] sm:$0xff] }
 0x490   : > { %v5081_v25 = vunpack.c.l.b16 %v5065_v62  ;;  %v5082_v28 = vunpack.c.h.b16 %v5065_v62 }
 0x492   : > { %v10769_v50 = vpack.c.b16 %v5081_v25, %v5081_v25  ;;  %v10771_v18 = vpack.c.b16 %v5082_v28, %v5082_v28 }
 0x494   : > { %5099 = vrot.lane.b32.xlu1 %v10769_v50, %s8165_s21  ;;  %5101 = vrot.lane.b32.xlu2 %v10771_v18, %s8165_s21 }
 0x498   : > { %v5033_v51 = vpop.permute.xlu2 %5032 }
 0x499   : > { %v5039_v42 = vrot.slane %v5033_v51, 4 }
 0x4a0   : > { %v5029_v12 = vpop.permute.xlu0 %5028 }
 0x4a1   : > { %v5037_v38 = vrot.slane %v5029_v12, 4 }
 0x4a3   : > { %v5043_v29 = vsel %vm1591_vm0, %v5036_v36, %v5037_v38 }
 0x4a4   : > { %v5044_v1 = vsel %vm5040_vm4, %v5043_v29, %v5029_v12 }
 0x4a5   : > { %v5083_v5 = vunpack.c.l.b16 %v5044_v1  ;;  %v5084_v33 = vunpack.c.h.b16 %v5044_v1 }
 0x4a7   : > { %v10782_v47 = vpack.c.b16 %v5083_v5, %v5083_v5  ;;  %v10788_v27 = vpack.c.b16 %v5084_v33, %v5084_v33 }
 0x4a9   : > { %5103 = vrot.lane.b32.xlu1 %v10782_v47, %s8165_s21  ;;  %v5281_v63 = vsel %vm1591_vm0, %v10782_v47, 0 }
 0x4ac   : > { %v5031_v55 = vpop.permute.xlu1 %5030 }
 0x4ad   : > { %v5038_v58 = vrot.slane %v5031_v55, 4 }
 0x4af   : > { %v5045_v45 = vsel %vm1591_vm0, %v5037_v38, %v5038_v58  ;;  %v5047_v21 = vsel %vm1591_vm0, %v5038_v58, %v5039_v42 }
 0x4b0   : > { %v5046_v35 = vsel %vm5040_vm4, %v5045_v45, %v5031_v55  ;;  %v5048_v9 = vsel %vm5040_vm4, %v5047_v21, %v5033_v51  ;;  %v5035_v11 = vpop.permute.xlu0 %5034  ;;  %v5275_v45 = vsel %vm1591_vm0, %v10769_v50, 0 }
 0x4b1   : > { %v5049_v48 = vsel %vm5040_vm4, %v5039_v42, %v5035_v11  ;;  %5105 = vrot.lane.b32.xlu1 %v10788_v27, %s8165_s21  ;;  %v5086_v46 = vunpack.c.h.b16 %v5046_v35  ;;  %v5085_v4 = vunpack.c.l.b16 %v5046_v35  ;;  %v5088_v61 = vunpack.c.h.b16 %v5048_v9  ;;  %v6516_v35 = vld.sshfl [vmem:[#allocation1] sm:$0xff pattern:$0x73625140] }
 0x4b2   : > { %5063 = vst.msk [vmem:[#allocation3 + $0x20] sm:$0xf] %vm5062_vm13, %v5049_v48  ;;  %v5087_v40 = vunpack.c.l.b16 %v5048_v9  ;;  %v6730_v9 = vld [vmem:[%s11461_s7] sm:$0x3] }
 0x4b3   : > { %v10795_v56 = vpack.c.b16 %v5086_v46, %v5086_v46  ;;  %v10797_v7 = vpack.c.b16 %v5085_v4, %v5085_v4  ;;  %v10803_v26 = vpack.c.b16 %v5088_v61, %v5088_v61  ;;  %6737 = vst [vmem:[#allocation1] ss:$4 sm:$0xff] %v6730_v9  ;;  %v5278_v46 = vsel %vm1591_vm0, %v10771_v18, 0 }
 0x4b4   : > { %v10807_v22 = vpack.c.b16 %v5087_v40, %v5087_v40 }
 0x4b5   : > { %5109 = vrot.lane.b32.xlu0 %v10795_v56, %s8165_s21  ;;  %5107 = vrot.lane.b32.xlu2 %v10797_v7, %s8165_s21  ;;  %v5287_v61 = vsel %vm1591_vm0, %v10797_v7, 0 }
 0x4b8   : > { %v10880_v43 = vpop.permute.xlu0 %5074 }
 0x4b9   : > { %5113 = vrot.lane.b32.xlu1 %v10803_v26, %s8165_s21  ;;  %v5069_v16 = vld [vmem:[#allocation3 + $0x20] sm:$0xf] }
 0x4ba   : > { %v5089_v0 = vunpack.c.l.b16 %v5069_v16  ;;  %v5423_v60 = vld [vmem:[#allocation3 + $0x20] sm:$0xf] }
 0x4bb   : > { %v5443_v31 = vunpack.c.l.b16 %v5423_v60  ;;  %v5640_v13 = vld [vmem:[#allocation3 + $0x20] sm:$0xf]  ;;  %v5293_v60 = vsel %vm1591_vm0, %v10807_v22, 0 }
 0x4bc   : > { %v10811_v3 = vpack.c.b16 %v5089_v0, %v5089_v0  ;;  %v5660_v39 = vunpack.c.l.b16 %v5640_v13  ;;  %v5857_v54 = vld [vmem:[#allocation3 + $0x20] sm:$0xf] }
 0x4bd   : > { %5111 = vrot.lane.b32.xlu2 %v10807_v22, %s8165_s21  ;;  %v5452_v2 = vpack.c.b16 %v5443_v31, %v5443_v31  ;;  %v5877_v52 = vunpack.c.l.b16 %v5857_v54  ;;  %v6074_v57 = vld [vmem:[#allocation3 + $0x20] sm:$0xf] }
 0x4be   : > { %5115 = vrot.lane.b32.xlu0 %v10811_v3, %s8165_s21  ;;  %v5669_v14 = vpack.c.b16 %v5660_v39, %v5660_v39  ;;  %v6094_v36 = vunpack.c.l.b16 %v6074_v57  ;;  %v5299_v13 = vsel %vm1591_vm0, %v10811_v3, 0 }
 0x4bf   : > { %v5886_v23 = vpack.c.b16 %v5877_v52, %v5877_v52 }
 0x4c0   : > { %v6103_v28 = vpack.c.b16 %v6094_v36, %v6094_v36 }
 0x4c1   : > { %5455 = vrot.lane.b32.xlu1 %v10771_v18, %s8166_s12 }
 0x4c5   : > { %5457 = vrot.lane.b32.xlu2 %v10782_v47, %s8166_s12 }
 0x4c6   : > { %5459 = vrot.lane.b32.xlu0 %v10788_v27, %s8166_s12 }
 0x4c9   : > { %5461 = vrot.lane.b32.xlu1 %v10797_v7, %s8166_s12 }
 0x4cd   : > { %5428 = vrot.lane.b32.xlu2 %v5426_v49, %s8167_s13  ;;  %v5284_v49 = vsel %vm1591_vm0, %v10788_v27, 0 }
 0x4ce   : > { %5453 = vrot.lane.b32.xlu0 %v10769_v50, %s8166_s12 }
 0x4d1   : > { %5463 = vrot.lane.b32.xlu1 %v10795_v56, %s8166_s12 }
 0x4d5   : > { %5465 = vrot.lane.b32.xlu2 %v10807_v22, %s8166_s12 }
 0x4d6   : > { %5467 = vrot.lane.b32.xlu0 %v10803_v26, %s8166_s12 }
 0x4d9   : > { %5674 = vrot.lane.b32.xlu1 %v10782_v47, %s8168_s14 }
 0x4dd   : > { %5469 = vrot.lane.b32.xlu2 %v5452_v2, %s8166_s12  ;;  %v5296_v2 = vsel %vm1591_vm0, %v10803_v26, 0 }
 0x4de   : > { %5672 = vrot.lane.b32.xlu0 %v10771_v18, %s8168_s14 }
 0x4e1   : > { %5676 = vrot.lane.b32.xlu1 %v10788_v27, %s8168_s14 }
 0x4e5   : > { %5670 = vrot.lane.b32.xlu2 %v10769_v50, %s8168_s14 }
 0x4e6   : > { %5645 = vrot.lane.b32.xlu0 %v5643_v30, %s8169_s15  ;;  %v5290_v30 = vsel %vm1591_vm0, %v10795_v56, 0 }
 0x4e9   : > { %5678 = vrot.lane.b32.xlu1 %v10797_v7, %s8168_s14 }
 0x4ed   : > { %5680 = vrot.lane.b32.xlu2 %v10795_v56, %s8168_s14 }
 0x4ee   : > { %5682 = vrot.lane.b32.xlu0 %v10807_v22, %s8168_s14  ;;  %v5102_v15 = vpop.permute.xlu2 %5101 }
 0x4f1   : > { %5889 = vrot.lane.b32.xlu1 %v10771_v18, %s8170_s16 }
 0x4f5   : > { %5684 = vrot.lane.b32.xlu2 %v10803_v26, %s8168_s14 }
 0x4f6   : > { %5887 = vrot.lane.b32.xlu0 %v10769_v50, %s8170_s16 }
 0x4f9   : > { %5891 = vrot.lane.b32.xlu1 %v10782_v47, %s8170_s16 }
 0x4fd   : > { %5686 = vrot.lane.b32.xlu2 %v5669_v14, %s8168_s14 }
 0x4fe   : > { %5862 = vrot.lane.b32.xlu0 %v5860_v34, %s8171_s17  ;;  %v6291_v34 = vld [vmem:[#allocation3 + $0x20] sm:$0xff] }
 0x4ff   : > { %v6311_v39 = vunpack.c.l.b16 %v6291_v34 }
 0x501   : > { %5893 = vrot.lane.b32.xlu1 %v10788_v27, %s8170_s16 }
 0x505   : > { %5895 = vrot.lane.b32.xlu2 %v10797_v7, %s8170_s16 }
 0x506   : > { %v5100_v32 = vpop.permute.xlu1 %5099  ;;  %5897 = vrot.lane.b32.xlu0 %v10795_v56, %s8170_s16 }
 0x507   : > { %v5117_v17 = vsel %vm1971_vm2, %v5100_v32, %v5102_v15 }
 0x508   : > { %v5129_v24 = vsel %vm1591_vm0, %v5117_v17, 0 }
 0x509   : > { %5162 = vmatpush.bf16.msrb.mxu2 %v5129_v24  ;;  %5901 = vrot.lane.b32.xlu1 %v10803_v26, %s8170_s16 }
 0x50c   : > { %7880 = vmatmul.msk.bf16.vlgmr.msrb.gmra.mxu2 %vm1630_vm1, %v10880_v43 }
 0x50d   : > { %5899 = vrot.lane.b32.xlu2 %v10807_v22, %s8170_s16 }
 0x50e   : > { %5903 = vrot.lane.b32.xlu0 %v5886_v23, %s8170_s16  ;;  %v6312_v23 = vunpack.c.h.b16 %v6291_v34 }
 0x50f   : > { %v5108_v62 = vpop.permute.xlu2 %5107 }
 0x511   : > { %6110 = vrot.lane.b32.xlu1 %v10788_v27, %s8172_s29 }
 0x515   : > { %6104 = vrot.lane.b32.xlu2 %v10769_v50, %s8172_s29 }
 0x516   : > { %6106 = vrot.lane.b32.xlu0 %v10771_v18, %s8172_s29 }
 0x517   : > { %v5112_v5 = vpop.permute.xlu2 %5111 }
 0x519   : > { %6108 = vrot.lane.b32.xlu1 %v10782_v47, %s8172_s29 }
 0x51b   : > { %v5104_v37 = vpop.permute.xlu1 %5103 }
 0x51c   : > { %v5118_v41 = vsel %vm1971_vm2, %v5102_v15, %v5104_v37 }
 0x51d   : > { %v5132_v25 = vsel %vm1591_vm0, %v5118_v41, 0  ;;  %6112 = vrot.lane.b32.xlu2 %v10797_v7, %s8172_s29 }
 0x51e   : > { %5175 = vmatpush.bf16.msrb.mxu3 %v5132_v25  ;;  %6079 = vrot.lane.b32.xlu0 %v6077_v19, %s8173_s18  ;;  %v10984_v19 = vpack.c.b16 %v6311_v39, %v6311_v39 }
 0x51f   : > { %v5458_v31 = vpop.permute.xlu2 %5457 }
 0x521   : > { %6120 = vrot.lane.b32.xlu1 %v6103_v28, %s8172_s29  ;;  %7881 = vmatmul.msk.bf16.vlgmr.msrb.gmra.mxu3 %vm1630_vm1, %v10880_v43 }
 0x523   : > { %v5106_v8 = vpop.permute.xlu1 %5105 }
 0x524   : > { %v5119_v12 = vsel %vm1971_vm2, %v5104_v37, %v5106_v8  ;;  %v5120_v38 = vsel %vm1971_vm2, %v5106_v8, %v5108_v62  ;;  %v6322_v37 = vpack.c.b16 %v6312_v23, %v6312_v23 }
 0x525   : > { %v5135_v29 = vsel %vm1591_vm0, %v5119_v12, 0  ;;  %v5138_v1 = vsel %vm1591_vm0, %v5120_v38, 0  ;;  %6114 = vrot.lane.b32.xlu2 %v10795_v56, %s8172_s29 }
 0x526   : > { %5188 = vmatpush.bf16.msra.mxu0 %v5135_v29  ;;  %5201 = vmatpush.bf16.msra.mxu1 %v5138_v1 }
 0x527   : > { %6118 = vrot.lane.b32.xlu0 %v10803_v26, %s8172_s29  ;;  %v5110_v51 = vpop.permute.xlu0 %5109  ;;  %v10987_v15 = vpop.permute.xlu2 %5428 }
 0x528   : > { %v5121_v33 = vsel %vm1971_vm2, %v5108_v62, %v5110_v51  ;;  %v5122_v55 = vsel %vm1971_vm2, %v5110_v51, %v5112_v5 }
 0x529   : > { %v5141_v42 = vsel %vm1591_vm0, %v5121_v33, 0  ;;  %v5144_v58 = vsel %vm1591_vm0, %v5122_v55, 0  ;;  %6329 = vrot.lane.b32.xlu1 %v10788_v27, %s8174_s19  ;;  %7882 = vmatmul.msk.bf16.vlgmr.msra.gmra.mxu0 %vm1630_vm1, %v10880_v43 }
 0x52a   : > { %7883 = vmatmul.msk.bf16.vlgmr.msra.gmra.mxu1 %vm1630_vm1, %v10880_v43  ;;  %5214 = vmatpush.bf16.msra.mxu2 %v5141_v42 }
 0x52b   : > { %5227 = vmatpush.bf16.msra.mxu3 %v5144_v58  ;;  %v5114_v21 = vpop.permute.xlu1 %5113 }
 0x52c   : > { %v5123_v11 = vsel %vm1971_vm2, %v5112_v5, %v5114_v21 }
 0x52d   : > { %v5147_v48 = vsel %vm1591_vm0, %v5123_v11, 0  ;;  %6116 = vrot.lane.b32.xlu2 %v10807_v22, %s8172_s29  ;;  %7884 = vmatmul.msk.bf16.vlgmr.msra.gmra.mxu2 %vm1630_vm1, %v10880_v43  ;;  %s11465_s29 = smov 64  }
 0x52e   : > { %5240 = vmatpush.bf16.msrb.mxu0 %v5147_v48 }
 0x52f   : > { %5308 = vmatpush.bf16.msrb.mxu3 %v5275_v45  ;;  %6327 = vrot.lane.b32.xlu0 %v10782_v47, %s8174_s19 }
 0x530   : > { %v5116_v4 = vpop.permute.xlu0 %5115 }
 0x531   : > { %6323 = vrot.lane.b32.xlu1 %v10769_v50, %s8174_s19  ;;  %7885 = vmatmul.msk.bf16.vlgmr.msra.gmra.mxu3 %vm1630_vm1, %v10880_v43  ;;  %v5124_v40 = vsel %vm1971_vm2, %v5114_v21, %v5116_v4  ;;  %v5153_v16 = vsel %vm1591_vm0, %v5116_v4, 0 }
 0x532   : > { %5321 = vmatpush.bf16.msra.mxu0 %v5278_v46  ;;  %v5150_v0 = vsel %vm1591_vm0, %v5124_v40, 0  ;;  %5266 = vmatpush.bf16.msrb.mxu2 %v5153_v16 }
 0x533   : > { %5360 = vmatpush.bf16.msra.mxu3 %v5287_v61  ;;  %5253 = vmatpush.bf16.msrb.mxu1 %v5150_v0  ;;  %v5456_v53 = vpop.permute.xlu1 %5455 }
 0x534   : > { %v5472_v32 = vsel %vm2343_vm5, %v5456_v53, %v5458_v31 }
 0x535   : > { %6325 = vrot.lane.b32.xlu2 %v10771_v18, %s8174_s19  ;;  %v5486_v17 = vsel %vm1591_vm0, %v5472_v32, 0 }
 0x536   : > { %5347 = vmatpush.bf16.msra.mxu2 %v5284_v49 }
 0x537   : > { %5334 = vmatpush.bf16.msra.mxu1 %v5281_v63  ;;  %6296 = vrot.lane.b32.xlu0 %v10891_v6, %s8175_s20  ;;  %v5466_v6 = vpop.permute.xlu2 %5465 }
 0x538   : > { %v5460_v59 = vpop.permute.xlu0 %5459 }
 0x539   : > { %6337 = vrot.lane.b32.xlu1 %v10803_v26, %s8174_s19  ;;  %7886 = vmatmul.msk.bf16.vlgmr.msrb.gmra.mxu0 %vm1630_vm1, %v10880_v43  ;;  %v5473_v24 = vsel %vm2343_vm5, %v5458_v31, %v5460_v59 }
 0x53a   : > { %7887 = vmatmul.msk.bf16.vlgmr.msrb.gmra.mxu1 %vm1630_vm1, %v10880_v43  ;;  %5373 = vmatpush.bf16.msrb.mxu0 %v5290_v30  ;;  %v5489_v52 = vsel %vm1591_vm0, %v5473_v24, 0 }
 0x53b   : > { %5386 = vmatpush.bf16.msrb.mxu1 %v5293_v60  ;;  %v5462_v54 = vpop.permute.xlu1 %5461 }
 0x53d   : > { %6331 = vrot.lane.b32.xlu2 %v10797_v7, %s8174_s19  ;;  %7888 = vmatmul.msk.bf16.vlgmr.msrb.gmra.mxu2 %vm1630_vm1, %v10880_v43  ;;  %v5474_v43 = vsel %vm2343_vm5, %v5460_v59, %v5462_v54 }
 0x53e   : > { %5399 = vmatpush.bf16.msrb.mxu2 %v5296_v2  ;;  %v5492_v10 = vsel %vm1591_vm0, %v5474_v43, 0 }
 0x53f   : > { %6335 = vrot.lane.b32.xlu0 %v10807_v22, %s8174_s19  ;;  %v5470_v12 = vpop.permute.xlu2 %5469 }
 0x540   : > { %v5454_v14 = vpop.permute.xlu0 %5453  ;;  %v5507_v42 = vsel %vm1591_vm0, %v5470_v12, 0 }
 0x541   : > { %6547 = vrot.lane.b32.xlu1 %v10771_v18, %s8176_s11  ;;  %7889 = vmatmul.msk.bf16.vlgmr.msrb.gmra.mxu3 %vm1630_vm1, %v10764_v20  ;;  %v5471_v44 = vsel %vm2343_vm5, %v5454_v14, %v5456_v53 }
 0x542   : > { %5412 = vmatpush.bf16.msrb.mxu3 %v5299_v13  ;;  %v5483_v3 = vsel %vm1591_vm0, %v5471_v44, 0 }
 0x543   : > { %v5464_v57 = vpop.permute.xlu1 %5463 }
 0x544   : > { %v5475_v36 = vsel %vm2343_vm5, %v5462_v54, %v5464_v57  ;;  %v5476_v41 = vsel %vm2343_vm5, %v5464_v57, %v5466_v6 }
 0x545   : > { %6333 = vrot.lane.b32.xlu2 %v10795_v56, %s8174_s19  ;;  %v5495_v25 = vsel %vm1591_vm0, %v5475_v36, 0  ;;  %v5498_v28 = vsel %vm1591_vm0, %v5476_v41, 0 }
 0x547   : > { %6339 = vrot.lane.b32.xlu0 %v10984_v19, %s8174_s19  ;;  %v5671_v33 = vpop.permute.xlu2 %5670 }
 0x548   : > { %v5468_v62 = vpop.permute.xlu0 %5467 }
 0x549   : > { %6518 = vrot.lane.b32.xlu1 %v6516_v35, %s8177_s22  ;;  %7890 = vmatmul.msk.bf16.vlgmr.msra.gmra.mxu0 %vm1630_vm1, %v10764_v20  ;;  %v5477_v8 = vsel %vm2343_vm5, %v5466_v6, %v5468_v62  ;;  %v5478_v29 = vsel %vm2343_vm5, %v5468_v62, %v5470_v12 }
 0x54a   : > { %7891 = vmatmul.msk.bf16.vlgmr.msra.gmra.mxu1 %vm1630_vm1, %v10764_v20  ;;  %5516 = vmatpush.bf16.msra.mxu0 %v5483_v3  ;;  %v5501_v38 = vsel %vm1591_vm0, %v5477_v8, 0  ;;  %v5504_v5 = vsel %vm1591_vm0, %v5478_v29, 0 }
 0x54b   : > { %5529 = vmatpush.bf16.msra.mxu1 %v5486_v17  ;;  %v5675_v1 = vpop.permute.xlu1 %5674 }
 0x54d   : > { %6549 = vrot.lane.b32.xlu2 %v10782_v47, %s8176_s11  ;;  %7892 = vmatmul.msk.bf16.vlgmr.msra.gmra.mxu2 %vm1630_vm1, %v10764_v20 }
 0x54e   : > { %5542 = vmatpush.bf16.msra.mxu2 %v5489_v52 }
 0x54f   : > { %6545 = vrot.lane.b32.xlu0 %v10769_v50, %s8176_s11  ;;  %v5681_v35 = vpop.permute.xlu2 %5680 }
 0x550   : > { %v5673_v51 = vpop.permute.xlu0 %5672 }
 0x551   : > { %6555 = vrot.lane.b32.xlu1 %v10795_v56, %s8176_s11  ;;  %7893 = vmatmul.msk.bf16.vlgmr.msra.gmra.mxu3 %vm1630_vm1, %v10764_v20  ;;  %v5688_v55 = vsel %vm2712_vm6, %v5671_v33, %v5673_v51 }
 0x552   : > { %5555 = vmatpush.bf16.msra.mxu3 %v5492_v10  ;;  %v5700_v45 = vsel %vm1591_vm0, %v5688_v55, 0 }
 0x553   : > { %v5677_v58 = vpop.permute.xlu1 %5676 }
 0x555   : > { %6341 = vrot.lane.b32.xlu2 %v6322_v37, %s8174_s19 }
 0x557   : > { %6551 = vrot.lane.b32.xlu0 %v10788_v27, %s8176_s11  ;;  %v5685_v61 = vpop.permute.xlu2 %5684 }
 0x558   : > { %v11055_v21 = vpop.permute.xlu0 %5645 }
 0x559   : > { %6559 = vrot.lane.b32.xlu1 %v10803_v26, %s8176_s11  ;;  %7894 = vmatmul.msk.bf16.vlgmr.msrb.gmra.mxu0 %vm1630_vm1, %v10764_v20 }
 0x55a   : > { %7895 = vmatmul.msk.bf16.vlgmr.msrb.gmra.mxu1 %vm1630_vm1, %v10764_v20  ;;  %5568 = vmatpush.bf16.msrb.mxu0 %v5495_v25 }
 0x55b   : > { %5581 = vmatpush.bf16.msrb.mxu1 %v5498_v28  ;;  %v5679_v11 = vpop.permute.xlu1 %5678 }
 0x55c   : > { %v5691_v48 = vsel %vm2712_vm6, %v5677_v58, %v5679_v11  ;;  %v5692_v46 = vsel %vm2712_vm6, %v5679_v11, %v5681_v35 }
 0x55d   : > { %6557 = vrot.lane.b32.xlu2 %v10807_v22, %s8176_s11  ;;  %7896 = vmatmul.msk.bf16.vlgmr.msrb.gmra.mxu2 %vm1630_vm1, %v10764_v20  ;;  %v5709_v40 = vsel %vm1591_vm0, %v5691_v48, 0 }
 0x55e   : > { %5594 = vmatpush.bf16.msrb.mxu2 %v5501_v38 }
 0x55f   : > { %6553 = vrot.lane.b32.xlu0 %v10797_v7, %s8176_s11  ;;  %v5687_v59 = vpop.permute.xlu2 %5686 }
 0x560   : > { %v5683_v4 = vpop.permute.xlu0 %5682  ;;  %v5724_v31 = vsel %vm1591_vm0, %v5687_v59, 0 }
 0x561   : > { %6561 = vrot.lane.b32.xlu1 %v10984_v19, %s8176_s11  ;;  %7897 = vmatmul.msk.bf16.vlgmr.msrb.gmra.mxu3 %vm1630_vm1, %v10764_v20  ;;  %v5689_v20 = vsel %vm2712_vm6, %v5673_v51, %v5675_v1 }
 0x562   : > { %5607 = vmatpush.bf16.msrb.mxu3 %v5504_v5 }
 0x563   : > { %v5890_v0 = vpop.permute.xlu1 %5889 }
 0x565   : > { %6767 = vrot.lane.b32.xlu2 %v10769_v50, %s8178_s24  ;;  %v6738_v50 = vld.sshfl [vmem:[#allocation1] sm:$0xff pattern:$0x73625140] }
 0x567   : > { %6769 = vrot.lane.b32.xlu0 %v10771_v18, %s8178_s24  ;;  %v5703_v18 = vsel %vm1591_vm0, %v5689_v20, 0  ;;  %v5896_v39 = vpop.permute.xlu2 %5895 }
 0x568   : > { %v5888_v63 = vpop.permute.xlu0 %5887 }
 0x569   : > { %6771 = vrot.lane.b32.xlu1 %v10782_v47, %s8178_s24  ;;  %7898 = vmatmul.msk.bf16.vlgmr.msra.gmra.mxu0 %vm1630_vm1, %v10987_v15  ;;  %v5690_v47 = vsel %vm2712_vm6, %v5675_v1, %v5677_v58  ;;  %v5905_v2 = vsel %vm3081_vm7, %v5888_v63, %v5890_v0 }
 0x56a   : > { %7899 = vmatmul.msk.bf16.vlgmr.msra.gmra.mxu1 %vm1630_vm1, %v10987_v15  ;;  %5620 = vmatpush.bf16.msra.mxu0 %v5507_v42  ;;  %v5706_v9 = vsel %vm1591_vm0, %v5690_v47, 0 }
 0x56b   : > { %5733 = vmatpush.bf16.msra.mxu1 %v5700_v45  ;;  %v5892_v60 = vpop.permute.xlu1 %5891 }
 0x56c   : > { %v5906_v53 = vsel %vm3081_vm7, %v5890_v0, %v5892_v60 }
 0x56d   : > { %6563 = vrot.lane.b32.xlu2 %v6322_v37, %s8176_s11  ;;  %7900 = vmatmul.msk.bf16.vlgmr.msra.gmra.mxu2 %vm1630_vm1, %v10987_v15  ;;  %v5920_v14 = vsel %vm1591_vm0, %v5906_v53, 0  ;;  %s8125_s11 = smul.u32 36, %s11467_s10 }
 0x56e   : > { %5746 = vmatpush.bf16.msra.mxu2 %v5703_v18 }
 0x56f   : > { %6740 = vrot.lane.b32.xlu0 %v6738_v50, %s11465_s29  ;;  %v5900_v52 = vpop.permute.xlu2 %5899  ;;  %s11429_s27 = scalar_lea.vmem %s11463_s9, %s8125_s11 }
 0x570   : > { %v11102_v34 = vpop.permute.xlu0 %5862 }
 0x571   : > { %6773 = vrot.lane.b32.xlu1 %v10788_v27, %s8178_s24  ;;  %7901 = vmatmul.msk.bf16.vlgmr.msra.gmra.mxu3 %vm1630_vm1, %v10987_v15  ;;  %v5712_v27 = vsel %vm1591_vm0, %v5692_v46, 0 }
 0x572   : > { %5759 = vmatpush.bf16.msra.mxu3 %v5706_v9 }
 0x575   : > { %6775 = vrot.lane.b32.xlu2 %v10797_v7, %s8178_s24  ;;  %v5693_v7 = vsel %vm2712_vm6, %v5681_v35, %v5683_v4 }
 0x576   : > { %v5715_v16 = vsel %vm1591_vm0, %v5693_v7, 0 }
 0x577   : > { %6777 = vrot.lane.b32.xlu0 %v10795_v56, %s8178_s24  ;;  %v5694_v56 = vsel %vm2712_vm6, %v5683_v4, %v5685_v61  ;;  %v6105_v36 = vpop.permute.xlu2 %6104 }
 0x578   : > { %v5718_v49 = vsel %vm1591_vm0, %v5694_v56, 0  ;;  %v5898_v44 = vpop.permute.xlu0 %5897 }
 0x579   : > { %6785 = vrot.lane.b32.xlu1 %v6322_v37, %s8178_s24  ;;  %7902 = vmatmul.msk.bf16.vlgmr.msrb.gmra.mxu0 %vm1630_vm1, %v10987_v15  ;;  %v5909_v24 = vsel %vm3081_vm7, %v5896_v39, %v5898_v44  ;;  %v5910_v23 = vsel %vm3081_vm7, %v5898_v44, %v5900_v52 }
 0x57a   : > { %7903 = vmatmul.msk.bf16.vlgmr.msrb.gmra.mxu1 %vm1630_vm1, %v10987_v15  ;;  %5772 = vmatpush.bf16.msrb.mxu0 %v5709_v40  ;;  %v5929_v43 = vsel %vm1591_vm0, %v5909_v24, 0  ;;  %v5932_v57 = vsel %vm1591_vm0, %v5910_v23, 0 }
 0x57b   : > { %5785 = vmatpush.bf16.msrb.mxu1 %v5712_v27 }
 0x57d   : > { %6779 = vrot.lane.b32.xlu2 %v10807_v22, %s8178_s24  ;;  %7904 = vmatmul.msk.bf16.vlgmr.msrb.gmra.mxu2 %vm1630_vm1, %v10987_v15  ;;  %v5695_v22 = vsel %vm2712_vm6, %v5685_v61, %v5687_v59 }
 0x57e   : > { %5798 = vmatpush.bf16.msrb.mxu2 %v5715_v16  ;;  %v5721_v30 = vsel %vm1591_vm0, %v5695_v22, 0 }
 0x57f   : > { %6783 = vrot.lane.b32.xlu0 %v10984_v19, %s8178_s24  ;;  %v5894_v19 = vpop.permute.xlu1 %5893  ;;  %v6113_v55 = vpop.permute.xlu2 %6112 }
 0x580   : > { %v5908_v32 = vsel %vm3081_vm7, %v5894_v19, %v5896_v39  ;;  %v5904_v10 = vpop.permute.xlu0 %5903 }
 0x581   : > { %7905 = vmatmul.msk.bf16.vlgmr.msrb.gmra.mxu3 %vm1630_vm1, %v10987_v15  ;;  %v5926_v17 = vsel %vm1591_vm0, %v5908_v32, 0  ;;  %v5941_v5 = vsel %vm1591_vm0, %v5904_v10, 0 }
 0x582   : > { %5811 = vmatpush.bf16.msrb.mxu3 %v5718_v49 }
 0x585   : > { %6781 = vrot.lane.b32.xlu2 %v10803_v26, %s8178_s24  ;;  %v5917_v26 = vsel %vm1591_vm0, %v5905_v2, 0 }
 0x587   : > { %v5902_v6 = vpop.permute.xlu1 %5901  ;;  %v6115_v48 = vpop.permute.xlu2 %6114 }
 0x588   : > { %v5911_v41 = vsel %vm3081_vm7, %v5900_v52, %v5902_v6  ;;  %v5912_v25 = vsel %vm3081_vm7, %v5902_v6, %v5904_v10  ;;  %v6107_v38 = vpop.permute.xlu0 %6106  ;;  %v6126_v16 = vsel %vm3450_vm8, %v6113_v55, %v6115_v48 }
 0x589   : > { %7906 = vmatmul.msk.bf16.vlgmr.msra.gmra.mxu0 %vm1630_vm1, %v10987_v15  ;;  %v5907_v15 = vsel %vm3081_vm7, %v5892_v60, %v5894_v19  ;;  %v5935_v8 = vsel %vm1591_vm0, %v5911_v41, 0  ;;  %v5938_v29 = vsel %vm1591_vm0, %v5912_v25, 0  ;;  %v6122_v51 = vsel %vm3450_vm8, %v6105_v36, %v6107_v38 }
 0x58a   : > { %7907 = vmatmul.msk.bf16.vlgmr.msra.gmra.mxu1 %vm1630_vm1, %v11055_v21  ;;  %5824 = vmatpush.bf16.msra.mxu0 %v5721_v30  ;;  %v5923_v3 = vsel %vm1591_vm0, %v5907_v15, 0  ;;  %v6134_v20 = vsel %vm1591_vm0, %v6122_v51, 0  ;;  %v6146_v59 = vsel %vm1591_vm0, %v6126_v16, 0 }
 0x58b   : > { %5837 = vmatpush.bf16.msra.mxu1 %v5724_v31 }
 0x58d   : > { %7908 = vmatmul.msk.bf16.vlgmr.msra.gmra.mxu2 %vm1630_vm1, %v11055_v21 }
 0x58e   : > { %5950 = vmatpush.bf16.msra.mxu2 %v5917_v26 }
 0x58f   : > { %v11108_v13 = vpop.f32.mrf.mxu2  ;;  %v6111_v12 = vpop.permute.xlu1 %6110 }
 0x590   : > { %v11148_v50 = vpop.permute.xlu0 %6079  ;;  %v6125_v4 = vsel %vm3450_vm8, %v6111_v12, %v6113_v55  ;;  %v6117_v22 = vpop.permute.xlu2 %6116 }
 0x591   : > { %7909 = vmatmul.msk.bf16.vlgmr.msra.gmra.mxu3 %vm1630_vm1, %v11055_v21  ;;  %v6143_v27 = vsel %vm1591_vm0, %v6125_v4, 0  ;;  %v6127_v31 = vsel %vm3450_vm8, %v6115_v48, %v6117_v22 }
 0x592   : > { %5963 = vmatpush.bf16.msra.mxu3 %v5920_v14  ;;  %v6149_v15 = vsel %vm1591_vm0, %v6127_v31, 0 }
 0x597   : > { %v5166_v54 = vpop.f32.mrf.mxu2  ;;  %v6109_v45 = vpop.permute.xlu1 %6108 }
 0x598   : > { %v6124_v35 = vsel %vm3450_vm8, %v6109_v45, %v6111_v12 }
 0x599   : > { %7910 = vmatmul.msk.bf16.vlgmr.msrb.gmra.mxu0 %vm1630_vm1, %v11055_v21  ;;  %v6140_v61 = vsel %vm1591_vm0, %v6124_v35, 0  ;;  %v6119_v7 = vpop.permute.xlu0 %6118 }
 0x59a   : > { %7911 = vmatmul.msk.bf16.vlgmr.msrb.gmra.mxu1 %vm1630_vm1, %v11055_v21  ;;  %5976 = vmatpush.bf16.msrb.mxu0 %v5923_v3  ;;  %v6128_v26 = vsel %vm3450_vm8, %v6117_v22, %v6119_v7 }
 0x59b   : > { %5989 = vmatpush.bf16.msrb.mxu1 %v5926_v17  ;;  %v6152_v54 = vsel %vm1591_vm0, %v6128_v26, 0  ;;  %v6326_v17 = vpop.permute.xlu2 %6325 }
 0x59d   : > { %7912 = vmatmul.msk.bf16.vlgmr.msrb.gmra.mxu2 %vm1630_vm1, %v11055_v21 }
 0x59e   : > { %6002 = vmatpush.bf16.msrb.mxu2 %v5929_v43 }
 0x59f   : > { %v6121_v0 = vpop.permute.xlu1 %6120 }
 0x5a0   : > { %v6158_v6 = vsel %vm1591_vm0, %v6121_v0, 0 }
 0x5a1   : > { %7913 = vmatmul.msk.bf16.vlgmr.msrb.gmra.mxu3 %vm1630_vm1, %v11055_v21  ;;  %v6328_v53 = vpop.permute.xlu0 %6327 }
 0x5a2   : > { %6015 = vmatpush.bf16.msrb.mxu3 %v5932_v57 }
 0x5a3   : > { %v6332_v25 = vpop.permute.xlu2 %6331 }
 0x5a4   : > { %v5177_v37 = vpop.f32.mrf.mxu3 }
 0x5a6   : > { %v5190_v62 = vpop.f32.mrf.mxu0 }
 0x5a7   : > { %v11131_v28 = vpop.f32.mrf.mxu1  ;;  %v6330_v32 = vpop.permute.xlu1 %6329 }
 0x5a9   : > { %7914 = vmatmul.msk.bf16.vlgmr.msra.gmra.mxu0 %vm1630_vm1, %v11055_v21  ;;  %v11194_v10 = vpop.permute.xlu0 %6296 }
 0x5aa   : > { %7915 = vmatmul.msk.bf16.vlgmr.msra.gmra.mxu1 %vm1630_vm1, %v11055_v21  ;;  %6028 = vmatpush.bf16.msra.mxu0 %v5935_v8  ;;  %v6123_v21 = vsel %vm3450_vm8, %v6107_v38, %v6109_v45  ;;  %v6344_v8 = vsel %vm3823_vm9, %v6326_v17, %v6328_v53 }
 0x5ab   : > { %6041 = vmatpush.bf16.msra.mxu1 %v5938_v29  ;;  %v6137_v46 = vsel %vm1591_vm0, %v6123_v21, 0  ;;  %v6359_v51 = vsel %vm1591_vm0, %v6344_v8, 0  ;;  %v6334_v35 = vpop.permute.xlu2 %6333 }
 0x5ac   : > { %v5179_v1 = vpop.f32.mrf.mxu3 }
 0x5ad   : > { %7916 = vmatmul.msk.bf16.vlgmr.msra.gmra.mxu2 %vm1630_vm1, %v11102_v34 }
 0x5ae   : > { %6054 = vmatpush.bf16.msra.mxu2 %v5941_v5  ;;  %v5192_v33 = vpop.f32.mrf.mxu0  ;;  %v6345_v5 = vsel %vm3823_vm9, %v6328_v53, %v6330_v32 }
 0x5af   : > { %v5205_v42 = vpop.f32.mrf.mxu1 }
 0x5b0   : > { %v11143_v58 = vpop.f32.mrf.mxu2  ;;  %v6362_v42 = vsel %vm1591_vm0, %v6345_v5, 0 }
 0x5b1   : > { %7917 = vmatmul.msk.bf16.vlgmr.msra.gmra.mxu3 %vm1630_vm1, %v11102_v34  ;;  %v6336_v33 = vpop.permute.xlu0 %6335 }
 0x5b2   : > { %6167 = vmatpush.bf16.msra.mxu3 %v6134_v20  ;;  %v6346_v20 = vsel %vm3823_vm9, %v6330_v32, %v6332_v25 }
 0x5b3   : > { %v6550_v22 = vpop.permute.xlu2 %6549 }
 0x5b4   : > { %v11150_v18 = vpop.f32.mrf.mxu3 }
 0x5b6   : > { %v11153_v47 = vpop.f32.mrf.mxu0 }
 0x5b7   : > { %v11156_v9 = vpop.f32.mrf.mxu1 }
 0x5b8   : > { %v5218_v11 = vpop.f32.mrf.mxu2 }
 0x5b9   : > { %7918 = vmatmul.msk.bf16.vlgmr.msrb.gmra.mxu0 %vm1630_vm1, %v11102_v34 }
 0x5ba   : > { %7919 = vmatmul.msk.bf16.vlgmr.msrb.gmra.mxu1 %vm1630_vm1, %v11102_v34  ;;  %6180 = vmatpush.bf16.msrb.mxu0 %v6137_v46  ;;  %v6340_v46 = vpop.permute.xlu0 %6339 }
 0x5bb   : > { %6193 = vmatpush.bf16.msrb.mxu1 %v6140_v61  ;;  %v6347_v61 = vsel %vm3823_vm9, %v6332_v25, %v6334_v35 }
 0x5bc   : > { %v5231_v40 = vpop.f32.mrf.mxu3 }
 0x5bd   : > { %7920 = vmatmul.msk.bf16.vlgmr.msrb.gmra.mxu2 %vm1630_vm1, %v11102_v34 }
 0x5be   : > { %6206 = vmatpush.bf16.msrb.mxu2 %v6143_v27  ;;  %v5244_v56 = vpop.f32.mrf.mxu0  ;;  %v6348_v27 = vsel %vm3823_vm9, %v6334_v35, %v6336_v33 }
 0x5bf   : > { %v5257_v49 = vpop.f32.mrf.mxu1 }
 0x5c0   : > { %v11169_v63 = vpop.f32.mrf.mxu2  ;;  %v6368_v49 = vsel %vm1591_vm0, %v6347_v61, 0 }
 0x5c1   : > { %7921 = vmatmul.msk.bf16.vlgmr.msrb.gmra.mxu3 %vm1630_vm1, %v11102_v34 }
 0x5c2   : > { %6219 = vmatpush.bf16.msrb.mxu3 %v6146_v59  ;;  %v6371_v59 = vsel %vm1591_vm0, %v6348_v27, 0  ;;  %v6546_v26 = vpop.permute.xlu0 %6545 }
 0x5c4   : > { %v5310_v30 = vpop.f32.mrf.mxu3 }
 0x5c5   : > { %v11175_v60 = vadd.f32 %v5310_v30, %v11108_v13  ;;  %v6129_v13 = vsel %vm3450_vm8, %v6119_v7, %v6121_v0 }
 0x5c6   : > { %v5323_v2 = vpop.f32.mrf.mxu0  ;;  %v6155_v24 = vsel %vm1591_vm0, %v6129_v13, 0  ;;  %v6342_v13 = vpop.permute.xlu2 %6341 }
 0x5c7   : > { %v11179_v39 = vadd.f32 %v5323_v2, %v5177_v37  ;;  %v5336_v14 = vpop.f32.mrf.mxu1  ;;  %v6324_v37 = vpop.permute.xlu1 %6323 }
 0x5c8   : > { %v11181_v19 = vadd.f32 %v5336_v14, %v5190_v62  ;;  %v5270_v44 = vpop.f32.mrf.mxu2 }
 0x5c9   : > { %7922 = vmatmul.msk.bf16.vlgmr.msra.gmra.mxu0 %vm1630_vm1, %v11102_v34 }
 0x5ca   : > { %7923 = vmatmul.msk.bf16.vlgmr.msra.gmra.mxu1 %vm1630_vm1, %v11102_v34  ;;  %6232 = vmatpush.bf16.msra.mxu0 %v6149_v15 }
 0x5cb   : > { %6245 = vmatpush.bf16.msra.mxu1 %v6152_v54 }
 0x5cc   : > { %v5312_v3 = vpop.f32.mrf.mxu3 }
 0x5cd   : > { %7924 = vmatmul.msk.bf16.vlgmr.msra.gmra.mxu2 %vm1630_vm1, %v11102_v34  ;;  %v6343_v34 = vsel %vm3823_vm9, %v6324_v37, %v6326_v17  ;;  %v6351_v3 = vsel %vm3823_vm9, %v6340_v46, %v6342_v13 }
 0x5ce   : > { %6258 = vmatpush.bf16.msra.mxu2 %v6155_v24  ;;  %v5325_v52 = vpop.f32.mrf.mxu0  ;;  %v6356_v1 = vsel %vm1591_vm0, %v6343_v34, 0 }
 0x5cf   : > { %v5338_v43 = vpop.f32.mrf.mxu1 }
 0x5d0   : > { %v5349_v23 = vpop.f32.mrf.mxu2 }
 0x5d1   : > { %v11197_v57 = vadd.f32 %v5349_v23, %v11131_v28  ;;  %7925 = vmatmul.msk.bf16.vlgmr.msra.gmra.mxu3 %vm1630_vm1, %v11148_v50 }
 0x5d2   : > { %6271 = vmatpush.bf16.msra.mxu3 %v6158_v6  ;;  %v6552_v6 = vpop.permute.xlu0 %6551 }
 0x5d4   : > { %v5362_v36 = vpop.f32.mrf.mxu3 }
 0x5d5   : > { %v11202_v41 = vadd.f32 %v5362_v36, %v11143_v58  ;;  %v6338_v58 = vpop.permute.xlu1 %6337 }
 0x5d6   : > { %v5375_v62 = vpop.f32.mrf.mxu0  ;;  %v6350_v31 = vsel %vm3823_vm9, %v6338_v58, %v6340_v46 }
 0x5d7   : > { %v11207_v12 = vadd.f32 %v5375_v62, %v11150_v18  ;;  %v5388_v28 = vpop.f32.mrf.mxu1  ;;  %v6377_v14 = vsel %vm1591_vm0, %v6350_v31, 0  ;;  %v6567_v62 = vsel %vm4228_vm10, %v6550_v22, %v6552_v6 }
 0x5d8   : > { %v11210_v38 = vadd.f32 %v5388_v28, %v11153_v47  ;;  %v5351_v29 = vpop.f32.mrf.mxu2  ;;  %v6365_v47 = vsel %vm1591_vm0, %v6346_v20, 0  ;;  %v6558_v28 = vpop.permute.xlu2 %6557 }
 0x5d9   : > { %7926 = vmatmul.msk.bf16.vlgmr.msrb.gmra.mxu0 %vm1630_vm1, %v11148_v50  ;;  %v6584_v29 = vsel %vm1591_vm0, %v6567_v62, 0 }
 0x5da   : > { %7927 = vmatmul.msk.bf16.vlgmr.msrb.gmra.mxu1 %vm1630_vm1, %v11148_v50  ;;  %6389 = vmatpush.bf16.msrb.mxu0 %v6356_v1  ;;  %v6554_v5 = vpop.permute.xlu0 %6553 }
 0x5db   : > { %6402 = vmatpush.bf16.msrb.mxu1 %v6359_v51 }
 0x5dc   : > { %v5364_v55 = vpop.f32.mrf.mxu3 }
 0x5dd   : > { %7928 = vmatmul.msk.bf16.vlgmr.msrb.gmra.mxu2 %vm1630_vm1, %v11148_v50  ;;  %v6548_v7 = vpop.permute.xlu1 %6547 }
 0x5de   : > { %6415 = vmatpush.bf16.msrb.mxu2 %v6362_v42  ;;  %v5377_v45 = vpop.f32.mrf.mxu0  ;;  %v6565_v24 = vsel %vm4228_vm10, %v6546_v26, %v6548_v7  ;;  %v6568_v42 = vsel %vm4228_vm10, %v6552_v6, %v6554_v5 }
 0x5df   : > { %v5390_v18 = vpop.f32.mrf.mxu1  ;;  %v6578_v37 = vsel %vm1591_vm0, %v6565_v24, 0 }
 0x5e0   : > { %v5401_v21 = vpop.f32.mrf.mxu2 }
 0x5e1   : > { %v11225_v11 = vadd.f32 %v5401_v21, %v11156_v9  ;;  %7929 = vmatmul.msk.bf16.vlgmr.msrb.gmra.mxu3 %vm1630_vm1, %v11148_v50 }
 0x5e2   : > { %6428 = vmatpush.bf16.msrb.mxu3 %v6365_v47  ;;  %v6587_v47 = vsel %vm1591_vm0, %v6568_v42, 0 }
 0x5e4   : > { %v5414_v48 = vpop.f32.mrf.mxu3 }
 0x5e5   : > { %v11230_v4 = vadd.f32 %v5414_v48, %v11169_v63  ;;  %v6349_v63 = vsel %vm3823_vm9, %v6336_v33, %v6338_v58  ;;  %v11252_v44 = vpop.permute.xlu1 %6518  ;;  %v6768_v48 = vpop.permute.xlu2 %6767 }
 0x5e6   : > { %v5518_v40 = vpop.f32.mrf.mxu0 }
 0x5e7   : > { %v11235_v16 = vadd.f32 %v5518_v40, %v11175_v60  ;;  %v5531_v9 = vpop.f32.mrf.mxu1  ;;  %v6374_v60 = vsel %vm1591_vm0, %v6349_v63, 0 }
 0x5e8   : > { %v11238_v56 = vadd.f32 %v5531_v9, %v11179_v39  ;;  %v5403_v0 = vpop.f32.mrf.mxu2 }
 0x5e9   : > { %7930 = vmatmul.msk.bf16.vlgmr.msra.gmra.mxu0 %vm1630_vm1, %v11148_v50 }
 0x5ea   : > { %7931 = vmatmul.msk.bf16.vlgmr.msra.gmra.mxu1 %vm1630_vm1, %v11148_v50  ;;  %6441 = vmatpush.bf16.msra.mxu0 %v6368_v49  ;;  %v6770_v49 = vpop.permute.xlu0 %6769 }
 0x5eb   : > { %6454 = vmatpush.bf16.msra.mxu1 %v6371_v59 }
 0x5ec   : > { %v5416_v30 = vpop.f32.mrf.mxu3 }
 0x5ed   : > { %7932 = vmatmul.msk.bf16.vlgmr.msra.gmra.mxu2 %vm1630_vm1, %v11148_v50  ;;  %v6556_v36 = vpop.permute.xlu1 %6555  ;;  %v6564_v59 = vpop.permute.xlu2 %6563 }
 0x5ee   : > { %6467 = vmatpush.bf16.msra.mxu2 %v6374_v60  ;;  %v5520_v2 = vpop.f32.mrf.mxu0  ;;  %v6569_v20 = vsel %vm4228_vm10, %v6554_v5, %v6556_v36  ;;  %v6570_v35 = vsel %vm4228_vm10, %v6556_v36, %v6558_v28 }
 0x5ef   : > { %v5533_v53 = vpop.f32.mrf.mxu1 }
 0x5f0   : > { %v5544_v39 = vpop.f32.mrf.mxu2 }
 0x5f1   : > { %v11255_v15 = vadd.f32 %v5544_v39, %v11181_v19  ;;  %7933 = vmatmul.msk.bf16.vlgmr.msra.gmra.mxu3 %vm1630_vm1, %v11148_v50  ;;  %v6380_v50 = vsel %vm1591_vm0, %v6351_v3, 0 }
 0x5f2   : > { %6480 = vmatpush.bf16.msra.mxu3 %v6377_v14  ;;  %v11334_v3 = vpop.permute.xlu0 %6740 }
 0x5f4   : > { %v5557_v32 = vpop.f32.mrf.mxu3 }
 0x5f5   : > { %v11260_v54 = vadd.f32 %v5557_v32, %v11197_v57  ;;  %v6566_v57 = vsel %vm4228_vm10, %v6548_v7, %v6550_v22  ;;  %v6560_v33 = vpop.permute.xlu1 %6559  ;;  %v6787_v32 = vsel %vm4603_vm11, %v6768_v48, %v6770_v49  ;;  %v6776_v24 = vpop.permute.xlu2 %6775 }
 0x5f6   : > { %v5570_v17 = vpop.f32.mrf.mxu0  ;;  %v6581_v34 = vsel %vm1591_vm0, %v6566_v57, 0  ;;  %v6571_v61 = vsel %vm4228_vm10, %v6558_v28, %v6560_v33 }
 0x5f7   : > { %v11265_v52 = vadd.f32 %v5570_v17, %v11202_v41  ;;  %v5583_v43 = vpop.f32.mrf.mxu1  ;;  %v6596_v9 = vsel %vm1591_vm0, %v6571_v61, 0 }
 0x5f8   : > { %v11268_v19 = vadd.f32 %v5583_v43, %v11207_v12  ;;  %v5546_v23 = vpop.f32.mrf.mxu2 }
 0x5f9   : > { %7934 = vmatmul.msk.bf16.vlgmr.msrb.gmra.mxu0 %vm1630_vm1, %v11194_v10 }
 0x5fa   : > { %7935 = vmatmul.msk.bf16.vlgmr.msrb.gmra.mxu1 %vm1630_vm1, %v11194_v10  ;;  %6493 = vmatpush.bf16.msrb.mxu0 %v6380_v50  ;;  %v6778_v62 = vpop.permute.xlu0 %6777 }
 0x5fb   : > { %6611 = vmatpush.bf16.msrb.mxu1 %v6578_v37  ;;  %v6791_v5 = vsel %vm4603_vm11, %v6776_v24, %v6778_v62 }
 0x5fc   : > { %v5559_v41 = vpop.f32.mrf.mxu3 }
 0x5fd   : > { %7936 = vmatmul.msk.bf16.vlgmr.msrb.gmra.mxu2 %vm1630_vm1, %v11194_v10  ;;  %v6562_v27 = vpop.permute.xlu1 %6561  ;;  %v6780_v28 = vpop.permute.xlu2 %6779 }
 0x5fe   : > { %6624 = vmatpush.bf16.msrb.mxu2 %v6581_v34  ;;  %v5572_v25 = vpop.f32.mrf.mxu0  ;;  %v6572_v30 = vsel %vm4228_vm10, %v6560_v33, %v6562_v27  ;;  %v6573_v31 = vsel %vm4228_vm10, %v6562_v27, %v6564_v59  ;;  %v6812_v33 = vsel %vm1591_vm0, %v6791_v5, 0 }
 0x5ff   : > { %v5585_v8 = vpop.f32.mrf.mxu1  ;;  %v6599_v39 = vsel %vm1591_vm0, %v6572_v30, 0 }
 0x600   : > { %v5596_v12 = vpop.f32.mrf.mxu2 }
 0x601   : > { %v11283_v1 = vadd.f32 %v5596_v12, %v11210_v38  ;;  %7937 = vmatmul.msk.bf16.vlgmr.msrb.gmra.mxu3 %vm1630_vm1, %v11194_v10 }
 0x602   : > { %6637 = vmatpush.bf16.msrb.mxu3 %v6584_v29 }
 0x604   : > { %v5609_v51 = vpop.f32.mrf.mxu3 }
 0x605   : > { %v11288_v55 = vadd.f32 %v5609_v51, %v11225_v11  ;;  %v6590_v11 = vsel %vm1591_vm0, %v6569_v20, 0  ;;  %v6772_v14 = vpop.permute.xlu1 %6771  ;;  %v6952_v20 = vld [vmem:[%s11462_s8] sm:$0xf] }
 0x606   : > { %v5622_v58 = vpop.f32.mrf.mxu0  ;;  %v6788_v17 = vsel %vm4603_vm11, %v6770_v49, %v6772_v14  ;;  %6955 = vperm.xlu0 %8153, %v6952_v20  }
 0x607   : > { %v11293_v45 = vadd.f32 %v5622_v58, %v11230_v4  ;;  %v5735_v38 = vpop.f32.mrf.mxu1  ;;  %v6593_v4 = vsel %vm1591_vm0, %v6570_v35, 0  ;;  %v6803_v23 = vsel %vm1591_vm0, %v6788_v17, 0  ;;  %v6784_v35 = vpop.permute.xlu0 %6783 }
 0x608   : > { %v11296_v18 = vadd.f32 %v5735_v38, %v11235_v16  ;;  %v5598_v21 = vpop.f32.mrf.mxu2 }
 0x609   : > { %7938 = vmatmul.msk.bf16.vlgmr.msra.gmra.mxu0 %vm1630_vm1, %v11194_v10 }
 0x60a   : > { %7939 = vmatmul.msk.bf16.vlgmr.msra.gmra.mxu1 %vm1630_vm1, %v11194_v10  ;;  %6650 = vmatpush.bf16.msra.mxu0 %v6587_v47  ;;  %v6782_v47 = vpop.permute.xlu2 %6781 }
 0x60b   : > { %6663 = vmatpush.bf16.msra.mxu1 %v6590_v11  ;;  %v6794_v61 = vsel %vm4603_vm11, %v6782_v47, %v6784_v35 }
 0x60c   : > { %v5611_v46 = vpop.f32.mrf.mxu3 }
 0x60d   : > { %7940 = vmatmul.msk.bf16.vlgmr.msra.gmra.mxu2 %vm1630_vm1, %v11194_v10  ;;  %v6774_v6 = vpop.permute.xlu1 %6773  ;;  %v6793_v46 = vsel %vm4603_vm11, %v6780_v28, %v6782_v47 }
 0x60e   : > { %6676 = vmatpush.bf16.msra.mxu2 %v6593_v4  ;;  %v5624_v40 = vpop.f32.mrf.mxu0  ;;  %v6789_v36 = vsel %vm4603_vm11, %v6772_v14, %v6774_v6  ;;  %v6790_v34 = vsel %vm4603_vm11, %v6774_v6, %v6776_v24 }
 0x60f   : > { %v5737_v7 = vpop.f32.mrf.mxu1  ;;  %v6806_v29 = vsel %vm1591_vm0, %v6789_v36, 0 }
 0x610   : > { %v5748_v16 = vpop.f32.mrf.mxu2 }
 0x611   : > { %v11311_v0 = vadd.f32 %v5748_v16, %v11238_v56  ;;  %7941 = vmatmul.msk.bf16.vlgmr.msra.gmra.mxu3 %vm1630_vm1, %v11194_v10  ;;  %v6818_v16 = vsel %vm1591_vm0, %v6793_v46, 0 }
 0x612   : > { %6689 = vmatpush.bf16.msra.mxu3 %v6596_v9 }
 0x614   : > { %v5761_v63 = vpop.f32.mrf.mxu3 }
 0x615   : > { %v11316_v22 = vadd.f32 %v5761_v63, %v11255_v15  ;;  %v6602_v15 = vsel %vm1591_vm0, %v6573_v31, 0  ;;  %v6786_v9 = vpop.permute.xlu1 %6785 }
 0x616   : > { %v5774_v60 = vpop.f32.mrf.mxu0  ;;  %v6795_v49 = vsel %vm4603_vm11, %v6784_v35, %v6786_v9 }
 0x617   : > { %v11321_v2 = vadd.f32 %v5774_v60, %v11260_v54  ;;  %v5787_v56 = vpop.f32.mrf.mxu1  ;;  %v6800_v54 = vsel %vm1591_vm0, %v6787_v32, 0  ;;  %v6824_v59 = vsel %vm1591_vm0, %v6795_v49, 0 }
 0x618   : > { %v11324_v26 = vadd.f32 %v5787_v56, %v11265_v52  ;;  %v5750_v53 = vpop.f32.mrf.mxu2 }
 0x619   : > { %7942 = vmatmul.msk.bf16.vlgmr.msrb.gmra.mxu0 %vm1630_vm1, %v11194_v10 }
 0x61a   : > { %7943 = vmatmul.msk.bf16.vlgmr.msrb.gmra.mxu1 %vm1630_vm1, %v11252_v44  ;;  %6702 = vmatpush.bf16.msrb.mxu0 %v6599_v39 }
 0x61b   : > { %6715 = vmatpush.bf16.msrb.mxu1 %v6602_v15 }
 0x61c   : > { %v5763_v13 = vpop.f32.mrf.mxu3 }
 0x61d   : > { %7944 = vmatmul.msk.bf16.vlgmr.msrb.gmra.mxu2 %vm1630_vm1, %v11252_v44 }
 0x61e   : > { %6833 = vmatpush.bf16.msrb.mxu2 %v6800_v54  ;;  %v5776_v10 = vpop.f32.mrf.mxu0 }
 0x61f   : > { %v5789_v52 = vpop.f32.mrf.mxu1 }
 0x620   : > { %v5800_v43 = vpop.f32.mrf.mxu2 }
 0x621   : > { %v11341_v50 = vadd.f32 %v5800_v43, %v11268_v19  ;;  %7945 = vmatmul.msk.bf16.vlgmr.msrb.gmra.mxu3 %vm1630_vm1, %v11252_v44 }
 0x622   : > { %6846 = vmatpush.bf16.msrb.mxu3 %v6803_v23 }
 0x624   : > { %v5813_v57 = vpop.f32.mrf.mxu3 }
 0x625   : > { %v5849_v37 = vadd.f32 %v5813_v57, %v11283_v1  ;;  %v6809_v1 = vsel %vm1591_vm0, %v6790_v34, 0 }
 0x626   : > { %v5826_v41 = vpop.f32.mrf.mxu0 }
 0x627   : > { %v5850_v25 = vadd.f32 %v5826_v41, %v11288_v55  ;;  %v5839_v8 = vpop.f32.mrf.mxu1  ;;  %v6792_v55 = vsel %vm4603_vm11, %v6778_v62, %v6780_v28 }
 0x628   : > { %v11350_v19 = vadd.f32 %v5839_v8, %v11293_v45  ;;  %v5802_v12 = vpop.f32.mrf.mxu2  ;;  %v6815_v38 = vsel %vm1591_vm0, %v6792_v55, 0 }
 0x629   : > { %7946 = vmatmul.msk.bf16.vlgmr.msra.gmra.mxu0 %vm1630_vm1, %v11252_v44 }
 0x62a   : > { %7947 = vmatmul.msk.bf16.vlgmr.msra.gmra.mxu1 %vm1630_vm1, %v11252_v44  ;;  %6859 = vmatpush.bf16.msra.mxu0 %v6806_v29 }
 0x62b   : > { %6872 = vmatpush.bf16.msra.mxu1 %v6809_v1 }
 0x62c   : > { %v5815_v51 = vpop.f32.mrf.mxu3 }
 0x62d   : > { %7948 = vmatmul.msk.bf16.vlgmr.msra.gmra.mxu2 %vm1630_vm1, %v11252_v44 }
 0x62e   : > { %6885 = vmatpush.bf16.msra.mxu2 %v6812_v33  ;;  %v5828_v42 = vpop.f32.mrf.mxu0 }
 0x62f   : > { %v5841_v58 = vpop.f32.mrf.mxu1 }
 0x630   : > { %v5952_v45 = vpop.f32.mrf.mxu2 }
 0x631   : > { %v6060_v21 = vadd.f32 %v5952_v45, %v11296_v18  ;;  %7949 = vmatmul.msk.bf16.vlgmr.msra.gmra.mxu3 %vm1630_vm1, %v11252_v44 }
 0x632   : > { %6898 = vmatpush.bf16.msra.mxu3 %v6815_v38 }
 0x634   : > { %v5965_v11 = vpop.f32.mrf.mxu3 }
 0x635   : > { %v6061_v48 = vadd.f32 %v5965_v11, %v11311_v0  ;;  %v6821_v0 = vsel %vm1591_vm0, %v6794_v61, 0 }
 0x636   : > { %v5978_v4 = vpop.f32.mrf.mxu0 }
 0x637   : > { %v6062_v40 = vadd.f32 %v5978_v4, %v11316_v22  ;;  %v5991_v27 = vpop.f32.mrf.mxu1 }
 0x638   : > { %v6063_v7 = vadd.f32 %v5991_v27, %v11321_v2  ;;  %v5954_v18 = vpop.f32.mrf.mxu2 }
 0x639   : > { %7950 = vmatmul.msk.bf16.vlgmr.msrb.gmra.mxu0 %vm1630_vm1, %v11252_v44 }
 0x63a   : > { %7951 = vmatmul.msk.bf16.vlgmr.msrb.gmra.mxu1 %vm1630_vm1, %v11252_v44  ;;  %6911 = vmatpush.bf16.msrb.mxu0 %v6818_v16 }
 0x63b   : > { %6924 = vmatpush.bf16.msrb.mxu1 %v6821_v0 }
 0x63c   : > { %v5967_v63 = vpop.f32.mrf.mxu3 }
 0x63d   : > { %7952 = vmatmul.msk.bf16.vlgmr.msrb.gmra.mxu2 %vm1630_vm1, %v11334_v3 }
 0x63e   : > { %6937 = vmatpush.bf16.msrb.mxu2 %v6824_v59  ;;  %v5980_v22 = vpop.f32.mrf.mxu0 }
 0x63f   : > { %v5993_v30 = vpop.f32.mrf.mxu1 }
 0x640   : > { %v6004_v60 = vpop.f32.mrf.mxu2 }
 0x641   : > { %v6064_v31 = vadd.f32 %v6004_v60, %v11324_v26  ;;  %7953 = vmatmul.msk.bf16.vlgmr.msrb.gmra.mxu3 %vm1630_vm1, %v11334_v3 }
 0x644   : > { %v6017_v2 = vpop.f32.mrf.mxu3 }
 0x645   : > { %v6065_v44 = vadd.f32 %v6017_v2, %v11341_v50 }
 0x646   : > { %v6030_v56 = vpop.f32.mrf.mxu0 }
 0x647   : > { %v6066_v53 = vadd.f32 %v6030_v56, %v5849_v37  ;;  %v6043_v39 = vpop.f32.mrf.mxu1 }
 0x648   : > { %v6067_v14 = vadd.f32 %v6043_v39, %v5850_v25  ;;  %v6006_v15 = vpop.f32.mrf.mxu2 }
 0x649   : > { %7954 = vmatmul.msk.bf16.vlgmr.msra.gmra.mxu0 %vm1630_vm1, %v11334_v3 }
 0x64a   : > { %7955 = vmatmul.msk.bf16.vlgmr.msra.gmra.mxu1 %vm1630_vm1, %v11334_v3 }
 0x64c   : > { %v6019_v32 = vpop.f32.mrf.mxu3 }
 0x64d   : > { %7956 = vmatmul.msk.bf16.vlgmr.msra.gmra.mxu2 %vm1630_vm1, %v11334_v3 }
 0x64e   : > { %v6032_v26 = vpop.f32.mrf.mxu0 }
 0x64f   : > { %v6045_v13 = vpop.f32.mrf.mxu1 }
 0x650   : > { %v6056_v54 = vpop.f32.mrf.mxu2 }
 0x651   : > { %v6068_v17 = vadd.f32 %v6056_v54, %v11350_v19  ;;  %7957 = vmatmul.msk.bf16.vlgmr.msra.gmra.mxu3 %vm1630_vm1, %v11334_v3 }
 0x654   : > { %v6169_v10 = vpop.f32.mrf.mxu3 }
 0x655   : > { %v6277_v24 = vadd.f32 %v6169_v10, %v6060_v21 }
 0x656   : > { %v6182_v52 = vpop.f32.mrf.mxu0 }
 0x657   : > { %v6278_v43 = vadd.f32 %v6182_v52, %v6061_v48  ;;  %v6195_v23 = vpop.f32.mrf.mxu1 }
 0x658   : > { %v6279_v50 = vadd.f32 %v6195_v23, %v6062_v40  ;;  %v6058_v6 = vpop.f32.mrf.mxu2 }
 0x659   : > { %7958 = vmatmul.msk.bf16.vlgmr.msrb.gmra.mxu0 %vm1630_vm1, %v11334_v3 }
 0x65a   : > { %7959 = vmatmul.msk.bf16.vlgmr.msrb.gmra.mxu1 %vm1630_vm1, %v11334_v3 }
 0x65c   : > { %v6171_v57 = vpop.f32.mrf.mxu3 }
 0x65d   : > { %7960 = vmatmul.msk.bf16.vlgmr.msrb.gmra.mxu2 %vm1630_vm1, %v11334_v3  ;;  %vm7000_vm1 = vcmask 502784  }
 0x65e   : > { %v6184_v37 = vpop.f32.mrf.mxu0 }
 0x65f   : > { %v6197_v36 = vpop.f32.mrf.mxu1 }
 0x660   : > { %v6208_v41 = vpop.f32.mrf.mxu2 }
 0x661   : > { %v11404_v34 = vadd.f32 %v6208_v41, %v6063_v7 }
 0x664   : > { %v6221_v62 = vpop.f32.mrf.mxu3 }
 0x665   : > { %v6281_v25 = vadd.f32 %v6221_v62, %v6064_v31 }
 0x666   : > { %v6234_v8 = vpop.f32.mrf.mxu0 }
 0x667   : > { %v6282_v19 = vadd.f32 %v6234_v8, %v6065_v44  ;;  %v6247_v12 = vpop.f32.mrf.mxu1 }
 0x668   : > { %v6283_v28 = vadd.f32 %v6247_v12, %v6066_v53  ;;  %v6210_v29 = vpop.f32.mrf.mxu2 }
 0x66c   : > { %v6223_v1 = vpop.f32.mrf.mxu3 }
 0x66e   : > { %v6236_v5 = vpop.f32.mrf.mxu0 }
 0x66f   : > { %v6249_v51 = vpop.f32.mrf.mxu1 }
 0x670   : > { %v6260_v33 = vpop.f32.mrf.mxu2 }
 0x671   : > { %v11406_v55 = vadd.f32 %v6260_v33, %v6067_v14 }
 0x674   : > { %v6273_v42 = vpop.f32.mrf.mxu3 }
 0x675   : > { %v6285_v3 = vadd.f32 %v6273_v42, %v6068_v17 }
 0x676   : > { %v6391_v58 = vpop.f32.mrf.mxu0 }
 0x677   : > { %v6499_v20 = vadd.f32 %v6391_v58, %v6277_v24  ;;  %v6404_v45 = vpop.f32.mrf.mxu1 }
 0x678   : > { %v6500_v38 = vadd.f32 %v6404_v45, %v6278_v43  ;;  %v6262_v21 = vpop.f32.mrf.mxu2 }
 0x67c   : > { %v6275_v47 = vpop.f32.mrf.mxu3 }
 0x67e   : > { %v6393_v35 = vpop.f32.mrf.mxu0 }
 0x67f   : > { %v6406_v11 = vpop.f32.mrf.mxu1 }
 0x680   : > { %v6417_v48 = vpop.f32.mrf.mxu2 }
 0x681   : > { %v6501_v46 = vadd.f32 %v6417_v48, %v6279_v50 }
 0x684   : > { %v6430_v4 = vpop.f32.mrf.mxu3 }
 0x685   : > { %v6502_v62 = vadd.f32 %v6430_v4, %v11404_v34 }
 0x686   : > { %v6443_v61 = vpop.f32.mrf.mxu0 }
 0x687   : > { %v11408_v40 = vadd.f32 %v6443_v61, %v6281_v25  ;;  %v6456_v27 = vpop.f32.mrf.mxu1  ;;  %v11419_v25 = vpop.permute.xlu0 %6955 }
 0x688   : > { %v11410_v7 = vadd.f32 %v6456_v27, %v6282_v19  ;;  %v6419_v18 = vpop.f32.mrf.mxu2 }
 0x68c   : > { %v6432_v16 = vpop.f32.mrf.mxu3 }
 0x68e   : > { %v6445_v9 = vpop.f32.mrf.mxu0 }
 0x68f   : > { %v6458_v49 = vpop.f32.mrf.mxu1 }
 0x690   : > { %v6469_v0 = vpop.f32.mrf.mxu2 }
 0x691   : > { %v11412_v63 = vadd.f32 %v6469_v0, %v6283_v28 }
 0x694   : > { %v6482_v59 = vpop.f32.mrf.mxu3 }
 0x695   : > { %v6506_v49 = vadd.f32 %v6482_v59, %v11406_v55 }
 0x696   : > { %v6495_v22 = vpop.f32.mrf.mxu0 }
 0x697   : > { %v11414_v30 = vadd.f32 %v6495_v22, %v6285_v3  ;;  %v6613_v60 = vpop.f32.mrf.mxu1 }
 0x698   : > { %v6471_v31 = vpop.f32.mrf.mxu2  ;;  %v6721_v37 = vadd.f32 %v6613_v60, %v6499_v20 }
 0x69c   : > { %v6484_v2 = vpop.f32.mrf.mxu3 }
 0x69e   : > { %v6497_v44 = vpop.f32.mrf.mxu0 }
 0x69f   : > { %v6615_v56 = vpop.f32.mrf.mxu1 }
 0x6a0   : > { %v6626_v53 = vpop.f32.mrf.mxu2 }
 0x6a1   : > { %v6722_v36 = vadd.f32 %v6626_v53, %v6500_v38 }
 0x6a4   : > { %v6639_v39 = vpop.f32.mrf.mxu3 }
 0x6a5   : > { %v6723_v19 = vadd.f32 %v6639_v39, %v6501_v46 }
 0x6a6   : > { %v6652_v14 = vpop.f32.mrf.mxu0 }
 0x6a7   : > { %v6665_v15 = vpop.f32.mrf.mxu1  ;;  %v6724_v28 = vadd.f32 %v6652_v14, %v6502_v62 }
 0x6a8   : > { %v6628_v32 = vpop.f32.mrf.mxu2  ;;  %v6725_v18 = vadd.f32 %v6665_v15, %v11408_v40 }
 0x6ac   : > { %v6641_v26 = vpop.f32.mrf.mxu3 }
 0x6ae   : > { %v6654_v13 = vpop.f32.mrf.mxu0 }
 0x6af   : > { %v6667_v54 = vpop.f32.mrf.mxu1 }
 0x6b0   : > { %v6678_v17 = vpop.f32.mrf.mxu2 }
 0x6b1   : > { %v6726_v16 = vadd.f32 %v6678_v17, %v11410_v7 }
 0x6b4   : > { %v6691_v10 = vpop.f32.mrf.mxu3 }
 0x6b5   : > { %v6727_v22 = vadd.f32 %v6691_v10, %v11412_v63 }
 0x6b6   : > { %v6704_v24 = vpop.f32.mrf.mxu0 }
 0x6b7   : > { %v11416_v52 = vpop.f32.mrf.mxu1  ;;  %v6728_v31 = vadd.f32 %v6704_v24, %v6506_v49 }
 0x6b8   : > { %v6680_v43 = vpop.f32.mrf.mxu2  ;;  %v6729_v24 = vadd.f32 %v11416_v52, %v11414_v30 }
 0x6bc   : > { %v6693_v23 = vpop.f32.mrf.mxu3 }
 0x6be   : > { %v6706_v50 = vpop.f32.mrf.mxu0 }
 0x6bf   : > { %v6719_v6 = vpop.f32.mrf.mxu1 }
 0x6c0   : > { %v6835_v57 = vpop.f32.mrf.mxu2 }
 0x6c1   : > { %v6943_v41 = vadd.f32 %v6835_v57, %v6721_v37 }
 0x6c3   : > { %v6958_v1 = vadd.f32 %v11419_v25, %v6943_v41 }
 0x6c4   : > { %v6848_v8 = vpop.f32.mrf.mxu3 }
 0x6c5   : > { %v6944_v12 = vadd.f32 %v6848_v8, %v6722_v36  ;;  %v6967_v45 = vmax.f32 %v6958_v1, 0.0 }
 0x6c6   : > { %v6861_v29 = vpop.f32.mrf.mxu0 }
 0x6c7   : > { %v6959_v5 = vadd.f32 %v11419_v25, %v6944_v12  ;;  %v6945_v51 = vadd.f32 %v6861_v29, %v6723_v19  ;;  %v6874_v33 = vpop.f32.mrf.mxu1 }
 0x6c8   : > { %v6946_v42 = vadd.f32 %v6874_v33, %v6724_v28  ;;  %v6837_v3 = vpop.f32.mrf.mxu2 }
 0x6c9   : > { %v6968_v58 = vmax.f32 %v6959_v5, 0.0  ;;  %v6960_v20 = vadd.f32 %v11419_v25, %v6945_v51 }
 0x6ca   : > { %v6961_v34 = vadd.f32 %v11419_v25, %v6946_v42 }
 0x6cb   : > { %v6984_v38 = vrot.slane %v6968_v58, 4  ;;  %v6969_v11 = vmax.f32 %v6960_v20, 0.0 }
 0x6cc   : > { %v6970_v21 = vmax.f32 %v6961_v34, 0.0  ;;  %v6850_v47 = vpop.f32.mrf.mxu3 }
 0x6cd   : > { %v6988_v35 = vsel %vm1591_vm0, %v6967_v45, %v6984_v38 }
 0x6ce   : > { %6996 = vst [vmem:[%s11429_s27] sm:$0xff] %v6988_v35  ;;  %v6985_v48 = vrot.slane %v6970_v21, 4  ;;  %v6863_v46 = vpop.f32.mrf.mxu0 }
 0x6cf   : > { %v6876_v4 = vpop.f32.mrf.mxu1 }
 0x6d0   : > { %v6989_v61 = vsel %vm1591_vm0, %v6969_v11, %v6985_v48  ;;  %v6887_v27 = vpop.f32.mrf.mxu2 }
 0x6d1   : > { %6997 = vst [vmem:[%s11429_s27 + $0x8] sm:$0xff] %v6989_v61  ;;  %v6947_v9 = vadd.f32 %v6887_v27, %v6725_v18 }
 0x6d3   : > { %v6962_v44 = vadd.f32 %v11419_v25, %v6947_v9 }
 0x6d4   : > { %v6900_v0 = vpop.f32.mrf.mxu3 }
 0x6d5   : > { %v6948_v60 = vadd.f32 %v6900_v0, %v6726_v16  ;;  %v6971_v59 = vmax.f32 %v6962_v44, 0.0 }
 0x6d6   : > { %v6913_v2 = vpop.f32.mrf.mxu0 }
 0x6d7   : > { %v6963_v56 = vadd.f32 %v11419_v25, %v6948_v60  ;;  %v6949_v53 = vadd.f32 %v6913_v2, %v6727_v22  ;;  %v6926_v39 = vpop.f32.mrf.mxu1 }
 0x6d8   : > { %v6950_v40 = vadd.f32 %v6926_v39, %v6728_v31  ;;  %v6889_v14 = vpop.f32.mrf.mxu2 }
 0x6d9   : > { %v6972_v15 = vmax.f32 %v6963_v56, 0.0  ;;  %v6964_v7 = vadd.f32 %v11419_v25, %v6949_v53 }
 0x6da   : > { %v6965_v55 = vadd.f32 %v11419_v25, %v6950_v40 }
 0x6db   : > { %v6986_v63 = vrot.slane %v6972_v15, 4  ;;  %v6973_v54 = vmax.f32 %v6964_v7, 0.0 }
 0x6dc   : > { %v6974_v32 = vmax.f32 %v6965_v55, 0.0  ;;  %v6902_v26 = vpop.f32.mrf.mxu3 }
 0x6dd   : > { %v6990_v13 = vsel %vm1591_vm0, %v6971_v59, %v6986_v63 }
 0x6de   : > { %6998 = vst [vmem:[%s11429_s27 + $0x10] sm:$0xff] %v6990_v13  ;;  %v6987_v17 = vrot.slane %v6974_v32, 4  ;;  %v6915_v10 = vpop.f32.mrf.mxu0 }
 0x6df   : > { %v6928_v43 = vpop.f32.mrf.mxu1 }
 0x6e0   : > { %v6991_v23 = vsel %vm1591_vm0, %v6973_v54, %v6987_v17  ;;  %v6939_v50 = vpop.f32.mrf.mxu2 }
 0x6e1   : > { %6999 = vst [vmem:[%s11429_s27 + $0x18] sm:$0xff] %v6991_v23  ;;  %v6951_v6 = vadd.f32 %v6939_v50, %v6729_v24 }
 0x6e3   : > { %v6966_v57 = vadd.f32 %v11419_v25, %v6951_v6 }
 0x6e5   : > { %v6975_v37 = vmax.f32 %v6966_v57, 0.0 }
 0x6e7   : > { %7001 = vst.msk [vmem:[%s11429_s27 + $0x20] sm:$0xf] %vm7000_vm1, %v6975_v37 }
 0x6e8   : > { %v6941_v36 = vpop.f32.mrf.mxu2 }
 0x6e9 PF: > { %s19_s30 = sadd.s32 1, %s8162_s30  }
 0x6ea   : > { %p16_p4 = scmp.ge.s32.totalorder %s19_s30, 4  }
 0x6ec   :  { %18 = sbr.rel (!%p16_p4) target bundleno = 1 (0x1), region = 89 }

</bundles_post_ra>
